<compile_context>
chip_gen: v7x
topology: tpu7x:2x2x1
jax: 0.10.0
libtpu: 0.0.40
codegen_flags: <defaults>
</compile_context>

<pallas_src>
import functools

import jax
import jax.numpy as jnp
from jax import lax
from jax.experimental import pallas as pl
from jax.experimental.pallas import tpu as pltpu

BN_EPS = 1e-5


# --------------------------------- fused kernel ---------------------------------
def _fused_conv_block_kernel(x_ref, b1_ref, s1_ref, t1_ref, b2_ref, s2_ref, t2_ref,
                             out_ref, pad1_ref, pad2_ref, col1_ref, col2_ref,
                             *, NB, D, H):
    """Fused (conv3x3x3 + BN + ReLU) x 2 for NB batch elements.

    x_ref   : (NB, D, H, W*Cin)        bf16  input, W and C merged into lanes
    b1_ref  : (9*W*Cin,  W*Cout)       bf16  banded conv1 weights stacked along K
    s1_ref  : (1, W*Cout)              f32   folded BN1 scale (tiled across W)
    t1_ref  : (1, W*Cout)              f32   folded BN1 shift
    b2_ref  : (9*W*Cout, W*Cout)       bf16  banded conv2 weights stacked along K
    out_ref : (NB, D, H, W*Cout)       f32
    pad1_ref: (NB, D+2, H+2, W*Cin)    bf16  scratch (D/H halo of conv1)
    pad2_ref: (NB, D+2, H+2, W*Cout)   bf16  scratch (D/H halo of conv2)
    col1_ref: (NB*D*H, 9*W*Cin)        bf16  im2col staging, conv1
    col2_ref: (NB*D*H, 9*W*Cout)       bf16  im2col staging, conv2
    """
    K1 = pad1_ref.shape[-1]      # W*Cin
    K2 = pad2_ref.shape[-1]      # W*Cout
    WCout = out_ref.shape[-1]    # W*Cout
    M = NB * D * H

    # ---- zero ONLY the halo faces, and only once (scratch persists across steps) ----
    @pl.when(pl.program_id(0) == 0)
    def _init_halos():
        for pad_ref, K in ((pad1_ref, K1), (pad2_ref, K2)):
            zd = jnp.zeros((NB, 1, H + 2, K), pad_ref.dtype)
            pad_ref[:, 0:1, :, :] = zd
            pad_ref[:, D + 1:D + 2, :, :] = zd
            zh = jnp.zeros((NB, D + 2, 1, K), pad_ref.dtype)
            pad_ref[:, :, 0:1, :] = zh
            pad_ref[:, :, H + 1:H + 2, :] = zh

    # ---- stage 1: conv1 + BN + ReLU -------------------------------------------------
    # Interior write only (halos already zero); x is already bf16 -> no cast.
    pad1_ref[:, 1:D + 1, 1:H + 1, :] = x_ref[...]
    # im2col: each shifted window written exactly once, tap-major along K.
    for t in range(9):
        kd, kh = divmod(t, 3)
        col1_ref[:, t * K1:(t + 1) * K1] = (
            pad1_ref[:, kd:kd + D, kh:kh + H, :].reshape(M, K1))
    # Single MXU matmul (M, 9*K1) x (9*K1, W*Cout), bf16 operands, f32 accumulate.
    y = jnp.dot(col1_ref[...], b1_ref[...], preferred_element_type=jnp.float32)
    y = jnp.maximum(y * s1_ref[...] + t1_ref[...], 0.0)

    # ---- stage 2: conv2 + BN + ReLU (intermediate stays in VMEM, one bf16 cast) -----
    pad2_ref[:, 1:D + 1, 1:H + 1, :] = y.astype(jnp.bfloat16).reshape(NB, D, H, K2)
    for t in range(9):
        kd, kh = divmod(t, 3)
        col2_ref[:, t * K2:(t + 1) * K2] = (
            pad2_ref[:, kd:kd + D, kh:kh + H, :].reshape(M, K2))
    y = jnp.dot(col2_ref[...], b2_ref[...], preferred_element_type=jnp.float32)
    y = jnp.maximum(y * s2_ref[...] + t2_ref[...], 0.0)

    # Dropout3d(p=0.0) is the identity.
    # Lane-dense store: last dim is W*Cout (=128 here).
    out_ref[...] = y.reshape(NB, D, H, WCout)


def fused_conv_block_pallas(x_merged, b1c, s1t, t1t, b2c, s2t, t2t, *, batch_block=None):
    """x_merged: (N, D, H, W*Cin) bf16  ->  (N, D, H, W*Cout) f32.

    batch_block=None merges the whole batch into one grid step (M = N*D*H, best on
    v5e/v6e); batch_block=1 keeps a 2-step "parallel" grid that shards across the two
    TensorCores on v7x.
    """
    N, D, H, WCin = x_merged.shape
    WCout = b1c.shape[-1]
    NB = N if batch_block is None else batch_block
    assert N % NB == 0
    kernel = functools.partial(_fused_conv_block_kernel, NB=NB, D=D, H=H)
    return pl.pallas_call(
        kernel,
        out_shape=jax.ShapeDtypeStruct((N, D, H, WCout), jnp.float32),
        grid=(N // NB,),
        in_specs=[
            pl.BlockSpec((NB, D, H, WCin), lambda n: (n, 0, 0, 0)),   # x (NB batch elems)
            pl.BlockSpec(b1c.shape, lambda n: (0, 0)),                # stacked banded conv1 w
            pl.BlockSpec(s1t.shape, lambda n: (0, 0)),                # BN1 scale (tiled)
            pl.BlockSpec(t1t.shape, lambda n: (0, 0)),                # BN1 shift (tiled)
            pl.BlockSpec(b2c.shape, lambda n: (0, 0)),                # stacked banded conv2 w
            pl.BlockSpec(s2t.shape, lambda n: (0, 0)),
            pl.BlockSpec(t2t.shape, lambda n: (0, 0)),
        ],
        out_specs=pl.BlockSpec((NB, D, H, WCout), lambda n: (n, 0, 0, 0)),
        scratch_shapes=[
            pltpu.VMEM((NB, D + 2, H + 2, WCin), jnp.bfloat16),       # pad1 (bf16, halo)
            pltpu.VMEM((NB, D + 2, H + 2, WCout), jnp.bfloat16),      # pad2 (bf16, halo)
            pltpu.VMEM((NB * D * H, 9 * WCin), jnp.bfloat16),         # im2col conv1
            pltpu.VMEM((NB * D * H, 9 * WCout), jnp.bfloat16),        # im2col conv2
        ],
        compiler_params=pltpu.CompilerParams(
            dimension_semantics=("parallel",),
            vmem_limit_bytes=32 * 1024 * 1024),
    )(x_merged, b1c, s1t, t1t, b2c, s2t, t2t)


# ------------------------------ wrapper-side plumbing ------------------------------
def _make_banded_weights(w_dhwio, W):
    """Build (9, W*Cin, W*Cout) banded (Toeplitz) matrices from (3,3,3,Cin,Cout) weights.

    B[kd*3+kh, v*Cin + ci, w*Cout + co] = w[kd, kh, kw, ci, co] with v = w + kw - 1;
    entries outside [0, W) are dropped, which realizes the W zero-padding.
    """
    kD, kH, kW, Cin, Cout = w_dhwio.shape
    mats = []
    for kd in range(kD):
        for kh in range(kH):
            B = jnp.zeros((W * Cin, W * Cout), jnp.float32)
            for kw in range(kW):
                tap = w_dhwio[kd, kh, kw].astype(jnp.float32)          # (Cin, Cout)
                sel = jnp.eye(W, W, k=1 - kw, dtype=jnp.float32)       # (W_in, W_out)
                B = B + jnp.einsum("vw,io->viwo", sel, tap).reshape(W * Cin, W * Cout)
            mats.append(B)
    return jnp.stack(mats)                                             # (9, W*Cin, W*Cout)


def _fold_bn(gamma, beta, mean, var, conv_bias):
    # BN(conv + bias) = scale * conv + shift   (eval-mode / running-stats BatchNorm)
    scale = gamma / jnp.sqrt(var + BN_EPS)
    shift = beta + scale * (conv_bias - mean)
    return scale, shift


def _tile_lanes(v, W):
    # per-channel vector (Cout,) -> (1, W*Cout) matching lane index w*Cout + co
    return jnp.tile(v, W).reshape(1, -1).astype(jnp.float32)


@jax.jit
def conv_block_3d(x_ncdhw, params):
    N, Cin, D, H, W = x_ncdhw.shape
    Cout = params["conv1_w"].shape[0]

    # NCDHW -> (N, D, H, W*Cin), bf16 (halves HBM read; MXU operands are bf16 anyway)
    x = jnp.transpose(x_ncdhw, (0, 2, 3, 4, 1)).reshape(N, D, H, W * Cin)
    x = x.astype(jnp.bfloat16)

    w1 = jnp.transpose(params["conv1_w"], (2, 3, 4, 1, 0))   # OIDHW -> DHWIO
    w2 = jnp.transpose(params["conv2_w"], (2, 3, 4, 1, 0))
    # Stack the 9 banded tap matrices along K (tap-major), matching the im2col layout.
    b1c = _make_banded_weights(w1, W).reshape(9 * W * Cin, W * Cout).astype(jnp.bfloat16)
    b2c = _make_banded_weights(w2, W).reshape(9 * W * Cout, W * Cout).astype(jnp.bfloat16)

    s1, t1 = _fold_bn(params["bn1_gamma"], params["bn1_beta"],
                      params["bn1_mean"], params["bn1_var"], params["conv1_b"])
    s2, t2 = _fold_bn(params["bn2_gamma"], params["bn2_beta"],
                      params["bn2_mean"], params["bn2_var"], params["conv2_b"])
    s1t, t1t = _tile_lanes(s1, W), _tile_lanes(t1, W)
    s2t, t2t = _tile_lanes(s2, W), _tile_lanes(t2, W)

    y = fused_conv_block_pallas(x, b1c, s1t, t1t, b2c, s2t, t2t)   # (N, D, H, W*Cout) f32

    # TODO(synk): training-mode Dropout3d (p>0) would need a pltpu.prng_* per-channel mask;
    #             training-mode BatchNorm batch statistics are not computed in-kernel.
    y = y.reshape(N, D, H, W, Cout)
    return jnp.transpose(y, (0, 4, 1, 2, 3))                       # NDHWC -> NCDHW


# ----------------------- pure-JAX reference (for a sanity check) -----------------------
def _ref_conv_bn_relu(x, w, b, g, beta, m, v):
    y = lax.conv_general_dilated(
        x, w, window_strides=(1, 1, 1),
        padding=((1, 1), (1, 1), (1, 1)),
        dimension_numbers=("NCDHW", "OIDHW", "NCDHW"),
        precision=lax.Precision.HIGHEST)
    y = y + b[None, :, None, None, None]
    y = (y - m[None, :, None, None, None]) / jnp.sqrt(v + BN_EPS)[None, :, None, None, None]
    y = y * g[None, :, None, None, None] + beta[None, :, None, None, None]
    return jnp.maximum(y, 0.0)


def ref_conv_block_3d(x, p):
    y = _ref_conv_bn_relu(x, p["conv1_w"], p["conv1_b"], p["bn1_gamma"],
                          p["bn1_beta"], p["bn1_mean"], p["bn1_var"])
    y = _ref_conv_bn_relu(y, p["conv2_w"], p["conv2_b"], p["bn2_gamma"],
                          p["bn2_beta"], p["bn2_mean"], p["bn2_var"])
    return y


def init_params(key, in_ch, out_ch):
    ks = jax.random.split(key, 14)
    f32 = jnp.float32
    return {
        "conv1_w": 0.1 * jax.random.normal(ks[0], (out_ch, in_ch, 3, 3, 3), f32),
        "conv1_b": 0.05 * jax.random.normal(ks[1], (out_ch,), f32),
        "bn1_gamma": 1.0 + 0.1 * jax.random.normal(ks[2], (out_ch,), f32),
        "bn1_beta": 0.05 * jax.random.normal(ks[3], (out_ch,), f32),
        "bn1_mean": 0.05 * jax.random.normal(ks[4], (out_ch,), f32),
        "bn1_var": 1.0 + 0.2 * jax.random.uniform(ks[5], (out_ch,), f32),
        "conv2_w": 0.1 * jax.random.normal(ks[6], (out_ch, out_ch, 3, 3, 3), f32),
        "conv2_b": 0.05 * jax.random.normal(ks[7], (out_ch,), f32),
        "bn2_gamma": 1.0 + 0.1 * jax.random.normal(ks[8], (out_ch,), f32),
        "bn2_beta": 0.05 * jax.random.normal(ks[9], (out_ch,), f32),
        "bn2_mean": 0.05 * jax.random.normal(ks[10], (out_ch,), f32),
        "bn2_var": 1.0 + 0.2 * jax.random.uniform(ks[11], (out_ch,), f32),
    }


if __name__ == "__main__":
    key = jax.random.PRNGKey(0)
    k_x, k_p = jax.random.split(key)

    in_ch, out_ch = 4, 8
    N, D, H, W = 2, 8, 16, 16

    x = jax.random.normal(k_x, (N, in_ch, D, H, W), jnp.float32)  # NCDHW, PyTorch layout
    params = init_params(k_p, in_ch, out_ch)

    y = jax.block_until_ready(conv_block_3d(x, params))
    assert y.shape == (N, out_ch, D, H, W), y.shape

    y_ref = ref_conv_block_3d(x, params)
    max_err = float(jnp.max(jnp.abs(y - y_ref)))
    # bf16 MXU operands / bf16 intermediate activation vs an f32 HIGHEST reference:
    # ~1e-2 max-abs deviation after two stacked convs is expected.
    assert max_err < 2.5e-2, f"max abs err {max_err}"

    print("KERNEL_OK")
</pallas_src>

<mosaic_0001>
module attributes {stable_mosaic.version = 11 : i64} {
  func.func @_fused_conv_block_kernel(%arg0: i32, %arg1: memref<2x8x16x64xbf16, #tpu.memory_space<vmem>>, %arg2: memref<576x128xbf16, #tpu.memory_space<vmem>>, %arg3: memref<1x128xf32, #tpu.memory_space<vmem>>, %arg4: memref<1x128xf32, #tpu.memory_space<vmem>>, %arg5: memref<1152x128xbf16, #tpu.memory_space<vmem>>, %arg6: memref<1x128xf32, #tpu.memory_space<vmem>>, %arg7: memref<1x128xf32, #tpu.memory_space<vmem>>, %arg8: memref<2x8x16x128xf32, #tpu.memory_space<vmem>>, %arg9: memref<2x10x18x64xbf16, #tpu.memory_space<vmem>>, %arg10: memref<2x10x18x128xbf16, #tpu.memory_space<vmem>>, %arg11: memref<256x576xbf16, #tpu.memory_space<vmem>>, %arg12: memref<256x1152xbf16, #tpu.memory_space<vmem>>) attributes {dimension_semantics = [#tpu.dimension_semantics<parallel>], iteration_bounds = array<i64: 1>, scalar_prefetch = 0 : i64, scratch_operands = 4 : i64, tpu.core_type = #tpu.core_type<tc>, window_params = [{transform_indices = @transform_0, window_bounds = array<i64: 2, 8, 16, 64>}, {pipeline_mode = #tpu.pipeline_mode<synchronous>, transform_indices = @transform_1, window_bounds = array<i64: 576, 128>}, {pipeline_mode = #tpu.pipeline_mode<synchronous>, transform_indices = @transform_2, window_bounds = array<i64: 1, 128>}, {pipeline_mode = #tpu.pipeline_mode<synchronous>, transform_indices = @transform_3, window_bounds = array<i64: 1, 128>}, {pipeline_mode = #tpu.pipeline_mode<synchronous>, transform_indices = @transform_4, window_bounds = array<i64: 1152, 128>}, {pipeline_mode = #tpu.pipeline_mode<synchronous>, transform_indices = @transform_5, window_bounds = array<i64: 1, 128>}, {pipeline_mode = #tpu.pipeline_mode<synchronous>, transform_indices = @transform_6, window_bounds = array<i64: 1, 128>}, {transform_indices = @transform_7, window_bounds = array<i64: 2, 8, 16, 128>}]} {
    %c0_i32 = arith.constant 0 : i32
    %0 = arith.cmpi eq, %arg0, %c0_i32 : i32
    %1 = arith.extui %0 : i1 to i32
    %c0_i32_0 = arith.constant 0 : i32
    %2 = arith.cmpi ne, %1, %c0_i32_0 : i32
    scf.if %2 {
      %cst_129 = arith.constant 0.000000e+00 : bf16
      %86 = vector.broadcast %cst_129 : bf16 to vector<2x1x18x64xbf16>
      %c0_130 = arith.constant 0 : index
      %c0_131 = arith.constant 0 : index
      %c0_132 = arith.constant 0 : index
      %c0_133 = arith.constant 0 : index
      %87 = vector.load %arg9[%c0_130, %c0_131, %c0_132, %c0_133] : memref<2x10x18x64xbf16, #tpu.memory_space<vmem>>, vector<2x1x18x64xbf16>
      tpu.vector_store %arg9[%c0_130, %c0_131, %c0_132, %c0_133], %86 {strides = array<i32>} : memref<2x10x18x64xbf16, #tpu.memory_space<vmem>>, vector<2x1x18x64xbf16>,
      %c0_134 = arith.constant 0 : index
      %c9 = arith.constant 9 : index
      %c0_135 = arith.constant 0 : index
      %c0_136 = arith.constant 0 : index
      %88 = vector.load %arg9[%c0_134, %c9, %c0_135, %c0_136] : memref<2x10x18x64xbf16, #tpu.memory_space<vmem>>, vector<2x1x18x64xbf16>
      tpu.vector_store %arg9[%c0_134, %c9, %c0_135, %c0_136], %86 {strides = array<i32>} : memref<2x10x18x64xbf16, #tpu.memory_space<vmem>>, vector<2x1x18x64xbf16>,
      %cst_137 = arith.constant 0.000000e+00 : bf16
      %89 = vector.broadcast %cst_137 : bf16 to vector<2x10x1x64xbf16>
      %c0_138 = arith.constant 0 : index
      %c0_139 = arith.constant 0 : index
      %c0_140 = arith.constant 0 : index
      %c0_141 = arith.constant 0 : index
      %90 = vector.load %arg9[%c0_138, %c0_139, %c0_140, %c0_141] : memref<2x10x18x64xbf16, #tpu.memory_space<vmem>>, vector<2x10x1x64xbf16>
      tpu.vector_store %arg9[%c0_138, %c0_139, %c0_140, %c0_141], %89 {strides = array<i32>} : memref<2x10x18x64xbf16, #tpu.memory_space<vmem>>, vector<2x10x1x64xbf16>,
      %c0_142 = arith.constant 0 : index
      %c0_143 = arith.constant 0 : index
      %c17 = arith.constant 17 : index
      %c0_144 = arith.constant 0 : index
      %91 = vector.load %arg9[%c0_142, %c0_143, %c17, %c0_144] : memref<2x10x18x64xbf16, #tpu.memory_space<vmem>>, vector<2x10x1x64xbf16>
      tpu.vector_store %arg9[%c0_142, %c0_143, %c17, %c0_144], %89 {strides = array<i32>} : memref<2x10x18x64xbf16, #tpu.memory_space<vmem>>, vector<2x10x1x64xbf16>,
      %cst_145 = arith.constant 0.000000e+00 : bf16
      %92 = vector.broadcast %cst_145 : bf16 to vector<2x1x18x128xbf16>
      %c0_146 = arith.constant 0 : index
      %c0_147 = arith.constant 0 : index
      %c0_148 = arith.constant 0 : index
      %c0_149 = arith.constant 0 : index
      %93 = vector.load %arg10[%c0_146, %c0_147, %c0_148, %c0_149] : memref<2x10x18x128xbf16, #tpu.memory_space<vmem>>, vector<2x1x18x128xbf16>
      tpu.vector_store %arg10[%c0_146, %c0_147, %c0_148, %c0_149], %92 {strides = array<i32>} : memref<2x10x18x128xbf16, #tpu.memory_space<vmem>>, vector<2x1x18x128xbf16>,
      %c0_150 = arith.constant 0 : index
      %c9_151 = arith.constant 9 : index
      %c0_152 = arith.constant 0 : index
      %c0_153 = arith.constant 0 : index
      %94 = vector.load %arg10[%c0_150, %c9_151, %c0_152, %c0_153] : memref<2x10x18x128xbf16, #tpu.memory_space<vmem>>, vector<2x1x18x128xbf16>
      tpu.vector_store %arg10[%c0_150, %c9_151, %c0_152, %c0_153], %92 {strides = array<i32>} : memref<2x10x18x128xbf16, #tpu.memory_space<vmem>>, vector<2x1x18x128xbf16>,
      %cst_154 = arith.constant 0.000000e+00 : bf16
      %95 = vector.broadcast %cst_154 : bf16 to vector<2x10x1x128xbf16>
      %c0_155 = arith.constant 0 : index
      %c0_156 = arith.constant 0 : index
      %c0_157 = arith.constant 0 : index
      %c0_158 = arith.constant 0 : index
      %96 = vector.load %arg10[%c0_155, %c0_156, %c0_157, %c0_158] : memref<2x10x18x128xbf16, #tpu.memory_space<vmem>>, vector<2x10x1x128xbf16>
      tpu.vector_store %arg10[%c0_155, %c0_156, %c0_157, %c0_158], %95 {strides = array<i32>} : memref<2x10x18x128xbf16, #tpu.memory_space<vmem>>, vector<2x10x1x128xbf16>,
      %c0_159 = arith.constant 0 : index
      %c0_160 = arith.constant 0 : index
      %c17_161 = arith.constant 17 : index
      %c0_162 = arith.constant 0 : index
      %97 = vector.load %arg10[%c0_159, %c0_160, %c17_161, %c0_162] : memref<2x10x18x128xbf16, #tpu.memory_space<vmem>>, vector<2x10x1x128xbf16>
      tpu.vector_store %arg10[%c0_159, %c0_160, %c17_161, %c0_162], %95 {strides = array<i32>} : memref<2x10x18x128xbf16, #tpu.memory_space<vmem>>, vector<2x10x1x128xbf16>,
    } else {
    }
    %c0 = arith.constant 0 : index
    %c0_1 = arith.constant 0 : index
    %c0_2 = arith.constant 0 : index
    %c0_3 = arith.constant 0 : index
    %3 = vector.load %arg1[%c0, %c0_1, %c0_2, %c0_3] : memref<2x8x16x64xbf16, #tpu.memory_space<vmem>>, vector<2x8x16x64xbf16>
    %c0_4 = arith.constant 0 : index
    %c1 = arith.constant 1 : index
    %c1_5 = arith.constant 1 : index
    %c0_6 = arith.constant 0 : index
    %4 = vector.load %arg9[%c0_4, %c1, %c1_5, %c0_6] : memref<2x10x18x64xbf16, #tpu.memory_space<vmem>>, vector<2x8x16x64xbf16>
    tpu.vector_store %arg9[%c0_4, %c1, %c1_5, %c0_6], %3 {strides = array<i32>} : memref<2x10x18x64xbf16, #tpu.memory_space<vmem>>, vector<2x8x16x64xbf16>,
    %c0_7 = arith.constant 0 : index
    %c0_8 = arith.constant 0 : index
    %c0_9 = arith.constant 0 : index
    %c0_10 = arith.constant 0 : index
    %5 = vector.load %arg9[%c0_7, %c0_8, %c0_9, %c0_10] : memref<2x10x18x64xbf16, #tpu.memory_space<vmem>>, vector<2x8x16x64xbf16>
    %6 = vector.shape_cast %5 : vector<2x8x16x64xbf16> to vector<256x64xbf16>
    %c0_11 = arith.constant 0 : index
    %c0_12 = arith.constant 0 : index
    %7 = vector.load %arg11[%c0_11, %c0_12] : memref<256x576xbf16, #tpu.memory_space<vmem>>, vector<256x64xbf16>
    tpu.vector_store %arg11[%c0_11, %c0_12], %6 {strides = array<i32>} : memref<256x576xbf16, #tpu.memory_space<vmem>>, vector<256x64xbf16>,
    %c0_13 = arith.constant 0 : index
    %c0_14 = arith.constant 0 : index
    %c1_15 = arith.constant 1 : index
    %c0_16 = arith.constant 0 : index
    %8 = vector.load %arg9[%c0_13, %c0_14, %c1_15, %c0_16] : memref<2x10x18x64xbf16, #tpu.memory_space<vmem>>, vector<2x8x16x64xbf16>
    %9 = vector.shape_cast %8 : vector<2x8x16x64xbf16> to vector<256x64xbf16>
    %c0_17 = arith.constant 0 : index
    %c64 = arith.constant 64 : index
    %10 = vector.load %arg11[%c0_17, %c64] : memref<256x576xbf16, #tpu.memory_space<vmem>>, vector<256x64xbf16>
    tpu.vector_store %arg11[%c0_17, %c64], %9 {strides = array<i32>} : memref<256x576xbf16, #tpu.memory_space<vmem>>, vector<256x64xbf16>,
    %c0_18 = arith.constant 0 : index
    %c0_19 = arith.constant 0 : index
    %c2 = arith.constant 2 : index
    %c0_20 = arith.constant 0 : index
    %11 = vector.load %arg9[%c0_18, %c0_19, %c2, %c0_20] : memref<2x10x18x64xbf16, #tpu.memory_space<vmem>>, vector<2x8x16x64xbf16>
    %12 = vector.shape_cast %11 : vector<2x8x16x64xbf16> to vector<256x64xbf16>
    %c0_21 = arith.constant 0 : index
    %c128 = arith.constant 128 : index
    %13 = vector.load %arg11[%c0_21, %c128] : memref<256x576xbf16, #tpu.memory_space<vmem>>, vector<256x64xbf16>
    tpu.vector_store %arg11[%c0_21, %c128], %12 {strides = array<i32>} : memref<256x576xbf16, #tpu.memory_space<vmem>>, vector<256x64xbf16>,
    %c0_22 = arith.constant 0 : index
    %c1_23 = arith.constant 1 : index
    %c0_24 = arith.constant 0 : index
    %c0_25 = arith.constant 0 : index
    %14 = vector.load %arg9[%c0_22, %c1_23, %c0_24, %c0_25] : memref<2x10x18x64xbf16, #tpu.memory_space<vmem>>, vector<2x8x16x64xbf16>
    %15 = vector.shape_cast %14 : vector<2x8x16x64xbf16> to vector<256x64xbf16>
    %c0_26 = arith.constant 0 : index
    %c192 = arith.constant 192 : index
    %16 = vector.load %arg11[%c0_26, %c192] : memref<256x576xbf16, #tpu.memory_space<vmem>>, vector<256x64xbf16>
    tpu.vector_store %arg11[%c0_26, %c192], %15 {strides = array<i32>} : memref<256x576xbf16, #tpu.memory_space<vmem>>, vector<256x64xbf16>,
    %c0_27 = arith.constant 0 : index
    %c1_28 = arith.constant 1 : index
    %c1_29 = arith.constant 1 : index
    %c0_30 = arith.constant 0 : index
    %17 = vector.load %arg9[%c0_27, %c1_28, %c1_29, %c0_30] : memref<2x10x18x64xbf16, #tpu.memory_space<vmem>>, vector<2x8x16x64xbf16>
    %18 = vector.shape_cast %17 : vector<2x8x16x64xbf16> to vector<256x64xbf16>
    %c0_31 = arith.constant 0 : index
    %c256 = arith.constant 256 : index
    %19 = vector.load %arg11[%c0_31, %c256] : memref<256x576xbf16, #tpu.memory_space<vmem>>, vector<256x64xbf16>
    tpu.vector_store %arg11[%c0_31, %c256], %18 {strides = array<i32>} : memref<256x576xbf16, #tpu.memory_space<vmem>>, vector<256x64xbf16>,
    %c0_32 = arith.constant 0 : index
    %c1_33 = arith.constant 1 : index
    %c2_34 = arith.constant 2 : index
    %c0_35 = arith.constant 0 : index
    %20 = vector.load %arg9[%c0_32, %c1_33, %c2_34, %c0_35] : memref<2x10x18x64xbf16, #tpu.memory_space<vmem>>, vector<2x8x16x64xbf16>
    %21 = vector.shape_cast %20 : vector<2x8x16x64xbf16> to vector<256x64xbf16>
    %c0_36 = arith.constant 0 : index
    %c320 = arith.constant 320 : index
    %22 = vector.load %arg11[%c0_36, %c320] : memref<256x576xbf16, #tpu.memory_space<vmem>>, vector<256x64xbf16>
    tpu.vector_store %arg11[%c0_36, %c320], %21 {strides = array<i32>} : memref<256x576xbf16, #tpu.memory_space<vmem>>, vector<256x64xbf16>,
    %c0_37 = arith.constant 0 : index
    %c2_38 = arith.constant 2 : index
    %c0_39 = arith.constant 0 : index
    %c0_40 = arith.constant 0 : index
    %23 = vector.load %arg9[%c0_37, %c2_38, %c0_39, %c0_40] : memref<2x10x18x64xbf16, #tpu.memory_space<vmem>>, vector<2x8x16x64xbf16>
    %24 = vector.shape_cast %23 : vector<2x8x16x64xbf16> to vector<256x64xbf16>
    %c0_41 = arith.constant 0 : index
    %c384 = arith.constant 384 : index
    %25 = vector.load %arg11[%c0_41, %c384] : memref<256x576xbf16, #tpu.memory_space<vmem>>, vector<256x64xbf16>
    tpu.vector_store %arg11[%c0_41, %c384], %24 {strides = array<i32>} : memref<256x576xbf16, #tpu.memory_space<vmem>>, vector<256x64xbf16>,
    %c0_42 = arith.constant 0 : index
    %c2_43 = arith.constant 2 : index
    %c1_44 = arith.constant 1 : index
    %c0_45 = arith.constant 0 : index
    %26 = vector.load %arg9[%c0_42, %c2_43, %c1_44, %c0_45] : memref<2x10x18x64xbf16, #tpu.memory_space<vmem>>, vector<2x8x16x64xbf16>
    %27 = vector.shape_cast %26 : vector<2x8x16x64xbf16> to vector<256x64xbf16>
    %c0_46 = arith.constant 0 : index
    %c448 = arith.constant 448 : index
    %28 = vector.load %arg11[%c0_46, %c448] : memref<256x576xbf16, #tpu.memory_space<vmem>>, vector<256x64xbf16>
    tpu.vector_store %arg11[%c0_46, %c448], %27 {strides = array<i32>} : memref<256x576xbf16, #tpu.memory_space<vmem>>, vector<256x64xbf16>,
    %c0_47 = arith.constant 0 : index
    %c2_48 = arith.constant 2 : index
    %c2_49 = arith.constant 2 : index
    %c0_50 = arith.constant 0 : index
    %29 = vector.load %arg9[%c0_47, %c2_48, %c2_49, %c0_50] : memref<2x10x18x64xbf16, #tpu.memory_space<vmem>>, vector<2x8x16x64xbf16>
    %30 = vector.shape_cast %29 : vector<2x8x16x64xbf16> to vector<256x64xbf16>
    %c0_51 = arith.constant 0 : index
    %c512 = arith.constant 512 : index
    %31 = vector.load %arg11[%c0_51, %c512] : memref<256x576xbf16, #tpu.memory_space<vmem>>, vector<256x64xbf16>
    tpu.vector_store %arg11[%c0_51, %c512], %30 {strides = array<i32>} : memref<256x576xbf16, #tpu.memory_space<vmem>>, vector<256x64xbf16>,
    %c0_52 = arith.constant 0 : index
    %c0_53 = arith.constant 0 : index
    %32 = vector.load %arg11[%c0_52, %c0_53] : memref<256x576xbf16, #tpu.memory_space<vmem>>, vector<256x576xbf16>
    %c0_54 = arith.constant 0 : index
    %c0_55 = arith.constant 0 : index
    %33 = vector.load %arg2[%c0_54, %c0_55] : memref<576x128xbf16, #tpu.memory_space<vmem>>, vector<576x128xbf16>
    %cst = arith.constant dense<0.000000e+00> : vector<256x128xf32>
    %34 = tpu.matmul %32, %33, %cst {dimension_numbers = #tpu.dot_dimension_numbers<[1], [0], [0], [1], [0, 0, 1, 1], [], []>} : vector<256x576xbf16>, vector<576x128xbf16>, vector<256x128xf32> -> vector<256x128xf32>
    %c0_56 = arith.constant 0 : index
    %c0_57 = arith.constant 0 : index
    %35 = vector.load %arg3[%c0_56, %c0_57] : memref<1x128xf32, #tpu.memory_space<vmem>>, vector<1x128xf32>
    %36 = vector.broadcast %35 : vector<1x128xf32> to vector<256x128xf32>
    %37 = arith.mulf %34, %36 : vector<256x128xf32>
    %c0_58 = arith.constant 0 : index
    %c0_59 = arith.constant 0 : index
    %38 = vector.load %arg4[%c0_58, %c0_59] : memref<1x128xf32, #tpu.memory_space<vmem>>, vector<1x128xf32>
    %39 = vector.broadcast %38 : vector<1x128xf32> to vector<256x128xf32>
    %40 = arith.addf %37, %39 : vector<256x128xf32>
    %cst_60 = arith.constant 0.000000e+00 : f32
    %41 = vector.broadcast %cst_60 : f32 to vector<256x128xf32>
    %42 = arith.maximumf %40, %41 : vector<256x128xf32>
    %43 = arith.truncf %42 : vector<256x128xf32> to vector<256x128xbf16>
    %44 = vector.shape_cast %43 : vector<256x128xbf16> to vector<2x8x16x128xbf16>
    %c0_61 = arith.constant 0 : index
    %c1_62 = arith.constant 1 : index
    %c1_63 = arith.constant 1 : index
    %c0_64 = arith.constant 0 : index
    %45 = vector.load %arg10[%c0_61, %c1_62, %c1_63, %c0_64] : memref<2x10x18x128xbf16, #tpu.memory_space<vmem>>, vector<2x8x16x128xbf16>
    tpu.vector_store %arg10[%c0_61, %c1_62, %c1_63, %c0_64], %44 {strides = array<i32>} : memref<2x10x18x128xbf16, #tpu.memory_space<vmem>>, vector<2x8x16x128xbf16>,
    %c0_65 = arith.constant 0 : index
    %c0_66 = arith.constant 0 : index
    %c0_67 = arith.constant 0 : index
    %c0_68 = arith.constant 0 : index
    %46 = vector.load %arg10[%c0_65, %c0_66, %c0_67, %c0_68] : memref<2x10x18x128xbf16, #tpu.memory_space<vmem>>, vector<2x8x16x128xbf16>
    %47 = vector.shape_cast %46 : vector<2x8x16x128xbf16> to vector<256x128xbf16>
    %c0_69 = arith.constant 0 : index
    %c0_70 = arith.constant 0 : index
    %48 = vector.load %arg12[%c0_69, %c0_70] : memref<256x1152xbf16, #tpu.memory_space<vmem>>, vector<256x128xbf16>
    tpu.vector_store %arg12[%c0_69, %c0_70], %47 {strides = array<i32>} : memref<256x1152xbf16, #tpu.memory_space<vmem>>, vector<256x128xbf16>,
    %c0_71 = arith.constant 0 : index
    %c0_72 = arith.constant 0 : index
    %c1_73 = arith.constant 1 : index
    %c0_74 = arith.constant 0 : index
    %49 = vector.load %arg10[%c0_71, %c0_72, %c1_73, %c0_74] : memref<2x10x18x128xbf16, #tpu.memory_space<vmem>>, vector<2x8x16x128xbf16>
    %50 = vector.shape_cast %49 : vector<2x8x16x128xbf16> to vector<256x128xbf16>
    %c0_75 = arith.constant 0 : index
    %c128_76 = arith.constant 128 : index
    %51 = vector.load %arg12[%c0_75, %c128_76] : memref<256x1152xbf16, #tpu.memory_space<vmem>>, vector<256x128xbf16>
    tpu.vector_store %arg12[%c0_75, %c128_76], %50 {strides = array<i32>} : memref<256x1152xbf16, #tpu.memory_space<vmem>>, vector<256x128xbf16>,
    %c0_77 = arith.constant 0 : index
    %c0_78 = arith.constant 0 : index
    %c2_79 = arith.constant 2 : index
    %c0_80 = arith.constant 0 : index
    %52 = vector.load %arg10[%c0_77, %c0_78, %c2_79, %c0_80] : memref<2x10x18x128xbf16, #tpu.memory_space<vmem>>, vector<2x8x16x128xbf16>
    %53 = vector.shape_cast %52 : vector<2x8x16x128xbf16> to vector<256x128xbf16>
    %c0_81 = arith.constant 0 : index
    %c256_82 = arith.constant 256 : index
    %54 = vector.load %arg12[%c0_81, %c256_82] : memref<256x1152xbf16, #tpu.memory_space<vmem>>, vector<256x128xbf16>
    tpu.vector_store %arg12[%c0_81, %c256_82], %53 {strides = array<i32>} : memref<256x1152xbf16, #tpu.memory_space<vmem>>, vector<256x128xbf16>,
    %c0_83 = arith.constant 0 : index
    %c1_84 = arith.constant 1 : index
    %c0_85 = arith.constant 0 : index
    %c0_86 = arith.constant 0 : index
    %55 = vector.load %arg10[%c0_83, %c1_84, %c0_85, %c0_86] : memref<2x10x18x128xbf16, #tpu.memory_space<vmem>>, vector<2x8x16x128xbf16>
    %56 = vector.shape_cast %55 : vector<2x8x16x128xbf16> to vector<256x128xbf16>
    %c0_87 = arith.constant 0 : index
    %c384_88 = arith.constant 384 : index
    %57 = vector.load %arg12[%c0_87, %c384_88] : memref<256x1152xbf16, #tpu.memory_space<vmem>>, vector<256x128xbf16>
    tpu.vector_store %arg12[%c0_87, %c384_88], %56 {strides = array<i32>} : memref<256x1152xbf16, #tpu.memory_space<vmem>>, vector<256x128xbf16>,
    %c0_89 = arith.constant 0 : index
    %c1_90 = arith.constant 1 : index
    %c1_91 = arith.constant 1 : index
    %c0_92 = arith.constant 0 : index
    %58 = vector.load %arg10[%c0_89, %c1_90, %c1_91, %c0_92] : memref<2x10x18x128xbf16, #tpu.memory_space<vmem>>, vector<2x8x16x128xbf16>
    %59 = vector.shape_cast %58 : vector<2x8x16x128xbf16> to vector<256x128xbf16>
    %c0_93 = arith.constant 0 : index
    %c512_94 = arith.constant 512 : index
    %60 = vector.load %arg12[%c0_93, %c512_94] : memref<256x1152xbf16, #tpu.memory_space<vmem>>, vector<256x128xbf16>
    tpu.vector_store %arg12[%c0_93, %c512_94], %59 {strides = array<i32>} : memref<256x1152xbf16, #tpu.memory_space<vmem>>, vector<256x128xbf16>,
    %c0_95 = arith.constant 0 : index
    %c1_96 = arith.constant 1 : index
    %c2_97 = arith.constant 2 : index
    %c0_98 = arith.constant 0 : index
    %61 = vector.load %arg10[%c0_95, %c1_96, %c2_97, %c0_98] : memref<2x10x18x128xbf16, #tpu.memory_space<vmem>>, vector<2x8x16x128xbf16>
    %62 = vector.shape_cast %61 : vector<2x8x16x128xbf16> to vector<256x128xbf16>
    %c0_99 = arith.constant 0 : index
    %c640 = arith.constant 640 : index
    %63 = vector.load %arg12[%c0_99, %c640] : memref<256x1152xbf16, #tpu.memory_space<vmem>>, vector<256x128xbf16>
    tpu.vector_store %arg12[%c0_99, %c640], %62 {strides = array<i32>} : memref<256x1152xbf16, #tpu.memory_space<vmem>>, vector<256x128xbf16>,
    %c0_100 = arith.constant 0 : index
    %c2_101 = arith.constant 2 : index
    %c0_102 = arith.constant 0 : index
    %c0_103 = arith.constant 0 : index
    %64 = vector.load %arg10[%c0_100, %c2_101, %c0_102, %c0_103] : memref<2x10x18x128xbf16, #tpu.memory_space<vmem>>, vector<2x8x16x128xbf16>
    %65 = vector.shape_cast %64 : vector<2x8x16x128xbf16> to vector<256x128xbf16>
    %c0_104 = arith.constant 0 : index
    %c768 = arith.constant 768 : index
    %66 = vector.load %arg12[%c0_104, %c768] : memref<256x1152xbf16, #tpu.memory_space<vmem>>, vector<256x128xbf16>
    tpu.vector_store %arg12[%c0_104, %c768], %65 {strides = array<i32>} : memref<256x1152xbf16, #tpu.memory_space<vmem>>, vector<256x128xbf16>,
    %c0_105 = arith.constant 0 : index
    %c2_106 = arith.constant 2 : index
    %c1_107 = arith.constant 1 : index
    %c0_108 = arith.constant 0 : index
    %67 = vector.load %arg10[%c0_105, %c2_106, %c1_107, %c0_108] : memref<2x10x18x128xbf16, #tpu.memory_space<vmem>>, vector<2x8x16x128xbf16>
    %68 = vector.shape_cast %67 : vector<2x8x16x128xbf16> to vector<256x128xbf16>
    %c0_109 = arith.constant 0 : index
    %c896 = arith.constant 896 : index
    %69 = vector.load %arg12[%c0_109, %c896] : memref<256x1152xbf16, #tpu.memory_space<vmem>>, vector<256x128xbf16>
    tpu.vector_store %arg12[%c0_109, %c896], %68 {strides = array<i32>} : memref<256x1152xbf16, #tpu.memory_space<vmem>>, vector<256x128xbf16>,
    %c0_110 = arith.constant 0 : index
    %c2_111 = arith.constant 2 : index
    %c2_112 = arith.constant 2 : index
    %c0_113 = arith.constant 0 : index
    %70 = vector.load %arg10[%c0_110, %c2_111, %c2_112, %c0_113] : memref<2x10x18x128xbf16, #tpu.memory_space<vmem>>, vector<2x8x16x128xbf16>
    %71 = vector.shape_cast %70 : vector<2x8x16x128xbf16> to vector<256x128xbf16>
    %c0_114 = arith.constant 0 : index
    %c1024 = arith.constant 1024 : index
    %72 = vector.load %arg12[%c0_114, %c1024] : memref<256x1152xbf16, #tpu.memory_space<vmem>>, vector<256x128xbf16>
    tpu.vector_store %arg12[%c0_114, %c1024], %71 {strides = array<i32>} : memref<256x1152xbf16, #tpu.memory_space<vmem>>, vector<256x128xbf16>,
    %c0_115 = arith.constant 0 : index
    %c0_116 = arith.constant 0 : index
    %73 = vector.load %arg12[%c0_115, %c0_116] : memref<256x1152xbf16, #tpu.memory_space<vmem>>, vector<256x1152xbf16>
    %c0_117 = arith.constant 0 : index
    %c0_118 = arith.constant 0 : index
    %74 = vector.load %arg5[%c0_117, %c0_118] : memref<1152x128xbf16, #tpu.memory_space<vmem>>, vector<1152x128xbf16>
    %cst_119 = arith.constant dense<0.000000e+00> : vector<256x128xf32>
    %75 = tpu.matmul %73, %74, %cst_119 {dimension_numbers = #tpu.dot_dimension_numbers<[1], [0], [0], [1], [0, 0, 1, 1], [], []>} : vector<256x1152xbf16>, vector<1152x128xbf16>, vector<256x128xf32> -> vector<256x128xf32>
    %c0_120 = arith.constant 0 : index
    %c0_121 = arith.constant 0 : index
    %76 = vector.load %arg6[%c0_120, %c0_121] : memref<1x128xf32, #tpu.memory_space<vmem>>, vector<1x128xf32>
    %77 = vector.broadcast %76 : vector<1x128xf32> to vector<256x128xf32>
    %78 = arith.mulf %75, %77 : vector<256x128xf32>
    %c0_122 = arith.constant 0 : index
    %c0_123 = arith.constant 0 : index
    %79 = vector.load %arg7[%c0_122, %c0_123] : memref<1x128xf32, #tpu.memory_space<vmem>>, vector<1x128xf32>
    %80 = vector.broadcast %79 : vector<1x128xf32> to vector<256x128xf32>
    %81 = arith.addf %78, %80 : vector<256x128xf32>
    %cst_124 = arith.constant 0.000000e+00 : f32
    %82 = vector.broadcast %cst_124 : f32 to vector<256x128xf32>
    %83 = arith.maximumf %81, %82 : vector<256x128xf32>
    %84 = vector.shape_cast %83 : vector<256x128xf32> to vector<2x8x16x128xf32>
    %c0_125 = arith.constant 0 : index
    %c0_126 = arith.constant 0 : index
    %c0_127 = arith.constant 0 : index
    %c0_128 = arith.constant 0 : index
    %85 = vector.load %arg8[%c0_125, %c0_126, %c0_127, %c0_128] : memref<2x8x16x128xf32, #tpu.memory_space<vmem>>, vector<2x8x16x128xf32>
    tpu.vector_store %arg8[%c0_125, %c0_126, %c0_127, %c0_128], %84 {strides = array<i32>} : memref<2x8x16x128xf32, #tpu.memory_space<vmem>>, vector<2x8x16x128xf32>,
    return
  }
  func.func @transform_0(%arg0: i32) -> (i32, i32, i32, i32) {
    %c0_i32 = arith.constant 0 : i32
    %c0_i32_0 = arith.constant 0 : i32
    %c0_i32_1 = arith.constant 0 : i32
    %c0_i32_2 = arith.constant 0 : i32
    return %arg0, %c0_i32, %c0_i32_0, %c0_i32_1 : i32, i32, i32, i32
  }
  func.func @transform_1(%arg0: i32) -> (i32, i32) {
    %c0_i32 = arith.constant 0 : i32
    %c0_i32_0 = arith.constant 0 : i32
    %c0_i32_1 = arith.constant 0 : i32
    return %c0_i32, %c0_i32_0 : i32, i32
  }
  func.func @transform_2(%arg0: i32) -> (i32, i32) {
    %c0_i32 = arith.constant 0 : i32
    %c0_i32_0 = arith.constant 0 : i32
    %c0_i32_1 = arith.constant 0 : i32
    return %c0_i32, %c0_i32_0 : i32, i32
  }
  func.func @transform_3(%arg0: i32) -> (i32, i32) {
    %c0_i32 = arith.constant 0 : i32
    %c0_i32_0 = arith.constant 0 : i32
    %c0_i32_1 = arith.constant 0 : i32
    return %c0_i32, %c0_i32_0 : i32, i32
  }
  func.func @transform_4(%arg0: i32) -> (i32, i32) {
    %c0_i32 = arith.constant 0 : i32
    %c0_i32_0 = arith.constant 0 : i32
    %c0_i32_1 = arith.constant 0 : i32
    return %c0_i32, %c0_i32_0 : i32, i32
  }
  func.func @transform_5(%arg0: i32) -> (i32, i32) {
    %c0_i32 = arith.constant 0 : i32
    %c0_i32_0 = arith.constant 0 : i32
    %c0_i32_1 = arith.constant 0 : i32
    return %c0_i32, %c0_i32_0 : i32, i32
  }
  func.func @transform_6(%arg0: i32) -> (i32, i32) {
    %c0_i32 = arith.constant 0 : i32
    %c0_i32_0 = arith.constant 0 : i32
    %c0_i32_1 = arith.constant 0 : i32
    return %c0_i32, %c0_i32_0 : i32, i32
  }
  func.func @transform_7(%arg0: i32) -> (i32, i32, i32, i32) {
    %c0_i32 = arith.constant 0 : i32
    %c0_i32_0 = arith.constant 0 : i32
    %c0_i32_1 = arith.constant 0 : i32
    %c0_i32_2 = arith.constant 0 : i32
    return %arg0, %c0_i32, %c0_i32_0, %c0_i32_1 : i32, i32, i32, i32
  }
}

</mosaic_0001>

<bundles_post_ra>
// kernel: tile.38
= control target key start
LH: loop header
LB: loop body
LE: loop exit
PB: predicated region body
PF: predicated region fallthrough
CT: control target
= control target key end

     0   :  { %s28_s0 = inlined_call_operand.vmem [shape: f32[8], index: 0, kind: input, shape index: {}]   ;;  %s29_s1 = inlined_call_operand.vmem [shape: f32[16,8], index: 1, kind: output, shape index: {}]  }
   0x1   :  { %v4_v0 = vld [vmem:[%s28_s0] ss:$0 sm:$0xff] }
   0x2   :  { %5 = vst [vmem:[%s29_s1] sm:$0xff] %v4_v0  ;;  %8 = vst [vmem:[%s29_s1 + $0x8] sm:$0xff] %v4_v0 }

// kernel: tile.39
= control target key start
LH: loop header
LB: loop body
LE: loop exit
PB: predicated region body
PF: predicated region fallthrough
CT: control target
= control target key end

     0   :  { %s131_s10 = smov 120   ;;  %s132_s11 = smov 104   ;;  %vm3_vm0 = vcmask 64512   ;;  %vm9_vm1 = vcmask 1048512   ;;  %vm15_vm2 = vcmask 982912   ;;  %vm21_vm3 = vcmask 917312   ;;  %s207_s0 = inlined_call_operand.vmem [shape: f32[16,8], index: 0, kind: input, shape index: {}]   ;;  %s208_s1 = inlined_call_operand.vmem [shape: f32[1,128], index: 1, kind: output, shape index: {}]  }
   0x1   :  { %v101_v0 = vld [vmem:[%s207_s0 + $0xf] sm:$0x1]   ;;  %v103_v1 = vld [vmem:[%s207_s0 + $0xd] sm:$0x1]   ;;  %v102_v2 = vld [vmem:[%s207_s0 + $0xe] sm:$0x1]  }
   0x2   :  { %7 = vrot.lane.b32.xlu0 %v101_v0, %s131_s10  ;;  %19 = vrot.lane.b32.xlu1 %v103_v1, %s132_s11  ;;  %v104_v3 = vld [vmem:[%s207_s0 + $0xc] sm:$0x1]   ;;  %s133_s16 = smov 112   ;;  %s134_s17 = smov 96   ;;  %v105_v4 = vld [vmem:[%s207_s0 + $0xb] sm:$0x1]  }
   0x3   :  { %v106_v5 = vld [vmem:[%s207_s0 + $0xa] sm:$0x1]   ;;  %v2_v6 = vld [vmem:[%s207_s0] sm:$0x1]   ;;  %s135_s24 = smov 88   ;;  %s136_s25 = smov 80  }
   0x4   :  { %4 = vst.msk [vmem:[#allocation0] sm:$0x1] %vm3_vm0, %v2_v6   ;;  %v107_v7 = vld [vmem:[%s207_s0 + $0x9] sm:$0x1]   ;;  %v108_v8 = vld [vmem:[%s207_s0 + $0x8] sm:$0x1]  }
   0x5   :  { %s137_s30 = smov 72   ;;  %s138_s2 = smov 64   ;;  %v109_v9 = vld [vmem:[%s207_s0 + $0x7] sm:$0x1]   ;;  %v110_v10 = vld [vmem:[%s207_s0 + $0x6] sm:$0x1]  }
   0x6   :  { %13 = vrot.lane.b32.xlu0 %v102_v2, %s133_s16  ;;  %25 = vrot.lane.b32.xlu1 %v104_v3, %s134_s17  ;;  %s139_s7 = smov 56   ;;  %s140_s8 = smov 48   ;;  %v111_v11 = vld [vmem:[%s207_s0 + $0x5] sm:$0x1]   ;;  %v112_v12 = vld [vmem:[%s207_s0 + $0x4] sm:$0x1]  }
   0x7   :  { %s141_s13 = smov 40   ;;  %s142_s14 = smov 32   ;;  %v113_v13 = vld [vmem:[%s207_s0 + $0x3] sm:$0x1]   ;;  %v114_v14 = vld [vmem:[%s207_s0 + $0x2] sm:$0x1]  }
   0x8   :  { %s143_s19 = smov 24   ;;  %s144_s20 = smov 16   ;;  %v115_v15 = vld [vmem:[%s207_s0 + $0x1] sm:$0x1]   ;;  %vm27_vm4 = vcmask 851712   ;;  %vm33_vm5 = vcmask 786112  }
   0x9   :  { %s145_s0 = smov 8   ;;  %vm39_vm6 = vcmask 720512   ;;  %vm45_vm7 = vcmask 654912   ;;  %vm51_vm8 = vcmask 589312   ;;  %vm57_vm9 = vcmask 523712  }
   0xa   :  { %31 = vrot.lane.b32.xlu0 %v105_v4, %s135_s24  ;;  %37 = vrot.lane.b32.xlu1 %v106_v5, %s136_s25  ;;  %vm63_vm10 = vcmask 458112   ;;  %vm69_vm11 = vcmask 392512   ;;  %vm75_vm12 = vcmask 326912   ;;  %vm81_vm13 = vcmask 261312  }
   0xb   :  { %vm87_vm14 = vcmask 195712   ;;  %vm93_vm15 = vcmask 130112  }
   0xe   :  { %43 = vrot.lane.b32.xlu0 %v107_v7, %s137_s30  ;;  %49 = vrot.lane.b32.xlu1 %v108_v8, %s138_s2 }
  0x12   :  { %55 = vrot.lane.b32.xlu0 %v109_v9, %s139_s7  ;;  %61 = vrot.lane.b32.xlu1 %v110_v10, %s140_s8 }
  0x16   :  { %67 = vrot.lane.b32.xlu0 %v111_v11, %s141_s13  ;;  %73 = vrot.lane.b32.xlu1 %v112_v12, %s142_s14 }
  0x1a   :  { %79 = vrot.lane.b32.xlu0 %v113_v13, %s143_s19  ;;  %85 = vrot.lane.b32.xlu1 %v114_v14, %s144_s20 }
  0x1e   :  { %91 = vrot.lane.b32.xlu0 %v115_v15, %s145_s0 }
  0x74   :  { %v8_v16 = vpop.permute.xlu0 %7   ;;  %v20_v17 = vpop.permute.xlu1 %19  }
  0x75   :  { %10 = vst.msk [vmem:[#allocation0] sm:$0x1] %vm9_vm1, %v8_v16  }
  0x78   :  { %v14_v18 = vpop.permute.xlu0 %13   ;;  %v26_v19 = vpop.permute.xlu1 %25  }
  0x79   :  { %16 = vst.msk [vmem:[#allocation0] sm:$0x1] %vm15_vm2, %v14_v18  }
  0x7a   :  { %22 = vst.msk [vmem:[#allocation0] sm:$0x1] %vm21_vm3, %v20_v17  }
  0x7b   :  { %28 = vst.msk [vmem:[#allocation0] sm:$0x1] %vm27_vm4, %v26_v19  }
  0x7c   :  { %v32_v20 = vpop.permute.xlu0 %31   ;;  %v38_v21 = vpop.permute.xlu1 %37  }
  0x7d   :  { %34 = vst.msk [vmem:[#allocation0] sm:$0x1] %vm33_vm5, %v32_v20  }
  0x7e   :  { %40 = vst.msk [vmem:[#allocation0] sm:$0x1] %vm39_vm6, %v38_v21  }
  0x80   :  { %v44_v22 = vpop.permute.xlu0 %43   ;;  %v50_v23 = vpop.permute.xlu1 %49  }
  0x81   :  { %46 = vst.msk [vmem:[#allocation0] sm:$0x1] %vm45_vm7, %v44_v22  }
  0x82   :  { %52 = vst.msk [vmem:[#allocation0] sm:$0x1] %vm51_vm8, %v50_v23  }
  0x84   :  { %v56_v24 = vpop.permute.xlu0 %55   ;;  %v62_v25 = vpop.permute.xlu1 %61  }
  0x85   :  { %58 = vst.msk [vmem:[#allocation0] sm:$0x1] %vm57_vm9, %v56_v24  }
  0x86   :  { %64 = vst.msk [vmem:[#allocation0] sm:$0x1] %vm63_vm10, %v62_v25  }
  0x88   :  { %v68_v26 = vpop.permute.xlu0 %67   ;;  %v74_v27 = vpop.permute.xlu1 %73  }
  0x89   :  { %70 = vst.msk [vmem:[#allocation0] sm:$0x1] %vm69_vm11, %v68_v26  }
  0x8a   :  { %76 = vst.msk [vmem:[#allocation0] sm:$0x1] %vm75_vm12, %v74_v27  }
  0x8c   :  { %v80_v28 = vpop.permute.xlu0 %79   ;;  %v86_v29 = vpop.permute.xlu1 %85  }
  0x8d   :  { %82 = vst.msk [vmem:[#allocation0] sm:$0x1] %vm81_vm13, %v80_v28  }
  0x8e   :  { %88 = vst.msk [vmem:[#allocation0] sm:$0x1] %vm87_vm14, %v86_v29  }
  0x90   :  { %v92_v30 = vpop.permute.xlu0 %91  }
  0x91   :  { %94 = vst.msk [vmem:[#allocation0] sm:$0x1] %vm93_vm15, %v92_v30  }
  0x98   :  { %v98_v31 = vld [vmem:[#allocation0] sm:$0x1] }
  0x99   :  { %100 = vst [vmem:[%s208_s1] sm:$0x1] %v98_v31 }

// kernel: conv_block_3d.1
= control target key start
LH: loop header
LB: loop body
LE: loop exit
PB: predicated region body
PF: predicated region fallthrough
CT: control target
= control target key end

     0   :  { %vm34_vm0 = vcmask 516096   ;;  %vm47_vm1 = vsmask.f32 256  ;;  %v52_v0 = vld [vmem:[#allocation2 + $0xc] sm:$0x1]  ;;  %vm31_vm2 = vcmask 519168   ;;  %s14755_s0 = inlined_call_operand.vmem [shape: bf16[2,8,16,64], index: 0, kind: input, shape index: {}]   ;;  %s14756_s1 = inlined_call_operand.vmem [shape: bf16[576,128], index: 1, kind: input, shape index: {}]   ;;  %s14757_s4 = inlined_call_operand.vmem [shape: bf16[1152,128], index: 4, kind: input, shape index: {}]   ;;  %s14758_s2 = inlined_call_operand.vmem [shape: f32[1,128], index: 2, kind: input, shape index: {}]   ;;  %s14759_s3 = inlined_call_operand.vmem [shape: f32[1,128], index: 3, kind: input, shape index: {}]   ;;  %s14760_s5 = inlined_call_operand.vmem [shape: f32[1,128], index: 5, kind: input, shape index: {}]   ;;  %s14761_s6 = inlined_call_operand.vmem [shape: f32[1,128], index: 6, kind: input, shape index: {}]   ;;  %s14762_s7 = inlined_call_operand.vmem [shape: f32[2,8,16,128], index: 7, kind: output, shape index: {}]  }
   0x1   :  { %vm11430_vm3 = vmand %vm34_vm0, %vm47_vm1  ;;  %vm109_vm4 = vsmask.f32 7938  ;;  %v307_v2 = vld [vmem:[%s14755_s0] sm:$0xf]  ;;  %v308_v4 = vld [vmem:[%s14755_s0 + $0x4] sm:$0xf] }
   0x2   :  { %v53_v3 = vsel %vm11430_vm3, 0, %v52_v0  ;;  %vm340_vm5 = vsmask.f32 4368  ;;  %v343_v5 = vshrl.u32 %v307_v2, 16  ;;  %v346_v6 = vshll.u32 %v307_v2, 16  ;;  %vm11464_vm6 = vmand %vm34_vm0, %vm109_vm4  ;;  %s11387_s17 = smov 64  }
   0x3   :  { %54 = vst [vmem:[#allocation2 + $0xc] sm:$0x1] %v53_v3  ;;  %v351_v7 = vshrl.u32 %v308_v4, 16  ;;  %v354_v8 = vshll.u32 %v308_v4, 16  ;;  %v55_v9 = vld [vmem:[#allocation2 + $0x18] sm:$0x1]  ;;  %vm11472_vm7 = vmor %vm47_vm1, %vm340_vm5 }
   0x4   :  { %v345_v10 = vrot.slane %v343_v5, 7  ;;  %v56_v11 = vsel %vm11430_vm3, 0, %v55_v9  ;;  %v309_v12 = vld [vmem:[%s14755_s0 + $0x8] sm:$0xf]  ;;  %v310_v13 = vld [vmem:[%s14755_s0 + $0xc] sm:$0xf]  ;;  %vm11485_vm8 = vmand %vm31_vm2, %vm109_vm4 }
   0x5   :  { %v11386_v14 = vmov 0   ;;  %v11468_v16 = vrot.slane %v351_v7, 7  ;;  %57 = vst [vmem:[#allocation2 + $0x18] sm:$0x1] %v56_v11  ;;  %v360_v17 = vshrl.u32 %v309_v12, 16  ;;  %v363_v18 = vshll.u32 %v309_v12, 16 }
   0x6   :  { %32 = vst.msk [vmem:[#allocation2] sm:$0xf] %vm31_vm2, %v11386_v14  ;;  %33 = vst.msk [vmem:[#allocation2 + $0x4] sm:$0xf] %vm31_vm2, %v11386_v14  ;;  %v368_v19 = vshrl.u32 %v310_v13, 16  ;;  %v349_v22 = vrot.slane %v345_v10, 4  ;;  %v348_v25 = vor.u32 %v346_v6, %v345_v10 }
   0x7   :  { %35 = vst.msk [vmem:[#allocation2 + $0x8] sm:$0x1] %vm34_vm0, %v11386_v14  ;;  %38 = vst.msk [vmem:[#allocation2 + $0x80] sm:$0x1] %vm34_vm0, %v11386_v14  ;;  %v114_v20 = vld [vmem:[#allocation2 + $0x14] sm:$0x1]  ;;  %v356_v26 = vor.u32 %v354_v8, %v11468_v16 }
   0x8   :  { %36 = vst.msk [vmem:[#allocation2 + $0x78] sm:$0xf] %vm31_vm2, %v11386_v14  ;;  %37 = vst.msk [vmem:[#allocation2 + $0x7c] sm:$0xf] %vm31_vm2, %v11386_v14  ;;  %v371_v23 = vshll.u32 %v310_v13, 16  ;;  %v362_v27 = vrot.slane %v360_v17, 7 }
   0x9   :  { %40 = vst.msk [vmem:[#allocation2 + $0x6c] sm:$0xf] %vm31_vm2, %v11386_v14  ;;  %41 = vst.msk [vmem:[#allocation2 + $0x70] sm:$0xf] %vm31_vm2, %v11386_v14  ;;  %v58_v24 = vld [vmem:[#allocation2 + $0x24] sm:$0x1]  ;;  %v357_v35 = vsel %vm11472_vm7, %v349_v22, %v356_v26 }
   0xa   :  { %42 = vst.msk [vmem:[#allocation2 + $0x74] sm:$0x1] %vm34_vm0, %v11386_v14  ;;  %45 = vst.msk [vmem:[#allocation2 + $0xec] sm:$0x1] %vm34_vm0, %v11386_v14  ;;  %v11477_v28 = vrot.slane %v368_v19, 7  ;;  %v358_v30 = vrot.slane %v11468_v16, 4  ;;  %v365_v36 = vor.u32 %v363_v18, %v362_v27 }
   0xb   :  { %43 = vst.msk [vmem:[#allocation2 + $0xe4] sm:$0xf] %vm31_vm2, %v11386_v14  ;;  %44 = vst.msk [vmem:[#allocation2 + $0xe8] sm:$0xf] %vm31_vm2, %v11386_v14  ;;  %v311_v29 = vld [vmem:[%s14755_s0 + $0x10] sm:$0xf] }
   0xc   :  { %171 = vst [vmem:[#allocation3] sm:$0xf] %v11386_v14  ;;  %172 = vst [vmem:[#allocation3 + $0x4] sm:$0xf] %v11386_v14  ;;  %v115_v32 = vsel %vm11464_vm6, 0, %v114_v20  ;;  %v59_v33 = vsel %vm11430_vm3, 0, %v58_v24  ;;  %v373_v38 = vor.u32 %v371_v23, %v11477_v28 }
   0xd   :  { %173 = vst [vmem:[#allocation3 + $0x8] sm:$0x1] %v11386_v14  ;;  %174 = vst [vmem:[#allocation3 + $0x78] sm:$0xf] %v11386_v14  ;;  %v312_v34 = vld [vmem:[%s14755_s0 + $0x14] sm:$0xf] }
   0xe   :  { %175 = vst [vmem:[#allocation3 + $0x7c] sm:$0xf] %v11386_v14  ;;  %176 = vst [vmem:[#allocation3 + $0x80] sm:$0x1] %v11386_v14  ;;  %v366_v37 = vrot.slane %v362_v27, 4  ;;  %v375_v42 = vrot.slane %v11477_v28, 4 }
   0xf   :  { %178 = vst [vmem:[#allocation3 + $0x6c] sm:$0xf] %v11386_v14  ;;  %179 = vst [vmem:[#allocation3 + $0x70] sm:$0xf] %v11386_v14  ;;  %v117_v39 = vld [vmem:[#allocation2 + $0x20] sm:$0x1] }
  0x10   :  { %180 = vst [vmem:[#allocation3 + $0x74] sm:$0x1] %v11386_v14  ;;  %181 = vst [vmem:[#allocation3 + $0xe4] sm:$0xf] %v11386_v14  ;;  %v61_v40 = vld [vmem:[#allocation2 + $0x30] sm:$0x1]  ;;  %v374_v47 = vsel %vm11472_vm7, %v366_v37, %v373_v38 }
  0x11   :  { %182 = vst [vmem:[#allocation3 + $0xe8] sm:$0xf] %v11386_v14  ;;  %183 = vst [vmem:[#allocation3 + $0xec] sm:$0x1] %v11386_v14  ;;  %v666_v41 = vld [vmem:[#allocation2 + $0xc] sm:$0xf] }
  0x12   :  { %116 = vst [vmem:[#allocation2 + $0x14] sm:$0x1] %v115_v32  ;;  %60 = vst [vmem:[#allocation2 + $0x24] sm:$0x1] %v59_v33  ;;  %v377_v43 = vshrl.u32 %v311_v29, 16  ;;  %v380_v44 = vshll.u32 %v311_v29, 16  ;;  %v667_v46 = vsel %vm11485_vm8, %v348_v25, %v666_v41 }
  0x13   :  { %670 = vst.msk [vmem:[#allocation2 + $0x10] sm:$0xf] %vm31_vm2, %v357_v35  ;;  %v385_v45 = vshrl.u32 %v312_v34, 16  ;;  %v49_v48 = vld [vmem:[#allocation2] sm:$0x1]  ;;  %v388_v59 = vshll.u32 %v312_v34, 16 }
  0x14   :  { %v111_v49 = vld [vmem:[#allocation2 + $0x8] sm:$0x1]  ;;  %v927_v50 = vld [vmem:[#allocation2 + $0x4] sm:$0xf]  ;;  %vm974_vm9 = vsmask.f32 3328 }
  0x15   :  { %vm975_vm10 = vsmask.f32 7440  ;;  %668 = vst [vmem:[#allocation2 + $0xc] sm:$0xf] %v667_v46  ;;  %v676_v51 = vld [vmem:[#allocation2 + $0x18] sm:$0xf] }
  0x16   :  { %679 = vst.msk [vmem:[#allocation2 + $0x1c] sm:$0xf] %vm31_vm2, %v374_v47  ;;  %v50_v52 = vsel %vm11430_vm3, 0, %v49_v48  ;;  %v112_v53 = vsel %vm11464_vm6, 0, %v111_v49  ;;  %v987_v54 = vshll.u32 %v927_v50, 16  ;;  %v991_v55 = vshrl.u32 %v927_v50, 16  ;;  %vm11550_vm11 = vmor %vm974_vm9, %vm975_vm10 }
  0x17   :  { %v677_v56 = vsel %vm11485_vm8, %v365_v36, %v676_v51  ;;  %51 = vst [vmem:[#allocation2] sm:$0x1] %v50_v52  ;;  %113 = vst [vmem:[#allocation2 + $0x8] sm:$0x1] %v112_v53  ;;  %v379_v57 = vrot.slane %v377_v43, 7  ;;  %v11512_v58 = vrot.slane %v385_v45, 7 }
  0x18   :  { %v11517_v60 = vld [vmem:[%s14755_s0 + $0x18] sm:$0xf]  ;;  %678 = vst [vmem:[#allocation2 + $0x18] sm:$0xf] %v677_v56  ;;  %v11519_v61 = vrot.slane %v987_v54, 5  ;;  %v993_v62 = vrot.slane %v991_v55, 4 }
  0x19   :  { %v118_v63 = vsel %vm11464_vm6, 0, %v117_v39  ;;  %v62_v0 = vsel %vm11430_vm3, 0, %v61_v40  ;;  %v11528_v2 = vld [vmem:[%s14755_s0 + $0x1c] sm:$0xf]  ;;  %v382_v3 = vor.u32 %v380_v44, %v379_v57  ;;  %v383_v4 = vrot.slane %v379_v57, 4 }
  0x1a   :  { %v390_v5 = vor.u32 %v388_v59, %v11512_v58  ;;  %v392_v6 = vrot.slane %v11512_v58, 4  ;;  %119 = vst [vmem:[#allocation2 + $0x20] sm:$0x1] %v118_v63  ;;  %63 = vst [vmem:[#allocation2 + $0x30] sm:$0x1] %v62_v0  ;;  %v994_v7 = vor.u32 %v993_v62, %v11519_v61  ;;  %v394_v10 = vshrl.u32 %v11517_v60, 16 }
  0x1b   :  { %v673_v8 = vld [vmem:[#allocation2 + $0x14] sm:$0x1]  ;;  %v683_v9 = vld [vmem:[#allocation2 + $0x24] sm:$0xf]  ;;  %v397_v11 = vshll.u32 %v11517_v60, 16  ;;  %v402_v17 = vshrl.u32 %v11528_v2, 16 }
  0x1c   :  { %v674_v12 = vsel %vm11430_vm3, %v358_v30, %v673_v8  ;;  %v930_v13 = vld [vmem:[#allocation2 + $0x10] sm:$0xf]  ;;  %v391_v14 = vsel %vm11472_vm7, %v383_v4, %v390_v5  ;;  %v684_v16 = vsel %vm11485_vm8, %v382_v3, %v683_v9  ;;  %v995_v18 = vrot.slane %v994_v7, 4  ;;  %v929_v27 = vld [vmem:[#allocation2 + $0xc] sm:$0xf] }
  0x1d   :  { %675 = vst [vmem:[#allocation2 + $0x14] sm:$0x1] %v674_v12  ;;  %v1011_v19 = vshll.u32 %v930_v13, 16  ;;  %v1015_v20 = vshrl.u32 %v930_v13, 16  ;;  %685 = vst [vmem:[#allocation2 + $0x24] sm:$0xf] %v684_v16 }
  0x1e   :  { %686 = vst.msk [vmem:[#allocation2 + $0x28] sm:$0xf] %vm31_vm2, %v391_v14  ;;  %v11543_v22 = vrot.slane %v394_v10, 7  ;;  %v11178_v23 = vld [vmem:[#allocation2 + $0xc] sm:$0xff]   ;;  %v11545_v24 = vrot.slane %v402_v17, 7  ;;  %v1002_v35 = vshrl.u32 %v929_v27, 16 }
  0x1f   :  { %v926_v25 = vld [vmem:[#allocation2] sm:$0xf]  ;;  %v928_v26 = vld [vmem:[#allocation2 + $0x8] sm:$0x1]  ;;  %1877 = vrot.lane.b32.xlu0 %v11178_v23, %s11387_s17  ;;  %v11179_v29 = vld [vmem:[#allocation2 + $0x18] sm:$0xff]   ;;  %v1005_v36 = vshll.u32 %v929_v27, 16 }
  0x20   :  { %v978_v30 = vshrl.u32 %v926_v25, 16  ;;  %v981_v32 = vshll.u32 %v926_v25, 16  ;;  %v997_v33 = vshll.u32 %v928_v26, 16  ;;  %v1013_v37 = vrot.slane %v1011_v19, 5  ;;  %1879 = vrot.lane.b32.xlu1 %v11179_v29, %s11387_s17  ;;  %v932_v45 = vld [vmem:[#allocation2 + $0x18] sm:$0xf] }
  0x21   :  { %v1017_v38 = vrot.slane %v1015_v20, 4  ;;  %v680_v39 = vld [vmem:[#allocation2 + $0x20] sm:$0x1]  ;;  %v1004_v46 = vrot.slane %v1002_v35, 4  ;;  %v1007_v47 = vrot.slane %v1005_v36, 5  ;;  %v1026_v50 = vshrl.u32 %v932_v45, 16 }
  0x22   :  { %v980_v40 = vrot.slane %v978_v30, 4  ;;  %v983_v41 = vrot.slane %v981_v32, 5  ;;  %v999_v43 = vrot.slane %v997_v33, 5  ;;  %v681_v44 = vsel %vm11430_vm3, %v375_v42, %v680_v39  ;;  %v933_v49 = vld [vmem:[#allocation2 + $0x1c] sm:$0xf] }
  0x23   :  { %v1018_v48 = vor.u32 %v1017_v38, %v1013_v37  ;;  %682 = vst [vmem:[#allocation2 + $0x20] sm:$0x1] %v681_v44  ;;  %v399_v54 = vor.u32 %v397_v11, %v11543_v22  ;;  %v1008_v55 = vor.u32 %v1007_v47, %v1004_v46  ;;  %v1028_v57 = vrot.slane %v1026_v50, 4  ;;  %v120_v5 = vld [vmem:[#allocation2 + $0x2c] sm:$0x1] }
  0x24   :  { %v984_v51 = vor.u32 %v983_v41, %v980_v40  ;;  %v1000_v52 = vsel %vm11550_vm11, %v995_v18, %v999_v43  ;;  %v931_v53 = vld [vmem:[#allocation2 + $0x14] sm:$0x1]  ;;  %v1029_v42 = vshll.u32 %v932_v45, 16  ;;  %v1035_v60 = vshll.u32 %v933_v49, 16  ;;  %v690_v11 = vld [vmem:[#allocation2 + $0x30] sm:$0xf] }
  0x25   :  { %v1019_v56 = vrot.slane %v1018_v48, 4  ;;  %v1021_v28 = vshll.u32 %v931_v53, 16  ;;  %v1039_v62 = vshrl.u32 %v933_v49, 16  ;;  %v1009_v63 = vrot.slane %v1008_v55, 4  ;;  %v935_v17 = vld [vmem:[#allocation2 + $0x24] sm:$0xf] }
  0x26   :  { %v985_v59 = vrot.slane %v984_v51, 4  ;;  %v400_v3 = vrot.slane %v11543_v22, 4  ;;  %v405_v4 = vshll.u32 %v11528_v2, 16  ;;  %v1031_v8 = vrot.slane %v1029_v42, 5  ;;  %v64_v2 = vld [vmem:[#allocation2 + $0x3c] sm:$0x1] }
  0x27   :  { %v1023_v0 = vrot.slane %v1021_v28, 5  ;;  %v1037_v9 = vrot.slane %v1035_v60, 5  ;;  %v1041_v10 = vrot.slane %v1039_v62, 4  ;;  %v1014_v13 = vsel %vm11550_vm11, %v1009_v63, %v1013_v37  ;;  %v936_v23 = vld [vmem:[#allocation2 + $0x28] sm:$0xf] }
  0x28   :  { %v990_v7 = vsel %vm11550_vm11, %v985_v59, %v11519_v61  ;;  %v407_v16 = vor.u32 %v405_v4, %v11545_v24  ;;  %v1032_v20 = vor.u32 %v1031_v8, %v1028_v57  ;;  %v409_v61 = vrot.slane %v11545_v24, 4  ;;  %v11180_v25 = vld [vmem:[#allocation2 + $0x24] sm:$0xff]   ;;  %v315_v32 = vld [vmem:[%s14755_s0 + $0x20] sm:$0xf]  ;;  %v123_v44 = vld [vmem:[#allocation2 + $0x38] sm:$0x1] }
  0x29   :  { %v9812_v12 = vcombine.low %v990_v7, %v1000_v52  ;;  %v1024_v14 = vsel %vm11550_vm11, %v1019_v56, %v1023_v0  ;;  %v1042_v22 = vor.u32 %v1041_v10, %v1037_v9  ;;  %v691_v29 = vsel %vm11485_vm8, %v399_v54, %v690_v11  ;;  %v316_v38 = vld [vmem:[%s14755_s0 + $0x24] sm:$0xf]  ;;  %v67_v49 = vld [vmem:[#allocation2 + $0x48] sm:$0x1]  ;;  %v318_v8 = vld [vmem:[%s14755_s0 + $0x2c] sm:$0xf] }
  0x2a   :  { %v9813_v18 = vcombine.low %v1014_v13, %v1024_v14  ;;  %v934_v19 = vld [vmem:[#allocation2 + $0x20] sm:$0x1]  ;;  %v408_v27 = vsel %vm11472_vm7, %v400_v3, %v407_v16  ;;  %v121_v30 = vsel %vm11464_vm6, 0, %v120_v5  ;;  %v1033_v33 = vrot.slane %v1032_v20, 4  ;;  %692 = vst [vmem:[#allocation2 + $0x30] sm:$0xf] %v691_v29 }
  0x2b   :  { %1409 = vrot.lane.b32.xlu0 %v9812_v12, %s11387_s17  ;;  %v1045_v26 = vshll.u32 %v934_v19, 16  ;;  %v1043_v35 = vrot.slane %v1042_v22, 4  ;;  %693 = vst.msk [vmem:[#allocation2 + $0x34] sm:$0xf] %vm31_vm2, %v408_v27  ;;  %122 = vst [vmem:[#allocation2 + $0x2c] sm:$0x1] %v121_v30 }
  0x2c   :  { %1411 = vrot.lane.b32.xlu1 %v9813_v18, %s11387_s17  ;;  %v1050_v36 = vshrl.u32 %v935_v17, 16  ;;  %v1053_v37 = vshll.u32 %v935_v17, 16  ;;  %v1059_v40 = vshll.u32 %v936_v23, 16  ;;  %v1063_v41 = vshrl.u32 %v936_v23, 16  ;;  %v317_v62 = vld [vmem:[%s14755_s0 + $0x28] sm:$0xf] }
  0x2d   :  { %v1047_v39 = vrot.slane %v1045_v26, 5  ;;  %v65_v43 = vsel %vm11430_vm3, 0, %v64_v2  ;;  %v1038_v45 = vsel %vm11550_vm11, %v1033_v33, %v1037_v9  ;;  %v411_v48 = vshrl.u32 %v315_v32, 16  ;;  %v70_v26 = vld [vmem:[#allocation2 + $0x54] sm:$0x1] }
  0x2e   :  { %v1052_v46 = vrot.slane %v1050_v36, 4  ;;  %v1055_v47 = vrot.slane %v1053_v37, 5  ;;  %66 = vst [vmem:[#allocation2 + $0x3c] sm:$0x1] %v65_v43  ;;  %v11595_v51 = vrot.slane %v1059_v40, 5  ;;  %v1065_v52 = vrot.slane %v1063_v41, 4 }
  0x2f   :  { %1881 = vrot.lane.b32.xlu0 %v11180_v25, %s11387_s17  ;;  %v1048_v50 = vsel %vm11550_vm11, %v1043_v35, %v1047_v39  ;;  %v414_v53 = vshll.u32 %v315_v32, 16  ;;  %v413_v56 = vrot.slane %v411_v48, 7  ;;  %v419_v28 = vshrl.u32 %v316_v38, 16  ;;  %v126_v25 = vld [vmem:[#allocation2 + $0x44] sm:$0x1] }
  0x30   :  { %v9814_v54 = vcombine.low %v1038_v45, %v1048_v50  ;;  %v1056_v55 = vor.u32 %v1055_v47, %v1052_v46  ;;  %v1066_v57 = vor.u32 %v1065_v52, %v11595_v51  ;;  %v422_v59 = vshll.u32 %v316_v38, 16  ;;  %v319_v30 = vld [vmem:[%s14755_s0 + $0x30] sm:$0xf]  ;;  %v320_v37 = vld [vmem:[%s14755_s0 + $0x34] sm:$0xf] }
  0x31   :  { %v124_v42 = vsel %vm11464_vm6, 0, %v123_v44  ;;  %v68_v60 = vsel %vm11430_vm3, 0, %v67_v49  ;;  %v416_v0 = vor.u32 %v414_v53, %v413_v56  ;;  %v417_v3 = vrot.slane %v413_v56, 4  ;;  %v938_v12 = vld [vmem:[#allocation2 + $0x30] sm:$0xf] }
  0x32   :  { %1413 = vrot.lane.b32.xlu1 %v9814_v54, %s11387_s17  ;;  %v11606_v63 = vrot.slane %v1056_v55, 4  ;;  %v11608_v4 = vrot.slane %v419_v28, 7  ;;  %125 = vst [vmem:[#allocation2 + $0x38] sm:$0x1] %v124_v42  ;;  %69 = vst [vmem:[#allocation2 + $0x48] sm:$0x1] %v68_v60 }
  0x33   :  { %v11181_v5 = vld [vmem:[#allocation2 + $0x30] sm:$0xff]   ;;  %v11610_v7 = vrot.slane %v1066_v57, 4  ;;  %v687_v9 = vld [vmem:[#allocation2 + $0x2c] sm:$0x1]  ;;  %v428_v13 = vshrl.u32 %v317_v62, 16  ;;  %v1074_v2 = vshrl.u32 %v938_v12, 16 }
  0x34   :  { %v424_v10 = vor.u32 %v422_v59, %v11608_v4  ;;  %v426_v11 = vrot.slane %v11608_v4, 4  ;;  %1883 = vrot.lane.b32.xlu0 %v11181_v5, %s11387_s17  ;;  %v688_v14 = vsel %vm11430_vm3, %v392_v6, %v687_v9  ;;  %v939_v17 = vld [vmem:[#allocation2 + $0x34] sm:$0xf]  ;;  %v1077_v18 = vshll.u32 %v938_v12, 16  ;;  %v129_v49 = vld [vmem:[#allocation2 + $0x50] sm:$0x1] }
  0x35   :  { %v697_v16 = vld [vmem:[#allocation2 + $0x3c] sm:$0xf]  ;;  %689 = vst [vmem:[#allocation2 + $0x2c] sm:$0x1] %v688_v14  ;;  %v1083_v22 = vshll.u32 %v939_v17, 16  ;;  %v1087_v23 = vshrl.u32 %v939_v17, 16 }
  0x36   :  { %v425_v19 = vsel %vm11472_vm7, %v417_v3, %v424_v10  ;;  %v698_v20 = vsel %vm11485_vm8, %v416_v0, %v697_v16  ;;  %v1076_v58 = vrot.slane %v1074_v2, 4  ;;  %v1079_v6 = vrot.slane %v1077_v18, 5  ;;  %v73_v57 = vld [vmem:[#allocation2 + $0x60] sm:$0x1]  ;;  %v11196_v3 = vld [vmem:[%s14756_s1 + $0x48] sm:$0xff]  }
  0x37   :  { %699 = vst [vmem:[#allocation2 + $0x3c] sm:$0xf] %v698_v20  ;;  %700 = vst.msk [vmem:[#allocation2 + $0x40] sm:$0xf] %vm31_vm2, %v425_v19  ;;  %v430_v27 = vrot.slane %v428_v13, 7  ;;  %v431_v29 = vshll.u32 %v317_v62, 16  ;;  %v1062_v10 = vsel %vm11550_vm11, %v11606_v63, %v11595_v51 }
  0x38   :  { %v11630_v32 = vrot.slane %v1083_v22, 5  ;;  %v1089_v33 = vrot.slane %v1087_v23, 4  ;;  %v436_v35 = vshrl.u32 %v318_v8, 16  ;;  %v439_v36 = vshll.u32 %v318_v8, 16  ;;  %v11195_v59 = vld [vmem:[%s14756_s1] sm:$0xff]  }
  0x39   :  { %v694_v38 = vld [vmem:[#allocation2 + $0x38] sm:$0x1]  ;;  %v1080_v39 = vor.u32 %v1079_v6, %v1076_v58  ;;  %v433_v40 = vor.u32 %v431_v29, %v430_v27  ;;  %v434_v41 = vrot.slane %v430_v27, 4  ;;  %v704_v43 = vld [vmem:[#allocation2 + $0x48] sm:$0xf]  ;;  %v127_v44 = vsel %vm11464_vm6, 0, %v126_v25 }
  0x3a   :  { %v695_v45 = vsel %vm11430_vm3, %v409_v61, %v694_v38  ;;  %v1090_v46 = vor.u32 %v1089_v33, %v11630_v32  ;;  %v11642_v47 = vrot.slane %v436_v35, 7  ;;  %128 = vst [vmem:[#allocation2 + $0x44] sm:$0x1] %v127_v44  ;;  %v71_v48 = vsel %vm11430_vm3, 0, %v70_v26  ;;  %v11194_v61 = vld [vmem:[%s14756_s1 + $0x40] sm:$0xff]   ;;  %v11197_v58 = vld [vmem:[%s14756_s1 + $0x8] sm:$0xff]  }
  0x3b   :  { %696 = vst [vmem:[#allocation2 + $0x38] sm:$0x1] %v695_v45  ;;  %v11646_v50 = vrot.slane %v1080_v39, 4  ;;  %v705_v52 = vsel %vm11485_vm8, %v433_v40, %v704_v43  ;;  %72 = vst [vmem:[#allocation2 + $0x54] sm:$0x1] %v71_v48  ;;  %v445_v24 = vshrl.u32 %v319_v30, 16  ;;  %10372 = vmatprep.subr.bf16.mxu0 %v11194_v61 }
  0x3c   :  { %v448_v53 = vshll.u32 %v319_v30, 16  ;;  %v11653_v54 = vrot.slane %v1090_v46, 4  ;;  %v441_v55 = vor.u32 %v439_v36, %v11642_v47  ;;  %v443_v56 = vrot.slane %v11642_v47, 4  ;;  %706 = vst [vmem:[#allocation2 + $0x48] sm:$0xf] %v705_v52  ;;  %10373 = vmatpush3.bf16.msra.mxu0 %v11195_v59  ;;  %v11199_v44 = vld [vmem:[%s14756_s1 + $0x10] sm:$0xff]  }
  0x3d   :  { %v453_v28 = vshrl.u32 %v320_v37, 16  ;;  %v937_v42 = vld [vmem:[#allocation2 + $0x2c] sm:$0x1]  ;;  %v447_v60 = vrot.slane %v445_v24, 7  ;;  %v456_v62 = vshll.u32 %v320_v37, 16  ;;  %v130_v0 = vsel %vm11464_vm6, 0, %v129_v49  ;;  %10374 = vmatprep.subr.bf16.mxu0 %v11196_v3 }
  0x3e   :  { %v1069_v5 = vshll.u32 %v937_v42, 16  ;;  %v11182_v8 = vld [vmem:[#allocation2 + $0x3c] sm:$0xff]   ;;  %v442_v9 = vsel %vm11472_vm7, %v434_v41, %v441_v55  ;;  %131 = vst [vmem:[#allocation2 + $0x50] sm:$0x1] %v130_v0  ;;  %v11678_v22 = vld [vmem:[%s14755_s0 + $0x38] sm:$0xf]  ;;  %v1086_v51 = vsel %vm11550_vm11, %v11646_v50, %v11630_v32 }
  0x3f   :  { %707 = vst.msk [vmem:[#allocation2 + $0x4c] sm:$0xf] %vm31_vm2, %v442_v9  ;;  %v941_v12 = vld [vmem:[#allocation2 + $0x3c] sm:$0xf]  ;;  %v942_v13 = vld [vmem:[#allocation2 + $0x40] sm:$0xf]  ;;  %v450_v14 = vor.u32 %v448_v53, %v447_v60  ;;  %1885 = vrot.lane.b32.xlu0 %v11182_v8, %s11387_s17 }
  0x40   :  { %v451_v16 = vrot.slane %v447_v60, 4  ;;  %v11672_v17 = vrot.slane %v453_v28, 7  ;;  %v1071_v2 = vrot.slane %v1069_v5, 5  ;;  %v1098_v18 = vshrl.u32 %v941_v12, 16  ;;  %10375 = vmatpush3.bf16.msra.mxu0 %v11197_v58  ;;  %v11709_v41 = vld [vmem:[%s14755_s0 + $0x3c] sm:$0xf] }
  0x41   :  { %v1101_v19 = vshll.u32 %v941_v12, 16  ;;  %v1107_v20 = vshll.u32 %v942_v13, 16  ;;  %v701_v63 = vld [vmem:[#allocation2 + $0x44] sm:$0x1]  ;;  %v1111_v23 = vshrl.u32 %v942_v13, 16  ;;  %v74_v26 = vsel %vm11430_vm3, 0, %v73_v57 }
  0x42   :  { %v458_v25 = vor.u32 %v456_v62, %v11672_v17  ;;  %v1072_v6 = vsel %vm11550_vm11, %v11610_v7, %v1071_v2  ;;  %v940_v27 = vld [vmem:[#allocation2 + $0x38] sm:$0x1]  ;;  %v702_v29 = vsel %vm11430_vm3, %v426_v11, %v701_v63  ;;  %v1100_v30 = vrot.slane %v1098_v18, 4  ;;  %v711_v33 = vld [vmem:[#allocation2 + $0x54] sm:$0xf]  ;;  %v11202_v13 = vld [vmem:[%s14756_s1 + $0x60] sm:$0xff]  }
  0x43   :  { %v1103_v32 = vrot.slane %v1101_v19, 5  ;;  %75 = vst [vmem:[#allocation2 + $0x60] sm:$0x1] %v74_v26  ;;  %v9815_v35 = vcombine.low %v1062_v10, %v1072_v6  ;;  %v1093_v36 = vshll.u32 %v940_v27, 16  ;;  %703 = vst [vmem:[#allocation2 + $0x44] sm:$0x1] %v702_v29  ;;  %v712_v11 = vsel %vm11485_vm8, %v450_v14, %v711_v33 }
  0x44   :  { %v11697_v37 = vrot.slane %v1107_v20, 5  ;;  %v1113_v38 = vrot.slane %v1111_v23, 4  ;;  %v11198_v7 = vld [vmem:[%s14756_s1 + $0x50] sm:$0xff]   ;;  %v459_v4 = vsel %vm11472_vm7, %v451_v16, %v458_v25  ;;  %v944_v40 = vld [vmem:[#allocation2 + $0x48] sm:$0xf]  ;;  %v462_v43 = vshrl.u32 %v11678_v22, 16 }
  0x45   :  { %v1104_v39 = vor.u32 %v1103_v32, %v1100_v30  ;;  %1415 = vrot.lane.b32.xlu1 %v9815_v35, %s11387_s17  ;;  %v1095_v45 = vrot.slane %v1093_v36, 5  ;;  %713 = vst [vmem:[#allocation2 + $0x54] sm:$0xf] %v712_v11  ;;  %714 = vst.msk [vmem:[#allocation2 + $0x58] sm:$0xf] %vm31_vm2, %v459_v4  ;;  %v1122_v49 = vshrl.u32 %v944_v40, 16  ;;  %10376 = vmatprep.subr.bf16.mxu0 %v11198_v7 }
  0x46   :  { %v1114_v46 = vor.u32 %v1113_v38, %v11697_v37  ;;  %v708_v48 = vld [vmem:[#allocation2 + $0x50] sm:$0x1]  ;;  %v1125_v50 = vshll.u32 %v944_v40, 16  ;;  %v11200_v52 = vld [vmem:[%s14756_s1 + $0x58] sm:$0xff]   ;;  %v11183_v24 = vld [vmem:[#allocation2 + $0x48] sm:$0xff]   ;;  %v460_v53 = vrot.slane %v11672_v17, 4  ;;  %10377 = vmatpush3.bf16.msra.mxu0 %v11199_v44 }
  0x47   :  { %v709_v61 = vsel %vm11430_vm3, %v443_v56, %v708_v48  ;;  %v945_v55 = vld [vmem:[#allocation2 + $0x4c] sm:$0xf]  ;;  %v1096_v28 = vsel %vm11550_vm11, %v11653_v54, %v1095_v45  ;;  %v1105_v57 = vrot.slane %v1104_v39, 4  ;;  %v1124_v59 = vrot.slane %v1122_v49, 4  ;;  %v132_v60 = vld [vmem:[#allocation2 + $0x5c] sm:$0x1]  ;;  %1887 = vrot.lane.b32.xlu0 %v11183_v24, %s11387_s17  ;;  %10378 = vmatprep.subr.bf16.mxu0 %v11200_v52 }
  0x48   :  { %710 = vst [vmem:[#allocation2 + $0x50] sm:$0x1] %v709_v61  ;;  %v1127_v42 = vrot.slane %v1125_v50, 5  ;;  %v11201_v62 = vld [vmem:[%s14756_s1 + $0x18] sm:$0xff]   ;;  %v9816_v0 = vcombine.low %v1086_v51, %v1096_v28  ;;  %v1115_v47 = vrot.slane %v1114_v46, 4  ;;  %v1131_v56 = vshll.u32 %v945_v55, 16 }
  0x49   :  { %v1135_v3 = vshrl.u32 %v945_v55, 16  ;;  %v82_v5 = vld [vmem:[#allocation2 + $0x84] sm:$0x1]  ;;  %v464_v54 = vrot.slane %v462_v43, 7  ;;  %v465_v9 = vshll.u32 %v11678_v22, 16  ;;  %v470_v10 = vshrl.u32 %v11709_v41, 16 }
  0x4a   :  { %v1128_v8 = vor.u32 %v1127_v42, %v1124_v59  ;;  %v718_v12 = vld [vmem:[#allocation2 + $0x60] sm:$0xf]  ;;  %1417 = vrot.lane.b32.xlu1 %v9816_v0, %s11387_s17  ;;  %v943_v14 = vld [vmem:[#allocation2 + $0x44] sm:$0x1]  ;;  %v1133_v16 = vrot.slane %v1131_v56, 5  ;;  %v473_v18 = vshll.u32 %v11709_v41, 16  ;;  %10379 = vmatpush3.bf16.msra.mxu0 %v11201_v62  ;;  %v1110_v6 = vsel %vm11550_vm11, %v1105_v57, %v11697_v37 }
  0x4b   :  { %v1137_v2 = vrot.slane %v1135_v3, 4  ;;  %v133_v19 = vsel %vm11464_vm6, 0, %v132_v60  ;;  %v1117_v20 = vshll.u32 %v943_v14, 16  ;;  %v467_v22 = vor.u32 %v465_v9, %v464_v54  ;;  %v11203_v23 = vld [vmem:[%s14756_s1 + $0x20] sm:$0xff]   ;;  %10380 = vmatprep.subr.bf16.mxu0 %v11202_v13  ;;  %v79_v49 = vld [vmem:[#allocation2 + $0x78] sm:$0x1] }
  0x4c   :  { %v1129_v51 = vrot.slane %v1128_v8, 4  ;;  %v468_v63 = vrot.slane %v464_v54, 4  ;;  %134 = vst [vmem:[#allocation2 + $0x5c] sm:$0x1] %v133_v19  ;;  %v11184_v25 = vld [vmem:[#allocation2 + $0x54] sm:$0xff]   ;;  %v11745_v58 = vrot.slane %v470_v10, 7 }
  0x4d   :  { %v1138_v26 = vor.u32 %v1137_v2, %v1133_v16  ;;  %v1119_v27 = vrot.slane %v1117_v20, 5  ;;  %v719_v29 = vsel %vm11485_vm8, %v467_v22, %v718_v12  ;;  %v947_v30 = vld [vmem:[#allocation2 + $0x54] sm:$0xf]  ;;  %v948_v32 = vld [vmem:[#allocation2 + $0x58] sm:$0xf]  ;;  %v83_v33 = vsel %vm11430_vm3, 0, %v82_v5  ;;  %1889 = vrot.lane.b32.xlu0 %v11184_v25, %s11387_s17 }
  0x4e   :  { %v1134_v36 = vsel %vm11550_vm11, %v1129_v51, %v1133_v16  ;;  %v475_v7 = vor.u32 %v473_v18, %v11745_v58  ;;  %720 = vst [vmem:[#allocation2 + $0x60] sm:$0xf] %v719_v29  ;;  %v1146_v37 = vshrl.u32 %v947_v30, 16  ;;  %84 = vst [vmem:[#allocation2 + $0x84] sm:$0x1] %v83_v33  ;;  %v1149_v40 = vshll.u32 %v947_v30, 16  ;;  %10381 = vmatpush3.bf16.msra.mxu0 %v11203_v23 }
  0x4f   :  { %v946_v35 = vld [vmem:[#allocation2 + $0x50] sm:$0x1]  ;;  %v1139_v38 = vrot.slane %v1138_v26, 4  ;;  %v323_v39 = vld [vmem:[%s14755_s0 + $0x40] sm:$0xf]  ;;  %v1120_v4 = vsel %vm11550_vm11, %v1115_v47, %v1119_v27  ;;  %v1155_v41 = vshll.u32 %v948_v32, 16 }
  0x50   :  { %v1141_v11 = vshll.u32 %v946_v35, 16  ;;  %v324_v43 = vld [vmem:[%s14755_s0 + $0x44] sm:$0xf]  ;;  %v9817_v44 = vcombine.low %v1110_v6, %v1120_v4  ;;  %v476_v45 = vsel %vm11472_vm7, %v468_v63, %v475_v7  ;;  %v1148_v46 = vrot.slane %v1146_v37, 4  ;;  %v141_v55 = vld [vmem:[#allocation2 + $0x80] sm:$0x1] }
  0x51   :  { %v1159_v48 = vshrl.u32 %v948_v32, 16  ;;  %721 = vst.msk [vmem:[#allocation2 + $0x64] sm:$0xf] %vm31_vm2, %v476_v45  ;;  %v1151_v52 = vrot.slane %v1149_v40, 5  ;;  %v11769_v24 = vrot.slane %v1155_v41, 5  ;;  %v479_v61 = vshrl.u32 %v323_v39, 16 }
  0x52   :  { %v1143_v50 = vrot.slane %v1141_v11, 5  ;;  %1419 = vrot.lane.b32.xlu1 %v9817_v44, %s11387_s17  ;;  %v482_v59 = vshll.u32 %v323_v39, 16  ;;  %v487_v42 = vshrl.u32 %v324_v43, 16  ;;  %v490_v60 = vshll.u32 %v324_v43, 16  ;;  %v951_v3 = vld [vmem:[#allocation2 + $0x7c] sm:$0xf] }
  0x53   :  { %v715_v28 = vld [vmem:[#allocation2 + $0x5c] sm:$0x1]  ;;  %v1161_v57 = vrot.slane %v1159_v48, 4  ;;  %v1152_v47 = vor.u32 %v1151_v52, %v1148_v46  ;;  %v481_v56 = vrot.slane %v479_v61, 7  ;;  %v85_v5 = vld [vmem:[#allocation2 + $0x90] sm:$0x1] }
  0x54   :  { %v1144_v62 = vsel %vm11550_vm11, %v1139_v38, %v1143_v50  ;;  %v716_v0 = vsel %vm11430_vm3, %v460_v53, %v715_v28  ;;  %v11779_v9 = vrot.slane %v487_v42, 7  ;;  %v80_v10 = vsel %vm11430_vm3, 0, %v79_v49  ;;  %v325_v17 = vld [vmem:[%s14755_s0 + $0x48] sm:$0xf]  ;;  %v326_v53 = vld [vmem:[%s14755_s0 + $0x4c] sm:$0xf] }
  0x55   :  { %v9818_v8 = vcombine.low %v1134_v36, %v1144_v62  ;;  %717 = vst [vmem:[#allocation2 + $0x5c] sm:$0x1] %v716_v0  ;;  %v1162_v54 = vor.u32 %v1161_v57, %v11769_v24  ;;  %v484_v12 = vor.u32 %v482_v59, %v481_v56  ;;  %v485_v13 = vrot.slane %v481_v56, 4  ;;  %v725_v14 = vld [vmem:[#allocation2 + $0x84] sm:$0xf]  ;;  %v11204_v63 = vld [vmem:[%s14756_s1 + $0x68] sm:$0xff]  }
  0x56   :  { %81 = vst [vmem:[#allocation2 + $0x78] sm:$0x1] %v80_v10  ;;  %v144_v16 = vld [vmem:[#allocation2 + $0x8c] sm:$0x1]  ;;  %v88_v2 = vld [vmem:[#allocation2 + $0x9c] sm:$0x1]  ;;  %v492_v20 = vor.u32 %v490_v60, %v11779_v9  ;;  %10382 = vmatprep.subr.bf16.mxu0 %v11204_v63 }
  0x57   :  { %1421 = vrot.lane.b32.xlu1 %v9818_v8, %s11387_s17  ;;  %v11790_v18 = vrot.slane %v1152_v47, 4  ;;  %v11792_v19 = vrot.slane %v1162_v54, 4  ;;  %v142_v51 = vsel %vm11464_vm6, 0, %v141_v55  ;;  %v327_v22 = vld [vmem:[%s14755_s0 + $0x50] sm:$0xf]  ;;  %v494_v23 = vrot.slane %v11779_v9, 4 }
  0x58   :  { %v726_v25 = vsel %vm11485_vm8, %v484_v12, %v725_v14  ;;  %143 = vst [vmem:[#allocation2 + $0x80] sm:$0x1] %v142_v51  ;;  %v1179_v26 = vshll.u32 %v951_v3, 16  ;;  %v1183_v6 = vshrl.u32 %v951_v3, 16  ;;  %v11809_v27 = vld [vmem:[%s14755_s0 + $0x54] sm:$0xf]  ;;  %v493_v30 = vsel %vm11472_vm7, %v485_v13, %v492_v20 }
  0x59   :  { %v11185_v29 = vld [vmem:[#allocation2 + $0x60] sm:$0xff]   ;;  %727 = vst [vmem:[#allocation2 + $0x84] sm:$0xf] %v726_v25  ;;  %v86_v32 = vsel %vm11430_vm3, 0, %v85_v5  ;;  %v496_v33 = vshrl.u32 %v325_v17, 16  ;;  %v499_v35 = vshll.u32 %v325_v17, 16  ;;  %v1158_v60 = vsel %vm11550_vm11, %v11790_v18, %v11769_v24 }
  0x5a   :  { %728 = vst.msk [vmem:[#allocation2 + $0x88] sm:$0xf] %vm31_vm2, %v493_v30  ;;  %v11816_v36 = vrot.slane %v1179_v26, 5  ;;  %v1185_v38 = vrot.slane %v1183_v6, 4  ;;  %87 = vst [vmem:[#allocation2 + $0x90] sm:$0x1] %v86_v32  ;;  %1891 = vrot.lane.b32.xlu0 %v11185_v29, %s11387_s17 }
  0x5b   :  { %v504_v7 = vshrl.u32 %v326_v53, 16  ;;  %v507_v37 = vshll.u32 %v326_v53, 16  ;;  %v498_v39 = vrot.slane %v496_v33, 7  ;;  %v145_v4 = vsel %vm11464_vm6, 0, %v144_v16  ;;  %v11205_v48 = vld [vmem:[%s14756_s1 + $0x28] sm:$0xff]   ;;  %v11206_v55 = vld [vmem:[%s14756_s1 + $0x70] sm:$0xff]  }
  0x5c   :  { %v89_v11 = vsel %vm11430_vm3, 0, %v88_v2  ;;  %v513_v40 = vshrl.u32 %v327_v22, 16  ;;  %v949_v41 = vld [vmem:[#allocation2 + $0x5c] sm:$0x1]  ;;  %v1186_v43 = vor.u32 %v1185_v38, %v11816_v36  ;;  %146 = vst [vmem:[#allocation2 + $0x8c] sm:$0x1] %v145_v4  ;;  %10383 = vmatpush3.bf16.msra.mxu0 %v11205_v48 }
  0x5d   :  { %v11824_v44 = vrot.slane %v504_v7, 7  ;;  %90 = vst [vmem:[#allocation2 + $0x9c] sm:$0x1] %v89_v11  ;;  %v516_v45 = vshll.u32 %v327_v22, 16  ;;  %v521_v46 = vshrl.u32 %v11809_v27, 16  ;;  %v1165_v49 = vshll.u32 %v949_v41, 16  ;;  %10384 = vmatprep.subr.bf16.mxu0 %v11206_v55 }
  0x5e   :  { %v950_v50 = vld [vmem:[#allocation2 + $0x78] sm:$0xf]  ;;  %v502_v52 = vrot.slane %v498_v39, 4  ;;  %v11830_v61 = vrot.slane %v513_v40, 7  ;;  %v501_v59 = vor.u32 %v499_v35, %v498_v39  ;;  %v1187_v47 = vrot.slane %v1186_v43, 4  ;;  %v11208_v3 = vld [vmem:[%s14756_s1 + $0x30] sm:$0xff]  }
  0x5f   :  { %v1170_v28 = vshrl.u32 %v950_v50, 16  ;;  %v1173_v57 = vshll.u32 %v950_v50, 16  ;;  %v509_v42 = vor.u32 %v507_v37, %v11824_v44  ;;  %v1167_v62 = vrot.slane %v1165_v49, 5  ;;  %v952_v0 = vld [vmem:[#allocation2 + $0x80] sm:$0x1]  ;;  %v11211_v43 = vld [vmem:[%s14756_s1 + $0x38] sm:$0xff]  }
  0x60   :  { %v519_v56 = vrot.slane %v11830_v61, 4  ;;  %v1189_v54 = vshll.u32 %v952_v0, 16  ;;  %v518_v12 = vor.u32 %v516_v45, %v11830_v61  ;;  %v11851_v13 = vrot.slane %v521_v46, 7  ;;  %v953_v20 = vld [vmem:[#allocation2 + $0x84] sm:$0xf]  ;;  %10385 = vmatpush3.bf16.msra.mxu0 %v11208_v3 }
  0x61   :  { %v1172_v5 = vrot.slane %v1170_v28, 4  ;;  %v1175_v8 = vrot.slane %v1173_v57, 5  ;;  %v510_v10 = vsel %vm11472_vm7, %v502_v52, %v509_v42  ;;  %v1168_v24 = vsel %vm11550_vm11, %v11792_v19, %v1167_v62  ;;  %v11186_v17 = vld [vmem:[#allocation2 + $0x84] sm:$0xff]   ;;  %v732_v53 = vld [vmem:[#allocation2 + $0x90] sm:$0xf]  ;;  %v11210_v19 = vld [vmem:[%s14756_s1 + $0x78] sm:$0xff]  }
  0x62   :  { %735 = vst.msk [vmem:[#allocation2 + $0x94] sm:$0xf] %vm31_vm2, %v510_v10  ;;  %v9819_v14 = vcombine.low %v1158_v60, %v1168_v24  ;;  %v1191_v2 = vrot.slane %v1189_v54, 5  ;;  %v733_v18 = vsel %vm11485_vm8, %v501_v59, %v732_v53  ;;  %v954_v51 = vld [vmem:[#allocation2 + $0x88] sm:$0xf]  ;;  %1893 = vrot.lane.b32.xlu0 %v11186_v17, %s11387_s17  ;;  %v1194_v25 = vshrl.u32 %v953_v20, 16  ;;  %10386 = vmatprep.subr.bf16.mxu0 %v11210_v19 }
  0x63   :  { %v1176_v16 = vor.u32 %v1175_v8, %v1172_v5  ;;  %v147_v22 = vld [vmem:[#allocation2 + $0x98] sm:$0x1]  ;;  %734 = vst [vmem:[#allocation2 + $0x90] sm:$0xf] %v733_v18  ;;  %v729_v63 = vld [vmem:[#allocation2 + $0x8c] sm:$0x1] }
  0x64   :  { %v1197_v26 = vshll.u32 %v953_v20, 16  ;;  %v1203_v6 = vshll.u32 %v954_v51, 16  ;;  %v1207_v29 = vshrl.u32 %v954_v51, 16  ;;  %1423 = vrot.lane.b32.xlu1 %v9819_v14, %s11387_s17  ;;  %v1192_v32 = vsel %vm11550_vm11, %v1187_v47, %v1191_v2  ;;  %v739_v38 = vld [vmem:[#allocation2 + $0x9c] sm:$0xf]  ;;  %10387 = vmatpush3.bf16.msra.mxu0 %v11211_v43  ;;  %v11213_v54 = vld [vmem:[%s14756_s1 + $0x100] sm:$0xff]  }
  0x65   :  { %v1177_v30 = vrot.slane %v1176_v16, 4  ;;  %v730_v33 = vsel %vm11430_vm3, %v494_v23, %v729_v63  ;;  %v524_v35 = vshll.u32 %v11809_v27, 16  ;;  %v91_v7 = vld [vmem:[#allocation2 + $0xa8] sm:$0x1]  ;;  %v1196_v37 = vrot.slane %v1194_v25, 4  ;;  %11088 = vmatprep.subr.bf16.mxu0 %v11213_v54 }
  0x66   :  { %731 = vst [vmem:[#allocation2 + $0x8c] sm:$0x1] %v730_v33  ;;  %v1199_v39 = vrot.slane %v1197_v26, 5  ;;  %v11867_v4 = vrot.slane %v1203_v6, 5  ;;  %v1209_v11 = vrot.slane %v1207_v29, 4  ;;  %v477_v9 = vrot.slane %v11745_v58, 4 }
  0x67   :  { %v329_v40 = vld [vmem:[%s14755_s0 + $0x58] sm:$0xf]  ;;  %v1182_v23 = vsel %vm11550_vm11, %v1177_v30, %v11816_v36  ;;  %v526_v27 = vor.u32 %v524_v35, %v11851_v13  ;;  %v740_v41 = vsel %vm11485_vm8, %v518_v12, %v739_v38  ;;  %v148_v49 = vsel %vm11464_vm6, 0, %v147_v22  ;;  %v330_v36 = vld [vmem:[%s14755_s0 + $0x5c] sm:$0xf] }
  0x68   :  { %v9820_v45 = vcombine.low %v1182_v23, %v1192_v32  ;;  %v1200_v46 = vor.u32 %v1199_v39, %v1196_v37  ;;  %v1210_v48 = vor.u32 %v1209_v11, %v11867_v4  ;;  %741 = vst [vmem:[#allocation2 + $0x9c] sm:$0xf] %v740_v41  ;;  %149 = vst [vmem:[#allocation2 + $0x98] sm:$0x1] %v148_v49  ;;  %v92_v61 = vsel %vm11430_vm3, 0, %v91_v7 }
  0x69   :  { %v527_v50 = vsel %vm11472_vm7, %v519_v56, %v526_v27  ;;  %v957_v52 = vld [vmem:[#allocation2 + $0x94] sm:$0xf]  ;;  %v530_v55 = vshrl.u32 %v329_v40, 16  ;;  %v511_v28 = vrot.slane %v11824_v44, 4  ;;  %93 = vst [vmem:[#allocation2 + $0xa8] sm:$0x1] %v92_v61 }
  0x6a   :  { %1425 = vrot.lane.b32.xlu1 %v9820_v45, %s11387_s17  ;;  %v1201_v57 = vrot.slane %v1200_v46, 4  ;;  %742 = vst.msk [vmem:[#allocation2 + $0xa0] sm:$0xf] %vm31_vm2, %v527_v50  ;;  %v1227_v59 = vshll.u32 %v957_v52, 16  ;;  %v1231_v42 = vshrl.u32 %v957_v52, 16  ;;  %v11187_v62 = vld [vmem:[#allocation2 + $0x90] sm:$0xff]  }
  0x6b   :  { %v150_v60 = vld [vmem:[#allocation2 + $0xa4] sm:$0x1]  ;;  %v956_v0 = vld [vmem:[#allocation2 + $0x90] sm:$0xf]  ;;  %v532_v47 = vrot.slane %v530_v55, 7  ;;  %v1211_v56 = vrot.slane %v1210_v48, 4  ;;  %1895 = vrot.lane.b32.xlu0 %v11187_v62, %s11387_s17 }
  0x6c   :  { %v1218_v3 = vshrl.u32 %v956_v0, 16  ;;  %v1221_v5 = vshll.u32 %v956_v0, 16  ;;  %v11895_v8 = vrot.slane %v1227_v59, 5  ;;  %v1233_v10 = vrot.slane %v1231_v42, 4  ;;  %v94_v63 = vld [vmem:[#allocation2 + $0xb4] sm:$0x1] }
  0x6d   :  { %v955_v44 = vld [vmem:[#allocation2 + $0x8c] sm:$0x1]  ;;  %v533_v24 = vshll.u32 %v329_v40, 16  ;;  %v536_v17 = vrot.slane %v532_v47, 4  ;;  %v538_v53 = vshrl.u32 %v330_v36, 16  ;;  %v541_v2 = vshll.u32 %v330_v36, 16 }
  0x6e   :  { %v1213_v12 = vshll.u32 %v955_v44, 16  ;;  %v1220_v14 = vrot.slane %v1218_v3, 4  ;;  %v1223_v16 = vrot.slane %v1221_v5, 5  ;;  %v1234_v18 = vor.u32 %v1233_v10, %v11895_v8  ;;  %v331_v32 = vld [vmem:[%s14755_s0 + $0x60] sm:$0xf] }
  0x6f   :  { %v535_v20 = vor.u32 %v533_v24, %v532_v47  ;;  %v11902_v51 = vrot.slane %v538_v53, 7  ;;  %v151_v22 = vsel %vm11464_vm6, 0, %v150_v60  ;;  %v959_v19 = vld [vmem:[#allocation2 + $0x9c] sm:$0xf]  ;;  %v1206_v25 = vsel %vm11550_vm11, %v1201_v57, %v11867_v4  ;;  %v736_v6 = vld [vmem:[#allocation2 + $0x98] sm:$0x1] }
  0x70   :  { %v1215_v26 = vrot.slane %v1213_v12, 5  ;;  %152 = vst [vmem:[#allocation2 + $0xa4] sm:$0x1] %v151_v22  ;;  %v1242_v29 = vshrl.u32 %v959_v19, 16  ;;  %v1245_v30 = vshll.u32 %v959_v19, 16  ;;  %v528_v33 = vrot.slane %v11851_v13, 4 }
  0x71   :  { %v11188_v35 = vld [vmem:[#allocation2 + $0x9c] sm:$0xff]   ;;  %v737_v38 = vsel %vm11430_vm3, %v511_v28, %v736_v6  ;;  %v543_v7 = vor.u32 %v541_v2, %v11902_v51  ;;  %v332_v37 = vld [vmem:[%s14755_s0 + $0x64] sm:$0xf]  ;;  %v1224_v4 = vor.u32 %v1223_v16, %v1220_v14  ;;  %v11921_v11 = vrot.slane %v1234_v18, 4  ;;  %v746_v40 = vld [vmem:[#allocation2 + $0xa8] sm:$0xf] }
  0x72   :  { %v1216_v39 = vsel %vm11550_vm11, %v1211_v56, %v1215_v26  ;;  %738 = vst [vmem:[#allocation2 + $0x98] sm:$0x1] %v737_v38  ;;  %v960_v23 = vld [vmem:[#allocation2 + $0xa0] sm:$0xf]  ;;  %v1244_v13 = vrot.slane %v1242_v29, 4  ;;  %1897 = vrot.lane.b32.xlu0 %v11188_v35, %s11387_s17  ;;  %v747_v43 = vsel %vm11485_vm8, %v535_v20, %v746_v40  ;;  %v1247_v45 = vrot.slane %v1245_v30, 5 }
  0x73   :  { %v9821_v27 = vcombine.low %v1206_v25, %v1216_v39  ;;  %v544_v41 = vsel %vm11472_vm7, %v536_v17, %v543_v7  ;;  %v153_v46 = vld [vmem:[#allocation2 + $0xb0] sm:$0x1]  ;;  %v545_v48 = vrot.slane %v11902_v51, 4  ;;  %748 = vst [vmem:[#allocation2 + $0xa8] sm:$0xf] %v747_v43  ;;  %v1251_v49 = vshll.u32 %v960_v23, 16 }
  0x74   :  { %749 = vst.msk [vmem:[#allocation2 + $0xac] sm:$0xf] %vm31_vm2, %v544_v41  ;;  %v1255_v36 = vshrl.u32 %v960_v23, 16  ;;  %v95_v50 = vsel %vm11430_vm3, 0, %v94_v63  ;;  %v97_v52 = vld [vmem:[#allocation2 + $0xc0] sm:$0x1]  ;;  %v1248_v61 = vor.u32 %v1247_v45, %v1244_v13 }
  0x75   :  { %1427 = vrot.lane.b32.xlu1 %v9821_v27, %s11387_s17  ;;  %96 = vst [vmem:[#allocation2 + $0xb4] sm:$0x1] %v95_v50  ;;  %v547_v55 = vshrl.u32 %v331_v32, 16  ;;  %v550_v28 = vshll.u32 %v331_v32, 16  ;;  %v555_v57 = vshrl.u32 %v332_v37, 16  ;;  %v11936_v42 = vrot.slane %v1251_v49, 5 }
  0x76   :  { %v333_v59 = vld [vmem:[%s14755_s0 + $0x68] sm:$0xf]  ;;  %v1257_v60 = vrot.slane %v1255_v36, 4  ;;  %v558_v62 = vshll.u32 %v332_v37, 16  ;;  %v154_v0 = vsel %vm11464_vm6, 0, %v153_v46  ;;  %v1225_v47 = vrot.slane %v1224_v4, 4 }
  0x77   :  { %v743_v56 = vld [vmem:[#allocation2 + $0xa4] sm:$0x1]  ;;  %v549_v3 = vrot.slane %v547_v55, 7  ;;  %v11940_v5 = vrot.slane %v555_v57, 7  ;;  %155 = vst [vmem:[#allocation2 + $0xb0] sm:$0x1] %v154_v0 }
  0x78   :  { %v98_v54 = vsel %vm11430_vm3, 0, %v97_v52  ;;  %v744_v44 = vsel %vm11430_vm3, %v528_v33, %v743_v56  ;;  %v1258_v10 = vor.u32 %v1257_v60, %v11936_v42  ;;  %v334_v24 = vld [vmem:[%s14755_s0 + $0x6c] sm:$0xf]  ;;  %v564_v17 = vshrl.u32 %v333_v59, 16  ;;  %v156_v7 = vld [vmem:[#allocation2 + $0xbc] sm:$0x1] }
  0x79   :  { %99 = vst [vmem:[#allocation2 + $0xc0] sm:$0x1] %v98_v54  ;;  %v567_v53 = vshll.u32 %v333_v59, 16  ;;  %v958_v12 = vld [vmem:[#allocation2 + $0x98] sm:$0x1]  ;;  %v11950_v14 = vrot.slane %v1248_v61, 4  ;;  %v552_v16 = vor.u32 %v550_v28, %v549_v3  ;;  %v560_v18 = vor.u32 %v558_v62, %v11940_v5 }
  0x7a   :  { %745 = vst [vmem:[#allocation2 + $0xa4] sm:$0x1] %v744_v44  ;;  %v553_v2 = vrot.slane %v549_v3, 4  ;;  %v1237_v20 = vshll.u32 %v958_v12, 16  ;;  %v11953_v22 = vrot.slane %v1258_v10, 4  ;;  %v562_v19 = vrot.slane %v11940_v5, 4 }
  0x7b   :  { %v566_v63 = vrot.slane %v564_v17, 7  ;;  %v11189_v25 = vld [vmem:[#allocation2 + $0xa8] sm:$0xff]   ;;  %v572_v6 = vshrl.u32 %v334_v24, 16  ;;  %v1230_v29 = vsel %vm11550_vm11, %v1225_v47, %v11895_v8  ;;  %v575_v45 = vshll.u32 %v334_v24, 16  ;;  %v335_v61 = vld [vmem:[%s14755_s0 + $0x70] sm:$0xf] }
  0x7c   :  { %v561_v26 = vsel %vm11472_vm7, %v553_v2, %v560_v18  ;;  %v1239_v30 = vrot.slane %v1237_v20, 5  ;;  %v753_v32 = vld [vmem:[#allocation2 + $0xb4] sm:$0xf]  ;;  %v962_v33 = vld [vmem:[#allocation2 + $0xa8] sm:$0xf]  ;;  %1899 = vrot.lane.b32.xlu0 %v11189_v25, %s11387_s17  ;;  %v11222_v51 = vld [vmem:[%s14756_s1 + $0xc0] sm:$0xff]   ;;  %v1254_v44 = vsel %vm11550_vm11, %v11950_v14, %v11936_v42 }
  0x7d   :  { %756 = vst.msk [vmem:[#allocation2 + $0xb8] sm:$0xf] %vm31_vm2, %v561_v26  ;;  %v569_v35 = vor.u32 %v567_v53, %v566_v63  ;;  %v570_v38 = vrot.slane %v566_v63, 4  ;;  %v754_v37 = vsel %vm11485_vm8, %v552_v16, %v753_v32  ;;  %v963_v39 = vld [vmem:[#allocation2 + $0xac] sm:$0xf]  ;;  %v1266_v4 = vshrl.u32 %v962_v33, 16  ;;  %10484 = vmatprep.subr.bf16.mxu1 %v11222_v51 }
  0x7e   :  { %v1269_v40 = vshll.u32 %v962_v33, 16  ;;  %v11965_v23 = vrot.slane %v572_v6, 7  ;;  %v100_v13 = vld [vmem:[#allocation2 + $0xcc] sm:$0x1]  ;;  %v1240_v8 = vsel %vm11550_vm11, %v11921_v11, %v1239_v30  ;;  %755 = vst [vmem:[#allocation2 + $0xb4] sm:$0xf] %v754_v37 }
  0x7f   :  { %v750_v27 = vld [vmem:[#allocation2 + $0xb0] sm:$0x1]  ;;  %v1275_v41 = vshll.u32 %v963_v39, 16  ;;  %v1279_v43 = vshrl.u32 %v963_v39, 16  ;;  %v9822_v46 = vcombine.low %v1230_v29, %v1240_v8  ;;  %v1268_v36 = vrot.slane %v1266_v4, 4  ;;  %v11223_v32 = vld [vmem:[%s14756_s1 + $0x80] sm:$0xff]  }
  0x80   :  { %v751_v49 = vsel %vm11430_vm3, %v545_v48, %v750_v27  ;;  %v1271_v50 = vrot.slane %v1269_v40, 5  ;;  %v760_v52 = vld [vmem:[#allocation2 + $0xc0] sm:$0xf]  ;;  %v577_v57 = vor.u32 %v575_v45, %v11965_v23  ;;  %v579_v59 = vrot.slane %v11965_v23, 4  ;;  %v336_v2 = vld [vmem:[%s14755_s0 + $0x74] sm:$0xf]  ;;  %10485 = vmatpush3.bf16.msra.mxu1 %v11223_v32 }
  0x81   :  { %v961_v55 = vld [vmem:[#allocation2 + $0xa4] sm:$0x1]  ;;  %752 = vst [vmem:[#allocation2 + $0xb0] sm:$0x1] %v751_v49  ;;  %v11977_v11 = vrot.slane %v1275_v41, 5  ;;  %v1281_v28 = vrot.slane %v1279_v43, 4  ;;  %1429 = vrot.lane.b32.xlu1 %v9822_v46, %s11387_s17  ;;  %v761_v62 = vsel %vm11485_vm8, %v569_v35, %v760_v52 }
  0x82   :  { %v1261_v48 = vshll.u32 %v961_v55, 16  ;;  %v1272_v60 = vor.u32 %v1271_v50, %v1268_v36  ;;  %v157_v0 = vsel %vm11464_vm6, 0, %v156_v7  ;;  %v578_v56 = vsel %vm11472_vm7, %v570_v38, %v577_v57  ;;  %762 = vst [vmem:[#allocation2 + $0xc0] sm:$0xf] %v761_v62  ;;  %v159_v30 = vld [vmem:[#allocation2 + $0xc8] sm:$0x1] }
  0x83   :  { %v1282_v47 = vor.u32 %v1281_v28, %v11977_v11  ;;  %158 = vst [vmem:[#allocation2 + $0xbc] sm:$0x1] %v157_v0  ;;  %v101_v3 = vsel %vm11430_vm3, 0, %v100_v13  ;;  %v581_v54 = vshrl.u32 %v335_v61, 16  ;;  %763 = vst.msk [vmem:[#allocation2 + $0xc4] sm:$0xf] %vm31_vm2, %v578_v56 }
  0x84   :  { %v1263_v10 = vrot.slane %v1261_v48, 5  ;;  %v1273_v24 = vrot.slane %v1272_v60, 4  ;;  %v966_v17 = vld [vmem:[#allocation2 + $0xb8] sm:$0xf]  ;;  %102 = vst [vmem:[#allocation2 + $0xcc] sm:$0x1] %v101_v3 }
  0x85   :  { %v1283_v53 = vrot.slane %v1282_v47, 4  ;;  %v1299_v12 = vshll.u32 %v966_v17, 16  ;;  %v1303_v16 = vshrl.u32 %v966_v17, 16  ;;  %v583_v18 = vrot.slane %v581_v54, 7  ;;  %v11190_v63 = vld [vmem:[#allocation2 + $0xb4] sm:$0xff]  }
  0x86   :  { %v1264_v20 = vsel %vm11550_vm11, %v11953_v22, %v1263_v10  ;;  %v965_v42 = vld [vmem:[#allocation2 + $0xb4] sm:$0xf]  ;;  %v584_v14 = vshll.u32 %v335_v61, 16  ;;  %1901 = vrot.lane.b32.xlu0 %v11190_v63, %s11387_s17  ;;  %v589_v22 = vshrl.u32 %v336_v2, 16  ;;  %v592_v40 = vshll.u32 %v336_v2, 16 }
  0x87   :  { %v9823_v25 = vcombine.low %v1254_v44, %v1264_v20  ;;  %v1290_v26 = vshrl.u32 %v965_v42, 16  ;;  %v1293_v6 = vshll.u32 %v965_v42, 16  ;;  %v12005_v29 = vrot.slane %v1299_v12, 5  ;;  %v103_v43 = vld [vmem:[#allocation2 + $0xd8] sm:$0x1]  ;;  %v11226_v12 = vld [vmem:[%s14756_s1 + $0xc8] sm:$0xff]  }
  0x88   :  { %v964_v33 = vld [vmem:[#allocation2 + $0xb0] sm:$0x1]  ;;  %v1305_v35 = vrot.slane %v1303_v16, 4  ;;  %v586_v38 = vor.u32 %v584_v14, %v583_v18  ;;  %v587_v7 = vrot.slane %v583_v18, 4  ;;  %v12013_v27 = vrot.slane %v589_v22, 7  ;;  %10486 = vmatprep.subr.bf16.mxu1 %v11226_v12 }
  0x89   :  { %1431 = vrot.lane.b32.xlu1 %v9823_v25, %s11387_s17  ;;  %v1285_v37 = vshll.u32 %v964_v33, 16  ;;  %v1292_v39 = vrot.slane %v1290_v26, 4  ;;  %v1295_v4 = vrot.slane %v1293_v6, 5  ;;  %v160_v41 = vsel %vm11464_vm6, 0, %v159_v30  ;;  %v337_v52 = vld [vmem:[%s14755_s0 + $0x78] sm:$0xf] }
  0x8a   :  { %v757_v13 = vld [vmem:[#allocation2 + $0xbc] sm:$0x1]  ;;  %v1306_v8 = vor.u32 %v1305_v35, %v12005_v29  ;;  %v1278_v45 = vsel %vm11550_vm11, %v1273_v24, %v11977_v11  ;;  %v11191_v49 = vld [vmem:[#allocation2 + $0xc0] sm:$0xff]   ;;  %161 = vst [vmem:[#allocation2 + $0xc8] sm:$0x1] %v160_v41  ;;  %v594_v28 = vor.u32 %v592_v40, %v12013_v27  ;;  %v596_v51 = vrot.slane %v12013_v27, 4 }
  0x8b   :  { %v1287_v46 = vrot.slane %v1285_v37, 5  ;;  %v758_v36 = vsel %vm11430_vm3, %v562_v19, %v757_v13  ;;  %v767_v50 = vld [vmem:[#allocation2 + $0xcc] sm:$0xf]  ;;  %v1296_v61 = vor.u32 %v1295_v4, %v1292_v39  ;;  %v968_v57 = vld [vmem:[#allocation2 + $0xc0] sm:$0xf]  ;;  %1903 = vrot.lane.b32.xlu0 %v11191_v49, %s11387_s17  ;;  %v104_v17 = vsel %vm11430_vm3, 0, %v103_v43 }
  0x8c   :  { %759 = vst [vmem:[#allocation2 + $0xbc] sm:$0x1] %v758_v36  ;;  %v12027_v55 = vrot.slane %v1306_v8, 4  ;;  %v768_v11 = vsel %vm11485_vm8, %v586_v38, %v767_v50  ;;  %v969_v5 = vld [vmem:[#allocation2 + $0xc4] sm:$0xf]  ;;  %v1314_v48 = vshrl.u32 %v968_v57, 16  ;;  %v595_v47 = vsel %vm11472_vm7, %v587_v7, %v594_v28 }
  0x8d   :  { %v1288_v19 = vsel %vm11550_vm11, %v1283_v53, %v1287_v46  ;;  %769 = vst [vmem:[#allocation2 + $0xcc] sm:$0xf] %v768_v11  ;;  %v1317_v60 = vshll.u32 %v968_v57, 16  ;;  %v338_v62 = vld [vmem:[%s14755_s0 + $0x7c] sm:$0xf]  ;;  %v1323_v56 = vshll.u32 %v969_v5, 16 }
  0x8e   :  { %v9824_v0 = vcombine.low %v1278_v45, %v1288_v19  ;;  %v1327_v3 = vshrl.u32 %v969_v5, 16  ;;  %v162_v54 = vld [vmem:[#allocation2 + $0xd4] sm:$0x1]  ;;  %v2918_v44 = vld [vmem:[#allocation2 + $0x18] sm:$0xf]  ;;  %v1316_v10 = vrot.slane %v1314_v48, 4 }
  0x8f   :  { %770 = vst.msk [vmem:[#allocation2 + $0xd0] sm:$0xf] %vm31_vm2, %v595_v47  ;;  %v1319_v24 = vrot.slane %v1317_v60, 5  ;;  %v12044_v53 = vld [vmem:[#allocation2 + $0x1c] sm:$0xf]  ;;  %v12050_v16 = vrot.slane %v1323_v56, 5 }
  0x90   :  { %1433 = vrot.lane.b32.xlu1 %v9824_v0, %s11387_s17  ;;  %v1329_v2 = vrot.slane %v1327_v3, 4  ;;  %105 = vst [vmem:[#allocation2 + $0xd8] sm:$0x1] %v104_v17  ;;  %v598_v18 = vshrl.u32 %v337_v52, 16  ;;  %v601_v20 = vshll.u32 %v337_v52, 16  ;;  %v606_v42 = vshrl.u32 %v338_v62, 16 }
  0x91   :  { %v1320_v63 = vor.u32 %v1319_v24, %v1316_v10  ;;  %v609_v14 = vshll.u32 %v338_v62, 16  ;;  %v163_v25 = vsel %vm11464_vm6, 0, %v162_v54  ;;  %v11227_v26 = vld [vmem:[%s14756_s1 + $0x88] sm:$0xff]   ;;  %v1297_v6 = vrot.slane %v1296_v61, 4  ;;  %v11229_v4 = vld [vmem:[%s14756_s1 + $0xd0] sm:$0xff]   ;;  %v11233_v27 = vld [vmem:[%s14756_s1 + $0x98] sm:$0xff]  }
  0x92   :  { %v764_v30 = vld [vmem:[#allocation2 + $0xc8] sm:$0x1]  ;;  %v1330_v32 = vor.u32 %v1329_v2, %v12050_v16  ;;  %v600_v33 = vrot.slane %v598_v18, 7  ;;  %164 = vst [vmem:[#allocation2 + $0xd4] sm:$0x1] %v163_v25  ;;  %v2967_v35 = vshrl.u32 %v2918_v44, 16  ;;  %10487 = vmatpush3.bf16.msra.mxu1 %v11227_v26 }
  0x93   :  { %v967_v38 = vld [vmem:[#allocation2 + $0xbc] sm:$0x1]  ;;  %v765_v7 = vsel %vm11430_vm3, %v579_v59, %v764_v30  ;;  %v12062_v22 = vrot.slane %v1320_v63, 4  ;;  %v12064_v37 = vrot.slane %v606_v42, 7  ;;  %v2970_v39 = vshll.u32 %v2918_v44, 16  ;;  %v11230_v23 = vld [vmem:[%s14756_s1 + $0x90] sm:$0xff]   ;;  %10488 = vmatprep.subr.bf16.mxu1 %v11229_v4 }
  0x94   :  { %v1309_v40 = vshll.u32 %v967_v38, 16  ;;  %766 = vst [vmem:[#allocation2 + $0xc8] sm:$0x1] %v765_v7  ;;  %v603_v13 = vor.u32 %v601_v20, %v600_v33  ;;  %v604_v8 = vrot.slane %v600_v33, 4  ;;  %v2976_v41 = vshll.u32 %v12044_v53, 16 }
  0x95   :  { %v12073_v59 = vrot.slane %v1330_v32, 4  ;;  %v611_v43 = vor.u32 %v609_v14, %v12064_v37  ;;  %v971_v45 = vld [vmem:[#allocation2 + $0xcc] sm:$0xf]  ;;  %v2969_v46 = vrot.slane %v2967_v35, 4  ;;  %v1302_v49 = vsel %vm11550_vm11, %v1297_v6, %v12005_v29  ;;  %v2920_v62 = vld [vmem:[#allocation2 + $0x20] sm:$0x1] }
  0x96   :  { %v1311_v36 = vrot.slane %v1309_v40, 5  ;;  %v11192_v50 = vld [vmem:[#allocation2 + $0xcc] sm:$0xff]   ;;  %v1326_v52 = vsel %vm11550_vm11, %v12062_v22, %v12050_v16  ;;  %v1338_v57 = vshrl.u32 %v971_v45, 16  ;;  %v1341_v5 = vshll.u32 %v971_v45, 16  ;;  %10489 = vmatpush3.bf16.msra.mxu1 %v11230_v23  ;;  %v2455_v18 = vld [vmem:[#allocation2 + $0x14] sm:$0x1] }
  0x97   :  { %v972_v61 = vld [vmem:[#allocation2 + $0xd0] sm:$0xf]  ;;  %v612_v28 = vsel %vm11472_vm7, %v604_v8, %v611_v43  ;;  %v774_v11 = vld [vmem:[#allocation2 + $0xd8] sm:$0xf]  ;;  %1905 = vrot.lane.b32.xlu0 %v11192_v50, %s11387_s17  ;;  %v2972_v0 = vrot.slane %v2970_v39, 5  ;;  %v12101_v2 = vrot.slane %v2976_v41, 5 }
  0x98   :  { %v1347_v19 = vshll.u32 %v972_v61, 16  ;;  %v1312_v29 = vsel %vm11550_vm11, %v12027_v55, %v1311_v36  ;;  %v775_v48 = vsel %vm11485_vm8, %v603_v13, %v774_v11  ;;  %777 = vst.msk [vmem:[#allocation2 + $0xdc] sm:$0xf] %vm31_vm2, %v612_v28  ;;  %v1351_v60 = vshrl.u32 %v972_v61, 16  ;;  %v2453_v47 = vld [vmem:[#allocation2 + $0xc] sm:$0xe] }
  0x99   :  { %v9825_v56 = vcombine.low %v1302_v49, %v1312_v29  ;;  %776 = vst [vmem:[#allocation2 + $0xd8] sm:$0xf] %v775_v48  ;;  %v771_v3 = vld [vmem:[#allocation2 + $0xd4] sm:$0x1]  ;;  %v1340_v54 = vrot.slane %v1338_v57, 4  ;;  %v1343_v44 = vrot.slane %v1341_v5, 5  ;;  %v2973_v12 = vor.u32 %v2972_v0, %v2969_v46 }
  0x9a   :  { %v12092_v10 = vrot.slane %v1347_v19, 5  ;;  %v2454_v24 = vld [vmem:[#allocation2 + $0x10] sm:$0xf]  ;;  %v11232_v55 = vld [vmem:[%s14756_s1 + $0xd8] sm:$0xff]   ;;  %v772_v31 = vsel %vm11430_vm3, %v596_v51, %v771_v3  ;;  %v1353_v17 = vrot.slane %v1351_v60, 4  ;;  %v2980_v14 = vshrl.u32 %v12044_v53, 16 }
  0x9b   :  { %v2921_v20 = vld [vmem:[#allocation2 + $0x24] sm:$0xf]  ;;  %1435 = vrot.lane.b32.xlu1 %v9825_v56, %s11387_s17  ;;  %v970_v63 = vld [vmem:[#allocation2 + $0xc8] sm:$0x1]  ;;  %773 = vst [vmem:[#allocation2 + $0xd4] sm:$0x1] %v772_v31  ;;  %v1344_v42 = vor.u32 %v1343_v44, %v1340_v54  ;;  %10490 = vmatprep.subr.bf16.mxu1 %v11232_v55 }
  0x9c   :  { %v2986_v25 = vshll.u32 %v2920_v62, 16  ;;  %vm1570_vm12 = vcmask 1042432   ;;  %v1333_v51 = vshll.u32 %v970_v63, 16  ;;  %v1354_v26 = vor.u32 %v1353_v17, %v12092_v10  ;;  %10491 = vmatpush3.bf16.msra.mxu1 %v11233_v27  ;;  %v2922_v40 = vld [vmem:[#allocation2 + $0x28] sm:$0xf]  ;;  %v11235_v13 = vld [vmem:[%s14756_s1 + $0xe0] sm:$0xff]  }
  0x9d   :  { %v2974_v6 = vrot.slane %v2973_v12, 4  ;;  %vm1571_vm13 = vcmask 1046532   ;;  %v12109_v30 = vrot.slane %v1344_v42, 4  ;;  %v2982_v32 = vrot.slane %v2980_v14, 4  ;;  %v2923_v43 = vld [vmem:[#allocation2 + $0x2c] sm:$0x1]  ;;  %10492 = vmatprep.subr.bf16.mxu1 %v11235_v13 }
  0x9e   :  { %v2988_v33 = vrot.slane %v2986_v25, 5  ;;  %vm12111_vm14 = vmor %vm1570_vm12, %vm1571_vm13  ;;  %v9892_v53 = vrot.slane %v2453_v47, 9  ;;  %v1335_v38 = vrot.slane %v1333_v51, 5  ;;  %v1355_v7 = vrot.slane %v1354_v26, 4  ;;  %v2456_v28 = vld [vmem:[#allocation2 + $0x18] sm:$0xe] }
  0x9f   :  { %v2979_v39 = vsel %vm11550_vm11, %v2974_v6, %v12101_v2  ;;  %v2551_v4 = vrot.slane %v2454_v24, 5  ;;  %v1350_v8 = vsel %vm11550_vm11, %v12109_v30, %v12092_v10  ;;  %v2983_v41 = vor.u32 %v2982_v32, %v12101_v2  ;;  %v2457_v11 = vld [vmem:[#allocation2 + $0x1c] sm:$0xf]  ;;  %v2458_v57 = vld [vmem:[#allocation2 + $0x20] sm:$0x1]  ;;  %v11238_v16 = vld [vmem:[%s14756_s1 + $0xe8] sm:$0xff]  }
  0xa0   :  { %v2554_v23 = vrot.slane %v2455_v18, 5  ;;  %v2991_v45 = vshrl.u32 %v2921_v20, 16  ;;  %v1336_v46 = vsel %vm11550_vm11, %v12073_v59, %v1335_v38  ;;  %v11193_v49 = vld [vmem:[#allocation2 + $0xd8] sm:$0xff]   ;;  %v2994_v61 = vshll.u32 %v2921_v20, 16  ;;  %v11236_v5 = vld [vmem:[%s14756_s1 + $0xa0] sm:$0xff]  }
  0xa1   :  { %v12131_v36 = vsel %vm12111_vm14, %v9892_v53, %v2551_v4  ;;  %v2553_v50 = vrot.slane %v2551_v4, 4  ;;  %v9826_v59 = vcombine.low %v1326_v52, %v1336_v46  ;;  %v2984_v19 = vrot.slane %v2983_v41, 4  ;;  %v2924_v60 = vld [vmem:[#allocation2 + $0x30] sm:$0xf]  ;;  %1907 = vrot.lane.b32.xlu0 %v11193_v49, %s11387_s17  ;;  %v2925_v54 = vld [vmem:[#allocation2 + $0x34] sm:$0xf]  ;;  %10493 = vmatpush3.bf16.msra.mxu1 %v11236_v5 }
  0xa2   :  { %v2993_v29 = vrot.slane %v2991_v45, 4  ;;  %v3000_v48 = vshll.u32 %v2922_v40, 16  ;;  %v973_v62 = vld [vmem:[#allocation2 + $0xd4] sm:$0x1]  ;;  %v2996_v47 = vrot.slane %v2994_v61, 5  ;;  %v3004_v56 = vshrl.u32 %v2922_v40, 16  ;;  %10494 = vmatprep.subr.bf16.mxu1 %v11238_v16  ;;  %v12163_v45 = vpop.permute.xlu1 %1879 }
  0xa3   :  { %v12144_v0 = vsel %vm12111_vm14, %v2553_v50, %v2554_v23  ;;  %v3010_v3 = vshll.u32 %v2923_v43, 16  ;;  %1437 = vrot.lane.b32.xlu1 %v9826_v59, %s11387_s17  ;;  %v1357_v22 = vshll.u32 %v973_v62, 16  ;;  %v2989_v52 = vsel %vm11550_vm11, %v2984_v19, %v2988_v33  ;;  %v2926_v63 = vld [vmem:[#allocation2 + $0x38] sm:$0x1]  ;;  %v2459_v51 = vld [vmem:[#allocation2 + $0x24] sm:$0xe] }
  0xa4   :  { %v9908_v44 = vcombine.low %v12131_v36, %v12144_v0  ;;  %v3002_v10 = vrot.slane %v3000_v48, 5  ;;  %v9940_v24 = vcombine.low %v2979_v39, %v2989_v52  ;;  %v2997_v55 = vor.u32 %v2996_v47, %v2993_v29  ;;  %v2460_v33 = vld [vmem:[#allocation2 + $0x28] sm:$0xf]  ;;  %v2461_v53 = vld [vmem:[#allocation2 + $0x2c] sm:$0x1] }
  0xa5   :  { %v3006_v31 = vrot.slane %v3004_v56, 4  ;;  %v3012_v17 = vrot.slane %v3010_v3, 5  ;;  %v1359_v12 = vrot.slane %v1357_v22, 5  ;;  %v9893_v2 = vrot.slane %v2456_v28, 9  ;;  %v2928_v50 = vld [vmem:[#allocation2 + $0x40] sm:$0xf] }
  0xa6   :  { %v2558_v18 = vrot.slane %v2457_v11, 5  ;;  %v2561_v20 = vrot.slane %v2458_v57, 5  ;;  %3398 = vrot.lane.b32.xlu0 %v9940_v24, %s11387_s17  ;;  %v2998_v42 = vrot.slane %v2997_v55, 4  ;;  %v3015_v25 = vshrl.u32 %v2924_v60, 16  ;;  %v2929_v61 = vld [vmem:[#allocation2 + $0x44] sm:$0x1] }
  0xa7   :  { %v3007_v14 = vor.u32 %v3006_v31, %v3002_v10  ;;  %v3018_v27 = vshll.u32 %v2924_v60, 16  ;;  %v1360_v26 = vsel %vm11550_vm11, %v1355_v7, %v1359_v12  ;;  %v3024_v32 = vshll.u32 %v2925_v54, 16  ;;  %v2927_v7 = vld [vmem:[#allocation2 + $0x3c] sm:$0xf]  ;;  %v2462_v60 = vld [vmem:[#allocation2 + $0x30] sm:$0xe] }
  0xa8   :  { %v2559_v6 = vsel %vm12111_vm14, %v9893_v2, %v2558_v18  ;;  %v2560_v30 = vrot.slane %v2558_v18, 4  ;;  %v9827_v38 = vcombine.low %v1350_v8, %v1360_v26  ;;  %v3003_v39 = vsel %vm11550_vm11, %v2998_v42, %v3002_v10  ;;  %v2463_v62 = vld [vmem:[#allocation2 + $0x34] sm:$0xf]  ;;  %v2930_v12 = vld [vmem:[#allocation2 + $0x48] sm:$0xf]  ;;  %v12176_v2 = vpop.permute.xlu1 %1411 }
  0xa9   :  { %v3008_v4 = vrot.slane %v3007_v14, 4  ;;  %v3017_v40 = vrot.slane %v3015_v25, 4  ;;  %v3020_v41 = vrot.slane %v3018_v27, 5  ;;  %v3026_v23 = vrot.slane %v3024_v32, 5  ;;  %v2931_v42 = vld [vmem:[#allocation2 + $0x4c] sm:$0xf] }
  0xaa   :  { %v2562_v13 = vsel %vm12111_vm14, %v2560_v30, %v2561_v20  ;;  %v3028_v43 = vshrl.u32 %v2925_v54, 16  ;;  %1439 = vrot.lane.b32.xlu1 %v9827_v38, %s11387_s17  ;;  %v3034_v49 = vshll.u32 %v2926_v63, 16  ;;  %v9894_v36 = vrot.slane %v2459_v51, 9 }
  0xab   :  { %v3013_v46 = vsel %vm11550_vm11, %v3008_v4, %v3012_v17  ;;  %v9909_v8 = vcombine.low %v2559_v6, %v2562_v13  ;;  %v3021_v11 = vor.u32 %v3020_v41, %v3017_v40  ;;  %v2565_v5 = vrot.slane %v2460_v33, 5  ;;  %v2464_v17 = vld [vmem:[#allocation2 + $0x38] sm:$0x1]  ;;  %v2932_v33 = vld [vmem:[#allocation2 + $0x50] sm:$0x1]  ;;  %v11239_v41 = vld [vmem:[%s14756_s1 + $0xa8] sm:$0xff]  }
  0xac   :  { %v9941_v28 = vcombine.low %v3003_v39, %v3013_v46  ;;  %v3030_v57 = vrot.slane %v3028_v43, 4  ;;  %v3036_v59 = vrot.slane %v3034_v49, 5  ;;  %v2568_v19 = vrot.slane %v2461_v53, 5  ;;  %v2465_v53 = vld [vmem:[#allocation2 + $0x3c] sm:$0xe]  ;;  %10495 = vmatpush3.bf16.msra.mxu1 %v11239_v41 }
  0xad   :  { %v3039_v29 = vshrl.u32 %v2927_v7, 16  ;;  %v3042_v48 = vshll.u32 %v2927_v7, 16  ;;  %v3022_v0 = vrot.slane %v3021_v11, 4  ;;  %v2566_v56 = vsel %vm12111_vm14, %v9894_v36, %v2565_v5  ;;  %v2466_v13 = vld [vmem:[#allocation2 + $0x40] sm:$0xf]  ;;  %v12191_v11 = vpop.permute.xlu1 %1413 }
  0xae   :  { %3400 = vrot.lane.b32.xlu0 %v9941_v28, %s11387_s17  ;;  %v3031_v47 = vor.u32 %v3030_v57, %v3026_v23  ;;  %v2567_v3 = vrot.slane %v2565_v5, 4  ;;  %2709 = vrot.lane.b32.xlu1 %v9908_v44, %s11387_s17  ;;  %v3048_v22 = vshll.u32 %v2928_v50, 16  ;;  %v3052_v52 = vshrl.u32 %v2928_v50, 16  ;;  %v2933_v28 = vld [vmem:[#allocation2 + $0x54] sm:$0xf] }
  0xaf   :  { %v3041_v54 = vrot.slane %v3039_v29, 4  ;;  %v3044_v16 = vrot.slane %v3042_v48, 5  ;;  %v3027_v10 = vsel %vm11550_vm11, %v3022_v0, %v3026_v23  ;;  %v3058_v31 = vshll.u32 %v2929_v61, 16  ;;  %v11241_v57 = vld [vmem:[%s14756_s1 + $0xf0] sm:$0xff]   ;;  %v2934_v48 = vld [vmem:[#allocation2 + $0x58] sm:$0xf] }
  0xb0   :  { %v3032_v24 = vrot.slane %v3031_v47, 4  ;;  %v2569_v55 = vsel %vm12111_vm14, %v2567_v3, %v2568_v19  ;;  %v3050_v63 = vrot.slane %v3048_v22, 5  ;;  %v3054_v44 = vrot.slane %v3052_v52, 4  ;;  %10496 = vmatprep.subr.bf16.mxu1 %v11241_v57  ;;  %v12199_v52 = vld [vmem:[#allocation2 + $0x48] sm:$0xe] }
  0xb1   :  { %v9910_v18 = vcombine.low %v2566_v56, %v2569_v55  ;;  %v3045_v20 = vor.u32 %v3044_v16, %v3041_v54  ;;  %v3060_v25 = vrot.slane %v3058_v31, 5  ;;  %v9895_v27 = vrot.slane %v2462_v60, 9  ;;  %v2935_v56 = vld [vmem:[#allocation2 + $0x5c] sm:$0x1]  ;;  %v11214_v57 = vld [vmem:[#allocation2 + $0x24] sm:$0xff]  }
  0xb2   :  { %v3037_v14 = vsel %vm11550_vm11, %v3032_v24, %v3036_v59  ;;  %v2572_v51 = vrot.slane %v2463_v62, 5  ;;  %2711 = vrot.lane.b32.xlu1 %v9909_v8, %s11387_s17  ;;  %v3055_v30 = vor.u32 %v3054_v44, %v3050_v63  ;;  %v2575_v32 = vrot.slane %v2464_v17, 5  ;;  %v2467_v8 = vld [vmem:[#allocation2 + $0x44] sm:$0x1] }
  0xb3   :  { %v9942_v26 = vcombine.low %v3027_v10, %v3037_v14  ;;  %v3046_v6 = vrot.slane %v3045_v20, 4  ;;  %v3063_v4 = vshrl.u32 %v2930_v12, 16  ;;  %v3066_v40 = vshll.u32 %v2930_v12, 16  ;;  %v11242_v10 = vld [vmem:[%s14756_s1 + $0xb0] sm:$0xff]   ;;  %v2469_v12 = vld [vmem:[#allocation2 + $0x4c] sm:$0xf] }
  0xb4   :  { %v2573_v38 = vsel %vm12111_vm14, %v9895_v27, %v2572_v51  ;;  %v2574_v39 = vrot.slane %v2572_v51, 4  ;;  %v3056_v43 = vrot.slane %v3055_v30, 4  ;;  %v3072_v7 = vshll.u32 %v2931_v42, 16  ;;  %v135_v20 = vld [vmem:[#allocation2 + $0x68] sm:$0x1]  ;;  %v12212_v27 = vpop.permute.xlu0 %1877  ;;  %10497 = vmatpush3.bf16.msra.mxu1 %v11242_v10  ;;  %v11243_v51 = vld [vmem:[%s14756_s1 + $0xf8] sm:$0xff]  }
  0xb5   :  { %3402 = vrot.lane.b32.xlu0 %v9942_v26, %s11387_s17  ;;  %v3051_v23 = vsel %vm11550_vm11, %v3046_v6, %v3050_v63  ;;  %v3076_v46 = vshrl.u32 %v2931_v42, 16  ;;  %v3065_v36 = vrot.slane %v3063_v4, 4  ;;  %v3068_v50 = vrot.slane %v3066_v40, 5  ;;  %10498 = vmatprep.subr.bf16.mxu1 %v11243_v51  ;;  %v12236_v10 = vld [vmem:[#allocation2] sm:$0xe] }
  0xb6   :  { %v2576_v49 = vsel %vm12111_vm14, %v2574_v39, %v2575_v32  ;;  %v3082_v61 = vshll.u32 %v2932_v33, 16  ;;  %2713 = vrot.lane.b32.xlu1 %v9910_v18, %s11387_s17  ;;  %v3061_v5 = vsel %vm11550_vm11, %v3056_v43, %v3060_v25  ;;  %v3074_v19 = vrot.slane %v3072_v7, 5  ;;  %v12205_v18 = vld [vmem:[#allocation2 + $0x50] sm:$0x1]  ;;  %v12210_v25 = vld [vmem:[#allocation2 + $0x60] sm:$0xf] }
  0xb7   :  { %v9911_v59 = vcombine.low %v2573_v38, %v2576_v49  ;;  %v3078_v29 = vrot.slane %v3076_v46, 4  ;;  %v9943_v60 = vcombine.low %v3051_v23, %v3061_v5  ;;  %v3069_v62 = vor.u32 %v3068_v50, %v3065_v36  ;;  %v2937_v33 = vld [vmem:[#allocation2 + $0x64] sm:$0xf]  ;;  %v11244_v38 = vld [vmem:[%s14756_s1 + $0xb8] sm:$0xff]   ;;  %v11215_v5 = vld [vmem:[#allocation2 + $0x30] sm:$0xff]  }
  0xb8   :  { %v3084_v0 = vrot.slane %v3082_v61, 5  ;;  %v9896_v47 = vrot.slane %v2465_v53, 9  ;;  %v2579_v54 = vrot.slane %v2466_v13, 5  ;;  %v2582_v16 = vrot.slane %v2467_v8, 5  ;;  %v12219_v53 = vpop.permute.xlu1 %1415  ;;  %v11207_v50 = vld [vmem:[#allocation2] sm:$0xff]   ;;  %v11209_v61 = vld [vmem:[#allocation2 + $0xc] sm:$0xff]   ;;  %10499 = vmatpush3.bf16.msra.mxu1 %v11244_v38 }
  0xb9   :  { %v3079_v3 = vor.u32 %v3078_v29, %v3074_v19  ;;  %v3087_v22 = vshrl.u32 %v2933_v28, 16  ;;  %3404 = vrot.lane.b32.xlu0 %v9943_v60, %s11387_s17  ;;  %v3070_v24 = vrot.slane %v3069_v62, 4  ;;  %v3090_v55 = vshll.u32 %v2933_v28, 16  ;;  %v11212_v28 = vld [vmem:[#allocation2 + $0x18] sm:$0xff]   ;;  %v11220_v60 = vld [vmem:[#allocation2 + $0x84] sm:$0xff]   ;;  %v11221_v62 = vld [vmem:[#allocation2 + $0x90] sm:$0xff]  }
  0xba   :  { %v3096_v31 = vshll.u32 %v2934_v48, 16  ;;  %v3100_v17 = vshrl.u32 %v2934_v48, 16  ;;  %2715 = vrot.lane.b32.xlu1 %v9911_v59, %s11387_s17  ;;  %v2580_v44 = vsel %vm12111_vm14, %v9896_v47, %v2579_v54  ;;  %v2581_v42 = vrot.slane %v2579_v54, 4  ;;  %v11216_v59 = vld [vmem:[#allocation2 + $0x3c] sm:$0xff]   ;;  %v11218_v29 = vld [vmem:[#allocation2 + $0x54] sm:$0xff]   ;;  %v11228_v47 = vld [vmem:[#allocation2 + $0xa8] sm:$0xff]  }
  0xbb   :  { %v3080_v63 = vrot.slane %v3079_v3, 4  ;;  %v3089_v14 = vrot.slane %v3087_v22, 4  ;;  %v3075_v26 = vsel %vm11550_vm11, %v3070_v24, %v3074_v19  ;;  %v3092_v6 = vrot.slane %v3090_v55, 5  ;;  %v11217_v19 = vld [vmem:[#allocation2 + $0x48] sm:$0xff]   ;;  %v11219_v48 = vld [vmem:[#allocation2 + $0x78] sm:$0xff]   ;;  %v11234_v3 = vld [vmem:[#allocation2 + $0xc0] sm:$0xff]  }
  0xbc   :  { %v3098_v30 = vrot.slane %v3096_v31, 5  ;;  %v3102_v32 = vrot.slane %v3100_v17, 4  ;;  %v2583_v4 = vsel %vm12111_vm14, %v2581_v42, %v2582_v16  ;;  %v3106_v40 = vshll.u32 %v2935_v56, 16  ;;  %v11231_v56 = vld [vmem:[#allocation2 + $0xb4] sm:$0xff]   ;;  %v12238_v24 = vld [vmem:[#allocation2 + $0x4] sm:$0xf] }
  0xbd   :  { %v3085_v39 = vsel %vm11550_vm11, %v3080_v63, %v3084_v0  ;;  %v9897_v13 = vrot.slane %v12199_v52, 9  ;;  %v9912_v23 = vcombine.low %v2580_v44, %v2583_v4  ;;  %v3093_v43 = vor.u32 %v3092_v6, %v3089_v14  ;;  %v11225_v0 = vld [vmem:[#allocation2 + $0x9c] sm:$0xff]   ;;  %v12240_v55 = vld [vmem:[#allocation2 + $0x8] sm:$0x1]  ;;  %v11237_v31 = vld [vmem:[#allocation2 + $0xcc] sm:$0xff]   ;;  %v1410_v14 = vpop.permute.xlu0 %1409 }
  0xbe   :  { %v9944_v41 = vcombine.low %v3075_v26, %v3085_v39  ;;  %v3103_v7 = vor.u32 %v3102_v32, %v3098_v30  ;;  %v3108_v46 = vrot.slane %v3106_v40, 5  ;;  %v2586_v8 = vrot.slane %v2469_v12, 5  ;;  %v11240_v17 = vld [vmem:[#allocation2 + $0x18] sm:$0xff]   ;;  %v12244_v44 = vld [vmem:[#allocation2 + $0x54] sm:$0xe]  ;;  %v1418_v39 = vpop.permute.xlu1 %1417 }
  0xbf   :  { %v2589_v49 = vrot.slane %v12205_v18, 5  ;;  %v136_v36 = vsel %vm11464_vm6, 0, %v135_v20  ;;  %2717 = vrot.lane.b32.xlu1 %v9912_v23, %s11387_s17  ;;  %v3094_v54 = vrot.slane %v3093_v43, 4  ;;  %v3111_v22 = vshrl.u32 %v12210_v25, 16  ;;  %v12246_v42 = vld [vmem:[#allocation2 + $0x58] sm:$0xf] }
  0xc0   :  { %3406 = vrot.lane.b32.xlu0 %v9944_v41, %s11387_s17  ;;  %v3104_v16 = vrot.slane %v3103_v7, 4  ;;  %137 = vst [vmem:[#allocation2 + $0x68] sm:$0x1] %v136_v36  ;;  %v3114_v52 = vshll.u32 %v12210_v25, 16  ;;  %v2587_v12 = vsel %vm12111_vm14, %v9897_v13, %v2586_v8  ;;  %v2588_v18 = vrot.slane %v2586_v8, 4  ;;  %v11245_v25 = vld [vmem:[#allocation2 + $0x24] sm:$0xff]  }
  0xc1   :  { %v3120_v20 = vshll.u32 %v2937_v33, 16  ;;  %v3124_v63 = vshrl.u32 %v2937_v33, 16  ;;  %v3099_v51 = vsel %vm11550_vm11, %v3094_v54, %v3098_v30  ;;  %v3113_v6 = vrot.slane %v3111_v22, 4  ;;  %v12252_v38 = vld [vmem:[#allocation2 + $0x5c] sm:$0x1] }
  0xc2   :  { %v3109_v26 = vsel %vm11550_vm11, %v3104_v16, %v3108_v46  ;;  %v3116_v32 = vrot.slane %v3114_v52, 5  ;;  %v2590_v33 = vsel %vm12111_vm14, %v2588_v18, %v2589_v49  ;;  %v12258_v41 = vld [vmem:[#allocation2 + $0xc] sm:$0xe]  ;;  %vm909_vm15 = vcmask 523264   ;;  %v12260_v30 = vld [vmem:[#allocation2 + $0x10] sm:$0xf] }
  0xc3   :  { %v9945_v4 = vcombine.low %v3099_v51, %v3109_v26  ;;  %v12256_v40 = vrot.slane %v3120_v20, 5  ;;  %v3126_v13 = vrot.slane %v3124_v63, 4  ;;  %v9913_v23 = vcombine.low %v2587_v12, %v2590_v33  ;;  %v12262_v7 = vld [vmem:[#allocation2 + $0x14] sm:$0x1]  ;;  %v12264_v46 = vld [vmem:[#allocation2 + $0x6c] sm:$0x1] }
  0xc4   :  { %v3117_v43 = vor.u32 %v3116_v32, %v3113_v6  ;;  %vm1457_vm0 = vcmask 1048064   ;;  %v9828_v49 = vrot.slane %v12236_v10, 9  ;;  %v1575_v36 = vrot.slane %v12238_v24, 5  ;;  %910 = vst.msk [vmem:[#allocation4] sm:$0xff] %vm909_vm15, %v11207_v50  ;;  %911 = vst.msk [vmem:[#allocation4 + $0x28] sm:$0xff] %vm909_vm15, %v11209_v61  ;;  %v1420_v10 = vpop.permute.xlu1 %1419  ;;  %v11248_v24 = vld [vmem:[#allocation2 + $0x3c] sm:$0xff]  }
  0xc5   :  { %3408 = vrot.lane.b32.xlu0 %v9945_v4, %s11387_s17  ;;  %v3127_v8 = vor.u32 %v3126_v13, %v12256_v40  ;;  %v1578_v54 = vrot.slane %v12240_v55, 5  ;;  %v138_v16 = vld [vmem:[#allocation2 + $0x74] sm:$0x1]  ;;  %912 = vst.msk [vmem:[#allocation4 + $0x50] sm:$0xff] %vm909_vm15, %v11212_v28  ;;  %913 = vst.msk [vmem:[#allocation4 + $0x78] sm:$0xff] %vm909_vm15, %v11214_v57  ;;  %2719 = vrot.lane.b32.xlu1 %v9913_v23, %s11387_s17  ;;  %v9898_v61 = vrot.slane %v12244_v44, 9 }
  0xc6   :  { %914 = vst.msk [vmem:[#allocation4 + $0xa0] sm:$0xff] %vm909_vm15, %v11215_v5  ;;  %915 = vst.msk [vmem:[#allocation4 + $0xc8] sm:$0xff] %vm909_vm15, %v11216_v59  ;;  %v12290_v50 = vrot.slane %v3117_v43, 4  ;;  %v2593_v28 = vrot.slane %v12246_v42, 5  ;;  %v2596_v57 = vrot.slane %v12252_v38, 5  ;;  %v77_v58 = vsel %vm11430_vm3, 0, %v12264_v46 }
  0xc7   :  { %916 = vst.msk [vmem:[#allocation4 + $0xf0] sm:$0xff] %vm909_vm15, %v11217_v19  ;;  %917 = vst.msk [vmem:[#allocation4 + $0x118] sm:$0xff] %vm909_vm15, %v11218_v29  ;;  %v2940_v5 = vld [vmem:[#allocation2 + $0x70] sm:$0xf]  ;;  %v722_v59 = vld [vmem:[#allocation2 + $0x68] sm:$0x1]  ;;  %v1576_v29 = vsel %vm12111_vm14, %v9828_v49, %v1575_v36 }
  0xc8   :  { %918 = vst.msk [vmem:[#allocation4 + $0x140] sm:$0xff] %vm909_vm15, %v11219_v48  ;;  %919 = vst.msk [vmem:[#allocation4 + $0x168] sm:$0xff] %vm909_vm15, %v11220_v60  ;;  %v12303_v19 = vrot.slane %v3127_v8, 4  ;;  %v1577_v48 = vrot.slane %v1575_v36, 4  ;;  %v9829_v60 = vrot.slane %v12258_v41, 9  ;;  %v139_v18 = vsel %vm11464_vm6, 0, %v138_v16 }
  0xc9   :  { %920 = vst.msk [vmem:[#allocation4 + $0x190] sm:$0xff] %vm909_vm15, %v11221_v62  ;;  %921 = vst.msk [vmem:[#allocation4 + $0x1b8] sm:$0xff] %vm909_vm15, %v11225_v0  ;;  %v2474_v62 = vld [vmem:[#allocation2 + $0x60] sm:$0xe]  ;;  %v1480_v0 = vld [vmem:[#allocation2 + $0x18] sm:$0xe] }
  0xca   :  { %922 = vst.msk [vmem:[#allocation4 + $0x1e0] sm:$0xff] %vm909_vm15, %v11228_v47  ;;  %923 = vst.msk [vmem:[#allocation4 + $0x208] sm:$0xff] %vm909_vm15, %v11231_v56  ;;  %v12308_v47 = vpop.permute.xlu0 %1881  ;;  %v2594_v56 = vsel %vm12111_vm14, %v9898_v61, %v2593_v28  ;;  %v1481_v22 = vld [vmem:[#allocation2 + $0x1c] sm:$0xf]  ;;  %v1482_v52 = vld [vmem:[#allocation2 + $0x20] sm:$0x1]  ;;  %v1579_v55 = vsel %vm12111_vm14, %v1577_v48, %v1578_v54  ;;  %v3123_v61 = vsel %vm11550_vm11, %v12290_v50, %v12256_v40 }
  0xcb   :  { %924 = vst.msk [vmem:[#allocation4 + $0x230] sm:$0xff] %vm909_vm15, %v11234_v3  ;;  %925 = vst.msk [vmem:[#allocation4 + $0x258] sm:$0xff] %vm909_vm15, %v11237_v31  ;;  %v2595_v3 = vrot.slane %v2593_v28, 4  ;;  %v1582_v31 = vrot.slane %v12260_v30, 5  ;;  %v3144_v20 = vshll.u32 %v2940_v5, 16  ;;  %v9899_v26 = vrot.slane %v2474_v62, 9 }
  0xcc   :  { %2902 = vst.msk [vmem:[#allocation4 + $0x18] sm:$0xff] %vm909_vm15, %v11240_v17  ;;  %2903 = vst.msk [vmem:[#allocation4 + $0x40] sm:$0xff] %vm909_vm15, %v11245_v25  ;;  %v1585_v17 = vrot.slane %v12262_v7, 5  ;;  %v1483_v25 = vld [vmem:[#allocation2 + $0x24] sm:$0xe]  ;;  %v9830_v32 = vrot.slane %v1480_v0, 9 }
  0xcd   :  { %1458 = vst.msk [vmem:[#allocation4] sm:$0xff] %vm1457_vm0, %v1410_v14  ;;  %1459 = vst.msk [vmem:[#allocation4 + $0x28] sm:$0xff] %vm1457_vm0, %v12176_v2  ;;  %v2475_v2 = vld [vmem:[#allocation2 + $0x64] sm:$0xf]  ;;  %v2597_v12 = vsel %vm12111_vm14, %v2595_v3, %v2596_v57  ;;  %v1583_v44 = vsel %vm12111_vm14, %v9829_v60, %v1582_v31  ;;  %v1584_v42 = vrot.slane %v1582_v31, 4  ;;  %v3148_v14 = vshrl.u32 %v2940_v5, 16 }
  0xce   :  { %1460 = vst.msk [vmem:[#allocation4 + $0x50] sm:$0xff] %vm1457_vm0, %v12191_v11  ;;  %1461 = vst.msk [vmem:[#allocation4 + $0x78] sm:$0xff] %vm1457_vm0, %v12219_v53  ;;  %v11247_v11 = vld [vmem:[#allocation2 + $0x30] sm:$0xff]   ;;  %v723_v53 = vsel %vm11430_vm3, %v477_v9, %v722_v59  ;;  %v9844_v9 = vcombine.low %v1576_v29, %v1579_v55  ;;  %v9914_v63 = vcombine.low %v2594_v56, %v2597_v12  ;;  %v12333_v51 = vrot.slane %v3144_v20, 5  ;;  %v1484_v38 = vld [vmem:[#allocation2 + $0x28] sm:$0xf]  ;;  %v12340_v43 = vpop.permute.xlu0 %1883 }
  0xcf   :  { %1462 = vst.msk [vmem:[#allocation4 + $0xa0] sm:$0xff] %vm1457_vm0, %v1418_v39  ;;  %724 = vst [vmem:[#allocation2 + $0x68] sm:$0x1] %v723_v53  ;;  %v2600_v6 = vrot.slane %v2475_v2, 5  ;;  %v1422_v39 = vpop.permute.xlu1 %1421  ;;  %v1586_v4 = vsel %vm12111_vm14, %v1584_v42, %v1585_v17  ;;  %v3150_v33 = vrot.slane %v3148_v14, 4  ;;  %v1589_v13 = vrot.slane %v1481_v22, 5 }
  0xd0   :  { %1463 = vst.msk [vmem:[#allocation4 + $0xc8] sm:$0xff] %vm1457_vm0, %v1420_v10  ;;  %78 = vst [vmem:[#allocation2 + $0x6c] sm:$0x1] %v77_v58  ;;  %2721 = vrot.lane.b32.xlu1 %v9914_v63, %s11387_s17  ;;  %v1592_v41 = vrot.slane %v1482_v52, 5  ;;  %v1485_v23 = vld [vmem:[#allocation2 + $0x2c] sm:$0x1]  ;;  %v9845_v30 = vcombine.low %v1583_v44, %v1586_v4 }
  0xd1   :  { %2904 = vst.msk [vmem:[#allocation4 + $0x68] sm:$0xff] %vm909_vm15, %v11247_v11  ;;  %2905 = vst.msk [vmem:[#allocation4 + $0x90] sm:$0xff] %vm909_vm15, %v11248_v24  ;;  %v2602_v7 = vrot.slane %v2600_v6, 4  ;;  %v9831_v46 = vrot.slane %v1483_v25, 9  ;;  %v3151_v8 = vor.u32 %v3150_v33, %v12333_v51  ;;  %v1591_v49 = vrot.slane %v1589_v13, 4  ;;  %v12364_v3 = vld [vmem:[%s14756_s1 + $0x108] sm:$0xff]  }
  0xd2   :  { %140 = vst [vmem:[#allocation2 + $0x74] sm:$0x1] %v139_v18  ;;  %1749 = vst.msk [vmem:[#allocation4 + $0x8] sm:$0xff] %vm909_vm15, %v9844_v9  ;;  %v1596_v36 = vrot.slane %v1484_v38, 5  ;;  %v2942_v54 = vld [vmem:[#allocation2 + $0x90] sm:$0xf]  ;;  %v2601_v57 = vsel %vm12111_vm14, %v9899_v26, %v2600_v6  ;;  %v12368_v31 = vpop.permute.xlu0 %1885 }
  0xd3   :  { %1925 = vst.msk [vmem:[#allocation4 + $0x8] sm:$0xff] %vm1457_vm0, %v12212_v27  ;;  %1464 = vst.msk [vmem:[#allocation4 + $0xf0] sm:$0xff] %vm1457_vm0, %v1422_v39  ;;  %v1590_v27 = vsel %vm12111_vm14, %v9830_v32, %v1589_v13  ;;  %v1599_v5 = vrot.slane %v1485_v23, 5  ;;  %v3159_v59 = vshrl.u32 %v2942_v54, 16  ;;  %v12355_v60 = vrot.slane %v3151_v8, 4 }
  0xd4   :  { %1750 = vst.msk [vmem:[#allocation4 + $0x30] sm:$0xff] %vm909_vm15, %v9845_v30  ;;  %v1593_v2 = vsel %vm12111_vm14, %v1591_v49, %v1592_v41  ;;  %v1597_v53 = vsel %vm12111_vm14, %v9831_v46, %v1596_v36  ;;  %v2943_v56 = vld [vmem:[#allocation2 + $0x94] sm:$0xf]  ;;  %v3750_v10 = vld [vmem:[#allocation4] sm:$0xff]  ;;  %v1598_v24 = vrot.slane %v1596_v36, 4  ;;  %v3162_v14 = vshll.u32 %v2942_v54, 16 }
  0xd5   :  { %1926 = vst.msk [vmem:[#allocation4 + $0x30] sm:$0xff] %vm1457_vm0, %v12163_v45  ;;  %v9846_v11 = vcombine.low %v1590_v27, %v1593_v2  ;;  %v2944_v55 = vld [vmem:[#allocation2 + $0x98] sm:$0x1]  ;;  %v3161_v18 = vrot.slane %v3159_v59, 4  ;;  %v2477_v20 = vld [vmem:[#allocation2 + $0x84] sm:$0xe] }
  0xd6   :  { %v2938_v16 = vld [vmem:[#allocation2 + $0x68] sm:$0x1]  ;;  %v1600_v42 = vsel %vm12111_vm14, %v1598_v24, %v1599_v5  ;;  %v2479_v26 = vld [vmem:[#allocation2 + $0x8c] sm:$0x1]  ;;  %v3168_v39 = vshll.u32 %v2943_v56, 16  ;;  %v3164_v13 = vrot.slane %v3162_v14, 5  ;;  %v1424_v59 = vpop.permute.xlu1 %1423 }
  0xd7   :  { %v2476_v28 = vld [vmem:[#allocation2 + $0x68] sm:$0x1]  ;;  %v3130_v29 = vshll.u32 %v2938_v16, 16  ;;  %v2939_v48 = vld [vmem:[#allocation2 + $0x6c] sm:$0xf]  ;;  %1751 = vst.msk [vmem:[#allocation4 + $0x58] sm:$0xff] %vm909_vm15, %v9846_v11  ;;  %v9847_v38 = vcombine.low %v1597_v53, %v1600_v42 }
  0xd8   :  { %v2603_v62 = vrot.slane %v2476_v28, 5  ;;  %v3135_v50 = vshrl.u32 %v2939_v48, 16  ;;  %v3138_v0 = vshll.u32 %v2939_v48, 16  ;;  %1927 = vst.msk [vmem:[#allocation4 + $0x58] sm:$0xff] %vm1457_vm0, %v12308_v47  ;;  %v2478_v25 = vld [vmem:[#allocation2 + $0x88] sm:$0xf]  ;;  %v3165_v54 = vor.u32 %v3164_v13, %v3161_v18 }
  0xd9   :  { %v2941_v40 = vld [vmem:[#allocation2 + $0x74] sm:$0x1]  ;;  %v3132_v45 = vrot.slane %v3130_v29, 5  ;;  %v1486_v4 = vld [vmem:[#allocation2 + $0x30] sm:$0xe]  ;;  %v11382_v47 = vld [vmem:[%s14756_s1 + $0x100] sm:$0xff]  }
  0xda   :  { %v3154_v22 = vshll.u32 %v2941_v40, 16  ;;  %v2604_v52 = vsel %vm12111_vm14, %v2602_v7, %v2603_v62  ;;  %v3137_v17 = vrot.slane %v3135_v50, 4  ;;  %v3140_v58 = vrot.slane %v3138_v0, 5  ;;  %v3751_v12 = vld [vmem:[#allocation4 + $0x8] sm:$0xff]  ;;  %v12385_v30 = vld [vmem:[#allocation2 + $0x38] sm:$0x1] }
  0xdb   :  { %v9915_v9 = vcombine.low %v2601_v57, %v2604_v52  ;;  %v3133_v63 = vsel %vm11550_vm11, %v12303_v19, %v3132_v45  ;;  %4198 = vmatprep.mubr.bf16.mxu0 %v3751_v12  ;;  %v1487_v19 = vld [vmem:[#allocation2 + $0x34] sm:$0xf]  ;;  %v3172_v41 = vshrl.u32 %v2943_v56, 16  ;;  %v3178_v23 = vshll.u32 %v2944_v55, 16  ;;  %1752 = vst.msk [vmem:[#allocation4 + $0x80] sm:$0xff] %vm909_vm15, %v9847_v38  ;;  %v12395_v57 = vpop.permute.xlu0 %1887  ;;  %v3755_v5 = vld [vmem:[#allocation4 + $0x28] sm:$0xff] }
  0xdc   :  { %v3156_v44 = vrot.slane %v3154_v22, 5  ;;  %v9946_v6 = vcombine.low %v3123_v61, %v3133_v63  ;;  %v3141_v32 = vor.u32 %v3140_v58, %v3137_v17  ;;  %4199 = vmatmul.mubr.bf16.vlgmr.msra.gmra.mrb[0].mxu0 %v3750_v10  ;;  %v3170_v46 = vrot.slane %v3168_v39, 5  ;;  %v3756_v49 = vld [vmem:[#allocation4 + $0x30] sm:$0xff]  ;;  %1928 = vst.msk [vmem:[#allocation4 + $0x80] sm:$0xff] %vm1457_vm0, %v12340_v43  ;;  %v1489_v2 = vld [vmem:[#allocation2 + $0x3c] sm:$0xe]  ;;  %v1426_v42 = vpop.permute.xlu1 %1425 }
  0xdd   :  { %2723 = vrot.lane.b32.xlu1 %v9915_v9, %s11387_s17  ;;  %11089 = vmatpush3.bf16.msra.mxu0 %v11382_v47  ;;  %v9900_v8 = vrot.slane %v2477_v20, 9  ;;  %v2607_v27 = vrot.slane %v2478_v25, 5  ;;  %v11246_v36 = vld [vmem:[%s14756_s1 + $0x110] sm:$0xff]   ;;  %v3174_v16 = vrot.slane %v3172_v41, 4  ;;  %v3180_v61 = vrot.slane %v3178_v23, 5  ;;  %1465 = vst.msk [vmem:[#allocation4 + $0x118] sm:$0xff] %vm1457_vm0, %v1424_v59 }
  0xde   :  { %v3157_v33 = vsel %vm11550_vm11, %v12355_v60, %v3156_v44  ;;  %3410 = vrot.lane.b32.xlu0 %v9946_v6, %s11387_s17  ;;  %v3142_v7 = vrot.slane %v3141_v32, 4  ;;  %11090 = vmatprep.subr.bf16.mxu0 %v12364_v3  ;;  %v2610_v28 = vrot.slane %v2479_v26, 5  ;;  %v9832_v62 = vrot.slane %v1486_v4, 9  ;;  %v1490_v43 = vld [vmem:[#allocation2 + $0x40] sm:$0xf]  ;;  %v11249_v9 = vld [vmem:[#allocation2 + $0x48] sm:$0xff]  }
  0xdf   :  { %4206 = vmatprep.mubr.bf16.mxu0 %v3756_v49  ;;  %v2608_v48 = vsel %vm12111_vm14, %v9900_v8, %v2607_v27  ;;  %v2609_v60 = vrot.slane %v2607_v27, 4  ;;  %v3166_v50 = vrot.slane %v3165_v54, 4  ;;  %v3175_v0 = vor.u32 %v3174_v16, %v3170_v46  ;;  %v1491_v53 = vld [vmem:[#allocation2 + $0x44] sm:$0x1]  ;;  %v3761_v52 = vld [vmem:[#allocation4 + $0x58] sm:$0xff]  ;;  %v12417_v39 = vpop.permute.xlu0 %1889  ;;  %1466 = vst.msk [vmem:[#allocation4 + $0x140] sm:$0xff] %vm1457_vm0, %v1426_v42 }
  0xe0   :  { %v3147_v29 = vsel %vm11550_vm11, %v3142_v7, %v12333_v51  ;;  %v1603_v11 = vrot.slane %v1487_v19, 5  ;;  %v1606_v51 = vrot.slane %v12385_v30, 5  ;;  %v9833_v45 = vrot.slane %v1489_v2, 9  ;;  %v2946_v58 = vld [vmem:[#allocation2 + $0xa0] sm:$0xf]  ;;  %v11250_v14 = vld [vmem:[#allocation2 + $0x54] sm:$0xff]  }
  0xe1   :  { %v9947_v40 = vcombine.low %v3147_v29, %v3157_v33  ;;  %11091 = vmatpush3.bf16.msra.mxu0 %v12364_v3  ;;  %v2611_v56 = vsel %vm12111_vm14, %v2609_v60, %v2610_v28  ;;  %v1610_v22 = vrot.slane %v1490_v43, 5  ;;  %v3171_v10 = vsel %vm11550_vm11, %v3166_v50, %v3170_v46  ;;  %v2945_v3 = vld [vmem:[#allocation2 + $0x9c] sm:$0xf]  ;;  %v2947_v44 = vld [vmem:[#allocation2 + $0xa4] sm:$0x1]  ;;  %2906 = vst.msk [vmem:[#allocation4 + $0xb8] sm:$0xff] %vm909_vm15, %v11249_v9 }
  0xe2   :  { %11092 = vmatprep.subr.bf16.mxu0 %v11246_v36  ;;  %v3176_v24 = vrot.slane %v3175_v0, 4  ;;  %v9916_v55 = vcombine.low %v2608_v48, %v2611_v56  ;;  %v1604_v17 = vsel %vm12111_vm14, %v9832_v62, %v1603_v11  ;;  %v1605_v12 = vrot.slane %v1603_v11, 4  ;;  %v2480_v38 = vld [vmem:[#allocation2 + $0x90] sm:$0xe]  ;;  %v11251_v4 = vld [vmem:[%s14756_s1 + $0x118] sm:$0xff]   ;;  %2907 = vst.msk [vmem:[#allocation4 + $0xe0] sm:$0xff] %vm909_vm15, %v11250_v14 }
  0xe3   :  { %3412 = vrot.lane.b32.xlu0 %v9947_v40, %s11387_s17  ;;  %v1611_v18 = vsel %vm12111_vm14, %v9833_v45, %v1610_v22  ;;  %v1612_v20 = vrot.slane %v1610_v22, 4  ;;  %v1613_v63 = vrot.slane %v1491_v53, 5  ;;  %v3183_v26 = vshrl.u32 %v2945_v3, 16  ;;  %v2481_v41 = vld [vmem:[#allocation2 + $0x94] sm:$0xf]  ;;  %v3766_v62 = vld [vmem:[#allocation4 + $0x80] sm:$0xff]  ;;  %v1892_v22 = vpop.permute.xlu0 %1891 }
  0xe4   :  { %4207 = vmatmul.mubr.bf16.gmra.mrb[4].mxu0 %v3755_v5  ;;  %v3181_v25 = vsel %vm11550_vm11, %v3176_v24, %v3180_v61  ;;  %2725 = vrot.lane.b32.xlu1 %v9916_v55, %s11387_s17  ;;  %v3186_v6 = vshll.u32 %v2945_v3, 16  ;;  %v3192_v32 = vshll.u32 %v2946_v58, 16  ;;  %v1607_v33 = vsel %vm12111_vm14, %v1605_v12, %v1606_v51  ;;  %v2482_v23 = vld [vmem:[#allocation2 + $0x98] sm:$0x1]  ;;  %v1492_v27 = vld [vmem:[#allocation2 + $0x48] sm:$0xe] }
  0xe5   :  { %4214 = vmatprep.mubr.bf16.mxu0 %v3761_v52  ;;  %v9948_v19 = vcombine.low %v3171_v10, %v3181_v25  ;;  %v1614_v47 = vsel %vm12111_vm14, %v1612_v20, %v1613_v63  ;;  %v3196_v13 = vshrl.u32 %v2946_v58, 16  ;;  %11093 = vmatpush3.bf16.msra.mxu0 %v11246_v36  ;;  %v9848_v30 = vcombine.low %v1604_v17, %v1607_v33  ;;  %v1493_v49 = vld [vmem:[#allocation2 + $0x4c] sm:$0xf]  ;;  %v3760_v54 = vld [vmem:[#allocation4 + $0x50] sm:$0xff]  ;;  %v11252_v0 = vld [vmem:[#allocation2 + $0x60] sm:$0xff]  }
  0xe6   :  { %v9849_v7 = vcombine.low %v1611_v18, %v1614_v47  ;;  %v3185_v46 = vrot.slane %v3183_v26, 4  ;;  %v3188_v8 = vrot.slane %v3186_v6, 5  ;;  %11094 = vmatprep.subr.bf16.mxu0 %v11251_v4  ;;  %v3194_v16 = vrot.slane %v3192_v32, 5  ;;  %v1494_v59 = vld [vmem:[#allocation2 + $0x50] sm:$0x1]  ;;  %2908 = vst.msk [vmem:[#allocation4 + $0x108] sm:$0xff] %vm909_vm15, %v11252_v0 }
  0xe7   :  { %3414 = vrot.lane.b32.xlu0 %v9948_v19, %s11387_s17  ;;  %v3198_v61 = vrot.slane %v3196_v13, 4  ;;  %v3202_v28 = vshll.u32 %v2947_v44, 16  ;;  %v9901_v5 = vrot.slane %v2480_v38, 9  ;;  %1753 = vst.msk [vmem:[#allocation4 + $0xa8] sm:$0xff] %vm909_vm15, %v9848_v30  ;;  %v2614_v29 = vrot.slane %v2481_v41, 5  ;;  %v1428_v38 = vpop.permute.xlu1 %1427 }
  0xe8   :  { %1754 = vst.msk [vmem:[#allocation4 + $0xd0] sm:$0xff] %vm909_vm15, %v9849_v7  ;;  %v3189_v36 = vor.u32 %v3188_v8, %v3185_v46  ;;  %v2617_v48 = vrot.slane %v2482_v23, 5  ;;  %v9834_v60 = vrot.slane %v1492_v27, 9  ;;  %v1617_v40 = vrot.slane %v1493_v49, 5  ;;  %v1495_v51 = vld [vmem:[#allocation2 + $0x54] sm:$0xe]  ;;  %v12457_v27 = vpop.permute.xlu0 %1893 }
  0xe9   :  { %1929 = vst.msk [vmem:[#allocation4 + $0xa8] sm:$0xff] %vm1457_vm0, %v12368_v31  ;;  %1930 = vst.msk [vmem:[#allocation4 + $0xd0] sm:$0xff] %vm1457_vm0, %v12395_v57  ;;  %v3199_v2 = vor.u32 %v3198_v61, %v3194_v16  ;;  %v3204_v43 = vrot.slane %v3202_v28, 5  ;;  %v1620_v50 = vrot.slane %v1494_v59, 5  ;;  %11095 = vmatpush3.bf16.msra.mxu0 %v11251_v4  ;;  %v2615_v53 = vsel %vm12111_vm14, %v9901_v5, %v2614_v29  ;;  %v1496_v45 = vld [vmem:[#allocation2 + $0x58] sm:$0xf] }
  0xea   :  { %v3190_v11 = vrot.slane %v3189_v36, 4  ;;  %v2616_v56 = vrot.slane %v2614_v29, 4  ;;  %v1618_v31 = vsel %vm12111_vm14, %v9834_v60, %v1617_v40  ;;  %v1619_v10 = vrot.slane %v1617_v40, 4  ;;  %v1497_v57 = vld [vmem:[#allocation2 + $0x5c] sm:$0x1]  ;;  %v11253_v4 = vld [vmem:[#allocation2 + $0x6c] sm:$0xff]  }
  0xeb   :  { %v3200_v52 = vrot.slane %v3199_v2, 4  ;;  %v9835_v24 = vrot.slane %v1495_v51, 9  ;;  %v1624_v3 = vrot.slane %v1496_v45, 5  ;;  %v1627_v58 = vrot.slane %v1497_v57, 5  ;;  %v2948_v20 = vld [vmem:[#allocation2 + $0xa8] sm:$0xf] }
  0xec   :  { %4215 = vmatmul.mubr.bf16.gmra.mrb[8].mxu0 %v3760_v54  ;;  %v3195_v55 = vsel %vm11550_vm11, %v3190_v11, %v3194_v16  ;;  %v2618_v17 = vsel %vm12111_vm14, %v2616_v56, %v2617_v48  ;;  %v1621_v18 = vsel %vm12111_vm14, %v1619_v10, %v1620_v50  ;;  %v2949_v63 = vld [vmem:[#allocation2 + $0xac] sm:$0xf]  ;;  %v2950_v44 = vld [vmem:[#allocation2 + $0xb0] sm:$0x1]  ;;  %v2483_v6 = vld [vmem:[#allocation2 + $0x9c] sm:$0xe] }
  0xed   :  { %4222 = vmatprep.mubr.bf16.mxu0 %v3766_v62  ;;  %v3205_v9 = vsel %vm11550_vm11, %v3200_v52, %v3204_v43  ;;  %v9917_v12 = vcombine.low %v2615_v53, %v2618_v17  ;;  %v9850_v14 = vcombine.low %v1618_v31, %v1621_v18  ;;  %v1625_v25 = vsel %vm12111_vm14, %v9835_v24, %v1624_v3  ;;  %v2484_v32 = vld [vmem:[#allocation2 + $0xa0] sm:$0xf]  ;;  %v2485_v41 = vld [vmem:[#allocation2 + $0xa4] sm:$0x1]  ;;  %v1498_v8 = vld [vmem:[#allocation2 + $0x78] sm:$0xe]  ;;  %v1896_v17 = vpop.permute.xlu0 %1895 }
  0xee   :  { %v9949_v42 = vcombine.low %v3195_v55, %v3205_v9  ;;  %v1626_v26 = vrot.slane %v1624_v3, 4  ;;  %v3207_v19 = vshrl.u32 %v2948_v20, 16  ;;  %v3210_v33 = vshll.u32 %v2948_v20, 16  ;;  %1467 = vst.msk [vmem:[#allocation4 + $0x168] sm:$0xff] %vm1457_vm0, %v1428_v38  ;;  %v3765_v49 = vld [vmem:[#allocation4 + $0x78] sm:$0xff]  ;;  %v11254_v62 = vld [vmem:[#allocation2 + $0x90] sm:$0xff]  }
  0xef   :  { %2727 = vrot.lane.b32.xlu1 %v9917_v12, %s11387_s17  ;;  %v3216_v47 = vshll.u32 %v2949_v63, 16  ;;  %v3220_v13 = vshrl.u32 %v2949_v63, 16  ;;  %1755 = vst.msk [vmem:[#allocation4 + $0xf8] sm:$0xff] %vm909_vm15, %v9850_v14  ;;  %v3226_v30 = vshll.u32 %v2950_v44, 16  ;;  %v9902_v7 = vrot.slane %v2483_v6, 9  ;;  %2909 = vst.msk [vmem:[#allocation4 + $0x130] sm:$0xff] %vm909_vm15, %v11253_v4 }
  0xf0   :  { %3416 = vrot.lane.b32.xlu0 %v9949_v42, %s11387_s17  ;;  %v1628_v23 = vsel %vm12111_vm14, %v1626_v26, %v1627_v58  ;;  %v2621_v46 = vrot.slane %v2484_v32, 5  ;;  %1931 = vst.msk [vmem:[#allocation4 + $0xf8] sm:$0xff] %vm1457_vm0, %v12417_v39  ;;  %v3209_v16 = vrot.slane %v3207_v19, 4  ;;  %v3212_v61 = vrot.slane %v3210_v33, 5  ;;  %v1499_v5 = vld [vmem:[#allocation2 + $0x7c] sm:$0xf] }
  0xf1   :  { %v9851_v54 = vcombine.low %v1625_v25, %v1628_v23  ;;  %v3218_v28 = vrot.slane %v3216_v47, 5  ;;  %v3771_v59 = vld [vmem:[#allocation4 + $0xa8] sm:$0xff]  ;;  %v3222_v36 = vrot.slane %v3220_v13, 4  ;;  %v1500_v60 = vld [vmem:[#allocation2 + $0x80] sm:$0x1]  ;;  %v2624_v43 = vrot.slane %v2485_v41, 5 }
  0xf2   :  { %v2622_v29 = vsel %vm12111_vm14, %v9902_v7, %v2621_v46  ;;  %v2623_v48 = vrot.slane %v2621_v46, 4  ;;  %v3213_v2 = vor.u32 %v3212_v61, %v3209_v16  ;;  %v9836_v40 = vrot.slane %v1498_v8, 9  ;;  %v1501_v53 = vld [vmem:[#allocation2 + $0x84] sm:$0xe]  ;;  %2910 = vst.msk [vmem:[#allocation4 + $0x158] sm:$0xff] %vm909_vm15, %v11254_v62  ;;  %v3776_v26 = vld [vmem:[#allocation4 + $0xd0] sm:$0xff] }
  0xf3   :  { %1756 = vst.msk [vmem:[#allocation4 + $0x120] sm:$0xff] %vm909_vm15, %v9851_v54  ;;  %v1631_v50 = vrot.slane %v1499_v5, 5  ;;  %v3223_v39 = vor.u32 %v3222_v36, %v3218_v28  ;;  %v3228_v0 = vrot.slane %v3226_v30, 5  ;;  %v1634_v11 = vrot.slane %v1500_v60, 5  ;;  %v1502_v31 = vld [vmem:[#allocation2 + $0x88] sm:$0xf]  ;;  %v1430_v7 = vpop.permute.xlu1 %1429 }
  0xf4   :  { %4223 = vmatmul.mubr.bf16.gmra.mrb[12].mxu0 %v3765_v49  ;;  %1932 = vst.msk [vmem:[#allocation4 + $0x120] sm:$0xff] %vm1457_vm0, %v1892_v22  ;;  %v3214_v56 = vrot.slane %v3213_v2, 4  ;;  %v2625_v51 = vsel %vm12111_vm14, %v2623_v48, %v2624_v43  ;;  %v1503_v10 = vld [vmem:[#allocation2 + $0x8c] sm:$0x1]  ;;  %v9837_v22 = vrot.slane %v1501_v53, 9  ;;  %v1638_v55 = vrot.slane %v1502_v31, 5 }
  0xf5   :  { %4230 = vmatprep.mubr.bf16.mxu0 %v3771_v59  ;;  %v1632_v45 = vsel %vm12111_vm14, %v9836_v40, %v1631_v50  ;;  %v1633_v52 = vrot.slane %v1631_v50, 4  ;;  %v3224_v57 = vrot.slane %v3223_v39, 4  ;;  %v9918_v24 = vcombine.low %v2622_v29, %v2625_v51  ;;  %v2951_v12 = vld [vmem:[#allocation2 + $0xb4] sm:$0xf]  ;;  %v3770_v18 = vld [vmem:[#allocation4 + $0xa0] sm:$0xff]  ;;  %1468 = vst.msk [vmem:[#allocation4 + $0x190] sm:$0xff] %vm1457_vm0, %v1430_v7  ;;  %v1898_v29 = vpop.permute.xlu0 %1897 }
  0xf6   :  { %v3219_v3 = vsel %vm11550_vm11, %v3214_v56, %v3218_v28  ;;  %v1641_v9 = vrot.slane %v1503_v10, 5  ;;  %v1639_v44 = vsel %vm12111_vm14, %v9837_v22, %v1638_v55  ;;  %v1640_v42 = vrot.slane %v1638_v55, 4  ;;  %v2952_v14 = vld [vmem:[#allocation2 + $0xb8] sm:$0xf]  ;;  %v2953_v25 = vld [vmem:[#allocation2 + $0xbc] sm:$0x1] }
  0xf7   :  { %v1635_v58 = vsel %vm12111_vm14, %v1633_v52, %v1634_v11  ;;  %v3229_v20 = vsel %vm11550_vm11, %v3224_v57, %v3228_v0  ;;  %2729 = vrot.lane.b32.xlu1 %v9918_v24, %s11387_s17  ;;  %v3231_v32 = vshrl.u32 %v2951_v12, 16  ;;  %v3234_v38 = vshll.u32 %v2951_v12, 16  ;;  %v2486_v19 = vld [vmem:[#allocation2 + $0xa8] sm:$0xe]  ;;  %v11255_v33 = vld [vmem:[#allocation2 + $0x9c] sm:$0xff]  }
  0xf8   :  { %v9852_v63 = vcombine.low %v1632_v45, %v1635_v58  ;;  %v9950_v6 = vcombine.low %v3219_v3, %v3229_v20  ;;  %v3240_v4 = vshll.u32 %v2952_v14, 16  ;;  %v1642_v47 = vsel %vm12111_vm14, %v1640_v42, %v1641_v9  ;;  %v2487_v23 = vld [vmem:[#allocation2 + $0xac] sm:$0xf]  ;;  %v2488_v30 = vld [vmem:[#allocation2 + $0xb0] sm:$0x1]  ;;  %2911 = vst.msk [vmem:[#allocation4 + $0x180] sm:$0xff] %vm909_vm15, %v11255_v33 }
  0xf9   :  { %v3244_v13 = vshrl.u32 %v2952_v14, 16  ;;  %v3250_v41 = vshll.u32 %v2953_v25, 16  ;;  %v9853_v46 = vcombine.low %v1639_v44, %v1642_v47  ;;  %v3233_v8 = vrot.slane %v3231_v32, 4  ;;  %v1504_v16 = vld [vmem:[#allocation2 + $0x90] sm:$0xe]  ;;  %v3775_v0 = vld [vmem:[#allocation4 + $0xc8] sm:$0xff]  ;;  %v1900_v12 = vpop.permute.xlu0 %1899 }
  0xfa   :  { %1757 = vst.msk [vmem:[#allocation4 + $0x148] sm:$0xff] %vm909_vm15, %v9852_v63  ;;  %3418 = vrot.lane.b32.xlu0 %v9950_v6, %s11387_s17  ;;  %v3236_v49 = vrot.slane %v3234_v38, 5  ;;  %v3242_v54 = vrot.slane %v3240_v4, 5  ;;  %v9903_v5 = vrot.slane %v2486_v19, 9  ;;  %v2628_v59 = vrot.slane %v2487_v23, 5  ;;  %v3781_v52 = vld [vmem:[#allocation4 + $0xf8] sm:$0xff] }
  0xfb   :  { %1933 = vst.msk [vmem:[#allocation4 + $0x148] sm:$0xff] %vm1457_vm0, %v12457_v27  ;;  %v3246_v61 = vrot.slane %v3244_v13, 4  ;;  %v3252_v28 = vrot.slane %v3250_v41, 5  ;;  %v1505_v36 = vld [vmem:[#allocation2 + $0x94] sm:$0xf]  ;;  %v2631_v48 = vrot.slane %v2488_v30, 5  ;;  %v1432_v22 = vpop.permute.xlu1 %1431 }
  0xfc   :  { %4231 = vmatmul.mubr.bf16.gmra.mrb[16].mxu0 %v3770_v18  ;;  %1758 = vst.msk [vmem:[#allocation4 + $0x170] sm:$0xff] %vm909_vm15, %v9853_v46  ;;  %v3237_v27 = vor.u32 %v3236_v49, %v3233_v8  ;;  %v1506_v60 = vld [vmem:[#allocation2 + $0x98] sm:$0x1]  ;;  %v9838_v62 = vrot.slane %v1504_v16, 9  ;;  %v1645_v2 = vrot.slane %v1505_v36, 5  ;;  %v2629_v40 = vsel %vm12111_vm14, %v9903_v5, %v2628_v59 }
  0xfd   :  { %4238 = vmatprep.mubr.bf16.mxu0 %v3776_v26  ;;  %1934 = vst.msk [vmem:[#allocation4 + $0x170] sm:$0xff] %vm1457_vm0, %v1896_v17  ;;  %v3247_v43 = vor.u32 %v3246_v61, %v3242_v54  ;;  %v2630_v50 = vrot.slane %v2628_v59, 4  ;;  %v1648_v39 = vrot.slane %v1506_v60, 5  ;;  %v1507_v24 = vld [vmem:[#allocation2 + $0x9c] sm:$0xe]  ;;  %1469 = vst.msk [vmem:[#allocation4 + $0x1b8] sm:$0xff] %vm1457_vm0, %v1432_v22  ;;  %v1902_v8 = vpop.permute.xlu0 %1901 }
  0xfe   :  { %v3238_v11 = vrot.slane %v3237_v27, 4  ;;  %v1646_v53 = vsel %vm12111_vm14, %v9838_v62, %v1645_v2  ;;  %v1647_v56 = vrot.slane %v1645_v2, 4  ;;  %v1508_v3 = vld [vmem:[#allocation2 + $0xa0] sm:$0xf]  ;;  %v1509_v58 = vld [vmem:[#allocation2 + $0xa4] sm:$0x1] }
  0xff   :  { %v3248_v51 = vrot.slane %v3247_v43, 4  ;;  %v2632_v45 = vsel %vm12111_vm14, %v2630_v50, %v2631_v48  ;;  %v9839_v9 = vrot.slane %v1507_v24, 9  ;;  %v1652_v20 = vrot.slane %v1508_v3, 5  ;;  %v2954_v44 = vld [vmem:[#allocation2 + $0xc0] sm:$0xf]  ;;  %v11256_v62 = vld [vmem:[#allocation2 + $0xa8] sm:$0xff]  }
 0x100   :  { %v3243_v31 = vsel %vm11550_vm11, %v3238_v11, %v3242_v54  ;;  %v9919_v10 = vcombine.low %v2629_v40, %v2632_v45  ;;  %v1649_v57 = vsel %vm12111_vm14, %v1647_v56, %v1648_v39  ;;  %v1655_v63 = vrot.slane %v1509_v58, 5  ;;  %v2955_v25 = vld [vmem:[#allocation2 + $0xc4] sm:$0xf]  ;;  %v2956_v26 = vld [vmem:[#allocation2 + $0xc8] sm:$0x1]  ;;  %v3780_v54 = vld [vmem:[#allocation4 + $0xf0] sm:$0xff] }
 0x101   :  { %v3253_v55 = vsel %vm11550_vm11, %v3248_v51, %v3252_v28  ;;  %v9854_v17 = vcombine.low %v1646_v53, %v1649_v57  ;;  %v1653_v42 = vsel %vm12111_vm14, %v9839_v9, %v1652_v20  ;;  %v1654_v14 = vrot.slane %v1652_v20, 4  ;;  %v2489_v13 = vld [vmem:[#allocation2 + $0xb4] sm:$0xe]  ;;  %v2490_v46 = vld [vmem:[#allocation2 + $0xb8] sm:$0xf]  ;;  %v3786_v59 = vld [vmem:[#allocation4 + $0x120] sm:$0xff]  ;;  %v1904_v24 = vpop.permute.xlu0 %1903 }
 0x102   :  { %v9951_v18 = vcombine.low %v3243_v31, %v3253_v55  ;;  %2731 = vrot.lane.b32.xlu1 %v9919_v10, %s11387_s17  ;;  %v3255_v6 = vshrl.u32 %v2954_v44, 16  ;;  %v3258_v32 = vshll.u32 %v2954_v44, 16  ;;  %v3264_v38 = vshll.u32 %v2955_v25, 16  ;;  %v1434_v49 = vpop.permute.xlu1 %1433  ;;  %v2491_v61 = vld [vmem:[#allocation2 + $0xbc] sm:$0x1]  ;;  %2912 = vst.msk [vmem:[#allocation4 + $0x1a8] sm:$0xff] %vm909_vm15, %v11256_v62 }
 0x103   :  { %1759 = vst.msk [vmem:[#allocation4 + $0x198] sm:$0xff] %vm909_vm15, %v9854_v17  ;;  %v3268_v4 = vshrl.u32 %v2955_v25, 16  ;;  %v3274_v19 = vshll.u32 %v2956_v26, 16  ;;  %v1656_v33 = vsel %vm12111_vm14, %v1654_v14, %v1655_v63  ;;  %v9904_v28 = vrot.slane %v2489_v13, 9  ;;  %v1510_v48 = vld [vmem:[#allocation2 + $0xa8] sm:$0xe] }
 0x104   :  { %4239 = vmatmul.mubr.bf16.gmra.mrb[20].mxu0 %v3775_v0  ;;  %3420 = vrot.lane.b32.xlu0 %v9951_v18, %s11387_s17  ;;  %1935 = vst.msk [vmem:[#allocation4 + $0x198] sm:$0xff] %vm1457_vm0, %v1898_v29  ;;  %v3257_v47 = vrot.slane %v3255_v6, 4  ;;  %v9855_v41 = vcombine.low %v1653_v42, %v1656_v33  ;;  %v3260_v23 = vrot.slane %v3258_v32, 5  ;;  %v3266_v30 = vrot.slane %v3264_v38, 5  ;;  %1470 = vst.msk [vmem:[#allocation4 + $0x1e0] sm:$0xff] %vm1457_vm0, %v1434_v49  ;;  %v11257_v0 = vld [vmem:[#allocation2 + $0xb4] sm:$0xff]  }
 0x105   :  { %4246 = vmatprep.mubr.bf16.mxu0 %v3781_v52  ;;  %v3270_v7 = vrot.slane %v3268_v4, 4  ;;  %v3276_v16 = vrot.slane %v3274_v19, 5  ;;  %v2635_v5 = vrot.slane %v2490_v46, 5  ;;  %v2638_v27 = vrot.slane %v2491_v61, 5  ;;  %v1511_v60 = vld [vmem:[#allocation2 + $0xac] sm:$0xf] }
 0x106   :  { %1760 = vst.msk [vmem:[#allocation4 + $0x1c0] sm:$0xff] %vm909_vm15, %v9855_v41  ;;  %v3261_v36 = vor.u32 %v3260_v23, %v3257_v47  ;;  %v1512_v40 = vld [vmem:[#allocation2 + $0xb0] sm:$0x1]  ;;  %v9840_v50 = vrot.slane %v1510_v48, 9  ;;  %v1659_v39 = vrot.slane %v1511_v60, 5  ;;  %2913 = vst.msk [vmem:[#allocation4 + $0x1d0] sm:$0xff] %vm909_vm15, %v11257_v0 }
 0x107   :  { %v3271_v29 = vor.u32 %v3270_v7, %v3266_v30  ;;  %1936 = vst.msk [vmem:[#allocation4 + $0x1c0] sm:$0xff] %vm1457_vm0, %v1900_v12  ;;  %v2636_v2 = vsel %vm12111_vm14, %v9904_v28, %v2635_v5  ;;  %v2637_v43 = vrot.slane %v2635_v5, 4  ;;  %v1662_v56 = vrot.slane %v1512_v40, 5  ;;  %v3785_v22 = vld [vmem:[#allocation4 + $0x118] sm:$0xff]  ;;  %v1513_v3 = vld [vmem:[#allocation2 + $0xb4] sm:$0xe] }
 0x108   :  { %v3262_v11 = vrot.slane %v3261_v36, 4  ;;  %v1660_v45 = vsel %vm12111_vm14, %v9840_v50, %v1659_v39  ;;  %v1661_v52 = vrot.slane %v1659_v39, 4  ;;  %v1514_v58 = vld [vmem:[#allocation2 + $0xb8] sm:$0xf]  ;;  %v1515_v9 = vld [vmem:[#allocation2 + $0xbc] sm:$0x1] }
 0x109   :  { %v3272_v53 = vrot.slane %v3271_v29, 4  ;;  %v2639_v51 = vsel %vm12111_vm14, %v2637_v43, %v2638_v27  ;;  %v9841_v18 = vrot.slane %v1513_v3, 9  ;;  %v1666_v20 = vrot.slane %v1514_v58, 5  ;;  %v3791_v44 = vld [vmem:[#allocation4 + $0x148] sm:$0xff]  ;;  %v2958_v26 = vld [vmem:[#allocation2 + $0xd0] sm:$0xf]  ;;  %v12537_v41 = vpop.permute.xlu0 %1905 }
 0x10a   :  { %v3267_v31 = vsel %vm11550_vm11, %v3262_v11, %v3266_v30  ;;  %v9920_v57 = vcombine.low %v2636_v2, %v2639_v51  ;;  %v1663_v17 = vsel %vm12111_vm14, %v1661_v52, %v1662_v56  ;;  %v1669_v63 = vrot.slane %v1515_v9, 5  ;;  %v2957_v25 = vld [vmem:[#allocation2 + $0xcc] sm:$0xf]  ;;  %v2959_v32 = vld [vmem:[#allocation2 + $0xd4] sm:$0x1]  ;;  %v11258_v23 = vld [vmem:[#allocation2 + $0xc0] sm:$0xff]  }
 0x10b   :  { %v3277_v10 = vsel %vm11550_vm11, %v3272_v53, %v3276_v16  ;;  %v9856_v12 = vcombine.low %v1660_v45, %v1663_v17  ;;  %v1667_v42 = vsel %vm12111_vm14, %v9841_v18, %v1666_v20  ;;  %v1668_v14 = vrot.slane %v1666_v20, 4  ;;  %v2492_v49 = vld [vmem:[#allocation2 + $0xc0] sm:$0xe]  ;;  %v2493_v16 = vld [vmem:[#allocation2 + $0xc4] sm:$0xf]  ;;  %2914 = vst.msk [vmem:[#allocation4 + $0x1f8] sm:$0xff] %vm909_vm15, %v11258_v23 }
 0x10c   :  { %4247 = vmatmul.mubr.bf16.gmra.mrb[24].mxu0 %v3780_v54  ;;  %v9952_v55 = vcombine.low %v3267_v31, %v3277_v10  ;;  %2733 = vrot.lane.b32.xlu1 %v9920_v57, %s11387_s17  ;;  %v3279_v38 = vshrl.u32 %v2957_v25, 16  ;;  %v3282_v4 = vshll.u32 %v2957_v25, 16  ;;  %v3288_v19 = vshll.u32 %v2958_v26, 16  ;;  %v2494_v61 = vld [vmem:[#allocation2 + $0xc8] sm:$0x1]  ;;  %v3790_v28 = vld [vmem:[#allocation4 + $0x140] sm:$0xff] }
 0x10d   :  { %4254 = vmatprep.mubr.bf16.mxu0 %v3786_v59  ;;  %1761 = vst.msk [vmem:[#allocation4 + $0x1e8] sm:$0xff] %vm909_vm15, %v9856_v12  ;;  %v1436_v6 = vpop.permute.xlu1 %1435  ;;  %v3292_v33 = vshrl.u32 %v2958_v26, 16  ;;  %v1670_v47 = vsel %vm12111_vm14, %v1668_v14, %v1669_v63  ;;  %v3298_v13 = vshll.u32 %v2959_v32, 16  ;;  %v9905_v59 = vrot.slane %v2492_v49, 9  ;;  %v1516_v27 = vld [vmem:[#allocation2 + $0xc0] sm:$0xe] }
 0x10e   :  { %3422 = vrot.lane.b32.xlu0 %v9952_v55, %s11387_s17  ;;  %1937 = vst.msk [vmem:[#allocation4 + $0x1e8] sm:$0xff] %vm1457_vm0, %v1902_v8  ;;  %1471 = vst.msk [vmem:[#allocation4 + $0x208] sm:$0xff] %vm1457_vm0, %v1436_v6  ;;  %v9857_v30 = vcombine.low %v1667_v42, %v1670_v47  ;;  %v3281_v7 = vrot.slane %v3279_v38, 4  ;;  %v3284_v46 = vrot.slane %v3282_v4, 5  ;;  %v3290_v8 = vrot.slane %v3288_v19, 5  ;;  %v3796_v48 = vld [vmem:[#allocation4 + $0x170] sm:$0xff] }
 0x10f   :  { %v3294_v54 = vrot.slane %v3292_v33, 4  ;;  %v2642_v36 = vrot.slane %v2493_v16, 5  ;;  %v2645_v29 = vrot.slane %v2494_v61, 5  ;;  %v3300_v62 = vrot.slane %v3298_v13, 5  ;;  %v1517_v2 = vld [vmem:[#allocation2 + $0xc4] sm:$0xf] }
 0x110   :  { %1762 = vst.msk [vmem:[#allocation4 + $0x210] sm:$0xff] %vm909_vm15, %v9857_v30  ;;  %v3285_v5 = vor.u32 %v3284_v46, %v3281_v7  ;;  %v1518_v43 = vld [vmem:[#allocation2 + $0xc8] sm:$0x1]  ;;  %v9842_v40 = vrot.slane %v1516_v27, 9  ;;  %v1673_v11 = vrot.slane %v1517_v2, 5  ;;  %v11259_v53 = vld [vmem:[#allocation2 + $0xcc] sm:$0xff]  }
 0x111   :  { %1938 = vst.msk [vmem:[#allocation4 + $0x210] sm:$0xff] %vm1457_vm0, %v1904_v24  ;;  %v3295_v60 = vor.u32 %v3294_v54, %v3290_v8  ;;  %v2643_v39 = vsel %vm12111_vm14, %v9905_v59, %v2642_v36  ;;  %v2644_v0 = vrot.slane %v2642_v36, 4  ;;  %v1676_v51 = vrot.slane %v1518_v43, 5  ;;  %v1519_v17 = vld [vmem:[#allocation2 + $0xcc] sm:$0xe]  ;;  %v3801_v13 = vld [vmem:[#allocation4 + $0x198] sm:$0xff] }
 0x112   :  { %v3286_v50 = vrot.slane %v3285_v5, 4  ;;  %v1674_v10 = vsel %vm12111_vm14, %v9842_v40, %v1673_v11  ;;  %v1675_v57 = vrot.slane %v1673_v11, 4  ;;  %2915 = vst.msk [vmem:[#allocation4 + $0x220] sm:$0xff] %vm909_vm15, %v11259_v53  ;;  %v1520_v3 = vld [vmem:[#allocation2 + $0xd0] sm:$0xf]  ;;  %v9843_v18 = vrot.slane %v1519_v17, 9 }
 0x113   :  { %v3296_v56 = vrot.slane %v3295_v60, 4  ;;  %v1908_v45 = vpop.permute.xlu0 %1907  ;;  %v2646_v31 = vsel %vm12111_vm14, %v2644_v0, %v2645_v29  ;;  %v1521_v12 = vld [vmem:[#allocation2 + $0xd4] sm:$0x1]  ;;  %v1680_v20 = vrot.slane %v1520_v3, 5  ;;  %v165_v26 = vld [vmem:[#allocation2 + $0xe0] sm:$0x1] }
 0x114   :  { %4255 = vmatmul.mubr.bf16.gmra.mrb[28].mxu0 %v3785_v22  ;;  %v3291_v52 = vsel %vm11550_vm11, %v3286_v50, %v3290_v8  ;;  %v9921_v55 = vcombine.low %v2643_v39, %v2646_v31  ;;  %v1677_v9 = vsel %vm12111_vm14, %v1675_v57, %v1676_v51  ;;  %v166_v6 = vsel %vm11464_vm6, 0, %v165_v26  ;;  %v2960_v32 = vld [vmem:[#allocation2 + $0xd8] sm:$0xf]  ;;  %v2961_v38 = vld [vmem:[#allocation2 + $0xdc] sm:$0xf]  ;;  %v3795_v4 = vld [vmem:[#allocation4 + $0x168] sm:$0xff] }
 0x115   :  { %4262 = vmatprep.mubr.bf16.mxu0 %v3791_v44  ;;  %v1438_v24 = vpop.permute.xlu1 %1437  ;;  %v3301_v22 = vsel %vm11550_vm11, %v3296_v56, %v3300_v62  ;;  %v9858_v63 = vcombine.low %v1674_v10, %v1677_v9  ;;  %v1683_v44 = vrot.slane %v1521_v12, 5  ;;  %v1681_v14 = vsel %vm12111_vm14, %v9843_v18, %v1680_v20  ;;  %167 = vst [vmem:[#allocation2 + $0xe0] sm:$0x1] %v166_v6  ;;  %v11260_v23 = vld [vmem:[#allocation2 + $0xd8] sm:$0xff]   ;;  %v2495_v46 = vld [vmem:[#allocation2 + $0xcc] sm:$0xe] }
 0x116   :  { %1472 = vst.msk [vmem:[#allocation4 + $0x230] sm:$0xff] %vm1457_vm0, %v1438_v24  ;;  %v9953_v58 = vcombine.low %v3291_v52, %v3301_v22  ;;  %2735 = vrot.lane.b32.xlu1 %v9921_v55, %s11387_s17  ;;  %v1682_v25 = vrot.slane %v1680_v20, 4  ;;  %v3303_v33 = vshrl.u32 %v2960_v32, 16  ;;  %v3306_v47 = vshll.u32 %v2960_v32, 16  ;;  %v2496_v16 = vld [vmem:[#allocation2 + $0xd0] sm:$0xf] }
 0x117   :  { %1763 = vst.msk [vmem:[#allocation4 + $0x238] sm:$0xff] %vm909_vm15, %v9858_v63  ;;  %v3312_v54 = vshll.u32 %v2961_v38, 16  ;;  %v9906_v61 = vrot.slane %v2495_v46, 9  ;;  %2916 = vst.msk [vmem:[#allocation4 + $0x248] sm:$0xff] %vm909_vm15, %v11260_v23  ;;  %v2649_v5 = vrot.slane %v2496_v16, 5  ;;  %v613_v59 = vrot.slane %v12064_v37, 4 }
 0x118   :  { %v3399_v42 = vpop.permute.xlu0 %3398  ;;  %3424 = vrot.lane.b32.xlu0 %v9953_v58, %s11387_s17  ;;  %1939 = vst.msk [vmem:[#allocation4 + $0x238] sm:$0xff] %vm1457_vm0, %v12537_v41  ;;  %v1684_v19 = vsel %vm12111_vm14, %v1682_v25, %v1683_v44  ;;  %v3305_v8 = vrot.slane %v3303_v33, 4  ;;  %v3308_v49 = vrot.slane %v3306_v47, 5  ;;  %v3316_v41 = vshrl.u32 %v2961_v38, 16  ;;  %v1941_v29 = vld [vmem:[#allocation2 + $0xc] sm:$0xf] }
 0x119   :  { %3446 = vst.msk [vmem:[#allocation4 + $0x18] sm:$0xff] %vm1457_vm0, %v3399_v42  ;;  %v9859_v30 = vcombine.low %v1681_v14, %v1684_v19  ;;  %v2650_v60 = vsel %vm12111_vm14, %v9906_v61, %v2649_v5  ;;  %v2651_v62 = vrot.slane %v2649_v5, 4  ;;  %v1942_v2 = vld [vmem:[#allocation2 + $0x10] sm:$0xf]  ;;  %v1943_v43 = vld [vmem:[#allocation2 + $0x14] sm:$0x1] }
 0x11a   :  { %v1990_v40 = vshrl.u32 %v1941_v29, 16  ;;  %v3800_v50 = vld [vmem:[#allocation4 + $0x190] sm:$0xff]  ;;  %v12576_v39 = vrot.slane %v3312_v54, 5  ;;  %v1993_v0 = vshll.u32 %v1941_v29, 16  ;;  %v1999_v37 = vshll.u32 %v1942_v2, 16  ;;  %v3806_v22 = vld [vmem:[#allocation4 + $0x1c0] sm:$0xff] }
 0x11b   :  { %1764 = vst.msk [vmem:[#allocation4 + $0x260] sm:$0xff] %vm909_vm15, %v9859_v30  ;;  %v2003_v11 = vshrl.u32 %v1942_v2, 16  ;;  %v3318_v56 = vrot.slane %v3316_v41, 4  ;;  %v2009_v52 = vshll.u32 %v1943_v43, 16  ;;  %v106_v9 = vld [vmem:[#allocation2 + $0xe4] sm:$0x1] }
 0x11c   :  { %4263 = vmatmul.mubr.bf16.gmra.mrb[32].mxu0 %v3790_v28  ;;  %v1440_v7 = vpop.permute.xlu1 %1439  ;;  %v2497_v28 = vld [vmem:[#allocation2 + $0xd4] sm:$0x1]  ;;  %1940 = vst.msk [vmem:[#allocation4 + $0x260] sm:$0xff] %vm1457_vm0, %v1908_v45  ;;  %v778_v53 = vld [vmem:[#allocation2 + $0xe0] sm:$0x1]  ;;  %v1992_v45 = vrot.slane %v1990_v40, 4 }
 0x11d   :  { %4270 = vmatprep.mubr.bf16.mxu0 %v3796_v48  ;;  %1473 = vst.msk [vmem:[#allocation4 + $0x258] sm:$0xff] %vm1457_vm0, %v1440_v7  ;;  %v2652_v36 = vrot.slane %v2497_v28, 5  ;;  %v3309_v48 = vor.u32 %v3308_v49, %v3305_v8  ;;  %v779_v10 = vsel %vm11430_vm3, %v613_v59, %v778_v53  ;;  %v1995_v24 = vrot.slane %v1993_v0, 5  ;;  %v168_v44 = vld [vmem:[#allocation2 + $0xec] sm:$0x1]  ;;  %v3805_v19 = vld [vmem:[#allocation4 + $0x1b8] sm:$0xff] }
 0x11e   :  { %780 = vst [vmem:[#allocation2 + $0xe0] sm:$0x1] %v779_v10  ;;  %v2001_v17 = vrot.slane %v1999_v37, 5  ;;  %v2005_v3 = vrot.slane %v2003_v11, 4  ;;  %v3319_v12 = vor.u32 %v3318_v56, %v12576_v39  ;;  %v2011_v20 = vrot.slane %v2009_v52, 5  ;;  %v3811_v30 = vld [vmem:[#allocation4 + $0x1e8] sm:$0xff] }
 0x11f   :  { %v2653_v51 = vsel %vm12111_vm14, %v2651_v62, %v2652_v36  ;;  %v12582_v55 = vrot.slane %v3309_v48, 4  ;;  %v1996_v58 = vor.u32 %v1995_v24, %v1992_v45  ;;  %v107_v63 = vsel %vm11430_vm3, 0, %v106_v9  ;;  %v2964_v42 = vld [vmem:[#allocation2 + $0xe8] sm:$0xf]  ;;  %v1944_v28 = vld [vmem:[#allocation2 + $0x18] sm:$0xf] }
 0x120   :  { %v3401_v27 = vpop.permute.xlu0 %3400  ;;  %v3753_v31 = vld [vmem:[#allocation4 + $0x18] sm:$0xff]  ;;  %v9922_v57 = vcombine.low %v2650_v60, %v2653_v51  ;;  %v2006_v18 = vor.u32 %v2005_v3, %v2001_v17  ;;  %108 = vst [vmem:[#allocation2 + $0xe4] sm:$0x1] %v107_v63  ;;  %v169_v26 = vsel %vm11464_vm6, 0, %v168_v44  ;;  %v3336_v6 = vshll.u32 %v2964_v42, 16  ;;  %v2710_v16 = vpop.permute.xlu1 %2709 }
 0x121   :  { %3447 = vst.msk [vmem:[#allocation4 + $0x40] sm:$0xff] %vm1457_vm0, %v3401_v27  ;;  %4359 = vmatprep.mubr.bf16.mxu1 %v3753_v31  ;;  %v1997_v25 = vrot.slane %v1996_v58, 4  ;;  %v3340_v32 = vshrl.u32 %v2964_v42, 16  ;;  %170 = vst [vmem:[#allocation2 + $0xec] sm:$0x1] %v169_v26  ;;  %v3320_v7 = vrot.slane %v3319_v12, 4  ;;  %v3315_v49 = vsel %vm11550_vm11, %v12582_v55, %v12576_v39 }
 0x122   :  { %2737 = vrot.lane.b32.xlu1 %v9922_v57, %s11387_s17  ;;  %v2007_v38 = vrot.slane %v2006_v18, 4  ;;  %v12593_v33 = vrot.slane %v3336_v6, 5  ;;  %v1945_v48 = vld [vmem:[#allocation2 + $0x1c] sm:$0xf]  ;;  %v1946_v62 = vld [vmem:[#allocation2 + $0x20] sm:$0x1] }
 0x123   :  { %v2002_v1 = vsel %vm11550_vm11, %v1997_v25, %v2001_v17  ;;  %v3342_v47 = vrot.slane %v3340_v32, 4  ;;  %v2014_v2 = vshrl.u32 %v1944_v28, 16  ;;  %v2017_v43 = vshll.u32 %v1944_v28, 16  ;;  %v3810_v55 = vld [vmem:[#allocation4 + $0x1e0] sm:$0xff]  ;;  %v3816_v18 = vld [vmem:[#allocation4 + $0x210] sm:$0xff] }
 0x124   :  { %4271 = vmatmul.mubr.bf16.gmra.mrb[36].mxu0 %v3795_v4  ;;  %v2498_v4 = vld [vmem:[#allocation2 + $0xd8] sm:$0xe]  ;;  %v2012_v15 = vsel %vm11550_vm11, %v2007_v38, %v2011_v20  ;;  %v2023_v40 = vshll.u32 %v1945_v48, 16  ;;  %v2027_v37 = vshrl.u32 %v1945_v48, 16  ;;  %v2033_v11 = vshll.u32 %v1946_v62, 16 }
 0x125   :  { %4278 = vmatprep.mubr.bf16.mxu0 %v3801_v13  ;;  %v2499_v13 = vld [vmem:[#allocation2 + $0xdc] sm:$0xf]  ;;  %v9907_v23 = vrot.slane %v2498_v4, 9  ;;  %v2962_v8 = vld [vmem:[#allocation2 + $0xe0] sm:$0x1]  ;;  %v9876_v54 = vcombine.low %v2002_v1, %v2012_v15  ;;  %v3343_v61 = vor.u32 %v3342_v47, %v12593_v33  ;;  %v2016_v52 = vrot.slane %v2014_v2, 4 }
 0x126   :  { %v2656_v46 = vrot.slane %v2499_v13, 5  ;;  %v2500_v41 = vld [vmem:[#allocation2 + $0xe0] sm:$0x1]  ;;  %v3322_v59 = vshll.u32 %v2962_v8, 16  ;;  %v2019_v24 = vrot.slane %v2017_v43, 5  ;;  %v2029_v9 = vrot.slane %v2027_v37, 4 }
 0x127   :  { %v3403_v14 = vpop.permute.xlu0 %3402  ;;  %v2659_v27 = vrot.slane %v2500_v41, 5  ;;  %2437 = vst.msk [vmem:[#allocation4 + $0x10] sm:$0xff] %vm909_vm15, %v9876_v54  ;;  %v12606_v60 = vrot.slane %v3343_v61, 4  ;;  %v2963_v39 = vld [vmem:[#allocation2 + $0xe4] sm:$0xf]  ;;  %v2035_v44 = vrot.slane %v2033_v11, 5 }
 0x128   :  { %3448 = vst.msk [vmem:[#allocation4 + $0x68] sm:$0xff] %vm1457_vm0, %v3403_v14  ;;  %v2657_v36 = vsel %vm12111_vm14, %v9907_v23, %v2656_v46  ;;  %v2658_v29 = vrot.slane %v2656_v46, 4  ;;  %2757 = vst.msk [vmem:[#allocation4 + $0x10] sm:$0xff] %vm1457_vm0, %v2710_v16  ;;  %v2965_v53 = vld [vmem:[#allocation2 + $0xec] sm:$0x1]  ;;  %v3327_v56 = vshrl.u32 %v2963_v39, 16  ;;  %v2020_v63 = vor.u32 %v2019_v24, %v2016_v52 }
 0x129   :  { %v3330_v51 = vshll.u32 %v2963_v39, 16  ;;  %v11261_v31 = vld [vmem:[#allocation2 + $0xe4] sm:$0xff]   ;;  %v3346_v57 = vshll.u32 %v2965_v53, 16  ;;  %v1949_v6 = vld [vmem:[#allocation2 + $0x2c] sm:$0x1]  ;;  %v3821_v53 = vld [vmem:[#allocation4 + $0x238] sm:$0xff] }
 0x12a   :  { %v2660_v0 = vsel %vm12111_vm14, %v2658_v29, %v2659_v27  ;;  %v3329_v3 = vrot.slane %v3327_v56, 4  ;;  %2917 = vst.msk [vmem:[#allocation4 + $0x270] sm:$0xff] %vm909_vm15, %v11261_v31  ;;  %v1947_v25 = vld [vmem:[#allocation2 + $0x24] sm:$0xf]  ;;  %v1948_v26 = vld [vmem:[#allocation2 + $0x28] sm:$0xf]  ;;  %v2712_v27 = vpop.permute.xlu1 %2711 }
 0x12b   :  { %v3405_v5 = vpop.permute.xlu0 %3404  ;;  %v9923_v45 = vcombine.low %v2657_v36, %v2660_v0  ;;  %v3332_v58 = vrot.slane %v3330_v51, 5  ;;  %v3348_v20 = vrot.slane %v3346_v57, 5  ;;  %v2021_v38 = vrot.slane %v2020_v63, 4  ;;  %v3758_v4 = vld [vmem:[#allocation4 + $0x40] sm:$0xff]  ;;  %v1952_v62 = vld [vmem:[#allocation2 + $0x38] sm:$0x1] }
 0x12c   :  { %4279 = vmatmul.mubr.bf16.gmra.mrb[40].mxu0 %v3800_v50  ;;  %3449 = vst.msk [vmem:[#allocation4 + $0x90] sm:$0xff] %vm1457_vm0, %v3405_v5  ;;  %v3324_v50 = vrot.slane %v3322_v59, 5  ;;  %v2041_v1 = vshll.u32 %v1947_v25, 16  ;;  %v1950_v5 = vld [vmem:[#allocation2 + $0x30] sm:$0xf]  ;;  %v2081_v37 = vshll.u32 %v1952_v62, 16 }
 0x12d   :  { %4286 = vmatprep.mubr.bf16.mxu0 %v3806_v22  ;;  %v2025_v22 = vrot.slane %v2023_v40, 5  ;;  %2739 = vrot.lane.b32.xlu1 %v9923_v45, %s11387_s17  ;;  %v3333_v42 = vor.u32 %v3332_v58, %v3329_v3  ;;  %v3349_v32 = vsel %vm11550_vm11, %v12606_v60, %v3348_v20  ;;  %v1951_v59 = vld [vmem:[#allocation2 + $0x34] sm:$0xf]  ;;  %v2062_v43 = vshrl.u32 %v1950_v5, 16  ;;  %v1953_v11 = vld [vmem:[#allocation2 + $0x3c] sm:$0xf] }
 0x12e   :  { %v3325_v10 = vsel %vm11550_vm11, %v3320_v7, %v3324_v50  ;;  %v2051_v7 = vshrl.u32 %v1948_v26, 16  ;;  %v2043_v8 = vrot.slane %v2041_v1, 5  ;;  %v2065_v40 = vshll.u32 %v1950_v5, 16  ;;  %v3815_v50 = vld [vmem:[#allocation4 + $0x208] sm:$0xff]  ;;  %v1954_v31 = vld [vmem:[#allocation2 + $0x40] sm:$0xf] }
 0x12f   :  { %v9954_v17 = vcombine.low %v3315_v49, %v3325_v10  ;;  %v2030_v14 = vor.u32 %v2029_v9, %v2025_v22  ;;  %v3334_v47 = vrot.slane %v3333_v42, 4  ;;  %v3752_v23 = vld [vmem:[#allocation4 + $0x10] sm:$0xff]  ;;  %v2026_v15 = vsel %vm11550_vm11, %v2021_v38, %v2025_v22  ;;  %v1955_v22 = vld [vmem:[#allocation2 + $0x44] sm:$0x1]  ;;  %v1956_v42 = vld [vmem:[#allocation2 + $0x48] sm:$0xf] }
 0x130   :  { %4360 = vmatmul.mubr.bf16.vlgmr.msra.gmra.mrb[0].mxu1 %v3752_v23  ;;  %v2057_v49 = vshll.u32 %v1949_v6, 16  ;;  %v2053_v28 = vrot.slane %v2051_v7, 4  ;;  %v2075_v0 = vshrl.u32 %v1951_v59, 16  ;;  %v2064_v51 = vrot.slane %v2062_v43, 4  ;;  %v1961_v43 = vld [vmem:[#allocation2 + $0x5c] sm:$0x1] }
 0x131   :  { %3426 = vrot.lane.b32.xlu0 %v9954_v17, %s11387_s17  ;;  %v2031_v13 = vrot.slane %v2030_v14, 4  ;;  %v3339_v16 = vsel %vm11550_vm11, %v3334_v47, %v12593_v33  ;;  %4367 = vmatprep.mubr.bf16.mxu1 %v3758_v4  ;;  %v2071_v33 = vshll.u32 %v1951_v59, 16  ;;  %v2067_v45 = vrot.slane %v2065_v40, 5  ;;  %v1957_v14 = vld [vmem:[#allocation2 + $0x4c] sm:$0xf] }
 0x132   :  { %v3407_v12 = vpop.permute.xlu0 %3406  ;;  %v9955_v36 = vcombine.low %v3339_v16, %v3349_v32  ;;  %v2059_v60 = vrot.slane %v2057_v49, 5  ;;  %v2077_v57 = vrot.slane %v2075_v0, 4  ;;  %v2083_v24 = vrot.slane %v2081_v37, 5  ;;  %v1958_v4 = vld [vmem:[#allocation2 + $0x50] sm:$0x1] }
 0x133   :  { %3450 = vst.msk [vmem:[#allocation4 + $0xb8] sm:$0xff] %vm1457_vm0, %v3407_v12  ;;  %v2036_v61 = vsel %vm11550_vm11, %v2031_v13, %v2035_v44  ;;  %v2073_v52 = vrot.slane %v2071_v33, 5  ;;  %v2068_v3 = vor.u32 %v2067_v45, %v2064_v51  ;;  %v2089_v58 = vshll.u32 %v1953_v11, 16 }
 0x134   :  { %4287 = vmatmul.mubr.bf16.gmra.mrb[44].mxu0 %v3805_v19  ;;  %v2038_v19 = vshrl.u32 %v1947_v25, 16  ;;  %v9877_v29 = vcombine.low %v2026_v15, %v2036_v61  ;;  %v2095_v9 = vshll.u32 %v1954_v31, 16  ;;  %v2099_v44 = vshrl.u32 %v1954_v31, 16  ;;  %v3763_v25 = vld [vmem:[#allocation4 + $0x68] sm:$0xff]  ;;  %v3820_v61 = vld [vmem:[#allocation4 + $0x230] sm:$0xff] }
 0x135   :  { %4294 = vmatprep.mubr.bf16.mxu0 %v3811_v30  ;;  %v2047_v30 = vshll.u32 %v1948_v26, 16  ;;  %3428 = vrot.lane.b32.xlu0 %v9955_v36, %s11387_s17  ;;  %v2078_v20 = vor.u32 %v2077_v57, %v2073_v52  ;;  %v2069_v26 = vrot.slane %v2068_v3, 4  ;;  %v2091_v6 = vrot.slane %v2089_v58, 5  ;;  %v1962_v57 = vld [vmem:[#allocation2 + $0x60] sm:$0xf] }
 0x136   :  { %v2040_v46 = vrot.slane %v2038_v19, 4  ;;  %2438 = vst.msk [vmem:[#allocation4 + $0x38] sm:$0xff] %vm909_vm15, %v9877_v29  ;;  %v2097_v32 = vrot.slane %v2095_v9, 5  ;;  %v2105_v38 = vshll.u32 %v1955_v22, 16  ;;  %v2101_v1 = vrot.slane %v2099_v44, 4 }
 0x137   :  { %v3409_v54 = vpop.permute.xlu0 %3408  ;;  %v2049_v41 = vrot.slane %v2047_v30, 5  ;;  %2758 = vst.msk [vmem:[#allocation4 + $0x38] sm:$0xff] %vm1457_vm0, %v2712_v27  ;;  %v2079_v19 = vrot.slane %v2078_v20, 4  ;;  %v2110_v47 = vshrl.u32 %v1956_v42, 16  ;;  %v2113_v13 = vshll.u32 %v1956_v42, 16  ;;  %v3826_v27 = vld [vmem:[#allocation4 + $0x260] sm:$0xff] }
 0x138   :  { %3451 = vst.msk [vmem:[#allocation4 + $0xe0] sm:$0xff] %vm1457_vm0, %v3409_v54  ;;  %v2044_v48 = vor.u32 %v2043_v8, %v2040_v46  ;;  %v2074_v23 = vsel %vm11550_vm11, %v2069_v26, %v2073_v52  ;;  %v2107_v7 = vrot.slane %v2105_v38, 5  ;;  %v2119_v15 = vshll.u32 %v1957_v14, 16  ;;  %v1959_v29 = vld [vmem:[#allocation2 + $0x54] sm:$0xf] }
 0x139   :  { %v2054_v2 = vor.u32 %v2053_v28, %v2049_v41  ;;  %v2084_v8 = vsel %vm11550_vm11, %v2079_v19, %v2083_v24  ;;  %v2102_v49 = vor.u32 %v2101_v1, %v2097_v32  ;;  %v2112_v54 = vrot.slane %v2110_v47, 4  ;;  %v1963_v24 = vld [vmem:[#allocation2 + $0x64] sm:$0xf]  ;;  %v1964_v9 = vld [vmem:[#allocation2 + $0x68] sm:$0x1] }
 0x13a   :  { %v2045_v39 = vrot.slane %v2044_v48, 4  ;;  %v2115_v16 = vrot.slane %v2113_v13, 5  ;;  %v2121_v59 = vrot.slane %v2119_v15, 5  ;;  %v2123_v36 = vshrl.u32 %v1957_v14, 16  ;;  %v11262_v14 = vld [vmem:[%s14757_s4 + $0x40] sm:$0xff]  }
 0x13b   :  { %v2055_v56 = vrot.slane %v2054_v2, 4  ;;  %v2103_v48 = vrot.slane %v2102_v49, 4  ;;  %v2129_v62 = vshll.u32 %v1958_v4, 16  ;;  %v1960_v2 = vld [vmem:[#allocation2 + $0x58] sm:$0xf]  ;;  %v2153_v58 = vshll.u32 %v1961_v43, 16  ;;  %10616 = vmatprep.subr.bf16.mxu1 %v11262_v14 }
 0x13c   :  { %4295 = vmatmul.mubr.bf16.gmra.mrb[48].mxu0 %v3810_v55  ;;  %v2050_v10 = vsel %vm11550_vm11, %v2045_v39, %v2049_v41  ;;  %v2086_v55 = vshrl.u32 %v1953_v11, 16  ;;  %v9879_v41 = vcombine.low %v2074_v23, %v2084_v8  ;;  %v2125_v33 = vrot.slane %v2123_v36, 4  ;;  %v1965_v13 = vld [vmem:[#allocation2 + $0x84] sm:$0xf]  ;;  %v1966_v8 = vld [vmem:[#allocation2 + $0x88] sm:$0xf] }
 0x13d   :  { %4302 = vmatprep.mubr.bf16.mxu0 %v3816_v18  ;;  %v2060_v17 = vsel %vm11550_vm11, %v2055_v56, %v2059_v60  ;;  %v2714_v18 = vpop.permute.xlu1 %2713  ;;  %v2116_v60 = vor.u32 %v2115_v16, %v2112_v54  ;;  %v2137_v39 = vshll.u32 %v1959_v29, 16  ;;  %v2108_v0 = vsel %vm11550_vm11, %v2103_v48, %v2107_v7  ;;  %v3768_v56 = vld [vmem:[#allocation4 + $0x90] sm:$0xff]  ;;  %v11263_v23 = vld [vmem:[%s14757_s4] sm:$0xff]  }
 0x13e   :  { %v9878_v12 = vcombine.low %v2050_v10, %v2060_v17  ;;  %v2088_v63 = vrot.slane %v2086_v55, 4  ;;  %v3757_v46 = vld [vmem:[#allocation4 + $0x38] sm:$0xff]  ;;  %2440 = vst.msk [vmem:[#allocation4 + $0x88] sm:$0xff] %vm909_vm15, %v9879_v41  ;;  %v2131_v11 = vrot.slane %v2129_v62, 5  ;;  %v2126_v52 = vor.u32 %v2125_v33, %v2121_v59  ;;  %10617 = vmatpush3.bf16.msra.mxu1 %v11263_v23  ;;  %v1968_v43 = vld [vmem:[#allocation2 + $0x90] sm:$0xf] }
 0x13f   :  { %4368 = vmatmul.mubr.bf16.gmra.mrb[4].mxu1 %v3757_v46  ;;  %v2117_v37 = vrot.slane %v2116_v60, 4  ;;  %v2139_v10 = vrot.slane %v2137_v39, 5  ;;  %v2147_v3 = vshrl.u32 %v1960_v2, 16  ;;  %v2158_v44 = vshrl.u32 %v1962_v57, 16  ;;  %v3467_v23 = vld [vmem:[#allocation2 + $0x2c] sm:$0x1] }
 0x140   :  { %2439 = vst.msk [vmem:[#allocation4 + $0x60] sm:$0xff] %vm909_vm15, %v9878_v12  ;;  %v2092_v30 = vor.u32 %v2091_v6, %v2088_v63  ;;  %4375 = vmatprep.mubr.bf16.mxu1 %v3763_v25  ;;  %v3825_v12 = vld [vmem:[#allocation4 + $0x258] sm:$0xff]  ;;  %v2161_v42 = vshll.u32 %v1962_v57, 16  ;;  %v2155_v26 = vrot.slane %v2153_v58, 5  ;;  %v2167_v6 = vshll.u32 %v1963_v24, 16 }
 0x141   :  { %2759 = vst.msk [vmem:[#allocation4 + $0x60] sm:$0xff] %vm1457_vm0, %v2714_v18  ;;  %v2716_v28 = vpop.permute.xlu1 %2715  ;;  %v2122_v55 = vsel %vm11550_vm11, %v2117_v37, %v2121_v59  ;;  %v2127_v18 = vrot.slane %v2126_v52, 4  ;;  %v2149_v25 = vrot.slane %v2147_v3, 4  ;;  %v2160_v1 = vrot.slane %v2158_v44, 4  ;;  %v1969_v37 = vld [vmem:[#allocation2 + $0x94] sm:$0xf] }
 0x142   :  { %v2093_v5 = vrot.slane %v2092_v30, 4  ;;  %2760 = vst.msk [vmem:[#allocation4 + $0x88] sm:$0xff] %vm1457_vm0, %v2716_v28  ;;  %v2163_v47 = vrot.slane %v2161_v42, 5  ;;  %v2169_v15 = vrot.slane %v2167_v6, 5  ;;  %v2177_v16 = vshll.u32 %v1964_v9, 16 }
 0x143   :  { %v2132_v38 = vsel %vm11550_vm11, %v2127_v18, %v2131_v11  ;;  %v2182_v41 = vshrl.u32 %v1965_v13, 16  ;;  %v2185_v36 = vshll.u32 %v1965_v13, 16  ;;  %v3773_v11 = vld [vmem:[#allocation4 + $0xb8] sm:$0xff]  ;;  %v2206_v57 = vshrl.u32 %v1968_v43, 16 }
 0x144   :  { %4303 = vmatmul.mubr.bf16.gmra.mrb[52].mxu0 %v3815_v50  ;;  %v2098_v40 = vsel %vm11550_vm11, %v2093_v5, %v2097_v32  ;;  %v2134_v50 = vshrl.u32 %v1959_v29, 16  ;;  %v2171_v32 = vshrl.u32 %v1963_v24, 16  ;;  %v9881_v30 = vcombine.low %v2122_v55, %v2132_v38  ;;  %v3463_v18 = vld [vmem:[#allocation2 + $0x1c] sm:$0xf] }
 0x145   :  { %4310 = vmatprep.mubr.bf16.mxu0 %v3821_v53  ;;  %v2143_v53 = vshll.u32 %v1960_v2, 16  ;;  %v9880_v51 = vcombine.low %v2098_v40, %v2108_v0  ;;  %v2718_v45 = vpop.permute.xlu1 %2717  ;;  %v2164_v54 = vor.u32 %v2163_v47, %v2160_v1  ;;  %v2191_v29 = vshll.u32 %v1966_v8, 16 }
 0x146   :  { %v2136_v31 = vrot.slane %v2134_v50, 4  ;;  %v2173_v46 = vrot.slane %v2171_v32, 4  ;;  %2442 = vst.msk [vmem:[#allocation4 + $0xd8] sm:$0xff] %vm909_vm15, %v9881_v30  ;;  %v2179_v60 = vrot.slane %v2177_v16, 5  ;;  %v2184_v62 = vrot.slane %v2182_v41, 4 }
 0x147   :  { %v12649_v17 = vrot.slane %v2143_v53, 5  ;;  %2441 = vst.msk [vmem:[#allocation4 + $0xb0] sm:$0xff] %vm909_vm15, %v9880_v51  ;;  %v2165_v48 = vrot.slane %v2164_v54, 4  ;;  %v2195_v2 = vshrl.u32 %v1966_v8, 16  ;;  %v2187_v39 = vrot.slane %v2185_v36, 5  ;;  %v3778_v36 = vld [vmem:[#allocation4 + $0xe0] sm:$0xff] }
 0x148   :  { %v3762_v22 = vld [vmem:[#allocation4 + $0x60] sm:$0xff]  ;;  %v2140_v63 = vor.u32 %v2139_v10, %v2136_v31  ;;  %2761 = vst.msk [vmem:[#allocation4 + $0xb0] sm:$0xff] %vm1457_vm0, %v2718_v45  ;;  %v2174_v59 = vor.u32 %v2173_v46, %v2169_v15  ;;  %v2193_v0 = vrot.slane %v2191_v29, 5  ;;  %v1970_v10 = vld [vmem:[#allocation2 + $0x98] sm:$0x1]  ;;  %v2209_v24 = vshll.u32 %v1968_v43, 16 }
 0x149   :  { %4376 = vmatmul.mubr.bf16.gmra.mrb[8].mxu1 %v3762_v22  ;;  %v2720_v4 = vpop.permute.xlu1 %2719  ;;  %v2150_v7 = vor.u32 %v2149_v25, %v12649_v17  ;;  %v3767_v40 = vld [vmem:[#allocation4 + $0x88] sm:$0xff]  ;;  %v2197_v51 = vrot.slane %v2195_v2, 4  ;;  %v2188_v31 = vor.u32 %v2187_v39, %v2184_v62  ;;  %v3462_v22 = vld [vmem:[#allocation2 + $0x18] sm:$0xe]  ;;  %v2208_v44 = vrot.slane %v2206_v57, 4 }
 0x14a   :  { %v2141_v19 = vrot.slane %v2140_v63, 4  ;;  %4383 = vmatprep.mubr.bf16.mxu1 %v3768_v56  ;;  %2762 = vst.msk [vmem:[#allocation4 + $0xd8] sm:$0xff] %vm1457_vm0, %v2720_v4  ;;  %v2175_v50 = vrot.slane %v2174_v59, 4  ;;  %v2170_v56 = vsel %vm11550_vm11, %v2165_v48, %v2169_v15  ;;  %v2211_v42 = vrot.slane %v2209_v24, 5  ;;  %v3465_v25 = vld [vmem:[#allocation2 + $0x24] sm:$0xe] }
 0x14b   :  { %v2151_v28 = vrot.slane %v2150_v7, 4  ;;  %v2198_v58 = vor.u32 %v2197_v51, %v2193_v0  ;;  %v2189_v63 = vrot.slane %v2188_v31, 4  ;;  %v2219_v14 = vshrl.u32 %v1969_v37, 16  ;;  %v3466_v4 = vld [vmem:[#allocation2 + $0x28] sm:$0xf] }
 0x14c   :  { %4311 = vmatmul.mubr.bf16.gmra.mrb[56].mxu0 %v3820_v61  ;;  %v2146_v49 = vsel %vm11550_vm11, %v2141_v19, %v12649_v17  ;;  %v1967_v61 = vld [vmem:[#allocation2 + $0x8c] sm:$0x1]  ;;  %v2180_v52 = vsel %vm11550_vm11, %v2175_v50, %v2179_v60  ;;  %v2225_v32 = vshll.u32 %v1970_v10, 16  ;;  %v9956_v38 = vrot.slane %v3462_v22, 9  ;;  %v1973_v43 = vld [vmem:[#allocation2 + $0xa4] sm:$0x1] }
 0x14d   :  { %4318 = vmatprep.mubr.bf16.mxu0 %v3826_v27  ;;  %v2722_v27 = vpop.permute.xlu1 %2721  ;;  %v2156_v33 = vsel %vm11550_vm11, %v2151_v28, %v2155_v26  ;;  %v2201_v45 = vshll.u32 %v1967_v61, 16  ;;  %v9883_v55 = vcombine.low %v2170_v56, %v2180_v52  ;;  %v2199_v26 = vrot.slane %v2198_v58, 4  ;;  %v1971_v28 = vld [vmem:[#allocation2 + $0x9c] sm:$0xf]  ;;  %v11264_v59 = vld [vmem:[%s14757_s4 + $0x48] sm:$0xff]  }
 0x14e   :  { %v9882_v53 = vcombine.low %v2146_v49, %v2156_v33  ;;  %v2194_v19 = vsel %vm11550_vm11, %v2189_v63, %v2193_v0  ;;  %v2212_v1 = vor.u32 %v2211_v42, %v2208_v44  ;;  %v2221_v47 = vrot.slane %v2219_v14, 4  ;;  %10618 = vmatprep.subr.bf16.mxu1 %v11264_v59  ;;  %v11265_v50 = vld [vmem:[%s14757_s4 + $0x8] sm:$0xff]   ;;  %v3469_v56 = vld [vmem:[#allocation2 + $0x34] sm:$0xf]  ;;  %v3470_v57 = vld [vmem:[#allocation2 + $0x38] sm:$0x1] }
 0x14f   :  { %v2203_v9 = vrot.slane %v2201_v45, 5  ;;  %2444 = vst.msk [vmem:[#allocation4 + $0x128] sm:$0xff] %vm909_vm15, %v9883_v55  ;;  %v3560_v13 = vrot.slane %v3463_v18, 5  ;;  %v3772_v30 = vld [vmem:[#allocation4 + $0xb0] sm:$0xff]  ;;  %v2227_v15 = vrot.slane %v2225_v32, 5  ;;  %v9957_v8 = vrot.slane %v3465_v25, 9  ;;  %10619 = vmatpush3.bf16.msra.mxu1 %v11265_v50 }
 0x150   :  { %v3411_v20 = vpop.permute.xlu0 %3410  ;;  %2443 = vst.msk [vmem:[#allocation4 + $0x100] sm:$0xff] %vm909_vm15, %v9882_v53  ;;  %v2213_v16 = vrot.slane %v2212_v1, 4  ;;  %v3570_v48 = vrot.slane %v3467_v23, 5  ;;  %v2230_v60 = vshrl.u32 %v1971_v28, 16  ;;  %v3468_v53 = vld [vmem:[#allocation2 + $0x30] sm:$0xe] }
 0x151   :  { %3452 = vst.msk [vmem:[#allocation4 + $0x108] sm:$0xff] %vm1457_vm0, %v3411_v20  ;;  %4384 = vmatmul.mubr.bf16.gmra.mrb[12].mxu1 %v3767_v40  ;;  %v2724_v17 = vpop.permute.xlu1 %2723  ;;  %v3464_v20 = vld [vmem:[#allocation2 + $0x20] sm:$0x1]  ;;  %2763 = vst.msk [vmem:[#allocation4 + $0x100] sm:$0xff] %vm1457_vm0, %v2722_v27  ;;  %v2204_v7 = vsel %vm11550_vm11, %v2199_v26, %v2203_v9  ;;  %v3561_v41 = vsel %vm12111_vm14, %v9956_v38, %v3560_v13  ;;  %v3562_v29 = vrot.slane %v3560_v13, 4  ;;  %v3567_v27 = vrot.slane %v3466_v4, 5 }
 0x152   :  { %4391 = vmatprep.mubr.bf16.mxu1 %v3773_v11  ;;  %2764 = vst.msk [vmem:[#allocation4 + $0x128] sm:$0xff] %vm1457_vm0, %v2724_v17  ;;  %v3563_v46 = vrot.slane %v3464_v20, 5  ;;  %v9884_v49 = vcombine.low %v2194_v19, %v2204_v7  ;;  %v2233_v40 = vshll.u32 %v1971_v28, 16  ;;  %v2232_v11 = vrot.slane %v2230_v60, 4  ;;  %v3471_v24 = vld [vmem:[#allocation2 + $0x3c] sm:$0xe] }
 0x153   :  { %v3568_v0 = vsel %vm12111_vm14, %v9957_v8, %v3567_v27  ;;  %v2249_v58 = vshll.u32 %v1973_v43, 16  ;;  %v3472_v9 = vld [vmem:[#allocation2 + $0x40] sm:$0xf]  ;;  %v9958_v20 = vrot.slane %v3468_v53, 9  ;;  %v3574_v63 = vrot.slane %v3469_v56, 5  ;;  %v3777_v32 = vld [vmem:[#allocation4 + $0xd8] sm:$0xff] }
 0x154   :  { %4319 = vmatmul.mubr.bf16.gmra.mrb[60].mxu0 %v3825_v12  ;;  %v2215_v12 = vshll.u32 %v1969_v37, 16  ;;  %2445 = vst.msk [vmem:[#allocation4 + $0x150] sm:$0xff] %vm909_vm15, %v9884_v49  ;;  %v3564_v39 = vsel %vm12111_vm14, %v3562_v29, %v3563_v46  ;;  %v3569_v37 = vrot.slane %v3567_v27, 4  ;;  %v2235_v31 = vrot.slane %v2233_v40, 5  ;;  %v3473_v44 = vld [vmem:[#allocation2 + $0x44] sm:$0x1] }
 0x155   :  { %v3413_v5 = vpop.permute.xlu0 %3412  ;;  %v9972_v52 = vcombine.low %v3561_v41, %v3564_v39  ;;  %v2251_v25 = vrot.slane %v2249_v58, 5  ;;  %v3577_v26 = vrot.slane %v3470_v57, 5  ;;  %v3575_v4 = vsel %vm12111_vm14, %v9958_v20, %v3574_v63  ;;  %v1976_v7 = vld [vmem:[#allocation2 + $0xb0] sm:$0x1]  ;;  %v3478_v39 = vld [vmem:[#allocation2 + $0x58] sm:$0xf] }
 0x156   :  { %3453 = vst.msk [vmem:[#allocation4 + $0x130] sm:$0xff] %vm1457_vm0, %v3413_v5  ;;  %v2217_v6 = vrot.slane %v2215_v12, 5  ;;  %v2726_v54 = vpop.permute.xlu1 %2725  ;;  %v1972_v5 = vld [vmem:[#allocation2 + $0xa0] sm:$0xf]  ;;  %v3571_v17 = vsel %vm12111_vm14, %v3569_v37, %v3570_v48  ;;  %v2236_v18 = vor.u32 %v2235_v31, %v2232_v11  ;;  %v3576_v19 = vrot.slane %v3574_v63, 4 }
 0x157   :  { %v2239_v33 = vshll.u32 %v1972_v5, 16  ;;  %2765 = vst.msk [vmem:[#allocation4 + $0x150] sm:$0xff] %vm1457_vm0, %v2726_v54  ;;  %v9973_v12 = vcombine.low %v3568_v0, %v3571_v17  ;;  %v3581_v1 = vrot.slane %v3472_v9, 5  ;;  %v3584_v23 = vrot.slane %v3473_v44, 5  ;;  %v1977_v20 = vld [vmem:[#allocation2 + $0xb4] sm:$0xf] }
 0x158   :  { %v2222_v61 = vor.u32 %v2221_v47, %v2217_v6  ;;  %v2218_v62 = vsel %vm11550_vm11, %v2213_v16, %v2217_v6  ;;  %3734 = vst.msk [vmem:[#allocation4 + $0x20] sm:$0xff] %vm909_vm15, %v9972_v52  ;;  %v3783_v42 = vld [vmem:[#allocation4 + $0x108] sm:$0xff]  ;;  %v9959_v6 = vrot.slane %v3471_v24, 9  ;;  %v2237_v38 = vrot.slane %v2236_v18, 4  ;;  %v1978_v63 = vld [vmem:[#allocation2 + $0xb8] sm:$0xf] }
 0x159   :  { %v3415_v3 = vpop.permute.xlu0 %3414  ;;  %4392 = vmatmul.mubr.bf16.gmra.mrb[16].mxu1 %v3772_v30  ;;  %v12702_v10 = vrot.slane %v2239_v33, 5  ;;  %3735 = vst.msk [vmem:[#allocation4 + $0x48] sm:$0xff] %vm909_vm15, %v9973_v12  ;;  %v1974_v47 = vld [vmem:[#allocation2 + $0xa8] sm:$0xf]  ;;  %v1975_v30 = vld [vmem:[#allocation2 + $0xac] sm:$0xf]  ;;  %v3578_v8 = vsel %vm12111_vm14, %v3576_v19, %v3577_v26 }
 0x15a   :  { %3454 = vst.msk [vmem:[#allocation4 + $0x158] sm:$0xff] %vm1457_vm0, %v3415_v3  ;;  %v2223_v2 = vrot.slane %v2222_v61, 4  ;;  %4399 = vmatprep.mubr.bf16.mxu1 %v3778_v36  ;;  %v2243_v3 = vshrl.u32 %v1972_v5, 16  ;;  %v3582_v49 = vsel %vm12111_vm14, %v9959_v6, %v3581_v1  ;;  %v3583_v54 = vrot.slane %v3581_v1, 4  ;;  %v3474_v16 = vld [vmem:[#allocation2 + $0x48] sm:$0xe] }
 0x15b   :  { %v2242_v46 = vsel %vm11550_vm11, %v2237_v38, %v12702_v10  ;;  %v3475_v61 = vld [vmem:[#allocation2 + $0x4c] sm:$0xf]  ;;  %v9974_v28 = vcombine.low %v3575_v4, %v3578_v8  ;;  %v2257_v59 = vshll.u32 %v1974_v47, 16  ;;  %v3476_v36 = vld [vmem:[#allocation2 + $0x50] sm:$0x1]  ;;  %v2263_v27 = vshll.u32 %v1975_v30, 16 }
 0x15c   :  { %v2228_v45 = vsel %vm11550_vm11, %v2223_v2, %v2227_v15  ;;  %v2245_v14 = vrot.slane %v2243_v3, 4  ;;  %v2254_v15 = vshrl.u32 %v1974_v47, 16  ;;  %v3585_v29 = vsel %vm12111_vm14, %v3583_v54, %v3584_v23  ;;  %v3480_v19 = vld [vmem:[#allocation2 + $0x60] sm:$0xe]  ;;  %v3481_v1 = vld [vmem:[#allocation2 + $0x64] sm:$0xf] }
 0x15d   :  { %v9885_v22 = vcombine.low %v2218_v62, %v2228_v45  ;;  %v2267_v48 = vshrl.u32 %v1975_v30, 16  ;;  %v2273_v60 = vshll.u32 %v1976_v7, 16  ;;  %v3477_v62 = vld [vmem:[#allocation2 + $0x54] sm:$0xe]  ;;  %3736 = vst.msk [vmem:[#allocation4 + $0x70] sm:$0xff] %vm909_vm15, %v9974_v28  ;;  %v9975_v40 = vcombine.low %v3582_v49, %v3585_v29  ;;  %v3782_v45 = vld [vmem:[#allocation4 + $0x100] sm:$0xff] }
 0x15e   :  { %v2246_v13 = vor.u32 %v2245_v14, %v12702_v10  ;;  %v2256_v5 = vrot.slane %v2254_v15, 4  ;;  %v2259_v33 = vrot.slane %v2257_v59, 5  ;;  %v9960_v50 = vrot.slane %v3474_v16, 9  ;;  %v3788_v52 = vld [vmem:[#allocation4 + $0x130] sm:$0xff]  ;;  %v3482_v15 = vld [vmem:[#allocation2 + $0x68] sm:$0x1] }
 0x15f   :  { %2446 = vst.msk [vmem:[#allocation4 + $0x178] sm:$0xff] %vm909_vm15, %v9885_v22  ;;  %v3754_v2 = vld [vmem:[#allocation4 + $0x20] sm:$0xff]  ;;  %v2265_v11 = vrot.slane %v2263_v27, 5  ;;  %v2269_v53 = vrot.slane %v2267_v48, 4  ;;  %v2275_v56 = vrot.slane %v2273_v60, 5  ;;  %3737 = vst.msk [vmem:[#allocation4 + $0x98] sm:$0xff] %vm909_vm15, %v9975_v40 }
 0x160   :  { %v2247_v41 = vrot.slane %v2246_v13, 4  ;;  %11096 = vmatprep.mubr.msk.bf16.mxu0 %vm909_vm15, %v3754_v2  ;;  %v3759_v31 = vld [vmem:[#allocation4 + $0x48] sm:$0xff]  ;;  %v2260_v57 = vor.u32 %v2259_v33, %v2256_v5  ;;  %v3588_v24 = vrot.slane %v3475_v61, 5  ;;  %v3591_v22 = vrot.slane %v3476_v36, 5  ;;  %v3484_v61 = vld [vmem:[#allocation2 + $0x70] sm:$0xf] }
 0x161   :  { %v2728_v55 = vpop.permute.xlu1 %2727  ;;  %4400 = vmatmul.mubr.bf16.gmra.mrb[20].mxu1 %v3777_v32  ;;  %11097 = vmatmul.mubr.msk.bf16.vlgmr.msra.gmra.mrb[64].mxu0 %vm909_vm15, %v3759_v31  ;;  %v2270_v17 = vor.u32 %v2269_v53, %v2265_v11  ;;  %v3595_v3 = vrot.slane %v3478_v39, 5  ;;  %v2278_v26 = vshrl.u32 %v1977_v20, 16  ;;  %v2281_v38 = vshll.u32 %v1977_v20, 16 }
 0x162   :  { %v3417_v51 = vpop.permute.xlu0 %3416  ;;  %2766 = vst.msk [vmem:[#allocation4 + $0x178] sm:$0xff] %vm1457_vm0, %v2728_v55  ;;  %4407 = vmatprep.mubr.bf16.mxu1 %v3783_v42  ;;  %v2252_v43 = vsel %vm11550_vm11, %v2247_v41, %v2251_v25  ;;  %v9961_v55 = vrot.slane %v3477_v62, 9  ;;  %v2261_v9 = vrot.slane %v2260_v57, 4  ;;  %v3589_v12 = vsel %vm12111_vm14, %v9960_v50, %v3588_v24  ;;  %v1979_v25 = vld [vmem:[#allocation2 + $0xbc] sm:$0x1] }
 0x163   :  { %3455 = vst.msk [vmem:[#allocation4 + $0x180] sm:$0xff] %vm1457_vm0, %v3417_v51  ;;  %v9886_v0 = vcombine.low %v2242_v46, %v2252_v43  ;;  %v3479_v51 = vld [vmem:[#allocation2 + $0x5c] sm:$0x1]  ;;  %v3590_v18 = vrot.slane %v3588_v24, 4  ;;  %v2271_v44 = vrot.slane %v2270_v17, 4  ;;  %v3597_v14 = vrot.slane %v3595_v3, 4 }
 0x164   :  { %v3598_v58 = vrot.slane %v3479_v51, 5  ;;  %v3596_v42 = vsel %vm12111_vm14, %v9961_v55, %v3595_v3  ;;  %v2266_v6 = vsel %vm11550_vm11, %v2261_v9, %v2265_v11  ;;  %v2287_v4 = vshll.u32 %v1978_v63, 16  ;;  %v3764_v47 = vld [vmem:[#allocation4 + $0x70] sm:$0xff]  ;;  %v3483_v46 = vld [vmem:[#allocation2 + $0x6c] sm:$0xe] }
 0x165   :  { %2447 = vst.msk [vmem:[#allocation4 + $0x1a0] sm:$0xff] %vm909_vm15, %v9886_v0  ;;  %v3592_v32 = vsel %vm12111_vm14, %v3590_v18, %v3591_v22  ;;  %v2276_v13 = vsel %vm11550_vm11, %v2271_v44, %v2275_v56  ;;  %v2280_v7 = vrot.slane %v2278_v26, 4  ;;  %11100 = vmatprep.mubr.msk.bf16.mxu0 %vm909_vm15, %v3764_v47  ;;  %v2283_v54 = vrot.slane %v2281_v38, 5  ;;  %v3485_v41 = vld [vmem:[#allocation2 + $0x74] sm:$0x1]  ;;  %v3787_v43 = vld [vmem:[#allocation4 + $0x128] sm:$0xff] }
 0x166   :  { %v9976_v23 = vcombine.low %v3589_v12, %v3592_v32  ;;  %v3599_v30 = vsel %vm12111_vm14, %v3597_v14, %v3598_v58  ;;  %v9887_v8 = vcombine.low %v2266_v6, %v2276_v13  ;;  %v12745_v16 = vrot.slane %v2287_v4, 5  ;;  %v3769_v28 = vld [vmem:[#allocation4 + $0x98] sm:$0xff]  ;;  %v1982_v57 = vld [vmem:[#allocation2 + $0xc8] sm:$0x1]  ;;  %v3486_v9 = vld [vmem:[#allocation2 + $0x90] sm:$0xe] }
 0x167   :  { %v9977_v49 = vcombine.low %v3596_v42, %v3599_v30  ;;  %v2291_v5 = vshrl.u32 %v1978_v63, 16  ;;  %v2297_v59 = vshll.u32 %v1979_v25, 16  ;;  %v9962_v36 = vrot.slane %v3480_v19, 9  ;;  %v3793_v0 = vld [vmem:[#allocation4 + $0x158] sm:$0xff]  ;;  %v3487_v12 = vld [vmem:[#allocation2 + $0x94] sm:$0xf] }
 0x168   :  { %3738 = vst.msk [vmem:[#allocation4 + $0xc0] sm:$0xff] %vm909_vm15, %v9976_v23  ;;  %v3602_v29 = vrot.slane %v3481_v1, 5  ;;  %2448 = vst.msk [vmem:[#allocation4 + $0x1c8] sm:$0xff] %vm909_vm15, %v9887_v8  ;;  %v2284_v48 = vor.u32 %v2283_v54, %v2280_v7  ;;  %v3605_v60 = vrot.slane %v3482_v15, 5  ;;  %v9963_v62 = vrot.slane %v3483_v46, 9  ;;  %v3792_v23 = vld [vmem:[#allocation4 + $0x150] sm:$0xff] }
 0x169   :  { %v2730_v37 = vpop.permute.xlu1 %2729  ;;  %4408 = vmatmul.mubr.bf16.gmra.mrb[24].mxu1 %v3782_v45  ;;  %3739 = vst.msk [vmem:[#allocation4 + $0xe8] sm:$0xff] %vm909_vm15, %v9977_v49  ;;  %v3609_v2 = vrot.slane %v3484_v61, 5  ;;  %11101 = vmatmul.mubr.msk.bf16.gmra.mrb[68].mxu0 %vm909_vm15, %v3769_v28  ;;  %v2293_v40 = vrot.slane %v2291_v5, 4  ;;  %v2299_v33 = vrot.slane %v2297_v59, 5  ;;  %v3612_v51 = vrot.slane %v3485_v41, 5 }
 0x16a   :  { %2767 = vst.msk [vmem:[#allocation4 + $0x1a0] sm:$0xff] %vm1457_vm0, %v2730_v37  ;;  %4415 = vmatprep.mubr.bf16.mxu1 %v3788_v52  ;;  %v3603_v50 = vsel %vm12111_vm14, %v9962_v36, %v3602_v29  ;;  %v3604_v39 = vrot.slane %v3602_v29, 4  ;;  %v2285_v11 = vrot.slane %v2284_v48, 4  ;;  %v1980_v45 = vld [vmem:[#allocation2 + $0xc0] sm:$0xf]  ;;  %v2321_v6 = vshll.u32 %v1982_v57, 16 }
 0x16b   :  { %v3610_v53 = vsel %vm12111_vm14, %v9963_v62, %v3609_v2  ;;  %v3611_v56 = vrot.slane %v3609_v2, 4  ;;  %v2294_v52 = vor.u32 %v2293_v40, %v12745_v16  ;;  %v2302_v24 = vshrl.u32 %v1980_v45, 16  ;;  %v3488_v42 = vld [vmem:[#allocation2 + $0x98] sm:$0x1]  ;;  %v3489_v13 = vld [vmem:[#allocation2 + $0x9c] sm:$0xe] }
 0x16c   :  { %v3419_v10 = vpop.permute.xlu0 %3418  ;;  %v3606_v31 = vsel %vm12111_vm14, %v3604_v39, %v3605_v60  ;;  %v2305_v22 = vshll.u32 %v1980_v45, 16  ;;  %v2290_v55 = vsel %vm11550_vm11, %v2285_v11, %v12745_v16  ;;  %v9964_v32 = vrot.slane %v3486_v9, 9  ;;  %v3490_v15 = vld [vmem:[#allocation2 + $0xa0] sm:$0xf]  ;;  %v3491_v61 = vld [vmem:[#allocation2 + $0xa4] sm:$0x1] }
 0x16d   :  { %3456 = vst.msk [vmem:[#allocation4 + $0x1a8] sm:$0xff] %vm1457_vm0, %v3419_v10  ;;  %v1981_v10 = vld [vmem:[#allocation2 + $0xc4] sm:$0xf]  ;;  %v9978_v17 = vcombine.low %v3603_v50, %v3606_v31  ;;  %v3613_v3 = vsel %vm12111_vm14, %v3611_v56, %v3612_v51  ;;  %v2295_v18 = vrot.slane %v2294_v52, 4  ;;  %v2304_v63 = vrot.slane %v2302_v24, 4  ;;  %v3797_v9 = vld [vmem:[#allocation4 + $0x178] sm:$0xff] }
 0x16e   :  { %v2311_v58 = vshll.u32 %v1981_v10, 16  ;;  %v9979_v20 = vcombine.low %v3610_v53, %v3613_v3  ;;  %v2307_v44 = vrot.slane %v2305_v22, 5  ;;  %v2315_v26 = vshrl.u32 %v1981_v10, 16  ;;  %v3798_v8 = vld [vmem:[#allocation4 + $0x180] sm:$0xff]  ;;  %v1983_v60 = vld [vmem:[#allocation2 + $0xcc] sm:$0xf] }
 0x16f   :  { %v3774_v14 = vld [vmem:[#allocation4 + $0xc0] sm:$0xff]  ;;  %3740 = vst.msk [vmem:[#allocation4 + $0x110] sm:$0xff] %vm909_vm15, %v9978_v17  ;;  %v2300_v4 = vsel %vm11550_vm11, %v2295_v18, %v2299_v33  ;;  %v3616_v1 = vrot.slane %v3487_v12, 5  ;;  %v3619_v47 = vrot.slane %v3488_v42, 5  ;;  %v9965_v46 = vrot.slane %v3489_v13, 9 }
 0x170   :  { %v2313_v25 = vrot.slane %v2311_v58, 5  ;;  %11104 = vmatprep.mubr.msk.bf16.mxu0 %vm909_vm15, %v3774_v14  ;;  %v3779_v38 = vld [vmem:[#allocation4 + $0xe8] sm:$0xff]  ;;  %3741 = vst.msk [vmem:[#allocation4 + $0x138] sm:$0xff] %vm909_vm15, %v9979_v20  ;;  %v2308_v19 = vor.u32 %v2307_v44, %v2304_v63  ;;  %v9888_v30 = vcombine.low %v2290_v55, %v2300_v4  ;;  %v2317_v7 = vrot.slane %v2315_v26, 4  ;;  %v1984_v62 = vld [vmem:[#allocation2 + $0xd0] sm:$0xf] }
 0x171   :  { %4416 = vmatmul.mubr.bf16.gmra.mrb[28].mxu1 %v3787_v43  ;;  %11105 = vmatmul.mubr.msk.bf16.gmra.mrb[72].mxu0 %vm909_vm15, %v3779_v38  ;;  %v3617_v54 = vsel %vm12111_vm14, %v9964_v32, %v3616_v1  ;;  %v3618_v16 = vrot.slane %v3616_v1, 4  ;;  %v3623_v41 = vrot.slane %v3490_v15, 5  ;;  %v2323_v5 = vrot.slane %v2321_v6, 5  ;;  %v1985_v40 = vld [vmem:[#allocation2 + $0xd4] sm:$0x1] }
 0x172   :  { %4423 = vmatprep.mubr.bf16.mxu1 %v3793_v0  ;;  %v2309_v49 = vrot.slane %v2308_v19, 4  ;;  %2449 = vst.msk [vmem:[#allocation4 + $0x1f0] sm:$0xff] %vm909_vm15, %v9888_v30  ;;  %v2318_v28 = vor.u32 %v2317_v7, %v2313_v25  ;;  %v3626_v59 = vrot.slane %v3491_v61, 5  ;;  %v2326_v33 = vshrl.u32 %v1983_v60, 16  ;;  %v3492_v51 = vld [vmem:[#allocation2 + $0xa8] sm:$0xe] }
 0x173   :  { %v3620_v29 = vsel %vm12111_vm14, %v3618_v16, %v3619_v47  ;;  %v3625_v48 = vrot.slane %v3623_v41, 4  ;;  %v2329_v50 = vshll.u32 %v1983_v60, 16  ;;  %v2335_v11 = vshll.u32 %v1984_v62, 16  ;;  %v3493_v22 = vld [vmem:[#allocation2 + $0xac] sm:$0xf]  ;;  %v3802_v60 = vld [vmem:[#allocation4 + $0x1a0] sm:$0xff] }
 0x174   :  { %v2732_v27 = vpop.permute.xlu1 %2731  ;;  %v2314_v36 = vsel %vm11550_vm11, %v2309_v49, %v2313_v25  ;;  %v2319_v2 = vrot.slane %v2318_v28, 4  ;;  %v9980_v43 = vcombine.low %v3617_v54, %v3620_v29  ;;  %v2339_v53 = vshrl.u32 %v1984_v62, 16  ;;  %v3494_v58 = vld [vmem:[#allocation2 + $0xb0] sm:$0x1]  ;;  %v3495_v44 = vld [vmem:[#allocation2 + $0xb4] sm:$0xe] }
 0x175   :  { %2768 = vst.msk [vmem:[#allocation4 + $0x1c8] sm:$0xff] %vm1457_vm0, %v2732_v27  ;;  %v3624_v27 = vsel %vm12111_vm14, %v9965_v46, %v3623_v41  ;;  %v2345_v56 = vshll.u32 %v1985_v40, 16  ;;  %v2328_v57 = vrot.slane %v2326_v33, 4  ;;  %v2331_v24 = vrot.slane %v2329_v50, 5  ;;  %v3496_v25 = vld [vmem:[#allocation2 + $0xb8] sm:$0xf] }
 0x176   :  { %v3421_v37 = vpop.permute.xlu0 %3420  ;;  %v3784_v0 = vld [vmem:[#allocation4 + $0x110] sm:$0xff]  ;;  %v2324_v31 = vsel %vm11550_vm11, %v2319_v2, %v2323_v5  ;;  %3742 = vst.msk [vmem:[#allocation4 + $0x160] sm:$0xff] %vm909_vm15, %v9980_v43  ;;  %v2337_v17 = vrot.slane %v2335_v11, 5  ;;  %v2341_v3 = vrot.slane %v2339_v53, 4  ;;  %v9966_v18 = vrot.slane %v3492_v51, 9  ;;  %v3803_v32 = vld [vmem:[#allocation4 + $0x1a8] sm:$0xff] }
 0x177   :  { %3457 = vst.msk [vmem:[#allocation4 + $0x1d0] sm:$0xff] %vm1457_vm0, %v3421_v37  ;;  %v3627_v37 = vsel %vm12111_vm14, %v3625_v48, %v3626_v59  ;;  %11108 = vmatprep.mubr.msk.bf16.mxu0 %vm909_vm15, %v3784_v0  ;;  %v3789_v52 = vld [vmem:[#allocation4 + $0x138] sm:$0xff]  ;;  %v9889_v55 = vcombine.low %v2314_v36, %v2324_v31  ;;  %v2332_v12 = vor.u32 %v2331_v24, %v2328_v57  ;;  %v3630_v20 = vrot.slane %v3493_v22, 5  ;;  %v1988_v49 = vld [vmem:[#allocation2 + $0xe0] sm:$0x1] }
 0x178   :  { %v9981_v10 = vcombine.low %v3624_v27, %v3627_v37  ;;  %v3633_v63 = vrot.slane %v3494_v58, 5  ;;  %v2342_v42 = vor.u32 %v2341_v3, %v2337_v17  ;;  %v2347_v14 = vrot.slane %v2345_v56, 5  ;;  %v3497_v26 = vld [vmem:[#allocation2 + $0xbc] sm:$0x1]  ;;  %v3498_v5 = vld [vmem:[#allocation2 + $0xc0] sm:$0xe] }
 0x179   :  { %4424 = vmatmul.mubr.bf16.gmra.mrb[32].mxu1 %v3792_v23  ;;  %11109 = vmatmul.mubr.msk.bf16.gmra.mrb[76].mxu0 %vm909_vm15, %v3789_v52  ;;  %2450 = vst.msk [vmem:[#allocation4 + $0x218] sm:$0xff] %vm909_vm15, %v9889_v55  ;;  %v9967_v6 = vrot.slane %v3495_v44, 9  ;;  %v2333_v38 = vrot.slane %v2332_v12, 4  ;;  %v3631_v4 = vsel %vm12111_vm14, %v9966_v18, %v3630_v20  ;;  %v3632_v19 = vrot.slane %v3630_v20, 4  ;;  %v1986_v23 = vld [vmem:[#allocation2 + $0xd8] sm:$0xf] }
 0x17a   :  { %4431 = vmatprep.mubr.bf16.mxu1 %v3798_v8  ;;  %3743 = vst.msk [vmem:[#allocation4 + $0x188] sm:$0xff] %vm909_vm15, %v9981_v10  ;;  %v3637_v1 = vrot.slane %v3496_v25, 5  ;;  %v2343_v47 = vrot.slane %v2342_v42, 4  ;;  %v3640_v13 = vrot.slane %v3497_v26, 5  ;;  %v1987_v8 = vld [vmem:[#allocation2 + $0xdc] sm:$0xf] }
 0x17b   :  { %v2338_v30 = vsel %vm11550_vm11, %v2333_v38, %v2337_v17  ;;  %v3634_v7 = vsel %vm12111_vm14, %v3632_v19, %v3633_v63  ;;  %v2350_v41 = vshrl.u32 %v1986_v23, 16  ;;  %v2353_v28 = vshll.u32 %v1986_v23, 16  ;;  %v3499_v48 = vld [vmem:[#allocation2 + $0xc4] sm:$0xf]  ;;  %v3500_v50 = vld [vmem:[#allocation2 + $0xc8] sm:$0x1] }
 0x17c   :  { %v3638_v15 = vsel %vm12111_vm14, %v9967_v6, %v3637_v1  ;;  %v3639_v46 = vrot.slane %v3637_v1, 4  ;;  %v2348_v16 = vsel %vm11550_vm11, %v2343_v47, %v2347_v14  ;;  %v9982_v61 = vcombine.low %v3631_v4, %v3634_v7  ;;  %v3501_v56 = vld [vmem:[#allocation2 + $0xcc] sm:$0xe]  ;;  %v3502_v31 = vld [vmem:[#allocation2 + $0xd0] sm:$0xf] }
 0x17d   :  { %v3794_v54 = vld [vmem:[#allocation4 + $0x160] sm:$0xff]  ;;  %v9890_v59 = vcombine.low %v2338_v30, %v2348_v16  ;;  %v2359_v29 = vshll.u32 %v1987_v8, 16  ;;  %v2363_v27 = vshrl.u32 %v1987_v8, 16  ;;  %v2352_v43 = vrot.slane %v2350_v41, 4  ;;  %v3503_v10 = vld [vmem:[#allocation2 + $0xd4] sm:$0x1] }
 0x17e   :  { %v2734_v39 = vpop.permute.xlu1 %2733  ;;  %11112 = vmatprep.mubr.msk.bf16.mxu0 %vm909_vm15, %v3794_v54  ;;  %v3641_v36 = vsel %vm12111_vm14, %v3639_v46, %v3640_v13  ;;  %3744 = vst.msk [vmem:[#allocation4 + $0x1b0] sm:$0xff] %vm909_vm15, %v9982_v61  ;;  %v2355_v40 = vrot.slane %v2353_v28, 5  ;;  %v2369_v33 = vshll.u32 %v1988_v49, 16  ;;  %v9968_v11 = vrot.slane %v3498_v5, 9  ;;  %v3504_v17 = vld [vmem:[#allocation2 + $0xd8] sm:$0xe] }
 0x17f   :  { %2769 = vst.msk [vmem:[#allocation4 + $0x1f0] sm:$0xff] %vm1457_vm0, %v2734_v39  ;;  %v9983_v2 = vcombine.low %v3638_v15, %v3641_v36  ;;  %v3808_v39 = vld [vmem:[#allocation4 + $0x1d0] sm:$0xff]  ;;  %v2361_v0 = vrot.slane %v2359_v29, 5  ;;  %v2365_v37 = vrot.slane %v2363_v27, 4  ;;  %v3644_v53 = vrot.slane %v3499_v48, 5  ;;  %v3807_v49 = vld [vmem:[#allocation4 + $0x1c8] sm:$0xff] }
 0x180   :  { %v3423_v45 = vpop.permute.xlu0 %3422  ;;  %2451 = vst.msk [vmem:[#allocation4 + $0x240] sm:$0xff] %vm909_vm15, %v9890_v59  ;;  %v2356_v51 = vor.u32 %v2355_v40, %v2352_v43  ;;  %v3647_v52 = vrot.slane %v3500_v50, 5  ;;  %v9969_v55 = vrot.slane %v3501_v56, 9  ;;  %v3505_v3 = vld [vmem:[#allocation2 + $0xdc] sm:$0xf]  ;;  %v3651_v12 = vrot.slane %v3502_v31, 5 }
 0x181   :  { %3458 = vst.msk [vmem:[#allocation4 + $0x1f8] sm:$0xff] %vm1457_vm0, %v3423_v45  ;;  %4432 = vmatmul.mubr.bf16.gmra.mrb[36].mxu1 %v3797_v9  ;;  %v3799_v62 = vld [vmem:[#allocation4 + $0x188] sm:$0xff]  ;;  %v2371_v45 = vrot.slane %v2369_v33, 5  ;;  %v2366_v57 = vor.u32 %v2365_v37, %v2361_v0  ;;  %v3645_v24 = vsel %vm12111_vm14, %v9968_v11, %v3644_v53  ;;  %v3646_v22 = vrot.slane %v3644_v53, 4  ;;  %v3506_v20 = vld [vmem:[#allocation2 + $0xe0] sm:$0x1] }
 0x182   :  { %4439 = vmatprep.mubr.bf16.mxu1 %v3803_v32  ;;  %11113 = vmatmul.mubr.msk.bf16.gmra.mrb[80].mxu0 %vm909_vm15, %v3799_v62  ;;  %3745 = vst.msk [vmem:[#allocation4 + $0x1d8] sm:$0xff] %vm909_vm15, %v9983_v2  ;;  %v2357_v9 = vrot.slane %v2356_v51, 4  ;;  %v3654_v18 = vrot.slane %v3503_v10, 5  ;;  %v9970_v63 = vrot.slane %v3504_v17, 9  ;;  %v3658_v25 = vrot.slane %v3505_v3, 5  ;;  %v11266_v32 = vld [vmem:[%s14757_s4 + $0x50] sm:$0xff]  }
 0x183   :  { %v2367_v42 = vrot.slane %v2366_v57, 4  ;;  %v3648_v14 = vsel %vm12111_vm14, %v3646_v22, %v3647_v52  ;;  %v3661_v26 = vrot.slane %v3506_v20, 5  ;;  %v3507_v6 = vld [vmem:[#allocation2 + $0xe4] sm:$0xe]  ;;  %v3652_v19 = vsel %vm12111_vm14, %v9969_v55, %v3651_v12  ;;  %v3508_v47 = vld [vmem:[#allocation2 + $0xe8] sm:$0xf]  ;;  %10620 = vmatprep.subr.bf16.mxu1 %v11266_v32 }
 0x184   :  { %v2362_v38 = vsel %vm11550_vm11, %v2357_v9, %v2361_v0  ;;  %v9984_v4 = vcombine.low %v3645_v24, %v3648_v14  ;;  %v3653_v1 = vrot.slane %v3651_v12, 4  ;;  %v3509_v13 = vld [vmem:[#allocation2 + $0xec] sm:$0x1]  ;;  %v3659_v7 = vsel %vm12111_vm14, %v9970_v63, %v3658_v25  ;;  %v11267_v8 = vld [vmem:[%s14757_s4 + $0x10] sm:$0xff]   ;;  %v11268_v11 = vld [vmem:[%s14757_s4 + $0x58] sm:$0xff]  }
 0x185   :  { %v3804_v23 = vld [vmem:[#allocation4 + $0x1b0] sm:$0xff]  ;;  %v2372_v30 = vsel %vm11550_vm11, %v2367_v42, %v2371_v45  ;;  %v3660_v15 = vrot.slane %v3658_v25, 4  ;;  %v9971_v46 = vrot.slane %v3507_v6, 9  ;;  %v3665_v61 = vrot.slane %v3508_v47, 5  ;;  %10621 = vmatpush3.bf16.msra.mxu1 %v11267_v8  ;;  %v11269_v53 = vld [vmem:[%s14757_s4 + $0x18] sm:$0xff]   ;;  %v11271_v20 = vld [vmem:[%s14757_s4 + $0x20] sm:$0xff]  }
 0x186   :  { %11116 = vmatprep.mubr.msk.bf16.mxu0 %vm909_vm15, %v3804_v23  ;;  %v9891_v54 = vcombine.low %v2362_v38, %v2372_v30  ;;  %3746 = vst.msk [vmem:[#allocation4 + $0x200] sm:$0xff] %vm909_vm15, %v9984_v4  ;;  %v3655_v16 = vsel %vm12111_vm14, %v3653_v1, %v3654_v18  ;;  %v3668_v41 = vrot.slane %v3509_v13, 5  ;;  %v3812_v43 = vld [vmem:[#allocation4 + $0x1f0] sm:$0xff]  ;;  %10622 = vmatprep.subr.bf16.mxu1 %v11268_v11  ;;  %v11272_v1 = vld [vmem:[%s14757_s4 + $0x68] sm:$0xff]   ;;  %vm184_vm2 = vcmask 1040384  }
 0x187   :  { %v9985_v5 = vcombine.low %v3652_v19, %v3655_v16  ;;  %v3662_v59 = vsel %vm12111_vm14, %v3660_v15, %v3661_v26  ;;  %v3666_v27 = vsel %vm12111_vm14, %v9971_v46, %v3665_v61  ;;  %v3667_v48 = vrot.slane %v3665_v61, 4  ;;  %v11273_v30 = vld [vmem:[%s14757_s4 + $0x28] sm:$0xff]   ;;  %vm12890_vm3 = vmand %vm184_vm2, %vm47_vm1 }
 0x188   :  { %v2736_v58 = vpop.permute.xlu1 %2735  ;;  %v3813_v36 = vld [vmem:[#allocation4 + $0x1f8] sm:$0xff]  ;;  %2452 = vst.msk [vmem:[#allocation4 + $0x268] sm:$0xff] %vm909_vm15, %v9891_v54  ;;  %v9986_v29 = vcombine.low %v3659_v7, %v3662_v59  ;;  %v11274_v59 = vld [vmem:[%s14757_s4 + $0x70] sm:$0xff]   ;;  %vm12898_vm5 = vmand %vm184_vm2, %vm109_vm4  ;;  %vm5176_vm1 = vcmask 1043456  }
 0x189   :  { %4440 = vmatmul.mubr.bf16.gmra.mrb[40].mxu1 %v3802_v60  ;;  %2770 = vst.msk [vmem:[#allocation4 + $0x218] sm:$0xff] %vm1457_vm0, %v2736_v58  ;;  %v3809_v28 = vld [vmem:[#allocation4 + $0x1d8] sm:$0xff]  ;;  %v3669_v60 = vsel %vm12111_vm14, %v3667_v48, %v3668_v41  ;;  %v11270_v58 = vld [vmem:[%s14757_s4 + $0x60] sm:$0xff]   ;;  %vm13171_vm6 = vmand %vm5176_vm1, %vm109_vm4 }
 0x18a   :  { %v3425_v44 = vpop.permute.xlu0 %3424  ;;  %4447 = vmatprep.mubr.bf16.mxu1 %v3808_v39  ;;  %11117 = vmatmul.mubr.msk.bf16.gmra.mrb[84].mxu0 %vm909_vm15, %v3809_v28  ;;  %3747 = vst.msk [vmem:[#allocation4 + $0x228] sm:$0xff] %vm909_vm15, %v9985_v5  ;;  %3748 = vst.msk [vmem:[#allocation4 + $0x250] sm:$0xff] %vm909_vm15, %v9986_v29  ;;  %v9987_v62 = vcombine.low %v3666_v27, %v3669_v60  ;;  %v192_v5 = vld [vmem:[#allocation3 + $0x18] sm:$0x1] }
 0x18b   :  { %3459 = vst.msk [vmem:[#allocation4 + $0x220] sm:$0xff] %vm1457_vm0, %v3425_v44  ;;  %10623 = vmatpush3.bf16.msra.mxu1 %v11269_v53  ;;  %v193_v27 = vsel %vm12890_vm3, 0, %v192_v5  ;;  %v250_v53 = vld [vmem:[#allocation3 + $0x14] sm:$0x1] }
 0x18c   :  { %3749 = vst.msk [vmem:[#allocation4 + $0x278] sm:$0xff] %vm909_vm15, %v9987_v62  ;;  %10624 = vmatprep.subr.bf16.mxu1 %v11270_v58  ;;  %194 = vst [vmem:[#allocation3 + $0x18] sm:$0x1] %v193_v27  ;;  %v11275_v62 = vld [vmem:[%s14757_s4 + $0xc0] sm:$0xff]   ;;  %v11281_v58 = vld [vmem:[%s14757_s4 + $0x90] sm:$0xff]  }
 0x18d   :  { %v3814_v2 = vld [vmem:[#allocation4 + $0x200] sm:$0xff]  ;;  %10728 = vmatprep.subr.bf16.mxu0 %v11275_v62  ;;  %v11288_v27 = vld [vmem:[%s14757_s4 + $0xe8] sm:$0xff]  }
 0x18e   :  { %11120 = vmatprep.mubr.msk.bf16.mxu0 %vm909_vm15, %v3814_v2  ;;  %v189_v2 = vld [vmem:[#allocation3 + $0xc] sm:$0x1]  ;;  %v11287_v5 = vld [vmem:[%s14757_s4 + $0xa0] sm:$0xff]   ;;  %v11289_v62 = vld [vmem:[%s14757_s4 + $0xa8] sm:$0xff]  }
 0x18f   :  { %10625 = vmatpush3.bf16.msra.mxu1 %v11271_v20 }
 0x190   :  { %v3817_v37 = vld [vmem:[#allocation4 + $0x218] sm:$0xff]  ;;  %10626 = vmatprep.subr.bf16.mxu1 %v11272_v1  ;;  %v11285_v1 = vld [vmem:[%s14757_s4 + $0xe0] sm:$0xff]  }
 0x191   :  { %4448 = vmatmul.mubr.bf16.gmra.mrb[44].mxu1 %v3807_v49  ;;  %v3819_v50 = vld [vmem:[#allocation4 + $0x228] sm:$0xff]  ;;  %v3824_v39 = vld [vmem:[#allocation4 + $0x250] sm:$0xff] }
 0x192   :  { %4455 = vmatprep.mubr.bf16.mxu1 %v3813_v36  ;;  %v3818_v40 = vld [vmem:[#allocation4 + $0x220] sm:$0xff]  ;;  %11121 = vmatmul.mubr.msk.bf16.gmra.mrb[88].mxu0 %vm909_vm15, %v3819_v50  ;;  %v14779_v36 = vmov 0 }
 0x193   :  { %11124 = vmatprep.mubr.msk.bf16.mxu0 %vm909_vm15, %v3824_v39  ;;  %v3829_v0 = vld [vmem:[#allocation4 + $0x278] sm:$0xff]  ;;  %10627 = vmatpush3.bf16.msra.mxu1 %v11273_v30  ;;  %v14780_v36 = vsel %vm12898_vm5, 4294967295, %v14779_v36  ;;  %v11277_v50 = vld [vmem:[%s14757_s4 + $0x80] sm:$0xff]   ;;  %v253_v39 = vld [vmem:[#allocation3 + $0x20] sm:$0x1] }
 0x194   :  { %v2738_v33 = vpop.permute.xlu1 %2737  ;;  %14781 = vst [vmem:[#allocation6_spill] sm:$0xff] %v14780_v36  ;;  %10628 = vmatprep.subr.bf16.mxu1 %v11274_v59  ;;  %v254_v11 = vsel %vm12898_vm5, 0, %v253_v39  ;;  %10729 = vmatpush3.bf16.msra.mxu0 %v11277_v50  ;;  %v204_v30 = vld [vmem:[#allocation3 + $0x48] sm:$0x1] }
 0x195   :  { %2771 = vst.msk [vmem:[#allocation4 + $0x240] sm:$0xff] %vm1457_vm0, %v2738_v33  ;;  %v190_v33 = vsel %vm12890_vm3, 0, %v189_v2  ;;  %255 = vst [vmem:[#allocation3 + $0x20] sm:$0x1] %v254_v11  ;;  %v11286_v59 = vld [vmem:[%s14757_s4 + $0x38] sm:$0xff]  }
 0x196   :  { %191 = vst [vmem:[#allocation3 + $0xc] sm:$0x1] %v190_v33  ;;  %v262_v2 = vld [vmem:[#allocation3 + $0x44] sm:$0x1] }
 0x199   :  { %4456 = vmatmul.mubr.bf16.gmra.mrb[48].mxu1 %v3812_v43  ;;  %v11276_v43 = vld [vmem:[%s14757_s4 + $0x30] sm:$0xff]  }
 0x19a   :  { %4463 = vmatprep.mubr.bf16.mxu1 %v3818_v40  ;;  %11125 = vmatmul.mubr.msk.bf16.gmra.mrb[92].mxu0 %vm909_vm15, %v3829_v0  ;;  %v11278_v0 = vld [vmem:[%s14757_s4 + $0xc8] sm:$0xff]  }
 0x19b   :  { %10629 = vmatpush3.bf16.msra.mxu1 %v11276_v43  ;;  %10730 = vmatprep.subr.bf16.mxu0 %v11278_v0  ;;  %v210_v0 = vld [vmem:[#allocation3 + $0x60] sm:$0x1] }
 0x19c   :  { %v3822_v57 = vld [vmem:[#allocation4 + $0x240] sm:$0xff] }
 0x19f   :  { %v2740_v56 = vpop.permute.xlu1 %2739 }
 0x1a0   :  { %2772 = vst.msk [vmem:[#allocation4 + $0x268] sm:$0xff] %vm1457_vm0, %v2740_v56  ;;  %v251_v56 = vsel %vm12898_vm5, 0, %v250_v53  ;;  %v211_v53 = vsel %vm12890_vm3, 0, %v210_v0 }
 0x1a1   :  { %4464 = vmatmul.mubr.bf16.gmra.mrb[52].mxu1 %v3817_v37  ;;  %252 = vst [vmem:[#allocation3 + $0x14] sm:$0x1] %v251_v56  ;;  %212 = vst [vmem:[#allocation3 + $0x60] sm:$0x1] %v211_v53 }
 0x1a3   :  { %v3427_v51 = vpop.permute.xlu0 %3426 }
 0x1a4   :  { %3460 = vst.msk [vmem:[#allocation4 + $0x248] sm:$0xff] %vm1457_vm0, %v3427_v51  ;;  %v11279_v51 = vld [vmem:[%s14757_s4 + $0x88] sm:$0xff]  }
 0x1a5   :  { %10731 = vmatpush3.bf16.msra.mxu0 %v11279_v51 }
 0x1a7   :  { %v3429_v22 = vpop.permute.xlu0 %3428  ;;  %v3827_v63 = vld [vmem:[#allocation4 + $0x268] sm:$0xff] }
 0x1a8   :  { %3461 = vst.msk [vmem:[#allocation4 + $0x270] sm:$0xff] %vm1457_vm0, %v3429_v22 }
 0x1ab   :  { %v3823_v17 = vld [vmem:[#allocation4 + $0x248] sm:$0xff] }
 0x1ac   :  { %4471 = vmatprep.mubr.bf16.mxu1 %v3823_v17 }
 0x1ad   :  { %4472 = vmatmul.mubr.bf16.gmra.mrb[56].mxu1 %v3822_v57 }
 0x1af   :  { %v10388_v45 = vpop.f32.mrb[0].mxu0  ;;  %v3828_v42 = vld [vmem:[#allocation4 + $0x270] sm:$0xff] }
 0x1b0   :  { %v10389_v52 = vpop.f32.mrb[1].mxu0  ;;  %4479 = vmatprep.mubr.bf16.mxu1 %v3828_v42  ;;  %v11282_v42 = vld [vmem:[%s14757_s4 + $0xd8] sm:$0xff]  }
 0x1b1   :  { %v12856_v31 = vadd.f32 %v10389_v52, %v10388_v45  ;;  %v10391_v10 = vpop.f32.mrb[2].mxu0  ;;  %v198_v52 = vld [vmem:[#allocation3 + $0x30] sm:$0x1] }
 0x1b2   :  { %v10392_v24 = vpop.f32.mrb[3].mxu0 }
 0x1b3   :  { %v12858_v55 = vadd.f32 %v10392_v24, %v10391_v10  ;;  %v11280_v10 = vld [vmem:[%s14757_s4 + $0xd0] sm:$0xff]   ;;  %v199_v24 = vsel %vm12890_vm3, 0, %v198_v52 }
 0x1b4   :  { %200 = vst [vmem:[#allocation3 + $0x30] sm:$0x1] %v199_v24  ;;  %10732 = vmatprep.subr.bf16.mxu0 %v11280_v10 }
 0x1b5   :  { %4480 = vmatmul.mubr.bf16.gmra.mrb[60].mxu1 %v3827_v63  ;;  %10733 = vmatpush3.bf16.msra.mxu0 %v11281_v58 }
 0x1b6   :  { %10734 = vmatprep.subr.bf16.mxu0 %v11282_v42  ;;  %v247_v42 = vld [vmem:[#allocation3 + $0x8] sm:$0x1] }
 0x1b7   :  { %v10394_v3 = vpop.f32.mrb[4].mxu0 }
 0x1b8   :  { %v10395_v9 = vpop.f32.mrb[5].mxu0 }
 0x1b9   :  { %v12864_v12 = vadd.f32 %v10395_v9, %v10394_v3  ;;  %v10397_v18 = vpop.f32.mrb[6].mxu0  ;;  %v195_v3 = vld [vmem:[#allocation3 + $0x24] sm:$0x1]  ;;  %v259_v9 = vld [vmem:[#allocation3 + $0x38] sm:$0x1] }
 0x1ba   :  { %v10398_v44 = vpop.f32.mrb[7].mxu0  ;;  %v196_v20 = vsel %vm12890_vm3, 0, %v195_v3  ;;  %v260_v63 = vsel %vm12898_vm5, 0, %v259_v9  ;;  %v207_v3 = vld [vmem:[#allocation3 + $0x54] sm:$0x1] }
 0x1bb   :  { %v12869_v14 = vadd.f32 %v10398_v44, %v10397_v18  ;;  %197 = vst [vmem:[#allocation3 + $0x24] sm:$0x1] %v196_v20  ;;  %261 = vst [vmem:[#allocation3 + $0x38] sm:$0x1] %v260_v63  ;;  %v208_v9 = vsel %vm12890_vm3, 0, %v207_v3  ;;  %v11291_v20 = vld [vmem:[%s14757_s4 + $0xb0] sm:$0xff]  }
 0x1bc   :  { %209 = vst [vmem:[#allocation3 + $0x54] sm:$0x1] %v208_v9  ;;  %v271_v63 = vld [vmem:[#allocation3 + $0x68] sm:$0x1] }
 0x1bf   :  { %v10400_v25 = vpop.f32.mrb[8].mxu0 }
 0x1c0   :  { %v10401_v26 = vpop.f32.mrb[9].mxu0 }
 0x1c1   :  { %v12871_v6 = vadd.f32 %v10401_v26, %v10400_v25  ;;  %v10403_v32 = vpop.f32.mrb[10].mxu0  ;;  %v11283_v25 = vld [vmem:[%s14757_s4 + $0x98] sm:$0xff]  }
 0x1c2   :  { %v10404_v38 = vpop.f32.mrb[11].mxu0  ;;  %v256_v26 = vld [vmem:[#allocation3 + $0x2c] sm:$0x1]  ;;  %10735 = vmatpush3.bf16.msra.mxu0 %v11283_v25  ;;  %v272_v25 = vsel %vm12898_vm5, 0, %v271_v63 }
 0x1c3   :  { %v12873_v4 = vadd.f32 %v10404_v38, %v10403_v32  ;;  %v257_v38 = vsel %vm12898_vm5, 0, %v256_v26  ;;  %10736 = vmatprep.subr.bf16.mxu0 %v11285_v1  ;;  %v248_v26 = vsel %vm12898_vm5, 0, %v247_v42  ;;  %273 = vst [vmem:[#allocation3 + $0x68] sm:$0x1] %v272_v25 }
 0x1c4   :  { %258 = vst [vmem:[#allocation3 + $0x2c] sm:$0x1] %v257_v38  ;;  %249 = vst [vmem:[#allocation3 + $0x8] sm:$0x1] %v248_v26  ;;  %v11292_v38 = vld [vmem:[%s14757_s4 + $0xf8] sm:$0xff]  }
 0x1c6   :  { %10737 = vmatpush3.bf16.msra.mxu0 %v11287_v5 }
 0x1c7   :  { %v10406_v19 = vpop.f32.mrb[12].mxu0  ;;  %10738 = vmatprep.subr.bf16.mxu0 %v11288_v27 }
 0x1c8   :  { %v10407_v47 = vpop.f32.mrb[13].mxu0 }
 0x1c9   :  { %v12878_v13 = vadd.f32 %v10407_v47, %v10406_v19  ;;  %v10409_v23 = vpop.f32.mrb[14].mxu0 }
 0x1ca   :  { %v10410_v7 = vpop.f32.mrb[15].mxu0  ;;  %10739 = vmatpush3.bf16.msra.mxu0 %v11289_v62 }
 0x1cb   :  { %v12883_v15 = vadd.f32 %v10410_v7, %v10409_v23  ;;  %v11284_v7 = vld [vmem:[%s14757_s4 + $0x78] sm:$0xff]  }
 0x1cc   :  { %10630 = vmatprep.subr.bf16.mxu1 %v11284_v7  ;;  %v5438_v0 = vld [vmem:[#allocation3 + $0x8] sm:$0x1] }
 0x1cd   :  { %10631 = vmatpush3.bf16.msra.mxu1 %v11286_v59 }
 0x1cf   :  { %v10412_v46 = vpop.f32.mrb[16].mxu0 }
 0x1d0   :  { %v10413_v8 = vpop.f32.mrb[17].mxu0 }
 0x1d1   :  { %v12885_v49 = vadd.f32 %v10413_v8, %v10412_v46  ;;  %v10415_v54 = vpop.f32.mrb[18].mxu0  ;;  %v201_v46 = vld [vmem:[#allocation3 + $0x3c] sm:$0x1] }
 0x1d2   :  { %v10416_v16 = vpop.f32.mrb[19].mxu0 }
 0x1d3   :  { %v12887_v61 = vadd.f32 %v10416_v16, %v10415_v54  ;;  %v205_v54 = vsel %vm12890_vm3, 0, %v204_v30 }
 0x1d4   :  { %206 = vst [vmem:[#allocation3 + $0x48] sm:$0x1] %v205_v54 }
 0x1d7   :  { %v10418_v41 = vpop.f32.mrb[20].mxu0 }
 0x1d8   :  { %v10419_v29 = vpop.f32.mrb[21].mxu0 }
 0x1d9   :  { %v12904_v48 = vadd.f32 %v10419_v29, %v10418_v41  ;;  %v10421_v60 = vpop.f32.mrb[22].mxu0  ;;  %v202_v41 = vsel %vm12890_vm3, 0, %v201_v46  ;;  %v265_v29 = vld [vmem:[#allocation3 + $0x50] sm:$0x1]  ;;  %v11293_v46 = vld [vmem:[%s14757_s4 + $0xb8] sm:$0xff]  }
 0x1da   :  { %v10422_v40 = vpop.f32.mrb[23].mxu0  ;;  %203 = vst [vmem:[#allocation3 + $0x3c] sm:$0x1] %v202_v41 }
 0x1db   :  { %v12920_v37 = vadd.f32 %v10422_v40, %v10421_v60  ;;  %v266_v60 = vsel %vm12898_vm5, 0, %v265_v29  ;;  %v263_v40 = vsel %vm12898_vm5, 0, %v262_v2 }
 0x1dc   :  { %267 = vst [vmem:[#allocation3 + $0x50] sm:$0x1] %v266_v60  ;;  %264 = vst [vmem:[#allocation3 + $0x44] sm:$0x1] %v263_v40  ;;  %v222_v60 = vld [vmem:[#allocation3 + $0x90] sm:$0x1] }
 0x1df   :  { %v10424_v45 = vpop.f32.mrb[24].mxu0 }
 0x1e0   :  { %v10425_v57 = vpop.f32.mrb[25].mxu0 }
 0x1e1   :  { %v12934_v22 = vadd.f32 %v10425_v57, %v10424_v45  ;;  %v10427_v17 = vpop.f32.mrb[26].mxu0  ;;  %v186_v45 = vld [vmem:[#allocation3] sm:$0x1] }
 0x1e2   :  { %v10428_v18 = vpop.f32.mrb[27].mxu0  ;;  %v187_v10 = vsel %vm12890_vm3, 0, %v186_v45  ;;  %v11296_v45 = vld [vmem:[%s14757_s4 + $0x140] sm:$0xff]  }
 0x1e3   :  { %v12943_v44 = vadd.f32 %v10428_v18, %v10427_v17  ;;  %v11290_v17 = vld [vmem:[%s14757_s4 + $0xf0] sm:$0xff]   ;;  %188 = vst [vmem:[#allocation3] sm:$0x1] %v187_v10  ;;  %10840 = vmatprep.subr.bf16.mxu1 %v11296_v45 }
 0x1e4   :  { %10740 = vmatprep.subr.bf16.mxu0 %v11290_v17 }
 0x1e5   :  { %10741 = vmatpush3.bf16.msra.mxu0 %v11291_v20  ;;  %v283_v20 = vld [vmem:[#allocation3 + $0x98] sm:$0x1] }
 0x1e6   :  { %10742 = vmatprep.subr.bf16.mxu0 %v11292_v38 }
 0x1e7   :  { %v10430_v32 = vpop.f32.mrb[28].mxu0 }
 0x1e8   :  { %v10431_v19 = vpop.f32.mrb[29].mxu0 }
 0x1e9   :  { %v12956_v47 = vadd.f32 %v10431_v19, %v10430_v32  ;;  %v10433_v23 = vpop.f32.mrb[30].mxu0  ;;  %v268_v32 = vld [vmem:[#allocation3 + $0x5c] sm:$0x1]  ;;  %v5437_v19 = vld [vmem:[#allocation3 + $0x4] sm:$0xf]  ;;  %10743 = vmatpush3.bf16.msra.mxu0 %v11293_v46 }
 0x1ea   :  { %v10434_v8 = vpop.f32.mrb[31].mxu0  ;;  %v5494_v30 = vshll.u32 %v5437_v19, 16  ;;  %v5498_v7 = vshrl.u32 %v5437_v19, 16  ;;  %v5436_v54 = vld [vmem:[#allocation3] sm:$0xf] }
 0x1eb   :  { %v12963_v16 = vadd.f32 %v10434_v8, %v10433_v23  ;;  %v269_v23 = vsel %vm12898_vm5, 0, %v268_v32  ;;  %v5485_v59 = vshrl.u32 %v5436_v54, 16  ;;  %v5488_v29 = vshll.u32 %v5436_v54, 16  ;;  %v11294_v32 = vld [vmem:[#allocation3] sm:$0xff]  }
 0x1ec   :  { %270 = vst [vmem:[#allocation3 + $0x5c] sm:$0x1] %v269_v23  ;;  %v5496_v27 = vrot.slane %v5494_v30, 5  ;;  %v5500_v2 = vrot.slane %v5498_v7, 4  ;;  %v284_v23 = vsel %vm12898_vm5, 0, %v283_v20 }
 0x1ed   :  { %v280_v30 = vld [vmem:[#allocation3 + $0x8c] sm:$0x1]  ;;  %285 = vst [vmem:[#allocation3 + $0x98] sm:$0x1] %v284_v23 }
 0x1ee   :  { %v281_v46 = vsel %vm12898_vm5, 0, %v280_v30 }
 0x1ef   :  { %v10436_v43 = vpop.f32.mrb[32].mxu0  ;;  %282 = vst [vmem:[#allocation3 + $0x8c] sm:$0x1] %v281_v46 }
 0x1f0   :  { %v10437_v33 = vpop.f32.mrb[33].mxu0 }
 0x1f1   :  { %v12983_v50 = vadd.f32 %v10437_v33, %v10436_v43  ;;  %v10439_v39 = vpop.f32.mrb[34].mxu0  ;;  %v223_v43 = vsel %vm12890_vm3, 0, %v222_v60  ;;  %v5487_v33 = vrot.slane %v5485_v59, 4  ;;  %v228_v59 = vld [vmem:[#allocation3 + $0xa8] sm:$0x1] }
 0x1f2   :  { %v10440_v11 = vpop.f32.mrb[35].mxu0  ;;  %224 = vst [vmem:[#allocation3 + $0x90] sm:$0x1] %v223_v43 }
 0x1f3   :  { %v12987_v56 = vadd.f32 %v10440_v11, %v10439_v39  ;;  %v5490_v39 = vrot.slane %v5488_v29, 5  ;;  %v5501_v11 = vor.u32 %v5500_v2, %v5496_v27 }
 0x1f5   :  { %v5491_v53 = vor.u32 %v5490_v39, %v5487_v33  ;;  %v5502_v10 = vrot.slane %v5501_v11, 4  ;;  %v225_v11 = vld [vmem:[#allocation3 + $0x9c] sm:$0x1] }
 0x1f6   :  { %v226_v45 = vsel %vm12890_vm3, 0, %v225_v11 }
 0x1f7   :  { %v10442_v51 = vpop.f32.mrb[36].mxu0  ;;  %v5492_v3 = vrot.slane %v5491_v53, 4  ;;  %227 = vst [vmem:[#allocation3 + $0x9c] sm:$0x1] %v226_v45 }
 0x1f8   :  { %v10443_v52 = vpop.f32.mrb[37].mxu0 }
 0x1f9   :  { %v12991_v57 = vadd.f32 %v10443_v52, %v10442_v51  ;;  %v10445_v24 = vpop.f32.mrb[38].mxu0  ;;  %v5504_v51 = vshll.u32 %v5438_v0, 16  ;;  %v219_v52 = vld [vmem:[#allocation3 + $0x84] sm:$0x1]  ;;  %v5497_v25 = vsel %vm11550_vm11, %v5492_v3, %v5496_v27 }
 0x1fa   :  { %v10446_v58 = vpop.f32.mrb[39].mxu0 }
 0x1fb   :  { %v12998_v18 = vadd.f32 %v10446_v58, %v10445_v24  ;;  %v220_v24 = vsel %vm12890_vm3, 0, %v219_v52  ;;  %v5506_v58 = vrot.slane %v5504_v51, 5 }
 0x1fc   :  { %221 = vst [vmem:[#allocation3 + $0x84] sm:$0x1] %v220_v24 }
 0x1fd   :  { %v5507_v26 = vsel %vm11550_vm11, %v5502_v10, %v5506_v58 }
 0x1fe   :  { %v10090_v19 = vcombine.low %v5497_v25, %v5507_v26  ;;  %v289_v25 = vld [vmem:[#allocation3 + $0xb0] sm:$0x1] }
 0x1ff   :  { %v10448_v1 = vpop.f32.mrb[40].mxu0 }
 0x200   :  { %v10449_v8 = vpop.f32.mrb[41].mxu0  ;;  %8877 = vmatprep.mubr.bf16.mxu1 %v10090_v19  ;;  %v286_v19 = vld [vmem:[#allocation3 + $0xa4] sm:$0x1] }
 0x201   :  { %v13015_v41 = vadd.f32 %v10449_v8, %v10448_v1  ;;  %v10451_v5 = vpop.f32.mrb[42].mxu0  ;;  %v11298_v1 = vld [vmem:[%s14757_s4 + $0x100] sm:$0xff]   ;;  %8878 = vmatmul.mubr.bf16.vlgmr.msra.gmra.mrb[64].mxu1 %v11294_v32  ;;  %v287_v23 = vsel %vm12898_vm5, 0, %v286_v19 }
 0x202   :  { %v10452_v62 = vpop.f32.mrb[43].mxu0  ;;  %10841 = vmatpush3.bf16.msra.mxu1 %v11298_v1  ;;  %288 = vst [vmem:[#allocation3 + $0xa4] sm:$0x1] %v287_v23 }
 0x203   :  { %v13019_v40 = vadd.f32 %v10452_v62, %v10451_v5  ;;  %v10500_v54 = vpop.f32.mrb[0].mxu1  ;;  %v229_v62 = vsel %vm12890_vm3, 0, %v228_v59 }
 0x204   :  { %v10501_v29 = vpop.f32.mrb[1].mxu1  ;;  %230 = vst [vmem:[#allocation3 + $0xa8] sm:$0x1] %v229_v62 }
 0x205   :  { %v10502_v2 = vadd.f32 %v10501_v29, %v10500_v54  ;;  %v10503_v43 = vpop.f32.mrb[2].mxu1 }
 0x206   :  { %v10504_v39 = vpop.f32.mrb[3].mxu1 }
 0x207   :  { %v10454_v17 = vpop.f32.mrb[44].mxu0  ;;  %v10505_v53 = vadd.f32 %v10504_v39, %v10503_v43  ;;  %v13048_v51 = vadd.f32 %v10502_v2, %v12856_v31  ;;  %v234_v39 = vld [vmem:[#allocation3 + $0xc0] sm:$0x1] }
 0x208   :  { %v10455_v9 = vpop.f32.mrb[45].mxu0  ;;  %v235_v45 = vsel %vm12890_vm3, 0, %v234_v39 }
 0x209   :  { %v13026_v63 = vadd.f32 %v10455_v9, %v10454_v17  ;;  %v10457_v42 = vpop.f32.mrb[46].mxu0  ;;  %v13053_v52 = vadd.f32 %v10505_v53, %v12858_v55  ;;  %236 = vst [vmem:[#allocation3 + $0xc0] sm:$0x1] %v235_v45  ;;  %v240_v45 = vld [vmem:[#allocation3 + $0xd8] sm:$0x1] }
 0x20a   :  { %v10458_v38 = vpop.f32.mrb[47].mxu0 }
 0x20b   :  { %v13037_v7 = vadd.f32 %v10458_v38, %v10457_v42  ;;  %v290_v38 = vsel %vm12898_vm5, 0, %v289_v25 }
 0x20c   :  { %291 = vst [vmem:[#allocation3 + $0xb0] sm:$0x1] %v290_v38 }
 0x20f   :  { %v10460_v8 = vpop.f32.mrb[48].mxu0 }
 0x210   :  { %v10461_v5 = vpop.f32.mrb[49].mxu0 }
 0x211   :  { %v13041_v27 = vadd.f32 %v10461_v5, %v10460_v8  ;;  %v10463_v60 = vpop.f32.mrb[50].mxu0 }
 0x212   :  { %v10464_v33 = vpop.f32.mrb[51].mxu0  ;;  %v10506_v20 = vpop.f32.mrb[4].mxu1 }
 0x213   :  { %v13045_v0 = vadd.f32 %v10464_v33, %v10463_v60  ;;  %v10507_v42 = vpop.f32.mrb[5].mxu1 }
 0x214   :  { %v10508_v31 = vadd.f32 %v10507_v42, %v10506_v20  ;;  %v10509_v26 = vpop.f32.mrb[6].mxu1 }
 0x215   :  { %v10510_v55 = vpop.f32.mrb[7].mxu1 }
 0x216   :  { %v10511_v30 = vadd.f32 %v10510_v55, %v10509_v26  ;;  %v13066_v54 = vadd.f32 %v10508_v31, %v12864_v12  ;;  %v11304_v55 = vld [vmem:[%s14757_s4 + $0x108] sm:$0xff]  }
 0x217   :  { %v10466_v10 = vpop.f32.mrb[52].mxu0 }
 0x218   :  { %v10467_v24 = vpop.f32.mrb[53].mxu0  ;;  %v13071_v29 = vadd.f32 %v10511_v30, %v12869_v14  ;;  %v11301_v14 = vld [vmem:[%s14757_s4 + $0x148] sm:$0xff]  }
 0x219   :  { %v13055_v17 = vadd.f32 %v10467_v24, %v10466_v10  ;;  %v10469_v3 = vpop.f32.mrb[54].mxu0  ;;  %10842 = vmatprep.subr.bf16.mxu1 %v11301_v14  ;;  %v237_v14 = vld [vmem:[#allocation3 + $0xcc] sm:$0x1] }
 0x21a   :  { %v10470_v58 = vpop.f32.mrb[55].mxu0  ;;  %10843 = vmatpush3.bf16.msra.mxu1 %v11304_v55 }
 0x21b   :  { %v13057_v9 = vadd.f32 %v10470_v58, %v10469_v3  ;;  %v231_v58 = vld [vmem:[#allocation3 + $0xb4] sm:$0x1] }
 0x21c   :  { %v10512_v60 = vpop.f32.mrb[8].mxu1  ;;  %v232_v42 = vsel %vm12890_vm3, 0, %v231_v58 }
 0x21d   :  { %v10513_v62 = vpop.f32.mrb[9].mxu1  ;;  %233 = vst [vmem:[#allocation3 + $0xb4] sm:$0x1] %v232_v42 }
 0x21e   :  { %v10514_v2 = vadd.f32 %v10513_v62, %v10512_v60  ;;  %v10515_v43 = vpop.f32.mrb[10].mxu1 }
 0x21f   :  { %v10472_v32 = vpop.f32.mrb[56].mxu0  ;;  %v10516_v11 = vpop.f32.mrb[11].mxu1 }
 0x220   :  { %v10473_v1 = vpop.f32.mrb[57].mxu0  ;;  %v10517_v12 = vadd.f32 %v10516_v11, %v10515_v43  ;;  %v13078_v3 = vadd.f32 %v10514_v2, %v12871_v6 }
 0x221   :  { %v13063_v46 = vadd.f32 %v10473_v1, %v10472_v32  ;;  %v10475_v8 = vpop.f32.mrb[58].mxu0  ;;  %v295_v1 = vld [vmem:[#allocation3 + $0xc8] sm:$0x1] }
 0x222   :  { %v10476_v5 = vpop.f32.mrb[59].mxu0  ;;  %v13088_v31 = vadd.f32 %v10517_v12, %v12873_v4  ;;  %v296_v4 = vsel %vm12898_vm5, 0, %v295_v1  ;;  %v13119_v1 = vld [vmem:[%s14758_s2] ss:$0 sm:$0xff] }
 0x223   :  { %14782 = vst [vmem:[#allocation7_spill] sm:$0xff] %v13063_v46  ;;  %v13068_v59 = vadd.f32 %v10476_v5, %v10475_v8  ;;  %297 = vst [vmem:[#allocation3 + $0xc8] sm:$0x1] %v296_v4  ;;  %v292_v8 = vld [vmem:[#allocation3 + $0xbc] sm:$0x1] }
 0x224   :  { %v10518_v26 = vpop.f32.mrb[12].mxu1  ;;  %v293_v60 = vsel %vm12898_vm5, 0, %v292_v8  ;;  %v13125_v4 = vld [vmem:[%s14759_s3] ss:$0 sm:$0xff] }
 0x225   :  { %14783 = vst [vmem:[#allocation8_spill] sm:$0xff] %v13068_v59  ;;  %v10519_v6 = vpop.f32.mrb[13].mxu1  ;;  %294 = vst [vmem:[#allocation3 + $0xbc] sm:$0x1] %v293_v60 }
 0x226   :  { %v10520_v32 = vadd.f32 %v10519_v6, %v10518_v26  ;;  %v10521_v38 = vpop.f32.mrb[14].mxu1 }
 0x227   :  { %v10478_v33 = vpop.f32.mrb[60].mxu0  ;;  %v10522_v19 = vpop.f32.mrb[15].mxu1 }
 0x228   :  { %v10479_v53 = vpop.f32.mrb[61].mxu0  ;;  %v10523_v23 = vadd.f32 %v10522_v19, %v10521_v38  ;;  %v13094_v30 = vadd.f32 %v10520_v32, %v12878_v13  ;;  %v5948_v38 = vld [vmem:[#allocation3] sm:$0xe]  ;;  %v5950_v19 = vld [vmem:[#allocation3 + $0x8] sm:$0x1] }
 0x229   :  { %v13075_v10 = vadd.f32 %v10479_v53, %v10478_v33  ;;  %v10481_v24 = vpop.f32.mrb[62].mxu0 }
 0x22a   :  { %v10482_v20 = vpop.f32.mrb[63].mxu0  ;;  %v13099_v5 = vadd.f32 %v10523_v23, %v12883_v15  ;;  %v241_v15 = vsel %vm12890_vm3, 0, %v240_v45 }
 0x22b   :  { %14784 = vst [vmem:[#allocation9_spill] sm:$0xff] %v13075_v10  ;;  %v13085_v25 = vadd.f32 %v10482_v20, %v10481_v24  ;;  %v5949_v24 = vld [vmem:[#allocation3 + $0x4] sm:$0xf]  ;;  %242 = vst [vmem:[#allocation3 + $0xd8] sm:$0x1] %v241_v15  ;;  %v238_v20 = vsel %vm12890_vm3, 0, %v237_v14 }
 0x22c   :  { %v10524_v62 = vpop.f32.mrb[16].mxu1  ;;  %239 = vst [vmem:[#allocation3 + $0xcc] sm:$0x1] %v238_v20  ;;  %v6046_v6 = vrot.slane %v5949_v24, 5  ;;  %v298_v24 = vld [vmem:[#allocation3 + $0xd4] sm:$0x1] }
 0x22d   :  { %14785 = vst [vmem:[#allocation10_spill] sm:$0xff] %v13085_v25  ;;  %v10525_v2 = vpop.f32.mrb[17].mxu1  ;;  %v5184_v10 = vld [vmem:[#allocation3 + $0x14] sm:$0x1] }
 0x22e   :  { %v10526_v43 = vadd.f32 %v10525_v2, %v10524_v62  ;;  %v10527_v33 = vpop.f32.mrb[18].mxu1  ;;  %v10106_v2 = vrot.slane %v5948_v38, 9 }
 0x22f   :  { %v10528_v39 = vpop.f32.mrb[19].mxu1 }
 0x230   :  { %v10529_v13 = vadd.f32 %v10528_v39, %v10527_v33  ;;  %v13104_v11 = vadd.f32 %v10526_v43, %v12885_v49  ;;  %v6048_v43 = vrot.slane %v6046_v6, 4  ;;  %v6049_v33 = vrot.slane %v5950_v19, 5  ;;  %v301_v39 = vld [vmem:[#allocation3 + $0xe0] sm:$0x1] }
 0x231   :  { %v13145_v19 = vsel %vm12111_vm14, %v10106_v2, %v6046_v6 }
 0x232   :  { %v13107_v53 = vadd.f32 %v10529_v13, %v12887_v61 }
 0x234   :  { %v10530_v12 = vpop.f32.mrb[20].mxu1  ;;  %v11098_v55 = vpop.f32.mrb[64].mxu0 }
 0x235   :  { %v10531_v58 = vpop.f32.mrb[21].mxu1  ;;  %v4531_v23 = vadd.f32 %v11098_v55, %v13066_v54  ;;  %v4522_v8 = vpop.f32.mrb[65].mxu0 }
 0x236   :  { %v10532_v42 = vadd.f32 %v10531_v58, %v10530_v12  ;;  %v10533_v26 = vpop.f32.mrb[22].mxu1  ;;  %v11099_v62 = vpop.f32.mrb[66].mxu0  ;;  %v302_v12 = vsel %vm12898_vm5, 0, %v301_v39  ;;  %v299_v58 = vsel %vm12898_vm5, 0, %v298_v24 }
 0x237   :  { %v10534_v49 = vpop.f32.mrb[23].mxu1  ;;  %v4658_v45 = vmul.f32 %v13119_v1, %v4531_v23  ;;  %v4534_v54 = vadd.f32 %v11099_v62, %v13071_v29  ;;  %v4525_v15 = vpop.f32.mrb[67].mxu0  ;;  %303 = vst [vmem:[#allocation3 + $0xe0] sm:$0x1] %v302_v12  ;;  %300 = vst [vmem:[#allocation3 + $0xd4] sm:$0x1] %v299_v58 }
 0x238   :  { %v10535_v32 = vadd.f32 %v10534_v49, %v10533_v26  ;;  %v13114_v61 = vadd.f32 %v10532_v42, %v12904_v48  ;;  %v4523_v48 = vadd.f32 %v4522_v8, %v13048_v51  ;;  %v4526_v51 = vadd.f32 %v4525_v15, %v13053_v52 }
 0x239   :  { %v4697_v26 = vadd.f32 %v13125_v4, %v4658_v45  ;;  %v4659_v29 = vmul.f32 %v13119_v1, %v4534_v54  ;;  %v13149_v52 = vsel %vm12111_vm14, %v6048_v43, %v6049_v33 }
 0x23a   :  { %v13128_v60 = vadd.f32 %v10535_v32, %v12920_v37  ;;  %v4656_v37 = vmul.f32 %v13119_v1, %v4523_v48  ;;  %v4657_v38 = vmul.f32 %v13119_v1, %v4526_v51 }
 0x23b   :  { %v4729_v23 = vmax.f32 %v4697_v26, 0.0  ;;  %v4698_v8 = vadd.f32 %v13125_v4, %v4659_v29 }
 0x23c   :  { %v10536_v13 = vpop.f32.mrb[24].mxu1  ;;  %v4695_v32 = vadd.f32 %v13125_v4, %v4656_v37  ;;  %v4696_v39 = vadd.f32 %v13125_v4, %v4657_v38 }
 0x23d   :  { %v10537_v14 = vpop.f32.mrb[25].mxu1  ;;  %v10342_v45 = vpack.c.bf16 %v4729_v23, %v4729_v23  ;;  %v4730_v54 = vmax.f32 %v4698_v8, 0.0 }
 0x23e   :  { %v10538_v20 = vadd.f32 %v10537_v14, %v10536_v13  ;;  %v10539_v42 = vpop.f32.mrb[26].mxu1  ;;  %v4727_v62 = vmax.f32 %v4695_v32, 0.0  ;;  %v11102_v13 = vpop.f32.mrb[68].mxu0  ;;  %v4728_v15 = vmax.f32 %v4696_v39, 0.0 }
 0x23f   :  { %v10540_v49 = vpop.f32.mrb[27].mxu1  ;;  %v4547_v6 = vadd.f32 %v11102_v13, %v13094_v30  ;;  %v4538_v2 = vpop.f32.mrb[69].mxu0  ;;  %v4873_v37 = vshrl.u32 %v10342_v45, 16  ;;  %v4876_v51 = vshll.u32 %v10342_v45, 16  ;;  %v10343_v58 = vpack.c.bf16 %v4730_v54, %v4730_v54 }
 0x240   :  { %v10541_v55 = vadd.f32 %v10540_v49, %v10539_v42  ;;  %v13153_v48 = vadd.f32 %v10538_v20, %v12934_v22  ;;  %v10340_v33 = vpack.c.bf16 %v4727_v62, %v4727_v62  ;;  %v4539_v12 = vadd.f32 %v4538_v2, %v13078_v3  ;;  %v11103_v24 = vpop.f32.mrb[70].mxu0  ;;  %v11307_v2 = vld [vmem:[%s14757_s4 + $0x150] sm:$0xff]  }
 0x241   :  { %v4662_v20 = vmul.f32 %v13119_v1, %v4547_v6  ;;  %v13164_v42 = vpop.f32.mrb[71].mxu0  ;;  %v10341_v29 = vpack.c.bf16 %v4728_v15, %v4728_v15  ;;  %v4875_v38 = vrot.slane %v4873_v37, 7  ;;  %v4881_v23 = vshrl.u32 %v10343_v58, 16  ;;  %v5178_v37 = vld [vmem:[#allocation3 + $0xc] sm:$0xf]  ;;  %10844 = vmatprep.subr.bf16.mxu1 %v11307_v2 }
 0x242   :  { %v13158_v43 = vadd.f32 %v10541_v55, %v12943_v44  ;;  %v4856_v26 = vshrl.u32 %v10340_v33, 16  ;;  %v4859_v44 = vshll.u32 %v10340_v33, 16  ;;  %v4660_v49 = vmul.f32 %v13119_v1, %v4539_v12  ;;  %v5187_v55 = vld [vmem:[#allocation3 + $0x18] sm:$0xf]  ;;  %v11310_v33 = vld [vmem:[%s14757_s4 + $0x110] sm:$0xff]  }
 0x243   :  { %v4884_v8 = vshll.u32 %v10343_v58, 16  ;;  %v4864_v45 = vshrl.u32 %v10341_v29, 16  ;;  %v4867_v54 = vshll.u32 %v10341_v29, 16  ;;  %v4701_v6 = vadd.f32 %v13125_v4, %v4662_v20  ;;  %v5191_v22 = vld [vmem:[#allocation3 + $0x20] sm:$0x1]  ;;  %10845 = vmatpush3.bf16.msra.mxu1 %v11310_v33 }
 0x244   :  { %v10542_v14 = vpop.f32.mrb[28].mxu1  ;;  %v4858_v13 = vrot.slane %v4856_v26, 7  ;;  %v4878_v12 = vor.u32 %v4876_v51, %v4875_v38  ;;  %v4883_v58 = vrot.slane %v4881_v23, 7  ;;  %v11106_v20 = vpop.f32.mrb[72].mxu0 }
 0x245   :  { %v10543_v30 = vpop.f32.mrb[29].mxu1  ;;  %v4866_v29 = vrot.slane %v4864_v45, 7  ;;  %v4733_v36 = vmax.f32 %v4701_v6, 0.0 }
 0x246   :  { %v13167_v32 = vadd.f32 %v10543_v30, %v10542_v14  ;;  %v10545_v3 = vpop.f32.mrb[30].mxu1  ;;  %v4879_v14 = vrot.slane %v4875_v38, 4  ;;  %v4861_v30 = vor.u32 %v4859_v44, %v4858_v13  ;;  %v4862_v26 = vrot.slane %v4858_v13, 4 }
 0x247   :  { %v10546_v62 = vpop.f32.mrb[31].mxu1  ;;  %v5188_v59 = vsel %vm13171_vm6, %v4878_v12, %v5187_v55  ;;  %v4886_v25 = vor.u32 %v4884_v8, %v4883_v58  ;;  %v4888_v46 = vrot.slane %v4883_v58, 4  ;;  %v4869_v44 = vor.u32 %v4867_v54, %v4866_v29 }
 0x248   :  { %v13182_v15 = vadd.f32 %v10546_v62, %v10545_v3  ;;  %v4699_v3 = vadd.f32 %v13125_v4, %v4660_v49  ;;  %v4554_v62 = vpop.f32.mrb[73].mxu0  ;;  %5189 = vst [vmem:[#allocation3 + $0x18] sm:$0xf] %v5188_v59  ;;  %v5179_v51 = vsel %vm13171_vm6, %v4861_v30, %v5178_v37  ;;  %v4871_v38 = vrot.slane %v4866_v29, 4  ;;  %v11313_v59 = vld [vmem:[%s14757_s4 + $0x158] sm:$0xff]  }
 0x249   :  { %v10346_v23 = vpack.c.bf16 %v4733_v36, %v4733_v36  ;;  %v11107_v13 = vpop.f32.mrb[74].mxu0  ;;  %5180 = vst [vmem:[#allocation3 + $0xc] sm:$0xf] %v5179_v51  ;;  %v4887_v55 = vsel %vm11472_vm7, %v4879_v14, %v4886_v25  ;;  %v5192_v8 = vsel %vm12890_vm3, %v4888_v46, %v5191_v22  ;;  %v4550_v49 = vadd.f32 %v11103_v24, %v13099_v5  ;;  %v11316_v29 = vld [vmem:[%s14757_s4 + $0x118] sm:$0xff]   ;;  %v5201_v51 = vld [vmem:[#allocation3 + $0x30] sm:$0xf] }
 0x24a   :  { %v4731_v6 = vmax.f32 %v4699_v3, 0.0  ;;  %v4557_v2 = vpop.f32.mrb[75].mxu0  ;;  %5190 = vst [vmem:[#allocation3 + $0x1c] sm:$0xf] %v4887_v55  ;;  %5193 = vst [vmem:[#allocation3 + $0x20] sm:$0x1] %v5192_v8  ;;  %v4870_v36 = vsel %vm11472_vm7, %v4862_v26, %v4869_v44  ;;  %v5185_v25 = vsel %vm12890_vm3, %v4871_v38, %v5184_v10  ;;  %v4542_v14 = vadd.f32 %v13164_v42, %v13088_v31 }
 0x24b   :  { %v4907_v33 = vshrl.u32 %v10346_v23, 16  ;;  %v4910_v12 = vshll.u32 %v10346_v23, 16  ;;  %5181 = vst [vmem:[#allocation3 + $0x10] sm:$0xf] %v4870_v36  ;;  %5186 = vst [vmem:[#allocation3 + $0x14] sm:$0x1] %v5185_v25  ;;  %v4663_v24 = vmul.f32 %v13119_v1, %v4550_v49  ;;  %10846 = vmatprep.subr.bf16.mxu1 %v11313_v59  ;;  %v4563_v30 = vadd.f32 %v11106_v20, %v13114_v61 }
 0x24c   :  { %v10548_v45 = vpop.f32.mrb[32].mxu1  ;;  %v10344_v5 = vpack.c.bf16 %v4731_v6, %v4731_v6  ;;  %v4555_v10 = vadd.f32 %v4554_v62, %v13104_v11  ;;  %v4566_v26 = vadd.f32 %v11107_v13, %v13128_v60  ;;  %v4661_v61 = vmul.f32 %v13119_v1, %v4542_v14  ;;  %v13221_v60 = vpop.f32.mrb[76].mxu0  ;;  %10847 = vmatpush3.bf16.msra.mxu1 %v11316_v29  ;;  %v5194_v6 = vld [vmem:[#allocation3 + $0x24] sm:$0xf] }
 0x24d   :  { %v10549_v54 = vpop.f32.mrb[33].mxu1  ;;  %v13206_v58 = vrot.slane %v4907_v33, 7  ;;  %v4702_v31 = vadd.f32 %v13125_v4, %v4663_v24  ;;  %v4666_v11 = vmul.f32 %v13119_v1, %v4563_v30  ;;  %v13227_v55 = vpop.f32.mrb[77].mxu0 }
 0x24e   :  { %v13201_v46 = vadd.f32 %v10549_v54, %v10548_v45  ;;  %v10551_v22 = vpop.f32.mrb[34].mxu1  ;;  %v4890_v44 = vshrl.u32 %v10344_v5, 16  ;;  %v4893_v38 = vshll.u32 %v10344_v5, 16  ;;  %v4664_v13 = vmul.f32 %v13119_v1, %v4555_v10  ;;  %v13234_v36 = vpop.f32.mrb[78].mxu0 }
 0x24f   :  { %v10552_v37 = vpop.f32.mrb[35].mxu1  ;;  %v4912_v42 = vor.u32 %v4910_v12, %v13206_v58  ;;  %v4913_v23 = vrot.slane %v13206_v58, 4  ;;  %v4734_v62 = vmax.f32 %v4702_v31, 0.0  ;;  %v4667_v45 = vmul.f32 %v13119_v1, %v4566_v26  ;;  %v13239_v24 = vpop.f32.mrb[79].mxu0 }
 0x250   :  { %v13214_v3 = vadd.f32 %v10552_v37, %v10551_v22  ;;  %v13223_v20 = vrot.slane %v4890_v44, 7  ;;  %v4700_v49 = vadd.f32 %v13125_v4, %v4661_v61  ;;  %v4705_v59 = vadd.f32 %v13125_v4, %v4666_v11 }
 0x251   :  { %v5202_v8 = vsel %vm13171_vm6, %v4912_v42, %v5201_v51  ;;  %v4558_v54 = vadd.f32 %v4557_v2, %v13107_v53  ;;  %v10347_v22 = vpack.c.bf16 %v4734_v62, %v4734_v62  ;;  %v4703_v5 = vadd.f32 %v13125_v4, %v4664_v13  ;;  %v11297_v13 = vld [vmem:[#allocation3 + $0x18] sm:$0xff]  }
 0x252   :  { %5203 = vst [vmem:[#allocation3 + $0x30] sm:$0xf] %v5202_v8  ;;  %v4895_v33 = vor.u32 %v4893_v38, %v13223_v20  ;;  %v4896_v12 = vrot.slane %v13223_v20, 4  ;;  %v4732_v37 = vmax.f32 %v4700_v49, 0.0  ;;  %v4737_v30 = vmax.f32 %v4705_v59, 0.0  ;;  %v11295_v2 = vld [vmem:[#allocation3 + $0xc] sm:$0xff]  }
 0x253   :  { %v4706_v10 = vadd.f32 %v13125_v4, %v4667_v45  ;;  %v4665_v53 = vmul.f32 %v13119_v1, %v4558_v54  ;;  %v4915_v44 = vshrl.u32 %v10347_v22, 16  ;;  %v4918_v38 = vshll.u32 %v10347_v22, 16  ;;  %9038 = vmatprep.mubr.bf16.mxu0 %v11295_v2  ;;  %v5205_v49 = vld [vmem:[#allocation3 + $0x38] sm:$0x1] }
 0x254   :  { %v10554_v25 = vpop.f32.mrb[36].mxu1  ;;  %v5195_v51 = vsel %vm13171_vm6, %v4895_v33, %v5194_v6  ;;  %v10345_v42 = vpack.c.bf16 %v4732_v37, %v4732_v37  ;;  %v10350_v61 = vpack.c.bf16 %v4737_v30, %v4737_v30  ;;  %v4735_v11 = vmax.f32 %v4703_v5, 0.0  ;;  %v11320_v30 = vld [vmem:[%s14757_s4 + $0x180] sm:$0xff]  }
 0x255   :  { %v10555_v14 = vpop.f32.mrb[37].mxu1  ;;  %5196 = vst [vmem:[#allocation3 + $0x24] sm:$0xf] %v5195_v51  ;;  %v4738_v62 = vmax.f32 %v4706_v10, 0.0  ;;  %v4917_v8 = vrot.slane %v4915_v44, 7  ;;  %v4704_v59 = vadd.f32 %v13125_v4, %v4665_v53  ;;  %v4418_v54 = vadd.f32 %v13167_v32, %v12956_v47  ;;  %v13258_v37 = vpop.f32.mrb[80].mxu0 }
 0x256   :  { %v13243_v26 = vadd.f32 %v10555_v14, %v10554_v25  ;;  %v10557_v29 = vpop.f32.mrb[38].mxu1  ;;  %v14788_v6 = vcombine.low %v13145_v19, %v13149_v52  ;;  %v11319_v25 = vld [vmem:[%s14757_s4 + $0x1c0] sm:$0xff]   ;;  %v4898_v33 = vshrl.u32 %v10345_v42, 16  ;;  %v4901_v22 = vshll.u32 %v10345_v42, 16  ;;  %v5198_v10 = vld [vmem:[#allocation3 + $0x2c] sm:$0x1] }
 0x257   :  { %v10558_v31 = vpop.f32.mrb[39].mxu1  ;;  %v4941_v5 = vshrl.u32 %v10350_v61, 16  ;;  %v4944_v14 = vshll.u32 %v10350_v61, 16  ;;  %v4920_v47 = vor.u32 %v4918_v38, %v4917_v8  ;;  %v4922_v32 = vrot.slane %v4917_v8, 4  ;;  %v13263_v53 = vpop.f32.mrb[81].mxu0  ;;  %10952 = vmatprep.subr.bf16.mxu0 %v11319_v25 }
 0x258   :  { %v13247_v45 = vadd.f32 %v10558_v31, %v10557_v29  ;;  %9039 = vmatmul.mubr.bf16.vlgmr.msra.gmra.mrb[96].mxu0 %v14788_v6  ;;  %v10348_v19 = vpack.c.bf16 %v4735_v11, %v4735_v11  ;;  %v10351_v52 = vpack.c.bf16 %v4738_v62, %v4738_v62  ;;  %v4900_v2 = vrot.slane %v4898_v33, 7  ;;  %v13266_v31 = vpop.f32.mrb[82].mxu0  ;;  %v5215_v11 = vld [vmem:[#allocation3 + $0x48] sm:$0xf] }
 0x259   :  { %9046 = vmatprep.mubr.bf16.mxu0 %v11297_v13  ;;  %v4943_v29 = vrot.slane %v4941_v5, 7  ;;  %v4736_v51 = vmax.f32 %v4704_v59, 0.0  ;;  %v4579_v44 = vadd.f32 %v13221_v60, %v4418_v54  ;;  %10953 = vmatpush3.bf16.msra.mxu0 %v11320_v30  ;;  %v4921_v38 = vsel %vm11472_vm7, %v4913_v23, %v4920_v47  ;;  %v13274_v8 = vpop.f32.mrb[83].mxu0 }
 0x25a   :  { %v5206_v42 = vsel %vm12890_vm3, %v4922_v32, %v5205_v49  ;;  %v4924_v62 = vshrl.u32 %v10348_v19, 16  ;;  %v4927_v13 = vshll.u32 %v10348_v19, 16  ;;  %5204 = vst [vmem:[#allocation3 + $0x34] sm:$0xf] %v4921_v38  ;;  %v4903_v60 = vor.u32 %v4901_v22, %v4900_v2  ;;  %v5219_v38 = vld [vmem:[#allocation3 + $0x50] sm:$0x1] }
 0x25b   :  { %5207 = vst [vmem:[#allocation3 + $0x38] sm:$0x1] %v5206_v42  ;;  %v4905_v59 = vrot.slane %v4900_v2, 4  ;;  %v4946_v6 = vor.u32 %v4944_v14, %v4943_v29  ;;  %v4947_v25 = vrot.slane %v4943_v29, 4  ;;  %v4949_v5 = vshrl.u32 %v10351_v52, 16  ;;  %v11321_v2 = vld [vmem:[%s14757_s4 + $0x160] sm:$0xff]  }
 0x25c   :  { %v10560_v61 = vpop.f32.mrb[40].mxu1  ;;  %v4926_v23 = vrot.slane %v4924_v62, 7  ;;  %v4952_v30 = vshll.u32 %v10351_v52, 16  ;;  %v4904_v49 = vsel %vm11472_vm7, %v4896_v12, %v4903_v60  ;;  %v5208_v14 = vld [vmem:[#allocation3 + $0x3c] sm:$0xf]  ;;  %v10349_v19 = vpack.c.bf16 %v4736_v51, %v4736_v51  ;;  %10848 = vmatprep.subr.bf16.mxu1 %v11321_v2  ;;  %v11324_v62 = vld [vmem:[%s14757_s4 + $0x120] sm:$0xff]  }
 0x25d   :  { %v10561_v54 = vpop.f32.mrb[41].mxu1  ;;  %v5199_v47 = vsel %vm12890_vm3, %v4905_v59, %v5198_v10  ;;  %v5216_v22 = vsel %vm13171_vm6, %v4946_v6, %v5215_v11  ;;  %5197 = vst [vmem:[#allocation3 + $0x28] sm:$0xf] %v4904_v49  ;;  %v4951_v29 = vrot.slane %v4949_v5, 7  ;;  %v4571_v51 = vadd.f32 %v13227_v55, %v13153_v48  ;;  %v13294_v11 = vpop.f32.mrb[84].mxu0  ;;  %10849 = vmatpush3.bf16.msra.mxu1 %v11324_v62 }
 0x25e   :  { %v13276_v58 = vadd.f32 %v10561_v54, %v10560_v61  ;;  %v10563_v33 = vpop.f32.mrb[42].mxu1  ;;  %5200 = vst [vmem:[#allocation3 + $0x2c] sm:$0x1] %v5199_v47  ;;  %5217 = vst [vmem:[#allocation3 + $0x48] sm:$0xf] %v5216_v22  ;;  %v4929_v52 = vor.u32 %v4927_v13, %v4926_v23  ;;  %v4930_v12 = vrot.slane %v4926_v23, 4  ;;  %v4670_v61 = vmul.f32 %v13119_v1, %v4579_v44 }
 0x25f   :  { %v10564_v32 = vpop.f32.mrb[43].mxu1  ;;  %v4932_v10 = vshrl.u32 %v10349_v19, 16  ;;  %v4935_v42 = vshll.u32 %v10349_v19, 16  ;;  %v4954_v60 = vor.u32 %v4952_v30, %v4951_v29  ;;  %v4956_v59 = vrot.slane %v4951_v29, 4  ;;  %v13303_v6 = vpop.f32.mrb[85].mxu0 }
 0x260   :  { %v13289_v20 = vadd.f32 %v10564_v32, %v10563_v33  ;;  %v5209_v13 = vsel %vm13171_vm6, %v4929_v52, %v5208_v14  ;;  %v4421_v54 = vadd.f32 %v13182_v15, %v12963_v16  ;;  %v4709_v48 = vadd.f32 %v13125_v4, %v4670_v61  ;;  %v13309_v23 = vpop.f32.mrb[86].mxu0  ;;  %v5212_v15 = vld [vmem:[#allocation3 + $0x44] sm:$0x1] }
 0x261   :  { %5210 = vst [vmem:[#allocation3 + $0x3c] sm:$0xf] %v5209_v13  ;;  %v4934_v44 = vrot.slane %v4932_v10, 7  ;;  %v4668_v55 = vmul.f32 %v13119_v1, %v4571_v51  ;;  %v4574_v33 = vadd.f32 %v13239_v24, %v13158_v43  ;;  %v4955_v5 = vsel %vm11472_vm7, %v4947_v25, %v4954_v60  ;;  %v13318_v22 = vpop.f32.mrb[87].mxu0 }
 0x262   :  { %v5220_v16 = vsel %vm12890_vm3, %v4956_v59, %v5219_v38  ;;  %v4582_v49 = vadd.f32 %v13234_v36, %v4421_v54  ;;  %v4434_v47 = vadd.f32 %v13243_v26, %v12991_v57  ;;  %5218 = vst [vmem:[#allocation3 + $0x4c] sm:$0xf] %v4955_v5  ;;  %v4741_v14 = vmax.f32 %v4709_v48, 0.0  ;;  %v11327_v5 = vld [vmem:[%s14757_s4 + $0x1c8] sm:$0xff]  }
 0x263   :  { %5221 = vst [vmem:[#allocation3 + $0x50] sm:$0x1] %v5220_v16  ;;  %v4937_v43 = vor.u32 %v4935_v42, %v4934_v44  ;;  %v4939_v24 = vrot.slane %v4934_v44, 4  ;;  %v4707_v25 = vadd.f32 %v13125_v4, %v4668_v55  ;;  %v4669_v36 = vmul.f32 %v13119_v1, %v4574_v33  ;;  %10954 = vmatprep.subr.bf16.mxu0 %v11327_v5 }
 0x264   :  { %v10566_v30 = vpop.f32.mrb[44].mxu1  ;;  %v4671_v52 = vmul.f32 %v13119_v1, %v4582_v49  ;;  %v4595_v29 = vadd.f32 %v13258_v37, %v4434_v47  ;;  %v10354_v38 = vpack.c.bf16 %v4741_v14, %v4741_v14  ;;  %v4437_v55 = vadd.f32 %v13247_v45, %v12998_v18 }
 0x265   :  { %v10567_v32 = vpop.f32.mrb[45].mxu1  ;;  %v4938_v57 = vsel %vm11472_vm7, %v4930_v12, %v4937_v43  ;;  %v5213_v26 = vsel %vm12890_vm3, %v4939_v24, %v5212_v15  ;;  %v4739_v42 = vmax.f32 %v4707_v25, 0.0  ;;  %v4708_v62 = vadd.f32 %v13125_v4, %v4669_v36  ;;  %v13340_v33 = vpop.f32.mrb[88].mxu0 }
 0x266   :  { %v13321_v19 = vadd.f32 %v10567_v32, %v10566_v30  ;;  %v10569_v2 = vpop.f32.mrb[46].mxu1  ;;  %5211 = vst [vmem:[#allocation3 + $0x40] sm:$0xf] %v4938_v57  ;;  %5214 = vst [vmem:[#allocation3 + $0x44] sm:$0x1] %v5213_v26  ;;  %v4710_v51 = vadd.f32 %v13125_v4, %v4671_v52  ;;  %v4674_v13 = vmul.f32 %v13119_v1, %v4595_v29  ;;  %v4975_v37 = vshrl.u32 %v10354_v38, 16 }
 0x267   :  { %v10570_v10 = vpop.f32.mrb[47].mxu1  ;;  %v4978_v60 = vshll.u32 %v10354_v38, 16  ;;  %v10352_v59 = vpack.c.bf16 %v4739_v42, %v4739_v42  ;;  %v4426_v12 = vadd.f32 %v13201_v46, %v12983_v50  ;;  %v4740_v44 = vmax.f32 %v4708_v62, 0.0  ;;  %v13346_v47 = vpop.f32.mrb[89].mxu0  ;;  %v5229_v50 = vld [vmem:[#allocation3 + $0x60] sm:$0xf] }
 0x268   :  { %v13330_v61 = vadd.f32 %v10570_v10, %v10569_v2  ;;  %v4742_v54 = vmax.f32 %v4710_v51, 0.0  ;;  %v4713_v48 = vadd.f32 %v13125_v4, %v4674_v13  ;;  %v4977_v16 = vrot.slane %v4975_v37, 7  ;;  %v13349_v45 = vpop.f32.mrb[90].mxu0  ;;  %v5222_v52 = vld [vmem:[#allocation3 + $0x54] sm:$0xf] }
 0x269   :  { %v4958_v15 = vshrl.u32 %v10352_v59, 16  ;;  %v4961_v30 = vshll.u32 %v10352_v59, 16  ;;  %v4587_v49 = vadd.f32 %v13263_v53, %v4426_v12  ;;  %v10353_v43 = vpack.c.bf16 %v4740_v44, %v4740_v44  ;;  %v13352_v53 = vpop.f32.mrb[91].mxu0  ;;  %v5233_v13 = vld [vmem:[#allocation3 + $0x68] sm:$0x1] }
 0x26a   :  { %v10355_v46 = vpack.c.bf16 %v4742_v54, %v4742_v54  ;;  %v4745_v32 = vmax.f32 %v4713_v48, 0.0  ;;  %v4598_v18 = vadd.f32 %v13266_v31, %v4437_v55  ;;  %v4980_v14 = vor.u32 %v4978_v60, %v4977_v16  ;;  %v5226_v54 = vld [vmem:[#allocation3 + $0x5c] sm:$0x1] }
 0x26b   :  { %v4981_v25 = vrot.slane %v4977_v16, 4  ;;  %v4960_v2 = vrot.slane %v4958_v15, 7  ;;  %v4672_v29 = vmul.f32 %v13119_v1, %v4587_v49  ;;  %v4966_v38 = vshrl.u32 %v10353_v43, 16 }
 0x26c   :  { %v10572_v24 = vpop.f32.mrb[48].mxu1  ;;  %v4983_v57 = vshrl.u32 %v10355_v46, 16  ;;  %v4986_v26 = vshll.u32 %v10355_v46, 16  ;;  %v4969_v10 = vshll.u32 %v10353_v43, 16  ;;  %v5230_v31 = vsel %vm13171_vm6, %v4980_v14, %v5229_v50 }
 0x26d   :  { %v10573_v36 = vpop.f32.mrb[49].mxu1  ;;  %v4963_v51 = vor.u32 %v4961_v30, %v4960_v2  ;;  %v4964_v62 = vrot.slane %v4960_v2, 4  ;;  %5231 = vst [vmem:[#allocation3 + $0x60] sm:$0xf] %v5230_v31  ;;  %v4968_v12 = vrot.slane %v4966_v38, 7  ;;  %v10358_v44 = vpack.c.bf16 %v4745_v32, %v4745_v32  ;;  %v13366_v43 = vpop.f32.mrb[92].mxu0 }
 0x26e   :  { %v10575_v42 = vpop.f32.mrb[50].mxu1  ;;  %v13356_v37 = vadd.f32 %v10573_v36, %v10572_v24  ;;  %v4985_v59 = vrot.slane %v4983_v57, 7  ;;  %v4711_v5 = vadd.f32 %v13125_v4, %v4672_v29  ;;  %v4675_v16 = vmul.f32 %v13119_v1, %v4598_v18  ;;  %v11328_v24 = vld [vmem:[%s14757_s4 + $0x188] sm:$0xff]   ;;  %v5439_v18 = vld [vmem:[#allocation3 + $0xc] sm:$0xf]  ;;  %v13372_v36 = vpop.f32.mrb[93].mxu0 }
 0x26f   :  { %v10576_v60 = vpop.f32.mrb[51].mxu1  ;;  %v5223_v55 = vsel %vm13171_vm6, %v4963_v51, %v5222_v52  ;;  %v4429_v15 = vadd.f32 %v13214_v3, %v12987_v56  ;;  %v4971_v50 = vor.u32 %v4969_v10, %v4968_v12  ;;  %v4973_v46 = vrot.slane %v4968_v12, 4  ;;  %v13382_v38 = vpop.f32.mrb[94].mxu0  ;;  %10955 = vmatpush3.bf16.msra.mxu0 %v11328_v24 }
 0x270   :  { %v13358_v48 = vadd.f32 %v10576_v60, %v10575_v42  ;;  %5224 = vst [vmem:[#allocation3 + $0x54] sm:$0xf] %v5223_v55  ;;  %v4988_v30 = vor.u32 %v4986_v26, %v4985_v59  ;;  %v4990_v49 = vrot.slane %v4985_v59, 4  ;;  %v5009_v32 = vshrl.u32 %v10358_v44, 16 }
 0x271   :  { %v5012_v14 = vshll.u32 %v10358_v44, 16  ;;  %v4743_v2 = vmax.f32 %v4711_v5, 0.0  ;;  %v4714_v52 = vadd.f32 %v13125_v4, %v4675_v16  ;;  %v4972_v29 = vsel %vm11472_vm7, %v4964_v62, %v4971_v50  ;;  %v13387_v62 = vpop.f32.mrb[95].mxu0  ;;  %v11329_v5 = vld [vmem:[%s14757_s4 + $0x168] sm:$0xff]   ;;  %v5236_v50 = vld [vmem:[#allocation3 + $0x84] sm:$0xf] }
 0x272   :  { %v4989_v56 = vsel %vm11472_vm7, %v4981_v25, %v4988_v30  ;;  %v5234_v3 = vsel %vm12890_vm3, %v4990_v49, %v5233_v13  ;;  %v5227_v57 = vsel %vm12890_vm3, %v4973_v46, %v5226_v54  ;;  %5225 = vst [vmem:[#allocation3 + $0x58] sm:$0xf] %v4972_v29  ;;  %v13384_v10 = vrot.slane %v5009_v32, 7  ;;  %v5243_v25 = vld [vmem:[#allocation3 + $0x90] sm:$0xf]  ;;  %10850 = vmatprep.subr.bf16.mxu1 %v11329_v5  ;;  %v11332_v32 = vld [vmem:[%s14757_s4 + $0x128] sm:$0xff]  }
 0x273   :  { %5232 = vst [vmem:[#allocation3 + $0x64] sm:$0xf] %v4989_v56  ;;  %5235 = vst [vmem:[#allocation3 + $0x68] sm:$0x1] %v5234_v3  ;;  %v10356_v42 = vpack.c.bf16 %v4743_v2, %v4743_v2  ;;  %v4746_v31 = vmax.f32 %v4714_v52, 0.0  ;;  %v4590_v51 = vadd.f32 %v13274_v8, %v4429_v15  ;;  %v4450_v12 = vadd.f32 %v13321_v19, %v13026_v63  ;;  %v11335_v56 = vld [vmem:[%s14757_s4 + $0x1d0] sm:$0xff]  }
 0x274   :  { %v10578_v26 = vpop.f32.mrb[52].mxu1  ;;  %5228 = vst [vmem:[#allocation3 + $0x5c] sm:$0x1] %v5227_v57  ;;  %v5440_v54 = vld [vmem:[#allocation3 + $0x10] sm:$0xf]  ;;  %v5509_v44 = vshrl.u32 %v5439_v18, 16  ;;  %v5014_v16 = vor.u32 %v5012_v14, %v13384_v10  ;;  %10851 = vmatpush3.bf16.msra.mxu1 %v11332_v32  ;;  %10956 = vmatprep.subr.bf16.mxu0 %v11335_v56 }
 0x275   :  { %v10579_v13 = vpop.f32.mrb[53].mxu1  ;;  %v5512_v55 = vshll.u32 %v5439_v18, 16  ;;  %v5015_v8 = vrot.slane %v13384_v10, 4  ;;  %v4992_v15 = vshrl.u32 %v10356_v42, 16  ;;  %v4995_v30 = vshll.u32 %v10356_v42, 16 }
 0x276   :  { %v13389_v60 = vadd.f32 %v10579_v13, %v10578_v26  ;;  %v13391_v59 = vpop.f32.mrb[54].mxu1  ;;  %v10359_v46 = vpack.c.bf16 %v4746_v31, %v4746_v31  ;;  %v4673_v24 = vmul.f32 %v13119_v1, %v4590_v51  ;;  %v4611_v63 = vadd.f32 %v13294_v11, %v4450_v12  ;;  %v5441_v26 = vld [vmem:[#allocation3 + $0x14] sm:$0x1]  ;;  %v5951_v10 = vld [vmem:[#allocation3 + $0xc] sm:$0xe] }
 0x277   :  { %v10582_v49 = vpop.f32.mrb[55].mxu1  ;;  %v5511_v19 = vrot.slane %v5509_v44, 4  ;;  %v5244_v14 = vsel %vm13171_vm6, %v5014_v16, %v5243_v25  ;;  %v13407_v2 = vrot.slane %v4992_v15, 7  ;;  %v5514_v52 = vrot.slane %v5512_v55, 5  ;;  %v5247_v31 = vld [vmem:[#allocation3 + $0x98] sm:$0x1] }
 0x278   :  { %v5518_v18 = vshll.u32 %v5440_v54, 16  ;;  %5245 = vst [vmem:[#allocation3 + $0x90] sm:$0xf] %v5244_v14  ;;  %v5017_v3 = vshrl.u32 %v10359_v46, 16  ;;  %v5020_v11 = vshll.u32 %v10359_v46, 16  ;;  %v4712_v29 = vadd.f32 %v13125_v4, %v4673_v24 }
 0x279   :  { %v4678_v57 = vmul.f32 %v13119_v1, %v4611_v63  ;;  %v4997_v25 = vor.u32 %v4995_v30, %v13407_v2  ;;  %v4998_v42 = vrot.slane %v13407_v2, 4  ;;  %v5515_v51 = vor.u32 %v5514_v52, %v5511_v19  ;;  %v5952_v12 = vld [vmem:[#allocation3 + $0x10] sm:$0xf]  ;;  %v5953_v63 = vld [vmem:[#allocation3 + $0x14] sm:$0x1] }
 0x27a   :  { %v13416_v13 = vrot.slane %v5518_v18, 5  ;;  %v5019_v44 = vrot.slane %v5017_v3, 7  ;;  %v4744_v55 = vmax.f32 %v4712_v29, 0.0  ;;  %v5522_v16 = vshrl.u32 %v5440_v54, 16  ;;  %v11299_v2 = vld [vmem:[#allocation3 + $0xc] sm:$0xff]  }
 0x27b   :  { %v4717_v5 = vadd.f32 %v13125_v4, %v4678_v57  ;;  %v5237_v15 = vsel %vm13171_vm6, %v4997_v25, %v5236_v50  ;;  %v5516_v46 = vrot.slane %v5515_v51, 4  ;;  %v5528_v24 = vshll.u32 %v5441_v26, 16 }
 0x27c   :  { %v10107_v30 = vrot.slane %v5951_v10, 9  ;;  %5238 = vst [vmem:[#allocation3 + $0x84] sm:$0xf] %v5237_v15  ;;  %v5022_v32 = vor.u32 %v5020_v11, %v5019_v44  ;;  %v5024_v14 = vrot.slane %v5019_v44, 4  ;;  %v10357_v19 = vpack.c.bf16 %v4744_v55, %v4744_v55  ;;  %v11336_v11 = vld [vmem:[%s14757_s4 + $0x190] sm:$0xff]  }
 0x27d   :  { %v4749_v52 = vmax.f32 %v4717_v5, 0.0  ;;  %v5521_v18 = vsel %vm11550_vm11, %v5516_v46, %v13416_v13  ;;  %v5524_v56 = vrot.slane %v5522_v16, 4  ;;  %v5530_v3 = vrot.slane %v5528_v24, 5  ;;  %10957 = vmatpush3.bf16.msra.mxu0 %v11336_v11  ;;  %v5240_v46 = vld [vmem:[#allocation3 + $0x8c] sm:$0x1] }
 0x27e   :  { %v6053_v29 = vrot.slane %v5952_v12, 5  ;;  %v5023_v54 = vsel %vm11472_vm7, %v5015_v8, %v5022_v32  ;;  %v5248_v50 = vsel %vm12890_vm3, %v5024_v14, %v5247_v31  ;;  %v5000_v57 = vshrl.u32 %v10357_v19, 16 }
 0x27f   :  { %v5003_v26 = vshll.u32 %v10357_v19, 16  ;;  %5246 = vst [vmem:[#allocation3 + $0x94] sm:$0xf] %v5023_v54  ;;  %5249 = vst [vmem:[#allocation3 + $0x98] sm:$0x1] %v5248_v50  ;;  %v10362_v25 = vpack.c.bf16 %v4749_v52, %v4749_v52  ;;  %v5525_v51 = vor.u32 %v5524_v56, %v13416_v13  ;;  %v6056_v55 = vrot.slane %v5953_v63, 5 }
 0x280   :  { %v13428_v10 = vpop.f32.mrb[56].mxu1  ;;  %v6054_v12 = vsel %vm12111_vm14, %v10107_v30, %v6053_v29  ;;  %v6055_v8 = vrot.slane %v6053_v29, 4  ;;  %v5002_v31 = vrot.slane %v5000_v57, 7  ;;  %v13439_v5 = vadd.f32 %v10582_v49, %v13391_v59  ;;  %v11337_v13 = vld [vmem:[%s14757_s4 + $0x170] sm:$0xff]   ;;  %v5257_v19 = vld [vmem:[#allocation3 + $0xa8] sm:$0xf] }
 0x281   :  { %v13436_v44 = vpop.f32.mrb[57].mxu1  ;;  %v4442_v16 = vadd.f32 %v13276_v58, %v13015_v41  ;;  %v5043_v24 = vshrl.u32 %v10362_v25, 16  ;;  %v5046_v30 = vshll.u32 %v10362_v25, 16  ;;  %v5526_v32 = vrot.slane %v5525_v51, 4  ;;  %v5442_v52 = vld [vmem:[#allocation3 + $0x18] sm:$0xf]  ;;  %10852 = vmatprep.subr.bf16.mxu1 %v11337_v13 }
 0x282   :  { %v13443_v15 = vpop.f32.mrb[58].mxu1  ;;  %v4453_v63 = vadd.f32 %v13330_v61, %v13037_v7  ;;  %v5005_v59 = vor.u32 %v5003_v26, %v5002_v31  ;;  %v5007_v49 = vrot.slane %v5002_v31, 4  ;;  %v6057_v41 = vsel %vm12111_vm14, %v6055_v8, %v6056_v55  ;;  %v5443_v56 = vld [vmem:[#allocation3 + $0x1c] sm:$0xf]  ;;  %v11340_v29 = vld [vmem:[%s14757_s4 + $0x130] sm:$0xff]  }
 0x283   :  { %v13450_v14 = vpop.f32.mrb[59].mxu1  ;;  %v4603_v58 = vadd.f32 %v13303_v6, %v4442_v16  ;;  %v13458_v54 = vrot.slane %v5043_v24, 7  ;;  %v5531_v7 = vsel %vm11550_vm11, %v5526_v32, %v5530_v3  ;;  %v10123_v61 = vcombine.low %v6054_v12, %v6057_v41  ;;  %v11300_v25 = vld [vmem:[#allocation3 + $0x24] sm:$0xff]   ;;  %v5444_v51 = vld [vmem:[#allocation3 + $0x20] sm:$0x1]  ;;  %10853 = vmatpush3.bf16.msra.mxu1 %v11340_v29 }
 0x284   :  { %v4614_v50 = vadd.f32 %v13309_v23, %v4453_v63  ;;  %v5006_v6 = vsel %vm11472_vm7, %v4998_v42, %v5005_v59  ;;  %v5241_v57 = vsel %vm12890_vm3, %v5007_v49, %v5240_v46  ;;  %v10091_v26 = vcombine.low %v5521_v18, %v5531_v7  ;;  %v5954_v16 = vld [vmem:[#allocation3 + $0x18] sm:$0xe]  ;;  %v5955_v13 = vld [vmem:[#allocation3 + $0x1c] sm:$0xf] }
 0x285   :  { %v4676_v11 = vmul.f32 %v13119_v1, %v4603_v58  ;;  %5239 = vst [vmem:[#allocation3 + $0x88] sm:$0xf] %v5006_v6  ;;  %5242 = vst [vmem:[#allocation3 + $0x8c] sm:$0x1] %v5241_v57  ;;  %v5048_v3 = vor.u32 %v5046_v30, %v13458_v54  ;;  %v5049_v23 = vrot.slane %v13458_v54, 4  ;;  %9047 = vmatmul.mubr.bf16.gmra.mrb[100].mxu0 %v10123_v61  ;;  %v5533_v42 = vshrl.u32 %v5442_v52, 16 }
 0x286   :  { %v4679_v12 = vmul.f32 %v13119_v1, %v4614_v50  ;;  %8885 = vmatprep.mubr.bf16.mxu1 %v10091_v26  ;;  %9054 = vmatprep.mubr.bf16.mxu0 %v11300_v25  ;;  %v5536_v18 = vshll.u32 %v5442_v52, 16  ;;  %v5542_v31 = vshll.u32 %v5443_v56, 16  ;;  %v5546_v55 = vshrl.u32 %v5443_v56, 16  ;;  %v13481_v1 = vld [vmem:[%s14759_s3] ss:$0 sm:$0xff]  ;;  %v11343_v50 = vld [vmem:[%s14757_s4 + $0x1d8] sm:$0xff]  }
 0x287   :  { %v4715_v8 = vadd.f32 %v13125_v4, %v4676_v11  ;;  %v5258_v24 = vsel %vm13171_vm6, %v5048_v3, %v5257_v19  ;;  %8886 = vmatmul.mubr.bf16.gmra.mrb[68].mxu1 %v11299_v2  ;;  %v5535_v4 = vrot.slane %v5533_v42, 4  ;;  %v5552_v32 = vshll.u32 %v5444_v51, 16  ;;  %10958 = vmatprep.subr.bf16.mxu0 %v11343_v50  ;;  %v11346_v50 = vld [vmem:[%s14757_s4 + $0x1e0] sm:$0xff]  }
 0x288   :  { %v13474_v46 = vpop.f32.mrb[60].mxu1  ;;  %v4718_v30 = vadd.f32 %v13481_v1, %v4679_v12  ;;  %5259 = vst [vmem:[#allocation3 + $0xa8] sm:$0xf] %v5258_v24  ;;  %v5538_v49 = vrot.slane %v5536_v18, 5  ;;  %v5544_v41 = vrot.slane %v5542_v31, 5  ;;  %v5548_v58 = vrot.slane %v5546_v55, 4 }
 0x289   :  { %v13484_v63 = vpop.f32.mrb[61].mxu1  ;;  %v4747_v59 = vmax.f32 %v4715_v8, 0.0  ;;  %v5554_v56 = vrot.slane %v5552_v32, 5  ;;  %v4445_v29 = vadd.f32 %v13289_v20, %v13019_v40  ;;  %v13492_v7 = vadd.f32 %v13436_v44, %v13428_v10  ;;  %v13505_v8 = vld [vmem:[%s14758_s2] ss:$0 sm:$0xff]  ;;  %v11344_v24 = vld [vmem:[%s14757_s4 + $0x198] sm:$0xff]  }
 0x28a   :  { %v13486_v52 = vpop.f32.mrb[62].mxu1  ;;  %v4750_v19 = vmax.f32 %v4718_v30, 0.0  ;;  %v5539_v57 = vor.u32 %v5538_v49, %v5535_v4  ;;  %v5549_v26 = vor.u32 %v5548_v58, %v5544_v41  ;;  %v4466_v11 = vadd.f32 %v13389_v60, %v13055_v17  ;;  %v5956_v60 = vld [vmem:[#allocation3 + $0x20] sm:$0x1]  ;;  %v5250_v31 = vld [vmem:[#allocation3 + $0x9c] sm:$0xf]  ;;  %10959 = vmatpush3.bf16.msra.mxu0 %v11344_v24 }
 0x28b   :  { %v13494_v61 = vpop.f32.mrb[63].mxu1  ;;  %v10360_v6 = vpack.c.bf16 %v4747_v59, %v4747_v59  ;;  %v4606_v51 = vadd.f32 %v13318_v22, %v4445_v29  ;;  %v10108_v40 = vrot.slane %v5954_v16, 9  ;;  %v6060_v20 = vrot.slane %v5955_v13, 5  ;;  %v5261_v4 = vld [vmem:[#allocation3 + $0xb0] sm:$0x1]  ;;  %v11345_v49 = vld [vmem:[%s14757_s4 + $0x178] sm:$0xff]   ;;  %10960 = vmatprep.subr.bf16.mxu0 %v11346_v50 }
 0x28c   :  { %v10363_v25 = vpack.c.bf16 %v4750_v19, %v4750_v19  ;;  %v5540_v3 = vrot.slane %v5539_v57, 4  ;;  %v5550_v2 = vrot.slane %v5549_v26, 4  ;;  %v4627_v17 = vadd.f32 %v13340_v33, %v4466_v11  ;;  %v11302_v29 = vld [vmem:[#allocation3 + $0x18] sm:$0xff]   ;;  %10854 = vmatprep.subr.bf16.mxu1 %v11345_v49  ;;  %v5254_v49 = vld [vmem:[#allocation3 + $0xa4] sm:$0x1] }
 0x28d   :  { %v5026_v10 = vshrl.u32 %v10360_v6, 16  ;;  %v5029_v44 = vshll.u32 %v10360_v6, 16  ;;  %v4677_v18 = vmul.f32 %v13505_v8, %v4606_v51  ;;  %v6061_v13 = vsel %vm12111_vm14, %v10108_v40, %v6060_v20 }
 0x28e   :  { %v5051_v12 = vshrl.u32 %v10363_v25, 16  ;;  %v5054_v42 = vshll.u32 %v10363_v25, 16  ;;  %v5545_v55 = vsel %vm11550_vm11, %v5540_v3, %v5544_v41  ;;  %v5555_v16 = vsel %vm11550_vm11, %v5550_v2, %v5554_v56  ;;  %v5445_v25 = vld [vmem:[#allocation3 + $0x24] sm:$0xf] }
 0x28f   :  { %v13509_v22 = vrot.slane %v5026_v10, 7  ;;  %v10092_v33 = vcombine.low %v5545_v55, %v5555_v16  ;;  %v4716_v32 = vadd.f32 %v13481_v1, %v4677_v18  ;;  %v4682_v59 = vmul.f32 %v13505_v8, %v4627_v17  ;;  %v11351_v16 = vld [vmem:[%s14757_s4 + $0x1e8] sm:$0xff]  }
 0x290   :  { %v5053_v30 = vrot.slane %v5051_v12, 7  ;;  %v6062_v19 = vrot.slane %v6060_v20, 4  ;;  %v6063_v56 = vrot.slane %v5956_v60, 5  ;;  %v13537_v20 = vadd.f32 %v13450_v14, %v13443_v15  ;;  %v11349_v15 = vld [vmem:[%s14757_s4 + $0x138] sm:$0xff]  }
 0x291   :  { %v5031_v41 = vor.u32 %v5029_v44, %v13509_v22  ;;  %v5032_v58 = vrot.slane %v13509_v22, 4  ;;  %8893 = vmatprep.mubr.bf16.mxu1 %v10092_v33  ;;  %v4748_v26 = vmax.f32 %v4716_v32, 0.0  ;;  %v4721_v11 = vadd.f32 %v13481_v1, %v4682_v59  ;;  %10855 = vmatpush3.bf16.msra.mxu1 %v11349_v15  ;;  %v11352_v59 = vld [vmem:[%s14757_s4 + $0x1a8] sm:$0xff]   ;;  %v11355_v15 = vld [vmem:[%s14757_s4 + $0x1b0] sm:$0xff]  }
 0x292   :  { %v5056_v6 = vor.u32 %v5054_v42, %v5053_v30  ;;  %v5058_v57 = vrot.slane %v5053_v30, 4  ;;  %v6064_v40 = vsel %vm12111_vm14, %v6062_v19, %v6063_v56  ;;  %v4458_v10 = vadd.f32 %v13356_v37, %v13041_v27  ;;  %8894 = vmatmul.mubr.bf16.gmra.mrb[72].mxu1 %v11302_v29  ;;  %v5446_v42 = vld [vmem:[#allocation3 + $0x28] sm:$0xf]  ;;  %v11353_v29 = vld [vmem:[%s14757_s4 + $0x1f0] sm:$0xff]  }
 0x293   :  { %v5251_v51 = vsel %vm13171_vm6, %v5031_v41, %v5250_v31  ;;  %v10361_v2 = vpack.c.bf16 %v4748_v26, %v4748_v26  ;;  %v4753_v12 = vmax.f32 %v4721_v11, 0.0  ;;  %v10124_v27 = vcombine.low %v6061_v13, %v6064_v40  ;;  %v11303_v31 = vld [vmem:[#allocation3 + $0x30] sm:$0xff]   ;;  %v5271_v26 = vld [vmem:[#allocation3 + $0xc0] sm:$0xf] }
 0x294   :  { %5252 = vst [vmem:[#allocation3 + $0x9c] sm:$0xf] %v5251_v51  ;;  %v5057_v44 = vsel %vm11472_vm7, %v5049_v23, %v5056_v6  ;;  %v5262_v3 = vsel %vm12890_vm3, %v5058_v57, %v5261_v4  ;;  %v4619_v37 = vadd.f32 %v13346_v47, %v4458_v10  ;;  %v4469_v14 = vadd.f32 %v13439_v5, %v13057_v9  ;;  %v11350_v23 = vld [vmem:[%s14757_s4 + $0x1a0] sm:$0xff]   ;;  %v5447_v5 = vld [vmem:[#allocation3 + $0x2c] sm:$0x1] }
 0x295   :  { %5260 = vst [vmem:[#allocation3 + $0xac] sm:$0xf] %v5057_v44  ;;  %5263 = vst [vmem:[#allocation3 + $0xb0] sm:$0x1] %v5262_v3  ;;  %v5557_v54 = vshrl.u32 %v5445_v25, 16  ;;  %v5034_v18 = vshrl.u32 %v10361_v2, 16  ;;  %v10366_v60 = vpack.c.bf16 %v4753_v12, %v4753_v12  ;;  %9055 = vmatmul.mubr.bf16.gmra.mrb[104].mxu0 %v10124_v27 }
 0x296   :  { %v5037_v17 = vshll.u32 %v10361_v2, 16  ;;  %v5560_v55 = vshll.u32 %v5445_v25, 16  ;;  %v4680_v47 = vmul.f32 %v13505_v8, %v4619_v37  ;;  %v4630_v9 = vadd.f32 %v13349_v45, %v4469_v14  ;;  %9062 = vmatprep.mubr.bf16.mxu0 %v11303_v31  ;;  %10961 = vmatpush3.bf16.msra.mxu0 %v11350_v23 }
 0x297   :  { %v5559_v13 = vrot.slane %v5557_v54, 4  ;;  %v5566_v24 = vshll.u32 %v5446_v42, 16  ;;  %v5036_v30 = vrot.slane %v5034_v18, 7  ;;  %v5077_v4 = vshrl.u32 %v10366_v60, 16  ;;  %10962 = vmatprep.subr.bf16.mxu0 %v11351_v16 }
 0x298   :  { %v5080_v33 = vshll.u32 %v10366_v60, 16  ;;  %v5562_v32 = vrot.slane %v5560_v55, 5  ;;  %v4719_v41 = vadd.f32 %v13481_v1, %v4680_v47  ;;  %v4683_v19 = vmul.f32 %v13505_v8, %v4630_v9  ;;  %v5958_v60 = vld [vmem:[#allocation3 + $0x28] sm:$0xf]  ;;  %v5959_v9 = vld [vmem:[#allocation3 + $0x2c] sm:$0x1] }
 0x299   :  { %v5568_v56 = vrot.slane %v5566_v24, 5  ;;  %v5570_v45 = vshrl.u32 %v5446_v42, 16  ;;  %v5039_v50 = vor.u32 %v5037_v17, %v5036_v30  ;;  %v5041_v6 = vrot.slane %v5036_v30, 4  ;;  %v5957_v42 = vld [vmem:[#allocation3 + $0x24] sm:$0xe]  ;;  %v14789_v24 = vld [vmem:[#allocation9_spill] sm:$0xff] }
 0x29a   :  { %v13569_v57 = vrot.slane %v5077_v4, 7  ;;  %v5563_v11 = vor.u32 %v5562_v32, %v5559_v13  ;;  %v4751_v25 = vmax.f32 %v4719_v41, 0.0  ;;  %v4722_v51 = vadd.f32 %v13481_v1, %v4683_v19  ;;  %10963 = vmatpush3.bf16.msra.mxu0 %v11352_v59  ;;  %v5264_v59 = vld [vmem:[#allocation3 + $0xb4] sm:$0xf] }
 0x29b   :  { %v5572_v40 = vrot.slane %v5570_v45, 4  ;;  %v5576_v10 = vshll.u32 %v5447_v5, 16  ;;  %v5040_v44 = vsel %vm11472_vm7, %v5032_v58, %v5039_v50  ;;  %v5255_v3 = vsel %vm12890_vm3, %v5041_v6, %v5254_v49  ;;  %10964 = vmatprep.subr.bf16.mxu0 %v11353_v29  ;;  %v11356_v58 = vld [vmem:[%s14757_s4 + $0x1f8] sm:$0xff]  }
 0x29c   :  { %v5082_v2 = vor.u32 %v5080_v33, %v13569_v57  ;;  %v5083_v12 = vrot.slane %v13569_v57, 4  ;;  %5253 = vst [vmem:[#allocation3 + $0xa0] sm:$0xf] %v5040_v44  ;;  %5256 = vst [vmem:[#allocation3 + $0xa4] sm:$0x1] %v5255_v3  ;;  %v10364_v27 = vpack.c.bf16 %v4751_v25, %v4751_v25  ;;  %v4754_v22 = vmax.f32 %v4722_v51, 0.0 }
 0x29d   :  { %v5564_v37 = vrot.slane %v5563_v11, 4  ;;  %v5573_v14 = vor.u32 %v5572_v40, %v5568_v56  ;;  %v5578_v23 = vrot.slane %v5576_v10, 5  ;;  %v4461_v18 = vadd.f32 %v13358_v48, %v13045_v0  ;;  %v11357_v0 = vld [vmem:[%s14757_s4 + $0x1b8] sm:$0xff]   ;;  %v11359_v48 = vld [vmem:[%s14757_s4 + $0x200] sm:$0xff]  }
 0x29e   :  { %v5272_v54 = vsel %vm13171_vm6, %v5082_v2, %v5271_v26  ;;  %v10592_v17 = vadd.f32 %v13484_v63, %v13474_v46  ;;  %v5060_v31 = vshrl.u32 %v10364_v27, 16  ;;  %v5063_v55 = vshll.u32 %v10364_v27, 16  ;;  %10965 = vmatpush3.bf16.msra.mxu0 %v11355_v15  ;;  %11128 = vmatprep.subr.bf16.mxu1 %v11359_v48  ;;  %v5275_v6 = vld [vmem:[#allocation3 + $0xc8] sm:$0x1]  ;;  %v5448_v2 = vld [vmem:[#allocation3 + $0x30] sm:$0xf] }
 0x29f   :  { %5273 = vst [vmem:[#allocation3 + $0xc0] sm:$0xf] %v5272_v54  ;;  %v10367_v16 = vpack.c.bf16 %v4754_v22, %v4754_v22  ;;  %v5569_v47 = vsel %vm11550_vm11, %v5564_v37, %v5568_v56  ;;  %v5574_v5 = vrot.slane %v5573_v14, 4  ;;  %v4622_v13 = vadd.f32 %v13352_v53, %v4461_v18  ;;  %10966 = vmatprep.subr.bf16.mxu0 %v11356_v58  ;;  %v11305_v40 = vld [vmem:[#allocation3 + $0x24] sm:$0xff]   ;;  %v14790_v22 = vld [vmem:[#allocation7_spill] sm:$0xff]  ;;  %v14791_v54 = vld [vmem:[#allocation10_spill] sm:$0xff] }
 0x2a0   :  { %v4482_v30 = vadd.f32 %v10592_v17, %v14789_v24  ;;  %v10109_v4 = vrot.slane %v5957_v42, 9  ;;  %v13602_v46 = vrot.slane %v5060_v31, 7  ;;  %v6067_v32 = vrot.slane %v5958_v60, 5  ;;  %v5449_v14 = vld [vmem:[#allocation3 + $0x34] sm:$0xf] }
 0x2a1   :  { %v5085_v63 = vshrl.u32 %v10367_v16, 16  ;;  %v5088_v33 = vshll.u32 %v10367_v16, 16  ;;  %v5579_v53 = vsel %vm11550_vm11, %v5574_v5, %v5578_v23  ;;  %v4681_v49 = vmul.f32 %v13505_v8, %v4622_v13  ;;  %v5450_v24 = vld [vmem:[#allocation3 + $0x38] sm:$0x1] }
 0x2a2   :  { %v4643_v41 = vadd.f32 %v13366_v43, %v4482_v30  ;;  %v6070_v19 = vrot.slane %v5959_v9, 5  ;;  %v5065_v56 = vor.u32 %v5063_v55, %v13602_v46  ;;  %v5066_v45 = vrot.slane %v13602_v46, 4  ;;  %10967 = vmatpush3.bf16.msra.mxu0 %v11357_v0 }
 0x2a3   :  { %v5087_v29 = vrot.slane %v5085_v63, 7  ;;  %v10093_v50 = vcombine.low %v5569_v47, %v5579_v53  ;;  %v4720_v26 = vadd.f32 %v13481_v1, %v4681_v49  ;;  %v6068_v25 = vsel %vm12111_vm14, %v10109_v4, %v6067_v32 }
 0x2a4   :  { %v4686_v11 = vmul.f32 %v13505_v8, %v4643_v41  ;;  %v6069_v51 = vrot.slane %v6067_v32, 4  ;;  %v5265_v43 = vsel %vm13171_vm6, %v5065_v56, %v5264_v59  ;;  %v10595_v3 = vadd.f32 %v13494_v61, %v13486_v52  ;;  %v5268_v32 = vld [vmem:[#allocation3 + $0xbc] sm:$0x1] }
 0x2a5   :  { %v5090_v10 = vor.u32 %v5088_v33, %v5087_v29  ;;  %v5092_v44 = vrot.slane %v5087_v29, 4  ;;  %8901 = vmatprep.mubr.bf16.mxu1 %v10093_v50  ;;  %5266 = vst [vmem:[#allocation3 + $0xb4] sm:$0xf] %v5265_v43  ;;  %v4752_v42 = vmax.f32 %v4720_v26, 0.0  ;;  %v4474_v37 = vadd.f32 %v13492_v7, %v14790_v22  ;;  %v11306_v7 = vld [vmem:[#allocation3 + $0x3c] sm:$0xff]  }
 0x2a6   :  { %v4725_v15 = vadd.f32 %v13481_v1, %v4686_v11  ;;  %v6071_v27 = vsel %vm12111_vm14, %v6069_v51, %v6070_v19  ;;  %8902 = vmatmul.mubr.bf16.gmra.mrb[76].mxu1 %v11305_v40  ;;  %v4485_v23 = vadd.f32 %v10595_v3, %v14791_v54  ;;  %v5581_v31 = vshrl.u32 %v5448_v2, 16  ;;  %v5285_v50 = vld [vmem:[#allocation3 + $0xd8] sm:$0xf]  ;;  %v5961_v51 = vld [vmem:[#allocation3 + $0x34] sm:$0xf] }
 0x2a7   :  { %v5091_v58 = vsel %vm11472_vm7, %v5083_v12, %v5090_v10  ;;  %v5276_v52 = vsel %vm12890_vm3, %v5092_v44, %v5275_v6  ;;  %v10125_v61 = vcombine.low %v6068_v25, %v6071_v27  ;;  %v10365_v18 = vpack.c.bf16 %v4752_v42, %v4752_v42  ;;  %v5960_v3 = vld [vmem:[#allocation3 + $0x30] sm:$0xe]  ;;  %v5962_v22 = vld [vmem:[#allocation3 + $0x38] sm:$0x1] }
 0x2a8   :  { %5274 = vst [vmem:[#allocation3 + $0xc4] sm:$0xf] %v5091_v58  ;;  %5277 = vst [vmem:[#allocation3 + $0xc8] sm:$0x1] %v5276_v52  ;;  %v4757_v17 = vmax.f32 %v4725_v15, 0.0  ;;  %v4635_v60 = vadd.f32 %v13372_v36, %v4474_v37  ;;  %v4646_v57 = vadd.f32 %v13382_v38, %v4485_v23  ;;  %v5584_v55 = vshll.u32 %v5448_v2, 16 }
 0x2a9   :  { %9063 = vmatmul.mubr.bf16.gmra.mrb[108].mxu0 %v10125_v61  ;;  %v5590_v16 = vshll.u32 %v5449_v14, 16  ;;  %v5594_v12 = vshrl.u32 %v5449_v14, 16  ;;  %v5068_v47 = vshrl.u32 %v10365_v18, 16  ;;  %v5071_v9 = vshll.u32 %v10365_v18, 16  ;;  %v5451_v37 = vld [vmem:[#allocation3 + $0x3c] sm:$0xf] }
 0x2aa   :  { %v10370_v5 = vpack.c.bf16 %v4757_v17, %v4757_v17  ;;  %v4684_v13 = vmul.f32 %v13505_v8, %v4635_v60  ;;  %9070 = vmatprep.mubr.bf16.mxu0 %v11306_v7  ;;  %v4687_v30 = vmul.f32 %v13505_v8, %v4646_v57  ;;  %v5583_v4 = vrot.slane %v5581_v31, 4  ;;  %v14792_v14 = vld [vmem:[#allocation8_spill] sm:$0xff] }
 0x2ab   :  { %v5586_v0 = vrot.slane %v5584_v55, 5  ;;  %v5592_v36 = vrot.slane %v5590_v16, 5  ;;  %v5070_v48 = vrot.slane %v5068_v47, 7  ;;  %v5596_v49 = vrot.slane %v5594_v12, 4  ;;  %v5452_v61 = vld [vmem:[#allocation3 + $0x40] sm:$0xf] }
 0x2ac   :  { %v5111_v63 = vshrl.u32 %v10370_v5, 16  ;;  %v5114_v33 = vshll.u32 %v10370_v5, 16  ;;  %v4723_v38 = vadd.f32 %v13481_v1, %v4684_v13  ;;  %v4726_v59 = vadd.f32 %v13481_v1, %v4687_v30  ;;  %v5278_v16 = vld [vmem:[#allocation3 + $0xcc] sm:$0xf]  ;;  %v11308_v13 = vld [vmem:[#allocation3 + $0x30] sm:$0xff]  }
 0x2ad   :  { %v5587_v53 = vor.u32 %v5586_v0, %v5583_v4  ;;  %v5600_v41 = vshll.u32 %v5450_v24, 16  ;;  %v5073_v19 = vor.u32 %v5071_v9, %v5070_v48  ;;  %v5075_v56 = vrot.slane %v5070_v48, 4  ;;  %v5289_v9 = vld [vmem:[#allocation3 + $0xe0] sm:$0x1] }
 0x2ae   :  { %v5113_v29 = vrot.slane %v5111_v63, 7  ;;  %v4755_v6 = vmax.f32 %v4723_v38, 0.0  ;;  %v4758_v26 = vmax.f32 %v4726_v59, 0.0  ;;  %v5597_v25 = vor.u32 %v5596_v49, %v5592_v36  ;;  %v5453_v63 = vld [vmem:[#allocation3 + $0x44] sm:$0x1] }
 0x2af   :  { %v5588_v11 = vrot.slane %v5587_v53, 4  ;;  %v5074_v40 = vsel %vm11472_vm7, %v5066_v45, %v5073_v19  ;;  %v5269_v43 = vsel %vm12890_vm3, %v5075_v56, %v5268_v32  ;;  %v5602_v44 = vrot.slane %v5600_v41, 5  ;;  %v5964_v53 = vld [vmem:[#allocation3 + $0x40] sm:$0xf] }
 0x2b0   :  { %v5116_v10 = vor.u32 %v5114_v33, %v5113_v29  ;;  %5267 = vst [vmem:[#allocation3 + $0xb8] sm:$0xf] %v5074_v40  ;;  %5270 = vst [vmem:[#allocation3 + $0xbc] sm:$0x1] %v5269_v43  ;;  %v5117_v2 = vrot.slane %v5113_v29, 4  ;;  %v10368_v42 = vpack.c.bf16 %v4755_v6, %v4755_v6  ;;  %v10371_v15 = vpack.c.bf16 %v4758_v26, %v4758_v26  ;;  %v11309_v6 = vld [vmem:[#allocation3 + $0x48] sm:$0xff]  }
 0x2b1   :  { %v5598_v27 = vrot.slane %v5597_v25, 4  ;;  %v5593_v45 = vsel %vm11550_vm11, %v5588_v11, %v5592_v36  ;;  %v4477_v58 = vadd.f32 %v13537_v20, %v14792_v14  ;;  %v6074_v52 = vrot.slane %v5961_v51, 5  ;;  %v5963_v33 = vld [vmem:[#allocation3 + $0x3c] sm:$0xe]  ;;  %v5965_v29 = vld [vmem:[#allocation3 + $0x44] sm:$0x1] }
 0x2b2   :  { %v5286_v46 = vsel %vm13171_vm6, %v5116_v10, %v5285_v50  ;;  %v5094_v54 = vshrl.u32 %v10368_v42, 16  ;;  %v5097_v23 = vshll.u32 %v10368_v42, 16  ;;  %v5119_v18 = vshrl.u32 %v10371_v15, 16  ;;  %v5454_v50 = vld [vmem:[#allocation3 + $0x48] sm:$0xf] }
 0x2b3   :  { %5287 = vst [vmem:[#allocation3 + $0xd8] sm:$0xf] %v5286_v46  ;;  %v10110_v17 = vrot.slane %v5960_v3, 9  ;;  %v5122_v60 = vshll.u32 %v10371_v15, 16  ;;  %v5603_v7 = vsel %vm11550_vm11, %v5598_v27, %v5602_v44  ;;  %v4638_v31 = vadd.f32 %v13387_v62, %v4477_v58  ;;  %v5455_v51 = vld [vmem:[#allocation3 + $0x4c] sm:$0xf] }
 0x2b4   :  { %v6076_v57 = vrot.slane %v6074_v52, 4  ;;  %v13651_v55 = vrot.slane %v5094_v54, 7  ;;  %v5121_v12 = vrot.slane %v5119_v18, 7  ;;  %v10094_v47 = vcombine.low %v5593_v45, %v5603_v7  ;;  %v5967_v7 = vld [vmem:[#allocation3 + $0x4c] sm:$0xf] }
 0x2b5   :  { %v6077_v20 = vrot.slane %v5962_v22, 5  ;;  %v4685_v5 = vmul.f32 %v13505_v8, %v4638_v31  ;;  %v5605_v24 = vshrl.u32 %v5451_v37, 16  ;;  %v5608_v30 = vshll.u32 %v5451_v37, 16 }
 0x2b6   :  { %v5614_v4 = vshll.u32 %v5452_v61, 16  ;;  %v5099_v0 = vor.u32 %v5097_v23, %v13651_v55  ;;  %v5124_v36 = vor.u32 %v5122_v60, %v5121_v12  ;;  %v5126_v48 = vrot.slane %v5121_v12, 4  ;;  %8909 = vmatprep.mubr.bf16.mxu1 %v10094_v47  ;;  %v5966_v60 = vld [vmem:[#allocation3 + $0x48] sm:$0xe] }
 0x2b7   :  { %v6075_v62 = vsel %vm12111_vm14, %v10110_v17, %v6074_v52  ;;  %v4724_v38 = vadd.f32 %v13481_v1, %v4685_v5  ;;  %v6078_v32 = vsel %vm12111_vm14, %v6076_v57, %v6077_v20  ;;  %8910 = vmatmul.mubr.bf16.gmra.mrb[80].mxu1 %v11308_v13  ;;  %v5607_v8 = vrot.slane %v5605_v24, 4  ;;  %v5456_v52 = vld [vmem:[#allocation3 + $0x50] sm:$0x1] }
 0x2b8   :  { %v5610_v59 = vrot.slane %v5608_v30, 5  ;;  %v5279_v49 = vsel %vm13171_vm6, %v5099_v0, %v5278_v16  ;;  %v5125_v41 = vsel %vm11472_vm7, %v5117_v2, %v5124_v36  ;;  %v5290_v19 = vsel %vm12890_vm3, %v5126_v48, %v5289_v9  ;;  %v11312_v16 = vld [vmem:[#allocation3 + $0x54] sm:$0xff]   ;;  %v5968_v13 = vld [vmem:[#allocation3 + $0x50] sm:$0x1] }
 0x2b9   :  { %v10126_v56 = vcombine.low %v6075_v62, %v6078_v32  ;;  %5280 = vst [vmem:[#allocation3 + $0xcc] sm:$0xf] %v5279_v49  ;;  %5288 = vst [vmem:[#allocation3 + $0xdc] sm:$0xf] %v5125_v41  ;;  %v4756_v1 = vmax.f32 %v4724_v38, 0.0  ;;  %v5616_v11 = vrot.slane %v5614_v4, 5 }
 0x2ba   :  { %5291 = vst [vmem:[#allocation3 + $0xe0] sm:$0x1] %v5290_v19  ;;  %v5611_v26 = vor.u32 %v5610_v59, %v5607_v8  ;;  %v5618_v25 = vshrl.u32 %v5452_v61, 16  ;;  %v5100_v39 = vrot.slane %v13651_v55, 4  ;;  %v5624_v40 = vshll.u32 %v5453_v63, 16  ;;  %v11311_v59 = vld [vmem:[#allocation3 + $0x3c] sm:$0xff]  }
 0x2bb   :  { %9071 = vmatmul.mubr.bf16.gmra.mrb[112].mxu0 %v10126_v56  ;;  %v10111_v43 = vrot.slane %v5963_v33, 9  ;;  %v6081_v10 = vrot.slane %v5964_v53, 5  ;;  %v10369_v44 = vpack.c.bf16 %v4756_v1, %v4756_v1  ;;  %v5629_v42 = vshrl.u32 %v5454_v50, 16  ;;  %v5282_v61 = vld [vmem:[#allocation3 + $0xd4] sm:$0x1] }
 0x2bc   :  { %9078 = vmatprep.mubr.bf16.mxu0 %v11309_v6  ;;  %v5612_v3 = vrot.slane %v5611_v26, 4  ;;  %v5620_v2 = vrot.slane %v5618_v25, 4  ;;  %v5626_v15 = vrot.slane %v5624_v40, 5  ;;  %v6084_v22 = vrot.slane %v5965_v29, 5  ;;  %v5457_v36 = vld [vmem:[#allocation3 + $0x54] sm:$0xf] }
 0x2bd   :  { %v6083_v27 = vrot.slane %v6081_v10, 4  ;;  %v5632_v37 = vshll.u32 %v5454_v50, 16  ;;  %v5102_v46 = vshrl.u32 %v10369_v44, 16  ;;  %v5105_v45 = vshll.u32 %v10369_v44, 16  ;;  %v5458_v33 = vld [vmem:[#allocation3 + $0x58] sm:$0xf] }
 0x2be   :  { %v5621_v14 = vor.u32 %v5620_v2, %v5616_v11  ;;  %v6082_v58 = vsel %vm12111_vm14, %v10111_v43, %v6081_v10  ;;  %v5631_v23 = vrot.slane %v5629_v42, 4  ;;  %v5638_v17 = vshll.u32 %v5455_v51, 16  ;;  %v5459_v38 = vld [vmem:[#allocation3 + $0x5c] sm:$0x1]  ;;  %v5969_v50 = vld [vmem:[#allocation3 + $0x54] sm:$0xe] }
 0x2bf   :  { %v6085_v54 = vsel %vm12111_vm14, %v6083_v27, %v6084_v22  ;;  %v5634_v18 = vrot.slane %v5632_v37, 5  ;;  %v5104_v31 = vrot.slane %v5102_v46, 7  ;;  %v5617_v57 = vsel %vm11550_vm11, %v5612_v3, %v5616_v11  ;;  %v5970_v1 = vld [vmem:[#allocation3 + $0x58] sm:$0xf]  ;;  %v5971_v25 = vld [vmem:[#allocation3 + $0x5c] sm:$0x1] }
 0x2c0   :  { %v5622_v55 = vrot.slane %v5621_v14, 4  ;;  %v5642_v12 = vshrl.u32 %v5455_v51, 16  ;;  %v10127_v47 = vcombine.low %v6082_v58, %v6085_v54  ;;  %v5640_v9 = vrot.slane %v5638_v17, 5  ;;  %v216_v10 = vld [vmem:[#allocation3 + $0x78] sm:$0x1] }
 0x2c1   :  { %v5635_v20 = vor.u32 %v5634_v18, %v5631_v23  ;;  %v5648_v5 = vshll.u32 %v5456_v52, 16  ;;  %v5107_v24 = vor.u32 %v5105_v45, %v5104_v31  ;;  %v5109_v30 = vrot.slane %v5104_v31, 4  ;;  %v277_v44 = vld [vmem:[#allocation3 + $0x80] sm:$0x1]  ;;  %v5461_v27 = vld [vmem:[#allocation3 + $0x7c] sm:$0xf] }
 0x2c2   :  { %v5627_v4 = vsel %vm11550_vm11, %v5622_v55, %v5626_v15  ;;  %v5644_v0 = vrot.slane %v5642_v12, 4  ;;  %v6088_v63 = vrot.slane %v5967_v7, 5  ;;  %v10112_v49 = vrot.slane %v5966_v60, 9  ;;  %v5972_v14 = vld [vmem:[#allocation3 + $0x78] sm:$0xe]  ;;  %v11315_v52 = vld [vmem:[#allocation3 + $0x60] sm:$0xff]  }
 0x2c3   :  { %v10095_v48 = vcombine.low %v5617_v57, %v5627_v4  ;;  %9079 = vmatmul.mubr.bf16.gmra.mrb[116].mxu0 %v10127_v47  ;;  %v5636_v62 = vrot.slane %v5635_v20, 4  ;;  %v5108_v32 = vsel %vm11472_vm7, %v5100_v39, %v5107_v24  ;;  %v5283_v8 = vsel %vm12890_vm3, %v5109_v30, %v5282_v61  ;;  %v5973_v58 = vld [vmem:[#allocation3 + $0x7c] sm:$0xf]  ;;  %v5463_v60 = vld [vmem:[#allocation3 + $0x84] sm:$0xf]  ;;  %v11314_v7 = vld [vmem:[#allocation3 + $0x48] sm:$0xff]  }
 0x2c4   :  { %9086 = vmatprep.mubr.bf16.mxu0 %v11312_v16  ;;  %v5645_v53 = vor.u32 %v5644_v0, %v5640_v9  ;;  %5281 = vst [vmem:[#allocation3 + $0xd0] sm:$0xf] %v5108_v32  ;;  %5284 = vst [vmem:[#allocation3 + $0xd4] sm:$0x1] %v5283_v8  ;;  %v5650_v41 = vrot.slane %v5648_v5, 5  ;;  %v6090_v19 = vrot.slane %v6088_v63, 4  ;;  %v6089_v39 = vsel %vm12111_vm14, %v10112_v49, %v6088_v63 }
 0x2c5   :  { %8917 = vmatprep.mubr.bf16.mxu1 %v10095_v48  ;;  %v6091_v56 = vrot.slane %v5968_v13, 5  ;;  %v5653_v29 = vshrl.u32 %v5457_v36, 16  ;;  %v5656_v21 = vshll.u32 %v5457_v36, 16  ;;  %v5662_v26 = vshll.u32 %v5458_v33, 16  ;;  %v5464_v30 = vld [vmem:[#allocation3 + $0x88] sm:$0xf] }
 0x2c6   :  { %8918 = vmatmul.mubr.bf16.gmra.mrb[84].mxu1 %v11311_v59  ;;  %v5646_v6 = vrot.slane %v5645_v53, 4  ;;  %v5666_v11 = vshrl.u32 %v5458_v33, 16  ;;  %v5641_v51 = vsel %vm11550_vm11, %v5636_v62, %v5640_v9  ;;  %v5672_v15 = vshll.u32 %v5459_v38, 16  ;;  %v5465_v63 = vld [vmem:[#allocation3 + $0x8c] sm:$0x1] }
 0x2c7   :  { %v6092_v40 = vsel %vm12111_vm14, %v6090_v19, %v6091_v56  ;;  %v5655_v43 = vrot.slane %v5653_v29, 4  ;;  %v5658_v2 = vrot.slane %v5656_v21, 5  ;;  %v5664_v42 = vrot.slane %v5662_v26, 5  ;;  %v5975_v33 = vld [vmem:[#allocation3 + $0x84] sm:$0xe] }
 0x2c8   :  { %v5651_v3 = vsel %vm11550_vm11, %v5646_v6, %v5650_v41  ;;  %v10128_v37 = vcombine.low %v6089_v39, %v6092_v40  ;;  %v5668_v46 = vrot.slane %v5666_v11, 4  ;;  %v6095_v45 = vrot.slane %v5970_v1, 5  ;;  %v5976_v53 = vld [vmem:[#allocation3 + $0x88] sm:$0xf]  ;;  %v11317_v40 = vld [vmem:[#allocation3 + $0x54] sm:$0xff]  }
 0x2c9   :  { %v10096_v22 = vcombine.low %v5641_v51, %v5651_v3  ;;  %v5659_v61 = vor.u32 %v5658_v2, %v5655_v43  ;;  %v10113_v54 = vrot.slane %v5969_v50, 9  ;;  %v217_v23 = vsel %vm12890_vm3, 0, %v216_v10  ;;  %v11318_v29 = vld [vmem:[#allocation3 + $0x84] sm:$0xff]  }
 0x2ca   :  { %v278_v17 = vsel %vm12898_vm5, 0, %v277_v44  ;;  %v5669_v31 = vor.u32 %v5668_v46, %v5664_v42  ;;  %v6097_v57 = vrot.slane %v6095_v45, 4  ;;  %v6098_v55 = vrot.slane %v5971_v25, 5  ;;  %218 = vst [vmem:[#allocation3 + $0x78] sm:$0x1] %v217_v23 }
 0x2cb   :  { %8925 = vmatprep.mubr.bf16.mxu1 %v10096_v22  ;;  %9087 = vmatmul.mubr.bf16.gmra.mrb[120].mxu0 %v10128_v37  ;;  %279 = vst [vmem:[#allocation3 + $0x80] sm:$0x1] %v278_v17  ;;  %v5686_v16 = vshll.u32 %v5461_v27, 16  ;;  %v5660_v12 = vrot.slane %v5659_v61, 4  ;;  %v5674_v47 = vrot.slane %v5672_v15, 5  ;;  %v5690_v20 = vshrl.u32 %v5461_v27, 16 }
 0x2cc   :  { %9094 = vmatprep.mubr.bf16.mxu0 %v11315_v52  ;;  %v6102_v9 = vrot.slane %v5973_v58, 5  ;;  %v5670_v5 = vrot.slane %v5669_v31, 4  ;;  %v6099_v13 = vsel %vm12111_vm14, %v6097_v57, %v6098_v55  ;;  %v5701_v4 = vshrl.u32 %v5463_v60, 16  ;;  %v5977_v52 = vld [vmem:[#allocation3 + $0x8c] sm:$0x1] }
 0x2cd   :  { %v13693_v24 = vrot.slane %v5686_v16, 5  ;;  %v5665_v0 = vsel %vm11550_vm11, %v5660_v12, %v5664_v42  ;;  %v6096_v36 = vsel %vm12111_vm14, %v10113_v54, %v6095_v45  ;;  %v5692_v48 = vrot.slane %v5690_v20, 4  ;;  %v5466_v42 = vld [vmem:[#allocation3 + $0x90] sm:$0xf] }
 0x2ce   :  { %8926 = vmatmul.mubr.bf16.gmra.mrb[88].mxu1 %v11314_v7  ;;  %v10114_v62 = vrot.slane %v5972_v14, 9  ;;  %v5675_v38 = vsel %vm11550_vm11, %v5670_v5, %v5674_v47  ;;  %v10129_v32 = vcombine.low %v6096_v36, %v6099_v13  ;;  %v5703_v8 = vrot.slane %v5701_v4, 4  ;;  %v5468_v7 = vld [vmem:[#allocation3 + $0x98] sm:$0x1]  ;;  %v11323_v12 = vld [vmem:[#allocation3 + $0x90] sm:$0xff]  }
 0x2cf   :  { %v5704_v59 = vshll.u32 %v5463_v60, 16  ;;  %v10097_v49 = vcombine.low %v5665_v0, %v5675_v38  ;;  %v5693_v41 = vor.u32 %v5692_v48, %v13693_v24  ;;  %v5710_v19 = vshll.u32 %v5464_v30, 16  ;;  %v5467_v60 = vld [vmem:[#allocation3 + $0x94] sm:$0xf]  ;;  %v5978_v13 = vld [vmem:[#allocation3 + $0x90] sm:$0xe] }
 0x2d0   :  { %v5714_v56 = vshrl.u32 %v5464_v30, 16  ;;  %v6104_v50 = vrot.slane %v6102_v9, 4  ;;  %v5720_v6 = vshll.u32 %v5465_v63, 16  ;;  %v10115_v21 = vrot.slane %v5975_v33, 9  ;;  %v5979_v30 = vld [vmem:[#allocation3 + $0x94] sm:$0xf] }
 0x2d1   :  { %v5706_v1 = vrot.slane %v5704_v59, 5  ;;  %8933 = vmatprep.mubr.bf16.mxu1 %v10097_v49  ;;  %v5460_v26 = vld [vmem:[#allocation3 + $0x78] sm:$0xf]  ;;  %v5694_v25 = vrot.slane %v5693_v41, 4  ;;  %v6103_v51 = vsel %vm12111_vm14, %v10114_v62, %v6102_v9  ;;  %v6109_v39 = vrot.slane %v5976_v53, 5 }
 0x2d2   :  { %v5462_v11 = vld [vmem:[#allocation3 + $0x80] sm:$0x1]  ;;  %v5677_v43 = vshrl.u32 %v5460_v26, 16  ;;  %v5680_v10 = vshll.u32 %v5460_v26, 16  ;;  %v5712_v27 = vrot.slane %v5710_v19, 5  ;;  %v5716_v22 = vrot.slane %v5714_v56, 4 }
 0x2d3   :  { %9095 = vmatmul.mubr.bf16.gmra.mrb[124].mxu0 %v10129_v32  ;;  %v5696_v44 = vshll.u32 %v5462_v11, 16  ;;  %v5974_v3 = vld [vmem:[#allocation3 + $0x80] sm:$0x1]  ;;  %v5707_v2 = vor.u32 %v5706_v1, %v5703_v8  ;;  %v5722_v37 = vrot.slane %v5720_v6, 5  ;;  %v13708_v23 = vsel %vm12111_vm14, %v10115_v21, %v6109_v39  ;;  %v5980_v4 = vld [vmem:[#allocation3 + $0x98] sm:$0x1] }
 0x2d4   :  { %9102 = vmatprep.mubr.bf16.mxu0 %v11318_v29  ;;  %v6105_v15 = vrot.slane %v5974_v3, 5  ;;  %v5679_v46 = vrot.slane %v5677_v43, 4  ;;  %v5682_v45 = vrot.slane %v5680_v10, 5  ;;  %v5717_v54 = vor.u32 %v5716_v22, %v5712_v27  ;;  %v5469_v63 = vld [vmem:[#allocation3 + $0x9c] sm:$0xf] }
 0x2d5   :  { %v5698_v14 = vrot.slane %v5696_v44, 5  ;;  %v5708_v58 = vrot.slane %v5707_v2, 4  ;;  %v6111_v17 = vrot.slane %v6109_v39, 4  ;;  %v6112_v20 = vrot.slane %v5977_v52, 5  ;;  %v11322_v53 = vld [vmem:[#allocation3 + $0x78] sm:$0xff]  }
 0x2d6   :  { %8934 = vmatmul.mubr.bf16.gmra.mrb[92].mxu1 %v11317_v40  ;;  %v6106_v61 = vsel %vm12111_vm14, %v6104_v50, %v6105_v15  ;;  %v5683_v31 = vor.u32 %v5682_v45, %v5679_v46  ;;  %v5718_v47 = vrot.slane %v5717_v54, 4  ;;  %v5725_v9 = vshrl.u32 %v5466_v42, 16  ;;  %v5470_v56 = vld [vmem:[#allocation3 + $0xa0] sm:$0xf]  ;;  %v5471_v40 = vld [vmem:[#allocation3 + $0xa4] sm:$0x1] }
 0x2d7   :  { %v5699_v57 = vsel %vm11550_vm11, %v5694_v25, %v5698_v14  ;;  %v10130_v55 = vcombine.low %v6103_v51, %v6106_v61  ;;  %v5713_v16 = vsel %vm11550_vm11, %v5708_v58, %v5712_v27  ;;  %v5728_v5 = vshll.u32 %v5466_v42, 16  ;;  %v5981_v51 = vld [vmem:[#allocation3 + $0x9c] sm:$0xe]  ;;  %v5982_v15 = vld [vmem:[#allocation3 + $0xa0] sm:$0xf] }
 0x2d8   :  { %v5684_v0 = vrot.slane %v5683_v31, 4  ;;  %v5734_v36 = vshll.u32 %v5467_v60, 16  ;;  %v5738_v48 = vshrl.u32 %v5467_v60, 16  ;;  %v5744_v62 = vshll.u32 %v5468_v7, 16  ;;  %v5472_v27 = vld [vmem:[#allocation3 + $0xa8] sm:$0xf] }
 0x2d9   :  { %v5723_v33 = vsel %vm11550_vm11, %v5718_v47, %v5722_v37  ;;  %v6113_v38 = vsel %vm12111_vm14, %v6111_v17, %v6112_v20  ;;  %v5727_v32 = vrot.slane %v5725_v9, 4  ;;  %v5730_v8 = vrot.slane %v5728_v5, 5  ;;  %v5983_v14 = vld [vmem:[#allocation3 + $0xa4] sm:$0x1]  ;;  %v11326_v17 = vld [vmem:[#allocation3 + $0x9c] sm:$0xff]  }
 0x2da   :  { %v5689_v59 = vsel %vm11550_vm11, %v5684_v0, %v13693_v24  ;;  %v10099_v49 = vcombine.low %v5713_v16, %v5723_v33  ;;  %v10131_v41 = vcombine.low %v13708_v23, %v6113_v38  ;;  %v5736_v19 = vrot.slane %v5734_v36, 5  ;;  %v5473_v23 = vld [vmem:[#allocation3 + $0xac] sm:$0xf]  ;;  %v5474_v20 = vld [vmem:[#allocation3 + $0xb0] sm:$0x1]  ;;  %v11325_v9 = vld [vmem:[#allocation3 + $0x84] sm:$0xff]  }
 0x2db   :  { %9103 = vmatmul.mubr.bf16.gmra.mrb[128].mxu0 %v10130_v55  ;;  %v10098_v29 = vcombine.low %v5689_v59, %v5699_v57  ;;  %v5731_v50 = vor.u32 %v5730_v8, %v5727_v32  ;;  %v5740_v1 = vrot.slane %v5738_v48, 4  ;;  %v5746_v6 = vrot.slane %v5744_v62, 5  ;;  %v5984_v0 = vld [vmem:[#allocation3 + $0xa8] sm:$0xe]  ;;  %v5985_v33 = vld [vmem:[#allocation3 + $0xac] sm:$0xf] }
 0x2dc   :  { %9110 = vmatprep.mubr.bf16.mxu0 %v11323_v12  ;;  %v10116_v21 = vrot.slane %v5978_v13, 9  ;;  %v6116_v26 = vrot.slane %v5979_v30, 5  ;;  %v6119_v11 = vrot.slane %v5980_v4, 5  ;;  %v5749_v25 = vshrl.u32 %v5469_v63, 16 }
 0x2dd   :  { %8941 = vmatprep.mubr.bf16.mxu1 %v10098_v29  ;;  %v5732_v39 = vrot.slane %v5731_v50, 4  ;;  %v5741_v24 = vor.u32 %v5740_v1, %v5736_v19  ;;  %v5752_v43 = vshll.u32 %v5469_v63, 16  ;;  %v5758_v10 = vshll.u32 %v5470_v56, 16  ;;  %v5476_v50 = vld [vmem:[#allocation3 + $0xb8] sm:$0xf] }
 0x2de   :  { %8942 = vmatmul.mubr.bf16.gmra.mrb[96].mxu1 %v11322_v53  ;;  %v13724_v44 = vsel %vm12111_vm14, %v10116_v21, %v6116_v26  ;;  %v6118_v3 = vrot.slane %v6116_v26, 4  ;;  %v5751_v2 = vrot.slane %v5749_v25, 4  ;;  %v5762_v42 = vshrl.u32 %v5470_v56, 16  ;;  %v5986_v53 = vld [vmem:[#allocation3 + $0xb0] sm:$0x1] }
 0x2df   :  { %8949 = vmatprep.mubr.bf16.mxu1 %v10099_v49  ;;  %v5737_v22 = vsel %vm11550_vm11, %v5732_v39, %v5736_v19  ;;  %v5742_v37 = vrot.slane %v5741_v24, 4  ;;  %v5754_v46 = vrot.slane %v5752_v43, 5  ;;  %v5760_v45 = vrot.slane %v5758_v10, 5  ;;  %v5475_v49 = vld [vmem:[#allocation3 + $0xb4] sm:$0xf]  ;;  %v11331_v43 = vld [vmem:[#allocation3 + $0xa8] sm:$0xff]  }
 0x2e0   :  { %v6120_v58 = vsel %vm12111_vm14, %v6118_v3, %v6119_v11  ;;  %v5764_v52 = vrot.slane %v5762_v42, 4  ;;  %v5768_v61 = vshll.u32 %v5471_v40, 16  ;;  %v10117_v54 = vrot.slane %v5981_v51, 9  ;;  %v5477_v11 = vld [vmem:[#allocation3 + $0xbc] sm:$0x1] }
 0x2e1   :  { %v5747_v60 = vsel %vm11550_vm11, %v5742_v37, %v5746_v6  ;;  %v10132_v7 = vcombine.low %v13724_v44, %v6120_v58  ;;  %v5755_v31 = vor.u32 %v5754_v46, %v5751_v2  ;;  %v6123_v57 = vrot.slane %v5982_v15, 5  ;;  %v5987_v25 = vld [vmem:[#allocation3 + $0xb4] sm:$0xe]  ;;  %v5988_v37 = vld [vmem:[#allocation3 + $0xb8] sm:$0xf] }
 0x2e2   :  { %v10100_v55 = vcombine.low %v5737_v22, %v5747_v60  ;;  %v5765_v16 = vor.u32 %v5764_v52, %v5760_v45  ;;  %v5770_v12 = vrot.slane %v5768_v61, 5  ;;  %v6126_v47 = vrot.slane %v5983_v14, 5  ;;  %v5989_v52 = vld [vmem:[#allocation3 + $0xbc] sm:$0x1]  ;;  %v11330_v61 = vld [vmem:[#allocation3 + $0x90] sm:$0xff]  }
 0x2e3   :  { %9111 = vmatmul.mubr.bf16.gmra.mrb[132].mxu0 %v10131_v41  ;;  %v5756_v5 = vrot.slane %v5755_v31, 4  ;;  %v13735_v13 = vsel %vm12111_vm14, %v10117_v54, %v6123_v57  ;;  %v6125_v30 = vrot.slane %v6123_v57, 4  ;;  %v5773_v4 = vshrl.u32 %v5472_v27, 16 }
 0x2e4   :  { %9118 = vmatprep.mubr.bf16.mxu0 %v11326_v17  ;;  %v5766_v36 = vrot.slane %v5765_v16, 4  ;;  %v5776_v48 = vshll.u32 %v5472_v27, 16  ;;  %v5782_v62 = vshll.u32 %v5473_v23, 16  ;;  %v5786_v63 = vshrl.u32 %v5473_v23, 16 }
 0x2e5   :  { %v5761_v38 = vsel %vm11550_vm11, %v5756_v5, %v5760_v45  ;;  %v13741_v32 = vsel %vm12111_vm14, %v6125_v30, %v6126_v47  ;;  %v5775_v8 = vrot.slane %v5773_v4, 4  ;;  %v5792_v59 = vshll.u32 %v5474_v20, 16  ;;  %v5480_v30 = vld [vmem:[#allocation3 + $0xc8] sm:$0x1]  ;;  %v5990_v4 = vld [vmem:[#allocation3 + $0xc0] sm:$0xe] }
 0x2e6   :  { %8950 = vmatmul.mubr.bf16.gmra.mrb[100].mxu1 %v11325_v9  ;;  %v5771_v41 = vsel %vm11550_vm11, %v5766_v36, %v5770_v12  ;;  %v10133_v19 = vcombine.low %v13735_v13, %v13741_v32  ;;  %v5778_v56 = vrot.slane %v5776_v48, 5  ;;  %v5784_v29 = vrot.slane %v5782_v62, 5  ;;  %v5479_v12 = vld [vmem:[#allocation3 + $0xc4] sm:$0xf] }
 0x2e7   :  { %8957 = vmatprep.mubr.bf16.mxu1 %v10100_v55  ;;  %v10101_v1 = vcombine.low %v5761_v38, %v5771_v41  ;;  %v5788_v6 = vrot.slane %v5786_v63, 4  ;;  %v5794_v21 = vrot.slane %v5792_v59, 5  ;;  %v10118_v26 = vrot.slane %v5984_v0, 9  ;;  %v5991_v63 = vld [vmem:[#allocation3 + $0xc4] sm:$0xf] }
 0x2e8   :  { %v5779_v51 = vor.u32 %v5778_v56, %v5775_v8  ;;  %v6130_v39 = vrot.slane %v5985_v33, 5  ;;  %v6133_v24 = vrot.slane %v5986_v53, 5  ;;  %v5797_v40 = vshrl.u32 %v5475_v49, 16  ;;  %v5992_v53 = vld [vmem:[#allocation3 + $0xc8] sm:$0x1] }
 0x2e9   :  { %v5789_v10 = vor.u32 %v5788_v6, %v5784_v29  ;;  %v5800_v44 = vshll.u32 %v5475_v49, 16  ;;  %v5806_v3 = vshll.u32 %v5476_v50, 16  ;;  %v5810_v2 = vshrl.u32 %v5476_v50, 16  ;;  %v11334_v49 = vld [vmem:[#allocation3 + $0xb4] sm:$0xff]  }
 0x2ea   :  { %v5780_v42 = vrot.slane %v5779_v51, 4  ;;  %v13749_v15 = vsel %vm12111_vm14, %v10118_v26, %v6130_v39  ;;  %v6132_v27 = vrot.slane %v6130_v39, 4  ;;  %v5799_v22 = vrot.slane %v5797_v40, 4 }
 0x2eb   :  { %9119 = vmatmul.mubr.bf16.gmra.mrb[136].mxu0 %v10132_v7  ;;  %v5790_v46 = vrot.slane %v5789_v10, 4  ;;  %v5802_v45 = vrot.slane %v5800_v44, 5  ;;  %v5808_v14 = vrot.slane %v5806_v3, 5  ;;  %v5812_v58 = vrot.slane %v5810_v2, 4  ;;  %v5478_v7 = vld [vmem:[#allocation3 + $0xc0] sm:$0xf] }
 0x2ec   :  { %9126 = vmatprep.mubr.bf16.mxu0 %v11331_v43  ;;  %v5785_v54 = vsel %vm11550_vm11, %v5780_v42, %v5784_v29  ;;  %v13755_v23 = vsel %vm12111_vm14, %v6132_v27, %v6133_v24  ;;  %v5816_v17 = vshll.u32 %v5477_v11, 16  ;;  %v10119_v60 = vrot.slane %v5987_v25, 9  ;;  %v5482_v25 = vld [vmem:[#allocation3 + $0xd0] sm:$0xf]  ;;  %v5993_v43 = vld [vmem:[#allocation3 + $0xcc] sm:$0xe] }
 0x2ed   :  { %v5795_v31 = vsel %vm11550_vm11, %v5790_v46, %v5794_v21  ;;  %v10134_v57 = vcombine.low %v13749_v15, %v13755_v23  ;;  %v5803_v55 = vor.u32 %v5802_v45, %v5799_v22  ;;  %v5813_v16 = vor.u32 %v5812_v58, %v5808_v14  ;;  %v11333_v10 = vld [vmem:[#allocation3 + $0x9c] sm:$0xff]   ;;  %v5483_v44 = vld [vmem:[#allocation3 + $0xd4] sm:$0x1]  ;;  %v7325_v45 = vld [vmem:[#allocation3 + $0x18] sm:$0xf] }
 0x2ee   :  { %8958 = vmatmul.mubr.bf16.gmra.mrb[104].mxu1 %v11330_v61  ;;  %v10102_v47 = vcombine.low %v5785_v54, %v5795_v31  ;;  %v5818_v20 = vrot.slane %v5816_v17, 5  ;;  %v6137_v9 = vrot.slane %v5988_v37, 5  ;;  %v6140_v5 = vrot.slane %v5989_v52, 5  ;;  %v5994_v37 = vld [vmem:[#allocation3 + $0xd0] sm:$0xf]  ;;  %v13784_v54 = vpop.f32.mrb[64].mxu1 }
 0x2ef   :  { %8965 = vmatprep.mubr.bf16.mxu1 %v10101_v1  ;;  %v5804_v0 = vrot.slane %v5803_v55, 4  ;;  %v5814_v36 = vrot.slane %v5813_v16, 4  ;;  %v5821_v48 = vshrl.u32 %v5478_v7, 16  ;;  %v5824_v62 = vshll.u32 %v5478_v7, 16  ;;  %v5481_v1 = vld [vmem:[#allocation3 + $0xcc] sm:$0xf] }
 0x2f0   :  { %v13763_v33 = vsel %vm12111_vm14, %v10119_v60, %v6137_v9  ;;  %v6139_v38 = vrot.slane %v6137_v9, 4  ;;  %v5830_v8 = vshll.u32 %v5479_v12, 16  ;;  %v5834_v59 = vshrl.u32 %v5479_v12, 16  ;;  %v5995_v46 = vld [vmem:[#allocation3 + $0xd4] sm:$0x1] }
 0x2f1   :  { %v5809_v41 = vsel %vm11550_vm11, %v5804_v0, %v5808_v14  ;;  %v5819_v56 = vsel %vm11550_vm11, %v5814_v36, %v5818_v20  ;;  %v5823_v29 = vrot.slane %v5821_v48, 4  ;;  %v5826_v50 = vrot.slane %v5824_v62, 5  ;;  %v7326_v9 = vld [vmem:[#allocation3 + $0x1c] sm:$0xf]  ;;  %v7327_v36 = vld [vmem:[#allocation3 + $0x20] sm:$0x1] }
 0x2f2   :  { %v13772_v6 = vcombine.low %v5809_v41, %v5819_v56  ;;  %v13776_v21 = vsel %vm12111_vm14, %v6139_v38, %v6140_v5  ;;  %v5832_v26 = vrot.slane %v5830_v8, 5  ;;  %v5836_v11 = vrot.slane %v5834_v59, 4  ;;  %v11339_v5 = vld [vmem:[#allocation3 + $0xc0] sm:$0xff]   ;;  %v6892_v48 = vld [vmem:[#allocation3 + $0xc] sm:$0xe]  ;;  %v13798_v62 = vpop.f32.mrb[65].mxu1 }
 0x2f3   :  { %9127 = vmatmul.mubr.bf16.gmra.mrb[140].mxu0 %v10133_v19  ;;  %v10135_v51 = vcombine.low %v13763_v33, %v13776_v21  ;;  %v5827_v39 = vor.u32 %v5826_v50, %v5823_v29  ;;  %v5840_v24 = vshll.u32 %v5480_v30, 16  ;;  %v10120_v40 = vrot.slane %v5990_v4, 9  ;;  %v6894_v50 = vld [vmem:[#allocation3 + $0x14] sm:$0x1] }
 0x2f4   :  { %9134 = vmatprep.mubr.bf16.mxu0 %v11334_v49  ;;  %v5837_v13 = vor.u32 %v5836_v11, %v5832_v26  ;;  %v6144_v32 = vrot.slane %v5991_v63, 5  ;;  %v6147_v19 = vrot.slane %v5992_v53, 5  ;;  %v5845_v3 = vshrl.u32 %v5481_v1, 16  ;;  %v6893_v53 = vld [vmem:[#allocation3 + $0x10] sm:$0xf] }
 0x2f5   :  { %v5828_v2 = vrot.slane %v5827_v39, 4  ;;  %v5842_v42 = vrot.slane %v5840_v24, 5  ;;  %v5848_v27 = vshll.u32 %v5481_v1, 16  ;;  %v5854_v22 = vshll.u32 %v5482_v25, 16  ;;  %v13803_v1 = vpop.f32.mrb[66].mxu1 }
 0x2f6   :  { %8966 = vmatmul.mubr.bf16.gmra.mrb[108].mxu1 %v11333_v10  ;;  %v5838_v14 = vrot.slane %v5837_v13, 4  ;;  %v13782_v58 = vsel %vm12111_vm14, %v10120_v40, %v6144_v32  ;;  %v6146_v52 = vrot.slane %v6144_v32, 4  ;;  %v5847_v61 = vrot.slane %v5845_v3, 4  ;;  %v6380_v10 = vld [vmem:[#allocation3 + $0xc] sm:$0xf] }
 0x2f7   :  { %8973 = vmatprep.mubr.bf16.mxu1 %v10102_v47  ;;  %v5833_v17 = vsel %vm11550_vm11, %v5828_v2, %v5832_v26  ;;  %v5850_v60 = vrot.slane %v5848_v27, 5  ;;  %v5856_v7 = vrot.slane %v5854_v22, 5  ;;  %v5858_v31 = vshrl.u32 %v5482_v25, 16  ;;  %v11338_v26 = vld [vmem:[#allocation3 + $0xa8] sm:$0xff]   ;;  %v13809_v25 = vpop.f32.mrb[67].mxu1 }
 0x2f8   :  { %v5843_v55 = vsel %vm11550_vm11, %v5838_v14, %v5842_v42  ;;  %v13792_v16 = vsel %vm12111_vm14, %v6146_v52, %v6147_v19  ;;  %v5864_v12 = vshll.u32 %v5483_v44, 16  ;;  %v10121_v20 = vrot.slane %v5993_v43, 9  ;;  %v6381_v3 = vld [vmem:[#allocation3 + $0x10] sm:$0xf]  ;;  %v6382_v52 = vld [vmem:[#allocation3 + $0x14] sm:$0x1] }
 0x2f9   :  { %v13794_v30 = vcombine.low %v5833_v17, %v5843_v55  ;;  %v10136_v47 = vcombine.low %v13782_v58, %v13792_v16  ;;  %v5851_v4 = vor.u32 %v5850_v60, %v5847_v61  ;;  %v5860_v0 = vrot.slane %v5858_v31, 4  ;;  %v11342_v61 = vld [vmem:[#allocation3 + $0xcc] sm:$0xff]   ;;  %v7328_v31 = vld [vmem:[#allocation3 + $0x24] sm:$0xf] }
 0x2fa   :  { %v5866_v63 = vrot.slane %v5864_v12, 5  ;;  %v6151_v38 = vrot.slane %v5994_v37, 5  ;;  %v6154_v8 = vrot.slane %v5995_v46, 5  ;;  %v7374_v59 = vshrl.u32 %v7325_v45, 16  ;;  %v7331_v58 = vld [vmem:[#allocation3 + $0x30] sm:$0xf] }
 0x2fb   :  { %9135 = vmatmul.mubr.bf16.gmra.mrb[144].mxu0 %v10134_v57  ;;  %v5852_v49 = vrot.slane %v5851_v4, 4  ;;  %v5861_v41 = vor.u32 %v5860_v0, %v5856_v7  ;;  %v7377_v56 = vshll.u32 %v7325_v45, 16  ;;  %v7383_v29 = vshll.u32 %v7326_v9, 16  ;;  %v11347_v16 = vld [vmem:[#allocation3 + $0xc0] sm:$0xff]  }
 0x2fc   :  { %9142 = vmatprep.mubr.bf16.mxu0 %v11339_v5  ;;  %v13807_v11 = vsel %vm12111_vm14, %v10121_v20, %v6151_v38  ;;  %v6153_v15 = vrot.slane %v6151_v38, 4  ;;  %v7376_v23 = vrot.slane %v7374_v59, 4  ;;  %v7387_v57 = vshrl.u32 %v7326_v9, 16  ;;  %v7329_v5 = vld [vmem:[#allocation3 + $0x28] sm:$0xf] }
 0x2fd   :  { %v5857_v39 = vsel %vm11550_vm11, %v5852_v49, %v5856_v7  ;;  %v5862_v24 = vrot.slane %v5861_v41, 4  ;;  %v7379_v40 = vrot.slane %v7377_v56, 5  ;;  %v7385_v43 = vrot.slane %v7383_v29, 5  ;;  %v6895_v38 = vld [vmem:[#allocation3 + $0x18] sm:$0xe] }
 0x2fe   :  { %8974 = vmatmul.mubr.bf16.gmra.mrb[112].mxu1 %v11338_v26  ;;  %v13815_v13 = vsel %vm12111_vm14, %v6153_v15, %v6154_v8  ;;  %v7389_v32 = vrot.slane %v7387_v57, 4  ;;  %v7393_v19 = vshll.u32 %v7327_v36, 16  ;;  %v10170_v44 = vrot.slane %v6892_v48, 9  ;;  %v11341_v8 = vld [vmem:[#allocation3 + $0xb4] sm:$0xff]   ;;  %v6897_v49 = vld [vmem:[#allocation3 + $0x20] sm:$0x1] }
 0x2ff   :  { %8981 = vmatprep.mubr.bf16.mxu1 %v13772_v6  ;;  %v5867_v2 = vsel %vm11550_vm11, %v5862_v24, %v5866_v63  ;;  %v10137_v42 = vcombine.low %v13807_v11, %v13815_v13  ;;  %v7380_v27 = vor.u32 %v7379_v40, %v7376_v23  ;;  %v6990_v22 = vrot.slane %v6893_v53, 5  ;;  %v7330_v63 = vld [vmem:[#allocation3 + $0x2c] sm:$0x1]  ;;  %v6896_v53 = vld [vmem:[#allocation3 + $0x1c] sm:$0xf] }
 0x300   :  { %v13822_v37 = vcombine.low %v5857_v39, %v5867_v2  ;;  %v7390_v46 = vor.u32 %v7389_v32, %v7385_v43  ;;  %v7395_v45 = vrot.slane %v7393_v19, 5  ;;  %v6993_v14 = vrot.slane %v6894_v50, 5  ;;  %v6383_v26 = vld [vmem:[#allocation3 + $0x18] sm:$0xf] }
 0x301   :  { %v7381_v17 = vrot.slane %v7380_v27, 4  ;;  %v13826_v60 = vsel %vm12111_vm14, %v10170_v44, %v6990_v22  ;;  %v6992_v6 = vrot.slane %v6990_v22, 4  ;;  %v6429_v7 = vshrl.u32 %v6380_v10, 16  ;;  %v11348_v2 = vld [vmem:[#allocation3 + $0xd8] sm:$0xff]  }
 0x302   :  { %v7391_v55 = vrot.slane %v7390_v46, 4  ;;  %v6432_v12 = vshll.u32 %v6380_v10, 16  ;;  %v6438_v20 = vshll.u32 %v6381_v3, 16  ;;  %v6442_v9 = vshrl.u32 %v6381_v3, 16 }
 0x303   :  { %9143 = vmatmul.mubr.bf16.gmra.mrb[148].mxu0 %v10135_v51  ;;  %v7386_v4 = vsel %vm11550_vm11, %v7381_v17, %v7385_v43  ;;  %v13835_v0 = vsel %vm12111_vm14, %v6992_v6, %v6993_v14  ;;  %v6431_v36 = vrot.slane %v6429_v7, 4  ;;  %v6448_v48 = vshll.u32 %v6382_v52, 16 }
 0x304   :  { %9150 = vmatprep.mubr.bf16.mxu0 %v11342_v61  ;;  %v7396_v33 = vsel %vm11550_vm11, %v7391_v55, %v7395_v45  ;;  %v10186_v21 = vcombine.low %v13826_v60, %v13835_v0  ;;  %v6434_v51 = vrot.slane %v6432_v12, 5  ;;  %v6440_v59 = vrot.slane %v6438_v20, 5  ;;  %v6384_v61 = vld [vmem:[#allocation3 + $0x1c] sm:$0xf]  ;;  %v6385_v55 = vld [vmem:[#allocation3 + $0x20] sm:$0x1] }
 0x305   :  { %v13841_v41 = vcombine.low %v7386_v4, %v7396_v33  ;;  %v6444_v56 = vrot.slane %v6442_v9, 4  ;;  %v6450_v29 = vrot.slane %v6448_v48, 5  ;;  %v7398_v50 = vshrl.u32 %v7328_v31, 16  ;;  %v7332_v4 = vld [vmem:[#allocation3 + $0x34] sm:$0xf] }
 0x306   :  { %8982 = vmatmul.mubr.bf16.gmra.mrb[116].mxu1 %v11341_v8  ;;  %v6435_v15 = vor.u32 %v6434_v51, %v6431_v36  ;;  %v7401_v23 = vshll.u32 %v7328_v31, 16  ;;  %v7407_v57 = vshll.u32 %v7329_v5, 16  ;;  %v7411_v39 = vshrl.u32 %v7329_v5, 16  ;;  %v7333_v8 = vld [vmem:[#allocation3 + $0x38] sm:$0x1] }
 0x307   :  { %8989 = vmatprep.mubr.bf16.mxu1 %v13794_v30  ;;  %v6445_v24 = vor.u32 %v6444_v56, %v6440_v59  ;;  %v7400_v40 = vrot.slane %v7398_v50, 4  ;;  %v7417_v43 = vshll.u32 %v7330_v63, 16  ;;  %v10171_v10 = vrot.slane %v6895_v38, 9 }
 0x308   :  { %v6436_v32 = vrot.slane %v6435_v15, 4  ;;  %v7403_v19 = vrot.slane %v7401_v23, 5  ;;  %v7409_v44 = vrot.slane %v7407_v57, 5  ;;  %v7413_v3 = vrot.slane %v7411_v39, 4  ;;  %v6899_v15 = vld [vmem:[#allocation3 + $0x28] sm:$0xf] }
 0x309   :  { %v6446_v27 = vrot.slane %v6445_v24, 4  ;;  %v7419_v22 = vrot.slane %v7417_v43, 5  ;;  %v6997_v46 = vrot.slane %v6896_v53, 5  ;;  %v7000_v45 = vrot.slane %v6897_v49, 5  ;;  %v6898_v49 = vld [vmem:[#allocation3 + $0x24] sm:$0xe] }
 0x30a   :  { %v6441_v30 = vsel %vm11550_vm11, %v6436_v32, %v6440_v59  ;;  %v7404_v14 = vor.u32 %v7403_v19, %v7400_v40  ;;  %v7414_v52 = vor.u32 %v7413_v3, %v7409_v44  ;;  %v6453_v17 = vshrl.u32 %v6383_v26, 16  ;;  %v6900_v40 = vld [vmem:[#allocation3 + $0x2c] sm:$0x1] }
 0x30b   :  { %9151 = vmatmul.mubr.bf16.gmra.mrb[152].mxu0 %v10136_v47  ;;  %v6451_v6 = vsel %vm11550_vm11, %v6446_v27, %v6450_v29  ;;  %v13853_v7 = vsel %vm12111_vm14, %v10171_v10, %v6997_v46  ;;  %v6999_v31 = vrot.slane %v6997_v46, 4  ;;  %v6456_v12 = vshll.u32 %v6383_v26, 16 }
 0x30c   :  { %9158 = vmatprep.mubr.bf16.mxu0 %v11348_v2  ;;  %v13855_v47 = vcombine.low %v6441_v30, %v6451_v6  ;;  %v7405_v20 = vrot.slane %v7404_v14, 4  ;;  %v7415_v9 = vrot.slane %v7414_v52, 4  ;;  %v6455_v5 = vrot.slane %v6453_v17, 4  ;;  %v11354_v52 = vld [vmem:[#allocation3 + $0xcc] sm:$0xff]  }
 0x30d   :  { %v13859_v36 = vsel %vm12111_vm14, %v6999_v31, %v7000_v45  ;;  %v6458_v48 = vrot.slane %v6456_v12, 5  ;;  %v6462_v63 = vshll.u32 %v6384_v61, 16  ;;  %v6466_v38 = vshrl.u32 %v6384_v61, 16 }
 0x30e   :  { %8990 = vmatmul.mubr.bf16.gmra.mrb[120].mxu1 %v11347_v16  ;;  %v7410_v33 = vsel %vm11550_vm11, %v7405_v20, %v7409_v44  ;;  %v7420_v51 = vsel %vm11550_vm11, %v7415_v9, %v7419_v22  ;;  %v10187_v59 = vcombine.low %v13853_v7, %v13859_v36  ;;  %v6472_v53 = vshll.u32 %v6385_v55, 16  ;;  %v6386_v44 = vld [vmem:[#allocation3 + $0x24] sm:$0xf]  ;;  %v6387_v22 = vld [vmem:[#allocation3 + $0x28] sm:$0xf] }
 0x30f   :  { %8997 = vmatprep.mubr.bf16.mxu1 %v13822_v37  ;;  %v13868_v56 = vcombine.low %v7410_v33, %v7420_v51  ;;  %v6459_v29 = vor.u32 %v6458_v48, %v6455_v5  ;;  %v6464_v50 = vrot.slane %v6462_v63, 5  ;;  %v6468_v26 = vrot.slane %v6466_v38, 4  ;;  %v7334_v9 = vld [vmem:[#allocation3 + $0x3c] sm:$0xf]  ;;  %v11365_v7 = vld [vmem:[%s14757_s4 + $0x210] sm:$0xff]  }
 0x310   :  { %v6474_v23 = vrot.slane %v6472_v53, 5  ;;  %v7422_v57 = vshrl.u32 %v7331_v58, 16  ;;  %v7425_v39 = vshll.u32 %v7331_v58, 16  ;;  %v7431_v24 = vshll.u32 %v7332_v4, 16  ;;  %v11358_v38 = vld [vmem:[#allocation3 + $0x18] sm:$0xff]  }
 0x311   :  { %v6460_v43 = vrot.slane %v6459_v29, 4  ;;  %v6469_v10 = vor.u32 %v6468_v26, %v6464_v50  ;;  %v7435_v32 = vshrl.u32 %v7332_v4, 16  ;;  %v7441_v19 = vshll.u32 %v7333_v8, 16  ;;  %v6901_v26 = vld [vmem:[#allocation3 + $0x30] sm:$0xe] }
 0x312   :  { %v7424_v37 = vrot.slane %v7422_v57, 4  ;;  %v7427_v3 = vrot.slane %v7425_v39, 5  ;;  %v7433_v2 = vrot.slane %v7431_v24, 5  ;;  %v10172_v27 = vrot.slane %v6898_v49, 9  ;;  %v7335_v49 = vld [vmem:[#allocation3 + $0x40] sm:$0xf] }
 0x313   :  { %9159 = vmatmul.mubr.bf16.gmra.mrb[156].mxu0 %v10137_v42  ;;  %v6465_v46 = vsel %vm11550_vm11, %v6460_v43, %v6464_v50  ;;  %v6470_v45 = vrot.slane %v6469_v10, 4  ;;  %v7437_v30 = vrot.slane %v7435_v32, 4  ;;  %v7443_v14 = vrot.slane %v7441_v19, 5  ;;  %v6388_v42 = vld [vmem:[#allocation3 + $0x2c] sm:$0x1] }
 0x314   :  { %9360 = vmatprep.mubr.bf16.mxu0 %v13841_v41  ;;  %v7428_v61 = vor.u32 %v7427_v3, %v7424_v37  ;;  %v7004_v17 = vrot.slane %v6899_v15, 5  ;;  %v7007_v6 = vrot.slane %v6900_v40, 5  ;;  %v6477_v31 = vshrl.u32 %v6386_v44, 16  ;;  %v6902_v24 = vld [vmem:[#allocation3 + $0x34] sm:$0xf] }
 0x315   :  { %v6475_v11 = vsel %vm11550_vm11, %v6470_v45, %v6474_v23  ;;  %v7438_v13 = vor.u32 %v7437_v30, %v7433_v2  ;;  %v6480_v55 = vshll.u32 %v6386_v44, 16  ;;  %v6486_v12 = vshll.u32 %v6387_v22, 16  ;;  %v6903_v19 = vld [vmem:[#allocation3 + $0x38] sm:$0x1] }
 0x316   :  { %8998 = vmatmul.mubr.bf16.gmra.mrb[124].mxu1 %v11354_v52  ;;  %v13878_v41 = vcombine.low %v6465_v46, %v6475_v11  ;;  %v7429_v58 = vrot.slane %v7428_v61, 4  ;;  %v13882_v16 = vsel %vm12111_vm14, %v10172_v27, %v7004_v17  ;;  %v7006_v20 = vrot.slane %v7004_v17, 4  ;;  %v11362_v44 = vld [vmem:[%s14757_s4 + $0x208] sm:$0xff]   ;;  %v11360_v52 = vld [vmem:[#allocation3 + $0x24] sm:$0xff]  }
 0x317   :  { %9199 = vmatprep.mubr.bf16.mxu1 %v10186_v21  ;;  %v7439_v5 = vrot.slane %v7438_v13, 4  ;;  %v6479_v4 = vrot.slane %v6477_v31, 4  ;;  %v6482_v48 = vrot.slane %v6480_v55, 5  ;;  %v6488_v63 = vrot.slane %v6486_v12, 5  ;;  %v7336_v21 = vld [vmem:[#allocation3 + $0x44] sm:$0x1] }
 0x318   :  { %v7434_v8 = vsel %vm11550_vm11, %v7429_v58, %v7433_v2  ;;  %v13891_v33 = vsel %vm12111_vm14, %v7006_v20, %v7007_v6  ;;  %v6490_v51 = vshrl.u32 %v6387_v22, 16  ;;  %v6496_v53 = vshll.u32 %v6388_v42, 16  ;;  %v6389_v22 = vld [vmem:[#allocation3 + $0x30] sm:$0xf]  ;;  %v6391_v11 = vld [vmem:[#allocation3 + $0x38] sm:$0x1] }
 0x319   :  { %v7444_v29 = vsel %vm11550_vm11, %v7439_v5, %v7443_v14  ;;  %v10188_v60 = vcombine.low %v13882_v16, %v13891_v33  ;;  %v6483_v0 = vor.u32 %v6482_v48, %v6479_v4  ;;  %v7446_v50 = vshrl.u32 %v7334_v9, 16  ;;  %v6390_v14 = vld [vmem:[#allocation3 + $0x34] sm:$0xf]  ;;  %v7337_v4 = vld [vmem:[#allocation3 + $0x48] sm:$0xf] }
 0x31a   :  { %v10220_v15 = vcombine.low %v7434_v8, %v7444_v29  ;;  %v6492_v23 = vrot.slane %v6490_v51, 4  ;;  %v6498_v57 = vrot.slane %v6496_v53, 5  ;;  %v7449_v39 = vshll.u32 %v7334_v9, 16  ;;  %v11385_v13 = vld [vmem:[%s14757_s4 + $0x200] sm:$0xff]  }
 0x31b   :  { %9361 = vmatmul.mubr.bf16.vlgmr.msra.gmra.mrb[160].mxu0 %v11358_v38  ;;  %v6484_v40 = vrot.slane %v6483_v0, 4  ;;  %v7448_v43 = vrot.slane %v7446_v50, 4  ;;  %v7455_v10 = vshll.u32 %v7335_v49, 16  ;;  %v7459_v32 = vshrl.u32 %v7335_v49, 16  ;;  %v7338_v38 = vld [vmem:[#allocation3 + $0x4c] sm:$0xf] }
 0x31c   :  { %9368 = vmatprep.mubr.bf16.mxu0 %v13868_v56  ;;  %v6493_v37 = vor.u32 %v6492_v23, %v6488_v63  ;;  %v7451_v3 = vrot.slane %v7449_v39, 5  ;;  %v7465_v2 = vshll.u32 %v7336_v21, 16  ;;  %v10173_v27 = vrot.slane %v6901_v26, 9  ;;  %v7339_v29 = vld [vmem:[#allocation3 + $0x50] sm:$0x1] }
 0x31d   :  { %v6489_v46 = vsel %vm11550_vm11, %v6484_v40, %v6488_v63  ;;  %v7457_v45 = vrot.slane %v7455_v10, 5  ;;  %v7461_v30 = vrot.slane %v7459_v32, 4  ;;  %v7011_v56 = vrot.slane %v6902_v24, 5  ;;  %v6904_v23 = vld [vmem:[#allocation3 + $0x3c] sm:$0xe] }
 0x31e   :  { %9200 = vmatmul.mubr.bf16.vlgmr.msra.gmra.mrb[128].mxu1 %v13855_v47  ;;  %v6494_v61 = vrot.slane %v6493_v37, 4  ;;  %v7452_v17 = vor.u32 %v7451_v3, %v7448_v43  ;;  %v7467_v6 = vrot.slane %v7465_v2, 5  ;;  %v7014_v31 = vrot.slane %v6903_v19, 5  ;;  %v6905_v10 = vld [vmem:[#allocation3 + $0x40] sm:$0xf] }
 0x31f   :  { %11129 = vmatpush3.bf16.msra.mxu1 %v11385_v13  ;;  %9207 = vmatprep.mubr.bf16.mxu1 %v10187_v59  ;;  %v7462_v42 = vor.u32 %v7461_v30, %v7457_v45  ;;  %v13912_v55 = vsel %vm12111_vm14, %v10173_v27, %v7011_v56  ;;  %v7013_v47 = vrot.slane %v7011_v56, 4  ;;  %v6501_v12 = vshrl.u32 %v6389_v22, 16  ;;  %v6906_v32 = vld [vmem:[#allocation3 + $0x44] sm:$0x1]  ;;  %v6393_v2 = vld [vmem:[#allocation3 + $0x40] sm:$0xf] }
 0x320   :  { %11130 = vmatprep.subr.bf16.mxu1 %v11362_v44  ;;  %v6499_v58 = vsel %vm11550_vm11, %v6494_v61, %v6498_v57  ;;  %v7453_v20 = vrot.slane %v7452_v17, 4  ;;  %v6504_v9 = vshll.u32 %v6389_v22, 16  ;;  %v6510_v5 = vshll.u32 %v6390_v14, 16  ;;  %v11368_v57 = vld [vmem:[%s14757_s4 + $0x218] sm:$0xff]   ;;  %v11361_v61 = vld [vmem:[#allocation3 + $0x30] sm:$0xff]  }
 0x321   :  { %v13919_v36 = vcombine.low %v6489_v46, %v6499_v58  ;;  %v7463_v59 = vrot.slane %v7462_v42, 4  ;;  %v13923_v48 = vsel %vm12111_vm14, %v7013_v47, %v7014_v31  ;;  %v6503_v63 = vrot.slane %v6501_v12, 4  ;;  %v6394_v42 = vld [vmem:[#allocation3 + $0x44] sm:$0x1] }
 0x322   :  { %v7458_v8 = vsel %vm11550_vm11, %v7453_v20, %v7457_v45  ;;  %v10189_v51 = vcombine.low %v13912_v55, %v13923_v48  ;;  %v6506_v53 = vrot.slane %v6504_v9, 5  ;;  %v6512_v49 = vrot.slane %v6510_v5, 5 }
 0x323   :  { %9369 = vmatmul.mubr.bf16.gmra.mrb[164].mxu0 %v11360_v52  ;;  %v7468_v0 = vsel %vm11550_vm11, %v7463_v59, %v7467_v6  ;;  %11131 = vmatpush3.bf16.msra.mxu1 %v11362_v44  ;;  %v6514_v21 = vshrl.u32 %v6390_v14, 16  ;;  %v6520_v50 = vshll.u32 %v6391_v11, 16  ;;  %v7470_v26 = vshrl.u32 %v7337_v4, 16  ;;  %v6392_v44 = vld [vmem:[#allocation3 + $0x3c] sm:$0xf]  ;;  %v11371_v11 = vld [vmem:[%s14757_s4 + $0x220] sm:$0xff]  }
 0x324   :  { %9376 = vmatprep.mubr.bf16.mxu0 %v10220_v15  ;;  %v10221_v39 = vcombine.low %v7458_v8, %v7468_v0  ;;  %v6507_v24 = vor.u32 %v6506_v53, %v6503_v63  ;;  %v7473_v40 = vshll.u32 %v7337_v4, 16  ;;  %v7479_v43 = vshll.u32 %v7338_v38, 16  ;;  %11132 = vmatprep.subr.bf16.mxu1 %v11365_v7 }
 0x325   :  { %v6516_v15 = vrot.slane %v6514_v21, 4  ;;  %v6522_v19 = vrot.slane %v6520_v50, 5  ;;  %v7472_v37 = vrot.slane %v7470_v26, 4  ;;  %v7483_v3 = vshrl.u32 %v7338_v38, 16  ;;  %v7340_v38 = vld [vmem:[#allocation3 + $0x54] sm:$0xf] }
 0x326   :  { %9208 = vmatmul.mubr.bf16.gmra.mrb[132].mxu1 %v13878_v41  ;;  %v6508_v27 = vrot.slane %v6507_v24, 4  ;;  %v7475_v22 = vrot.slane %v7473_v40, 5  ;;  %v7481_v46 = vrot.slane %v7479_v43, 5  ;;  %v7489_v45 = vshll.u32 %v7339_v29, 16  ;;  %v7341_v21 = vld [vmem:[#allocation3 + $0x58] sm:$0xf] }
 0x327   :  { %9215 = vmatprep.mubr.bf16.mxu1 %v10188_v60  ;;  %v6517_v30 = vor.u32 %v6516_v15, %v6512_v49  ;;  %v7485_v56 = vrot.slane %v7483_v3, 4  ;;  %v10174_v14 = vrot.slane %v6904_v23, 9  ;;  %v7018_v52 = vrot.slane %v6905_v10, 5  ;;  %11133 = vmatpush3.bf16.msra.mxu1 %v11365_v7  ;;  %v11374_v50 = vld [vmem:[%s14757_s4 + $0x228] sm:$0xff]  }
 0x328   :  { %v6513_v17 = vsel %vm11550_vm11, %v6508_v27, %v6512_v49  ;;  %v7476_v6 = vor.u32 %v7475_v22, %v7472_v37  ;;  %v7491_v31 = vrot.slane %v7489_v45, 5  ;;  %v7021_v41 = vrot.slane %v6906_v32, 5  ;;  %11134 = vmatprep.subr.bf16.mxu1 %v11368_v57  ;;  %v7342_v40 = vld [vmem:[#allocation3 + $0x5c] sm:$0x1]  ;;  %v6908_v27 = vld [vmem:[#allocation3 + $0x4c] sm:$0xf] }
 0x329   :  { %v6518_v13 = vrot.slane %v6517_v30, 4  ;;  %v7486_v16 = vor.u32 %v7485_v56, %v7481_v46  ;;  %v13945_v33 = vsel %vm12111_vm14, %v10174_v14, %v7018_v52  ;;  %v7020_v60 = vrot.slane %v7018_v52, 4  ;;  %v6909_v22 = vld [vmem:[#allocation3 + $0x50] sm:$0x1]  ;;  %v11377_v14 = vld [vmem:[%s14757_s4 + $0x230] sm:$0xff]  }
 0x32a   :  { %v7477_v12 = vrot.slane %v7476_v6, 4  ;;  %v6525_v58 = vshrl.u32 %v6392_v44, 16  ;;  %v6528_v20 = vshll.u32 %v6392_v44, 16  ;;  %v6534_v9 = vshll.u32 %v6393_v2, 16 }
 0x32b   :  { %v13947_v47 = vpop.f32.mrb[96].mxu0  ;;  %9377 = vmatmul.mubr.bf16.gmra.mrb[168].mxu0 %v11361_v61  ;;  %v6523_v4 = vsel %vm11550_vm11, %v6518_v13, %v6522_v19  ;;  %v7487_v7 = vrot.slane %v7486_v16, 4  ;;  %v13955_v59 = vsel %vm12111_vm14, %v7020_v60, %v7021_v41  ;;  %v6538_v63 = vshrl.u32 %v6393_v2, 16  ;;  %11135 = vmatpush3.bf16.msra.mxu1 %v11368_v57  ;;  %v6907_v19 = vld [vmem:[#allocation3 + $0x48] sm:$0xe] }
 0x32c   :  { %v13949_v5 = vpop.f32.mrb[97].mxu0  ;;  %9384 = vmatprep.mubr.bf16.mxu0 %v10221_v39  ;;  %v10157_v53 = vcombine.low %v6513_v17, %v6523_v4  ;;  %v7482_v49 = vsel %vm11550_vm11, %v7477_v12, %v7481_v46  ;;  %v10190_v29 = vcombine.low %v13945_v33, %v13955_v59  ;;  %v6527_v0 = vrot.slane %v6525_v58, 4  ;;  %11136 = vmatprep.subr.bf16.mxu1 %v11371_v11  ;;  %v11363_v46 = vld [vmem:[#allocation3 + $0x3c] sm:$0xff]   ;;  %v6395_v61 = vld [vmem:[#allocation3 + $0x48] sm:$0xf] }
 0x32d   :  { %v13957_v8 = vpop.f32.mrb[98].mxu0  ;;  %v7492_v23 = vsel %vm11550_vm11, %v7487_v7, %v7491_v31  ;;  %v6530_v57 = vrot.slane %v6528_v20, 5  ;;  %v6536_v39 = vrot.slane %v6534_v9, 5  ;;  %v6540_v24 = vrot.slane %v6538_v63, 4  ;;  %v6397_v12 = vld [vmem:[#allocation3 + $0x50] sm:$0x1] }
 0x32e   :  { %v13966_v26 = vpop.f32.mrb[99].mxu0  ;;  %9216 = vmatmul.mubr.bf16.gmra.mrb[136].mxu1 %v13919_v36  ;;  %v10222_v43 = vcombine.low %v7482_v49, %v7492_v23  ;;  %v6544_v10 = vshll.u32 %v6394_v42, 16  ;;  %v7494_v32 = vshrl.u32 %v7340_v38, 16  ;;  %v7497_v15 = vshll.u32 %v7340_v38, 16  ;;  %v11380_v7 = vld [vmem:[%s14757_s4 + $0x238] sm:$0xff]  }
 0x32f   :  { %9223 = vmatprep.mubr.bf16.mxu1 %v10189_v51  ;;  %v6531_v37 = vor.u32 %v6530_v57, %v6527_v0  ;;  %v6541_v3 = vor.u32 %v6540_v24, %v6536_v39  ;;  %v7503_v44 = vshll.u32 %v7341_v21, 16  ;;  %v7507_v2 = vshrl.u32 %v7341_v21, 16  ;;  %11137 = vmatpush3.bf16.msra.mxu1 %v11371_v11  ;;  %v6396_v11 = vld [vmem:[#allocation3 + $0x4c] sm:$0xf]  ;;  %v7344_v24 = vld [vmem:[#allocation3 + $0x64] sm:$0xf] }
 0x330   :  { %v6546_v45 = vrot.slane %v6544_v10, 5  ;;  %v7496_v30 = vrot.slane %v7494_v32, 4  ;;  %v7499_v36 = vrot.slane %v7497_v15, 5  ;;  %v7513_v56 = vshll.u32 %v7342_v40, 16  ;;  %11138 = vmatprep.subr.bf16.mxu1 %v11374_v50  ;;  %v7345_v32 = vld [vmem:[#allocation3 + $0x68] sm:$0x1] }
 0x331   :  { %v6532_v52 = vrot.slane %v6531_v37, 4  ;;  %v6542_v55 = vrot.slane %v6541_v3, 4  ;;  %v7505_v48 = vrot.slane %v7503_v44, 5  ;;  %v7509_v51 = vrot.slane %v7507_v2, 4  ;;  %v6910_v15 = vld [vmem:[#allocation3 + $0x54] sm:$0xe] }
 0x332   :  { %v7500_v17 = vor.u32 %v7499_v36, %v7496_v30  ;;  %v7515_v6 = vrot.slane %v7513_v56, 5  ;;  %v10175_v31 = vrot.slane %v6907_v19, 9  ;;  %v7025_v41 = vrot.slane %v6908_v27, 5  ;;  %v11364_v19 = vld [vmem:[#allocation3 + $0x48] sm:$0xff]   ;;  %v6911_v27 = vld [vmem:[#allocation3 + $0x58] sm:$0xf] }
 0x333   :  { %9385 = vmatmul.mubr.bf16.gmra.mrb[172].mxu0 %v11363_v46  ;;  %v6537_v13 = vsel %vm11550_vm11, %v6532_v52, %v6536_v39  ;;  %v6547_v16 = vsel %vm11550_vm11, %v6542_v55, %v6546_v45  ;;  %v7510_v60 = vor.u32 %v7509_v51, %v7505_v48  ;;  %v7028_v42 = vrot.slane %v6909_v22, 5  ;;  %11139 = vmatpush3.bf16.msra.mxu1 %v11374_v50  ;;  %v7343_v39 = vld [vmem:[#allocation3 + $0x60] sm:$0xf]  ;;  %v6912_v46 = vld [vmem:[#allocation3 + $0x5c] sm:$0x1] }
 0x334   :  { %9392 = vmatprep.mubr.bf16.mxu0 %v10222_v43  ;;  %v10158_v58 = vcombine.low %v6537_v13, %v6547_v16  ;;  %v7501_v20 = vrot.slane %v7500_v17, 4  ;;  %v13983_v9 = vsel %vm12111_vm14, %v10175_v31, %v7025_v41  ;;  %v7027_v4 = vrot.slane %v7025_v41, 4  ;;  %11140 = vmatprep.subr.bf16.mxu1 %v11377_v14  ;;  %v6398_v52 = vld [vmem:[#allocation3 + $0x54] sm:$0xf]  ;;  %v6399_v16 = vld [vmem:[#allocation3 + $0x58] sm:$0xf] }
 0x335   :  { %v7511_v63 = vrot.slane %v7510_v60, 4  ;;  %v6549_v38 = vshrl.u32 %v6395_v61, 16  ;;  %v6552_v49 = vshll.u32 %v6395_v61, 16  ;;  %v6558_v0 = vshll.u32 %v6396_v11, 16 }
 0x336   :  { %9224 = vmatmul.mubr.bf16.gmra.mrb[140].mxu1 %v10157_v53  ;;  %v7506_v21 = vsel %vm11550_vm11, %v7501_v20, %v7505_v48  ;;  %v7029_v50 = vsel %vm12111_vm14, %v7027_v4, %v7028_v42  ;;  %v6562_v23 = vshrl.u32 %v6396_v11, 16  ;;  %v6568_v57 = vshll.u32 %v6397_v12, 16  ;;  %v6400_v4 = vld [vmem:[#allocation3 + $0x5c] sm:$0x1] }
 0x337   :  { %9231 = vmatprep.mubr.bf16.mxu1 %v10190_v29  ;;  %v7516_v40 = vsel %vm11550_vm11, %v7511_v63, %v7515_v6  ;;  %v10191_v43 = vcombine.low %v13983_v9, %v7029_v50  ;;  %v6551_v53 = vrot.slane %v6549_v38, 4  ;;  %v6554_v10 = vrot.slane %v6552_v49, 5  ;;  %11141 = vmatpush3.bf16.msra.mxu1 %v11377_v14  ;;  %v11366_v50 = vld [vmem:[#allocation3 + $0x54] sm:$0xff]  }
 0x338   :  { %v10223_v37 = vcombine.low %v7506_v21, %v7516_v40  ;;  %v6560_v3 = vrot.slane %v6558_v0, 5  ;;  %v6564_v44 = vrot.slane %v6562_v23, 4  ;;  %v6570_v2 = vrot.slane %v6568_v57, 5  ;;  %11142 = vmatprep.subr.bf16.mxu1 %v11380_v7  ;;  %v6914_v21 = vld [vmem:[#allocation3 + $0x64] sm:$0xf] }
 0x339   :  { %v6555_v22 = vor.u32 %v6554_v10, %v6551_v53  ;;  %v7518_v33 = vshrl.u32 %v7343_v39, 16  ;;  %v7521_v59 = vshll.u32 %v7343_v39, 16  ;;  %v7527_v29 = vshll.u32 %v7344_v24, 16 }
 0x33a   :  { %v6565_v45 = vor.u32 %v6564_v44, %v6560_v3  ;;  %v7531_v30 = vshrl.u32 %v7344_v24, 16  ;;  %v7537_v36 = vshll.u32 %v7345_v32, 16  ;;  %v10176_v56 = vrot.slane %v6910_v15, 9  ;;  %v6915_v24 = vld [vmem:[#allocation3 + $0x68] sm:$0x1] }
 0x33b   :  { %9393 = vmatmul.mubr.bf16.gmra.mrb[176].mxu0 %v11364_v19  ;;  %v6556_v14 = vrot.slane %v6555_v22, 4  ;;  %v7520_v55 = vrot.slane %v7518_v33, 4  ;;  %v7523_v48 = vrot.slane %v7521_v59, 5  ;;  %v7529_v51 = vrot.slane %v7527_v29, 5  ;;  %11143 = vmatpush3.bf16.msra.mxu1 %v11380_v7  ;;  %v6913_v7 = vld [vmem:[#allocation3 + $0x60] sm:$0xe] }
 0x33c   :  { %9400 = vmatprep.mubr.bf16.mxu0 %v10223_v37  ;;  %v6566_v61 = vrot.slane %v6565_v45, 4  ;;  %v7533_v17 = vrot.slane %v7531_v30, 4  ;;  %v7539_v6 = vrot.slane %v7537_v36, 5  ;;  %v7032_v31 = vrot.slane %v6911_v27, 5  ;;  %v274_v15 = vld [vmem:[#allocation3 + $0x74] sm:$0x1] }
 0x33d   :  { %v6561_v41 = vsel %vm11550_vm11, %v6556_v14, %v6560_v3  ;;  %v7524_v11 = vor.u32 %v7523_v48, %v7520_v55  ;;  %v7035_v13 = vrot.slane %v6912_v46, 5  ;;  %v6573_v60 = vshrl.u32 %v6398_v52, 16  ;;  %v6401_v29 = vld [vmem:[#allocation3 + $0x60] sm:$0xf] }
 0x33e   :  { %9232 = vmatmul.mubr.bf16.gmra.mrb[144].mxu1 %v10158_v58  ;;  %v6571_v42 = vsel %vm11550_vm11, %v6566_v61, %v6570_v2  ;;  %v7534_v12 = vor.u32 %v7533_v17, %v7529_v51  ;;  %v7033_v20 = vsel %vm12111_vm14, %v10176_v56, %v7032_v31  ;;  %v7034_v9 = vrot.slane %v7032_v31, 4  ;;  %v7347_v2 = vld [vmem:[#allocation3 + $0x70] sm:$0xf]  ;;  %v6402_v56 = vld [vmem:[#allocation3 + $0x64] sm:$0xf] }
 0x33f   :  { %9239 = vmatprep.mubr.bf16.mxu1 %v10191_v43  ;;  %v10159_v63 = vcombine.low %v6561_v41, %v6571_v42  ;;  %v7525_v38 = vrot.slane %v7524_v11, 4  ;;  %v6575_v49 = vrot.slane %v6573_v60, 4  ;;  %v6576_v0 = vshll.u32 %v6398_v52, 16  ;;  %v213_v43 = vld [vmem:[#allocation3 + $0x6c] sm:$0x1]  ;;  %v11367_v42 = vld [vmem:[#allocation3 + $0x60] sm:$0xff]  }
 0x340   :  { %v7535_v23 = vrot.slane %v7534_v12, 4  ;;  %v7036_v58 = vsel %vm12111_vm14, %v7034_v9, %v7035_v13  ;;  %v6582_v57 = vshll.u32 %v6399_v16, 16  ;;  %v6586_v39 = vshrl.u32 %v6399_v16, 16  ;;  %v6403_v13 = vld [vmem:[#allocation3 + $0x68] sm:$0x1] }
 0x341   :  { %v7530_v40 = vsel %vm11550_vm11, %v7525_v38, %v7529_v51  ;;  %v10192_v53 = vcombine.low %v7033_v20, %v7036_v58  ;;  %v6578_v10 = vrot.slane %v6576_v0, 5  ;;  %v6592_v32 = vshll.u32 %v6400_v4, 16  ;;  %v7349_v60 = vld [vmem:[#allocation3 + $0x90] sm:$0xf] }
 0x342   :  { %v7540_v19 = vsel %vm11550_vm11, %v7535_v23, %v7539_v6  ;;  %v6584_v37 = vrot.slane %v6582_v57, 5  ;;  %v6588_v3 = vrot.slane %v6586_v39, 4  ;;  %v10177_v44 = vrot.slane %v6913_v7, 9  ;;  %v7350_v7 = vld [vmem:[#allocation3 + $0x94] sm:$0xf] }
 0x343   :  { %9401 = vmatmul.mubr.bf16.gmra.mrb[180].mxu0 %v11366_v50  ;;  %v10224_v27 = vcombine.low %v7530_v40, %v7540_v19  ;;  %v6579_v22 = vor.u32 %v6578_v10, %v6575_v49  ;;  %v6594_v33 = vrot.slane %v6592_v32, 5  ;;  %v7039_v59 = vrot.slane %v6914_v21, 5 }
 0x344   :  { %v6589_v46 = vor.u32 %v6588_v3, %v6584_v37  ;;  %v7042_v45 = vrot.slane %v6915_v24, 5  ;;  %v214_v30 = vsel %vm12890_vm3, 0, %v213_v43  ;;  %v275_v36 = vsel %vm12898_vm5, 0, %v274_v15  ;;  %v7351_v43 = vld [vmem:[#allocation3 + $0x98] sm:$0x1] }
 0x345   :  { %9408 = vmatprep.mubr.bf16.mxu0 %v10224_v27  ;;  %v6580_v52 = vrot.slane %v6579_v22, 4  ;;  %v7040_v14 = vsel %vm12111_vm14, %v10177_v44, %v7039_v59  ;;  %v7041_v55 = vrot.slane %v7039_v59, 4  ;;  %215 = vst [vmem:[#allocation3 + $0x6c] sm:$0x1] %v214_v30  ;;  %276 = vst [vmem:[#allocation3 + $0x74] sm:$0x1] %v275_v36  ;;  %v14027_v15 = vadd.f32 %v13798_v62, %v13784_v54 }
 0x346   :  { %v7551_v48 = vshll.u32 %v7347_v2, 16  ;;  %9240 = vmatmul.mubr.bf16.gmra.mrb[148].mxu1 %v10159_v63  ;;  %v6590_v51 = vrot.slane %v6589_v46, 4  ;;  %v7555_v61 = vshrl.u32 %v7347_v2, 16  ;;  %v6597_v17 = vshrl.u32 %v6401_v29, 16  ;;  %v6916_v46 = vld [vmem:[#allocation3 + $0x84] sm:$0xe] }
 0x347   :  { %v6600_v6 = vshll.u32 %v6401_v29, 16  ;;  %9247 = vmatprep.mubr.bf16.mxu1 %v10192_v53  ;;  %v6585_v31 = vsel %vm11550_vm11, %v6580_v52, %v6584_v37  ;;  %v7043_v41 = vsel %vm12111_vm14, %v7041_v55, %v7042_v45  ;;  %v6606_v16 = vshll.u32 %v6402_v56, 16 }
 0x348   :  { %v14020_v11 = vrot.slane %v7551_v48, 5  ;;  %v6595_v12 = vsel %vm11550_vm11, %v6590_v51, %v6594_v33  ;;  %v10193_v20 = vcombine.low %v7040_v14, %v7043_v41  ;;  %v7557_v9 = vrot.slane %v7555_v61, 4  ;;  %v6405_v41 = vld [vmem:[#allocation3 + $0x88] sm:$0xf] }
 0x349   :  { %v6599_v4 = vrot.slane %v6597_v17, 4  ;;  %v10160_v63 = vcombine.low %v6585_v31, %v6595_v12  ;;  %v6602_v38 = vrot.slane %v6600_v6, 5  ;;  %v6608_v49 = vrot.slane %v6606_v16, 5  ;;  %v6404_v31 = vld [vmem:[#allocation3 + $0x84] sm:$0xf] }
 0x34a   :  { %v6610_v0 = vshrl.u32 %v6402_v56, 16  ;;  %v7558_v21 = vor.u32 %v7557_v9, %v14020_v11  ;;  %v6616_v50 = vshll.u32 %v6403_v13, 16  ;;  %v7566_v23 = vshrl.u32 %v7349_v60, 16  ;;  %v6918_v56 = vld [vmem:[#allocation3 + $0x8c] sm:$0x1] }
 0x34b   :  { %9409 = vmatmul.mubr.bf16.gmra.mrb[184].mxu0 %v11367_v42  ;;  %v7569_v58 = vshll.u32 %v7349_v60, 16  ;;  %v6603_v57 = vor.u32 %v6602_v38, %v6599_v4  ;;  %v7575_v24 = vshll.u32 %v7350_v7, 16  ;;  %v7579_v40 = vshrl.u32 %v7350_v7, 16  ;;  %v6406_v7 = vld [vmem:[#allocation3 + $0x8c] sm:$0x1] }
 0x34c   :  { %v6612_v39 = vrot.slane %v6610_v0, 4  ;;  %v7346_v53 = vld [vmem:[#allocation3 + $0x6c] sm:$0xf]  ;;  %v7348_v10 = vld [vmem:[#allocation3 + $0x74] sm:$0x1]  ;;  %v7559_v32 = vrot.slane %v7558_v21, 4  ;;  %v14031_v19 = vadd.f32 %v13809_v25, %v13803_v1  ;;  %v14035_v37 = vadd.f32 %v13949_v5, %v13947_v47 }
 0x34d   :  { %v7542_v3 = vshrl.u32 %v7346_v53, 16  ;;  %v7545_v44 = vshll.u32 %v7346_v53, 16  ;;  %v7561_v2 = vshll.u32 %v7348_v10, 16  ;;  %v6604_v27 = vrot.slane %v6603_v57, 4  ;;  %v6917_v25 = vld [vmem:[#allocation3 + $0x88] sm:$0xf] }
 0x34e   :  { %9248 = vmatmul.mubr.bf16.gmra.mrb[152].mxu1 %v10160_v63  ;;  %v6613_v22 = vor.u32 %v6612_v39, %v6608_v49  ;;  %v6618_v33 = vrot.slane %v6616_v50, 5  ;;  %v7568_v59 = vrot.slane %v7566_v23, 4  ;;  %v7571_v29 = vrot.slane %v7569_v58, 5  ;;  %v11369_v38 = vld [vmem:[#allocation3 + $0x6c] sm:$0xff]   ;;  %v7352_v50 = vld [vmem:[#allocation3 + $0x9c] sm:$0xf] }
 0x34f   :  { %9255 = vmatprep.mubr.bf16.mxu1 %v10193_v20  ;;  %v7544_v54 = vrot.slane %v7542_v3, 4  ;;  %v7547_v62 = vrot.slane %v7545_v44, 5  ;;  %v7563_v45 = vrot.slane %v7561_v2, 5  ;;  %v6609_v1 = vsel %vm11550_vm11, %v6604_v27, %v6608_v49  ;;  %v6920_v3 = vld [vmem:[#allocation3 + $0x94] sm:$0xf] }
 0x350   :  { %v6614_v47 = vrot.slane %v6613_v22, 4  ;;  %v7572_v5 = vor.u32 %v7571_v29, %v7568_v59  ;;  %v7577_v30 = vrot.slane %v7575_v24, 5  ;;  %v7581_v36 = vrot.slane %v7579_v40, 4  ;;  %v7353_v24 = vld [vmem:[#allocation3 + $0xa0] sm:$0xf] }
 0x351   :  { %v7548_v52 = vor.u32 %v7547_v62, %v7544_v54  ;;  %v7564_v14 = vsel %vm11550_vm11, %v7559_v32, %v7563_v45  ;;  %v7585_v55 = vshll.u32 %v7351_v43, 16  ;;  %v10178_v48 = vrot.slane %v6916_v46, 9  ;;  %v7354_v40 = vld [vmem:[#allocation3 + $0xa4] sm:$0x1]  ;;  %v6919_v43 = vld [vmem:[#allocation3 + $0x90] sm:$0xe] }
 0x352   :  { %v6619_v51 = vsel %vm11550_vm11, %v6614_v47, %v6618_v33  ;;  %v7573_v61 = vrot.slane %v7572_v5, 4  ;;  %v7582_v17 = vor.u32 %v7581_v36, %v7577_v30  ;;  %v7046_v6 = vrot.slane %v6917_v25, 5  ;;  %v6921_v33 = vld [vmem:[#allocation3 + $0x98] sm:$0x1]  ;;  %v6407_v45 = vld [vmem:[#allocation3 + $0x90] sm:$0xf] }
 0x353   :  { %v7549_v13 = vrot.slane %v7548_v52, 4  ;;  %v10161_v16 = vcombine.low %v6609_v1, %v6619_v51  ;;  %v7587_v60 = vrot.slane %v7585_v55, 5  ;;  %v7049_v42 = vrot.slane %v6918_v56, 5 }
 0x354   :  { %v7578_v12 = vsel %vm11550_vm11, %v7573_v61, %v7577_v30  ;;  %v7583_v20 = vrot.slane %v7582_v17, 4  ;;  %v7047_v9 = vsel %vm12111_vm14, %v10178_v48, %v7046_v6  ;;  %v7048_v4 = vrot.slane %v7046_v6, 4 }
 0x355   :  { %v7554_v63 = vsel %vm11550_vm11, %v7549_v13, %v14020_v11  ;;  %v6621_v49 = vshrl.u32 %v6404_v31, 16  ;;  %v6624_v0 = vshll.u32 %v6404_v31, 16  ;;  %v6630_v21 = vshll.u32 %v6405_v41, 16 }
 0x356   :  { %v10225_v23 = vcombine.low %v7554_v63, %v7564_v14  ;;  %9256 = vmatmul.mubr.bf16.gmra.mrb[156].mxu1 %v10161_v16  ;;  %v7588_v58 = vsel %vm11550_vm11, %v7583_v20, %v7587_v60  ;;  %v7050_v57 = vsel %vm12111_vm14, %v7048_v4, %v7049_v42  ;;  %v6634_v39 = vshrl.u32 %v6405_v41, 16  ;;  %v6408_v20 = vld [vmem:[#allocation3 + $0x94] sm:$0xf] }
 0x357   :  { %v10226_v53 = vcombine.low %v7578_v12, %v7588_v58  ;;  %v10194_v10 = vcombine.low %v7047_v9, %v7050_v57  ;;  %v6623_v32 = vrot.slane %v6621_v49, 4  ;;  %v6626_v11 = vrot.slane %v6624_v0, 5  ;;  %v11370_v0 = vld [vmem:[#allocation3 + $0x90] sm:$0xff]   ;;  %v7355_v57 = vld [vmem:[#allocation3 + $0xa8] sm:$0xf] }
 0x358   :  { %9416 = vmatprep.mubr.bf16.mxu0 %v10225_v23  ;;  %v6632_v44 = vrot.slane %v6630_v21, 5  ;;  %v6636_v2 = vrot.slane %v6634_v39, 4  ;;  %v6640_v27 = vshll.u32 %v6406_v7, 16  ;;  %v7590_v22 = vshrl.u32 %v7352_v50, 16  ;;  %v14054_v59 = vpop.f32.mrb[100].mxu0 }
 0x359   :  { %9417 = vmatmul.mubr.bf16.gmra.mrb[188].mxu0 %v11369_v38  ;;  %9263 = vmatprep.mubr.bf16.mxu1 %v10194_v10  ;;  %v6627_v29 = vor.u32 %v6626_v11, %v6623_v32  ;;  %v7593_v46 = vshll.u32 %v7352_v50, 16  ;;  %v7599_v54 = vshll.u32 %v7353_v24, 16  ;;  %v7603_v62 = vshrl.u32 %v7353_v24, 16  ;;  %v14056_v1 = vpop.f32.mrb[101].mxu0  ;;  %v6409_v38 = vld [vmem:[#allocation3 + $0x98] sm:$0x1] }
 0x35a   :  { %9424 = vmatprep.mubr.bf16.mxu0 %v10226_v53  ;;  %v6637_v25 = vor.u32 %v6636_v2, %v6632_v44  ;;  %v6642_v47 = vrot.slane %v6640_v27, 5  ;;  %v7592_v5 = vrot.slane %v7590_v22, 4  ;;  %v7609_v30 = vshll.u32 %v7354_v40, 16  ;;  %v14058_v36 = vpop.f32.mrb[68].mxu1  ;;  %v14060_v56 = vpop.f32.mrb[102].mxu0 }
 0x35b   :  { %v6628_v52 = vrot.slane %v6627_v29, 4  ;;  %v7595_v14 = vrot.slane %v7593_v46, 5  ;;  %v7601_v55 = vrot.slane %v7599_v54, 5  ;;  %v7605_v48 = vrot.slane %v7603_v62, 4  ;;  %v14062_v51 = vpop.f32.mrb[69].mxu1  ;;  %v14064_v61 = vpop.f32.mrb[103].mxu0 }
 0x35c   :  { %v6638_v17 = vrot.slane %v6637_v25, 4  ;;  %v7611_v6 = vrot.slane %v7609_v30, 5  ;;  %v10179_v31 = vrot.slane %v6919_v43, 9  ;;  %v7053_v41 = vrot.slane %v6920_v3, 5  ;;  %v14066_v13 = vpop.f32.mrb[70].mxu1 }
 0x35d   :  { %v6633_v16 = vsel %vm11550_vm11, %v6628_v52, %v6632_v44  ;;  %v7596_v60 = vor.u32 %v7595_v14, %v7592_v5  ;;  %v7606_v42 = vor.u32 %v7605_v48, %v7601_v55  ;;  %v7056_v12 = vrot.slane %v6921_v33, 5  ;;  %v14070_v9 = vpop.f32.mrb[71].mxu1  ;;  %v7356_v10 = vld [vmem:[#allocation3 + $0xac] sm:$0xf]  ;;  %v7357_v44 = vld [vmem:[#allocation3 + $0xb0] sm:$0x1] }
 0x35e   :  { %v6643_v4 = vsel %vm11550_vm11, %v6638_v17, %v6642_v47  ;;  %v7054_v7 = vsel %vm12111_vm14, %v10179_v31, %v7053_v41  ;;  %v7055_v63 = vrot.slane %v7053_v41, 4  ;;  %v6645_v49 = vshrl.u32 %v6407_v45, 16  ;;  %v6922_v2 = vld [vmem:[#allocation3 + $0x9c] sm:$0xe]  ;;  %v6923_v46 = vld [vmem:[#allocation3 + $0xa0] sm:$0xf] }
 0x35f   :  { %v10162_v21 = vcombine.low %v6633_v16, %v6643_v4  ;;  %v7597_v50 = vrot.slane %v7596_v60, 4  ;;  %v7607_v23 = vrot.slane %v7606_v42, 4  ;;  %v6648_v58 = vshll.u32 %v6407_v45, 16  ;;  %v6924_v47 = vld [vmem:[#allocation3 + $0xa4] sm:$0x1]  ;;  %v11372_v4 = vld [vmem:[#allocation3 + $0x9c] sm:$0xff]  }
 0x360   :  { %v7057_v39 = vsel %vm12111_vm14, %v7055_v63, %v7056_v12  ;;  %v6647_v24 = vrot.slane %v6645_v49, 4  ;;  %v6654_v40 = vshll.u32 %v6408_v20, 16  ;;  %v6658_v53 = vshrl.u32 %v6408_v20, 16 }
 0x361   :  { %9425 = vmatmul.mubr.bf16.gmra.mrb[192].mxu0 %v11370_v0  ;;  %9264 = vmatmul.mubr.bf16.gmra.mrb[160].mxu1 %v10162_v21  ;;  %v7602_v32 = vsel %vm11550_vm11, %v7597_v50, %v7601_v55  ;;  %v7612_v11 = vsel %vm11550_vm11, %v7607_v23, %v7611_v6  ;;  %v10195_v43 = vcombine.low %v7054_v7, %v7057_v39  ;;  %v6650_v3 = vrot.slane %v6648_v58, 5  ;;  %v6410_v55 = vld [vmem:[#allocation3 + $0x9c] sm:$0xf]  ;;  %v6411_v0 = vld [vmem:[#allocation3 + $0xa0] sm:$0xf] }
 0x362   :  { %v10227_v27 = vcombine.low %v7602_v32, %v7612_v11  ;;  %v6656_v22 = vrot.slane %v6654_v40, 5  ;;  %v6660_v33 = vrot.slane %v6658_v53, 4  ;;  %v6664_v29 = vshll.u32 %v6409_v38, 16  ;;  %v6412_v58 = vld [vmem:[#allocation3 + $0xa4] sm:$0x1] }
 0x363   :  { %9271 = vmatprep.mubr.bf16.mxu1 %v10195_v43  ;;  %v6651_v54 = vor.u32 %v6650_v3, %v6647_v24  ;;  %v7614_v62 = vshrl.u32 %v7355_v57, 16  ;;  %v7617_v45 = vshll.u32 %v7355_v57, 16  ;;  %v7623_v25 = vshll.u32 %v7356_v10, 16  ;;  %v7358_v11 = vld [vmem:[#allocation3 + $0xb4] sm:$0xf] }
 0x364   :  { %9432 = vmatprep.mubr.bf16.mxu0 %v10227_v27  ;;  %v6661_v5 = vor.u32 %v6660_v33, %v6656_v22  ;;  %v6666_v30 = vrot.slane %v6664_v29, 5  ;;  %v7627_v52 = vshrl.u32 %v7356_v10, 16  ;;  %v7633_v14 = vshll.u32 %v7357_v44, 16 }
 0x365   :  { %v6652_v48 = vrot.slane %v6651_v54, 4  ;;  %v7616_v17 = vrot.slane %v7614_v62, 4  ;;  %v7619_v6 = vrot.slane %v7617_v45, 5  ;;  %v7625_v31 = vrot.slane %v7623_v25, 5  ;;  %v14082_v41 = vpop.f32.mrb[72].mxu1 }
 0x366   :  { %v6662_v16 = vrot.slane %v6661_v5, 4  ;;  %v7629_v60 = vrot.slane %v7627_v52, 4  ;;  %v7635_v42 = vrot.slane %v7633_v14, 5  ;;  %v10180_v12 = vrot.slane %v6922_v2, 9  ;;  %v14084_v20 = vpop.f32.mrb[73].mxu1 }
 0x367   :  { %v6657_v7 = vsel %vm11550_vm11, %v6652_v48, %v6656_v22  ;;  %v7620_v63 = vor.u32 %v7619_v6, %v7616_v17  ;;  %v7060_v38 = vrot.slane %v6923_v46, 5  ;;  %v7063_v49 = vrot.slane %v6924_v47, 5  ;;  %v14088_v21 = vpop.f32.mrb[74].mxu1  ;;  %v7359_v62 = vld [vmem:[#allocation3 + $0xb8] sm:$0xf] }
 0x368   :  { %v6667_v50 = vsel %vm11550_vm11, %v6662_v16, %v6666_v30  ;;  %v7630_v23 = vor.u32 %v7629_v60, %v7625_v31  ;;  %v6669_v57 = vshrl.u32 %v6410_v55, 16  ;;  %v6672_v39 = vshll.u32 %v6410_v55, 16  ;;  %v14092_v24 = vpop.f32.mrb[75].mxu1  ;;  %v14096_v43 = vpop.f32.mrb[104].mxu0  ;;  %v7360_v52 = vld [vmem:[#allocation3 + $0xbc] sm:$0x1] }
 0x369   :  { %9433 = vmatmul.mubr.bf16.gmra.mrb[196].mxu0 %v11372_v4  ;;  %v10163_v40 = vcombine.low %v6657_v7, %v6667_v50  ;;  %v7621_v53 = vrot.slane %v7620_v63, 4  ;;  %v7061_v10 = vsel %vm12111_vm14, %v10180_v12, %v7060_v38  ;;  %v7062_v32 = vrot.slane %v7060_v38, 4  ;;  %v14098_v22 = vpop.f32.mrb[105].mxu0  ;;  %v6925_v14 = vld [vmem:[#allocation3 + $0xa8] sm:$0xe] }
 0x36a   :  { %v7631_v3 = vrot.slane %v7630_v23, 4  ;;  %v6671_v44 = vrot.slane %v6669_v57, 4  ;;  %v6674_v2 = vrot.slane %v6672_v39, 5  ;;  %v6678_v27 = vshll.u32 %v6411_v0, 16  ;;  %v14104_v45 = vpop.f32.mrb[106].mxu0 }
 0x36b   :  { %9272 = vmatmul.mubr.bf16.gmra.mrb[164].mxu1 %v10163_v40  ;;  %v7626_v33 = vsel %vm11550_vm11, %v7621_v53, %v7625_v31  ;;  %v7064_v29 = vsel %vm12111_vm14, %v7062_v32, %v7063_v49  ;;  %v6682_v46 = vshrl.u32 %v6411_v0, 16  ;;  %v6688_v54 = vshll.u32 %v6412_v58, 16  ;;  %v14108_v55 = vpop.f32.mrb[107].mxu0  ;;  %v6926_v16 = vld [vmem:[#allocation3 + $0xac] sm:$0xf] }
 0x36c   :  { %v7636_v25 = vsel %vm11550_vm11, %v7631_v3, %v7635_v42  ;;  %v10196_v47 = vcombine.low %v7061_v10, %v7064_v29  ;;  %v6675_v5 = vor.u32 %v6674_v2, %v6671_v44  ;;  %v6680_v30 = vrot.slane %v6678_v27, 5  ;;  %v6927_v63 = vld [vmem:[#allocation3 + $0xb0] sm:$0x1]  ;;  %v11373_v42 = vld [vmem:[#allocation3 + $0xa8] sm:$0xff]  }
 0x36d   :  { %v10228_v48 = vcombine.low %v7626_v33, %v7636_v25  ;;  %v6684_v17 = vrot.slane %v6682_v46, 4  ;;  %v6690_v6 = vrot.slane %v6688_v54, 5  ;;  %v7638_v31 = vshrl.u32 %v7358_v11, 16  ;;  %v6413_v40 = vld [vmem:[#allocation3 + $0xa8] sm:$0xf] }
 0x36e   :  { %9279 = vmatprep.mubr.bf16.mxu1 %v10196_v47  ;;  %v6676_v60 = vrot.slane %v6675_v5, 4  ;;  %v7641_v12 = vshll.u32 %v7358_v11, 16  ;;  %v7647_v4 = vshll.u32 %v7359_v62, 16  ;;  %v7651_v7 = vshrl.u32 %v7359_v62, 16  ;;  %v6414_v33 = vld [vmem:[#allocation3 + $0xac] sm:$0xf] }
 0x36f   :  { %9440 = vmatprep.mubr.bf16.mxu0 %v10228_v48  ;;  %v6685_v38 = vor.u32 %v6684_v17, %v6680_v30  ;;  %v7640_v49 = vrot.slane %v7638_v31, 4  ;;  %v7657_v0 = vshll.u32 %v7360_v52, 16  ;;  %v10181_v50 = vrot.slane %v6925_v14, 9  ;;  %v7362_v48 = vld [vmem:[#allocation3 + $0xc4] sm:$0xf] }
 0x370   :  { %v6681_v23 = vsel %vm11550_vm11, %v6676_v60, %v6680_v30  ;;  %v7643_v58 = vrot.slane %v7641_v12, 5  ;;  %v7649_v57 = vrot.slane %v7647_v4, 5  ;;  %v7653_v39 = vrot.slane %v7651_v7, 4  ;;  %v6928_v60 = vld [vmem:[#allocation3 + $0xb4] sm:$0xe] }
 0x371   :  { %9441 = vmatmul.mubr.bf16.gmra.mrb[200].mxu0 %v11373_v42  ;;  %v6686_v53 = vrot.slane %v6685_v38, 4  ;;  %v7659_v10 = vrot.slane %v7657_v0, 5  ;;  %v7067_v32 = vrot.slane %v6926_v16, 5  ;;  %v7070_v11 = vrot.slane %v6927_v63, 5  ;;  %v6929_v42 = vld [vmem:[#allocation3 + $0xb8] sm:$0xf] }
 0x372   :  { %v7644_v3 = vor.u32 %v7643_v58, %v7640_v49  ;;  %v7654_v44 = vor.u32 %v7653_v39, %v7649_v57  ;;  %v14114_v2 = vadd.f32 %v14035_v37, %v14027_v15  ;;  %v10749_v27 = vadd.f32 %v13966_v26, %v13957_v8  ;;  %v6415_v15 = vld [vmem:[#allocation3 + $0xb0] sm:$0x1]  ;;  %v7361_v37 = vld [vmem:[#allocation3 + $0xc0] sm:$0xf]  ;;  %v11375_v38 = vld [vmem:[#allocation3 + $0xb4] sm:$0xff]  }
 0x373   :  { %v6691_v29 = vsel %vm11550_vm11, %v6686_v53, %v6690_v6  ;;  %v7068_v46 = vsel %vm12111_vm14, %v10181_v50, %v7067_v32  ;;  %v7069_v54 = vrot.slane %v7067_v32, 4  ;;  %v6693_v62 = vshrl.u32 %v6413_v40, 16 }
 0x374   :  { %v10164_v25 = vcombine.low %v6681_v23, %v6691_v29  ;;  %v7645_v47 = vrot.slane %v7644_v3, 4  ;;  %v7655_v5 = vrot.slane %v7654_v44, 4  ;;  %v14123_v30 = vadd.f32 %v10749_v27, %v14031_v19  ;;  %v7363_v19 = vld [vmem:[#allocation3 + $0xc8] sm:$0x1] }
 0x375   :  { %v7071_v8 = vsel %vm12111_vm14, %v7069_v54, %v7070_v11  ;;  %v6695_v26 = vrot.slane %v6693_v62, 4  ;;  %v6696_v52 = vshll.u32 %v6413_v40, 16  ;;  %v6702_v14 = vshll.u32 %v6414_v33, 16 }
 0x376   :  { %9280 = vmatmul.mubr.bf16.gmra.mrb[168].mxu1 %v10164_v25  ;;  %v7650_v17 = vsel %vm11550_vm11, %v7645_v47, %v7649_v57  ;;  %v7660_v6 = vsel %vm11550_vm11, %v7655_v5, %v7659_v10  ;;  %v10197_v31 = vcombine.low %v7068_v46, %v7071_v8  ;;  %v6706_v16 = vshrl.u32 %v6414_v33, 16  ;;  %v6930_v10 = vld [vmem:[#allocation3 + $0xbc] sm:$0x1] }
 0x377   :  { %v10229_v12 = vcombine.low %v7650_v17, %v7660_v6  ;;  %v6698_v4 = vrot.slane %v6696_v52, 5  ;;  %v6704_v7 = vrot.slane %v6702_v14, 5  ;;  %v6712_v63 = vshll.u32 %v6415_v15, 16  ;;  %v6416_v6 = vld [vmem:[#allocation3 + $0xb4] sm:$0xf] }
 0x378   :  { %9287 = vmatprep.mubr.bf16.mxu1 %v10197_v31  ;;  %v6708_v49 = vrot.slane %v6706_v16, 4  ;;  %v7662_v0 = vshrl.u32 %v7361_v37, 16  ;;  %v7665_v50 = vshll.u32 %v7361_v37, 16  ;;  %v7671_v23 = vshll.u32 %v7362_v48, 16 }
 0x379   :  { %v14131_v58 = vpop.f32.mrb[76].mxu1  ;;  %9448 = vmatprep.mubr.bf16.mxu0 %v10229_v12  ;;  %v6699_v57 = vor.u32 %v6698_v4, %v6695_v26  ;;  %v6714_v39 = vrot.slane %v6712_v63, 5  ;;  %v7675_v40 = vshrl.u32 %v7362_v48, 16  ;;  %v7681_v53 = vshll.u32 %v7363_v19, 16  ;;  %v6417_v4 = vld [vmem:[#allocation3 + $0xb8] sm:$0xf] }
 0x37a   :  { %v14133_v32 = vpop.f32.mrb[77].mxu1  ;;  %9449 = vmatmul.mubr.bf16.gmra.mrb[204].mxu0 %v11375_v38  ;;  %v6709_v11 = vor.u32 %v6708_v49, %v6704_v7  ;;  %v7664_v3 = vrot.slane %v7662_v0, 4  ;;  %v7667_v44 = vrot.slane %v7665_v50, 5  ;;  %v7673_v27 = vrot.slane %v7671_v23, 5  ;;  %v6418_v49 = vld [vmem:[#allocation3 + $0xbc] sm:$0x1] }
 0x37b   :  { %v14135_v33 = vpop.f32.mrb[78].mxu1  ;;  %v6700_v29 = vrot.slane %v6699_v57, 4  ;;  %v7677_v46 = vrot.slane %v7675_v40, 4  ;;  %v7683_v54 = vrot.slane %v7681_v53, 5  ;;  %v10182_v62 = vrot.slane %v6928_v60, 9 }
 0x37c   :  { %v14137_v25 = vpop.f32.mrb[108].mxu0  ;;  %v14139_v47 = vpop.f32.mrb[79].mxu1  ;;  %v6710_v5 = vrot.slane %v6709_v11, 4  ;;  %v7668_v15 = vor.u32 %v7667_v44, %v7664_v3  ;;  %v7074_v37 = vrot.slane %v6929_v42, 5  ;;  %v7077_v8 = vrot.slane %v6930_v10, 5  ;;  %v11376_v10 = vld [vmem:[#allocation3 + $0xc0] sm:$0xff]  }
 0x37d   :  { %v14141_v26 = vpop.f32.mrb[109].mxu0  ;;  %v6705_v52 = vsel %vm11550_vm11, %v6700_v29, %v6704_v7  ;;  %v7678_v14 = vor.u32 %v7677_v46, %v7673_v27  ;;  %v10752_v48 = vadd.f32 %v14056_v1, %v14054_v59  ;;  %v10640_v17 = vadd.f32 %v14062_v51, %v14058_v36  ;;  %v7364_v50 = vld [vmem:[#allocation3 + $0xcc] sm:$0xf]  ;;  %v7366_v44 = vld [vmem:[#allocation3 + $0xd4] sm:$0x1] }
 0x37e   :  { %v14149_v31 = vpop.f32.mrb[110].mxu0  ;;  %v6715_v16 = vsel %vm11550_vm11, %v6710_v5, %v6714_v39  ;;  %v7669_v19 = vrot.slane %v7668_v15, 4  ;;  %v7075_v60 = vsel %vm12111_vm14, %v10182_v62, %v7074_v37  ;;  %v7076_v12 = vrot.slane %v7074_v37, 4  ;;  %v6931_v46 = vld [vmem:[#allocation3 + $0xc0] sm:$0xe] }
 0x37f   :  { %v14155_v7 = vpop.f32.mrb[111].mxu0  ;;  %v10165_v63 = vcombine.low %v6705_v52, %v6715_v16  ;;  %v7679_v42 = vrot.slane %v7678_v14, 4  ;;  %v14157_v59 = vadd.f32 %v10752_v48, %v10640_v17  ;;  %v10755_v1 = vadd.f32 %v14064_v61, %v14060_v56  ;;  %v7365_v56 = vld [vmem:[#allocation3 + $0xd0] sm:$0xf]  ;;  %v6932_v37 = vld [vmem:[#allocation3 + $0xc4] sm:$0xf] }
 0x380   :  { %v7674_v36 = vsel %vm11550_vm11, %v7669_v19, %v7673_v27  ;;  %v7078_v51 = vsel %vm12111_vm14, %v7076_v12, %v7077_v8  ;;  %v10643_v38 = vadd.f32 %v14070_v9, %v14066_v13  ;;  %v6717_v0 = vshrl.u32 %v6416_v6, 16  ;;  %v6933_v17 = vld [vmem:[#allocation3 + $0xc8] sm:$0x1] }
 0x381   :  { %9288 = vmatmul.mubr.bf16.gmra.mrb[172].mxu1 %v10165_v63  ;;  %v7684_v23 = vsel %vm11550_vm11, %v7679_v42, %v7683_v54  ;;  %v10198_v57 = vcombine.low %v7075_v60, %v7078_v51  ;;  %v6720_v39 = vshll.u32 %v6416_v6, 16  ;;  %v6726_v40 = vshll.u32 %v6417_v4, 16 }
 0x382   :  { %v10230_v61 = vcombine.low %v7674_v36, %v7684_v23  ;;  %v14169_v53 = vadd.f32 %v10755_v1, %v10643_v38  ;;  %v6719_v11 = vrot.slane %v6717_v0, 4  ;;  %v6730_v3 = vshrl.u32 %v6417_v4, 16 }
 0x383   :  { %9295 = vmatprep.mubr.bf16.mxu1 %v10198_v57  ;;  %v6722_v13 = vrot.slane %v6720_v39, 5  ;;  %v6728_v9 = vrot.slane %v6726_v40, 5  ;;  %v6736_v27 = vshll.u32 %v6418_v49, 16  ;;  %v7686_v29 = vshrl.u32 %v7364_v50, 16  ;;  %v6419_v57 = vld [vmem:[#allocation3 + $0xc0] sm:$0xf] }
 0x384   :  { %9456 = vmatprep.mubr.bf16.mxu0 %v10230_v61  ;;  %v6732_v62 = vrot.slane %v6730_v3, 4  ;;  %v7689_v54 = vshll.u32 %v7364_v50, 16  ;;  %v7695_v5 = vshll.u32 %v7365_v56, 16  ;;  %v7699_v15 = vshrl.u32 %v7365_v56, 16 }
 0x385   :  { %9457 = vmatmul.mubr.bf16.gmra.mrb[208].mxu0 %v11376_v10  ;;  %v6723_v8 = vor.u32 %v6722_v13, %v6719_v11  ;;  %v6738_v52 = vrot.slane %v6736_v27, 5  ;;  %v7688_v14 = vrot.slane %v7686_v29, 4  ;;  %v7705_v48 = vshll.u32 %v7366_v44, 16  ;;  %v6420_v10 = vld [vmem:[#allocation3 + $0xc4] sm:$0xf] }
 0x386   :  { %v6733_v6 = vor.u32 %v6732_v62, %v6728_v9  ;;  %v7691_v16 = vrot.slane %v7689_v54, 5  ;;  %v7697_v19 = vrot.slane %v7695_v5, 5  ;;  %v7701_v60 = vrot.slane %v7699_v15, 4  ;;  %v7368_v62 = vld [vmem:[#allocation3 + $0xdc] sm:$0xf] }
 0x387   :  { %v6724_v12 = vrot.slane %v6723_v8, 4  ;;  %v7707_v4 = vrot.slane %v7705_v48, 5  ;;  %v10183_v63 = vrot.slane %v6931_v46, 9  ;;  %v7081_v42 = vrot.slane %v6932_v37, 5  ;;  %v7369_v5 = vld [vmem:[#allocation3 + $0xe0] sm:$0x1] }
 0x388   :  { %v6734_v1 = vrot.slane %v6733_v6, 4  ;;  %v7692_v36 = vor.u32 %v7691_v16, %v7688_v14  ;;  %v7702_v51 = vor.u32 %v7701_v60, %v7697_v19  ;;  %v7084_v38 = vrot.slane %v6933_v17, 5  ;;  %v6934_v15 = vld [vmem:[#allocation3 + $0xcc] sm:$0xe]  ;;  %v6935_v37 = vld [vmem:[#allocation3 + $0xd0] sm:$0xf] }
 0x389   :  { %v6729_v49 = vsel %vm11550_vm11, %v6724_v12, %v6728_v9  ;;  %v7082_v0 = vsel %vm12111_vm14, %v10183_v63, %v7081_v42  ;;  %v7083_v50 = vrot.slane %v7081_v42, 4  ;;  %v10758_v23 = vadd.f32 %v14098_v22, %v14096_v43  ;;  %v6421_v22 = vld [vmem:[#allocation3 + $0xc8] sm:$0x1]  ;;  %v7367_v9 = vld [vmem:[#allocation3 + $0xd8] sm:$0xf]  ;;  %v11378_v14 = vld [vmem:[#allocation3 + $0xcc] sm:$0xff]  }
 0x38a   :  { %v6739_v39 = vsel %vm11550_vm11, %v6734_v1, %v6738_v52  ;;  %v7693_v40 = vrot.slane %v7692_v36, 4  ;;  %v7703_v56 = vrot.slane %v7702_v51, 4  ;;  %v10646_v61 = vadd.f32 %v14084_v20, %v14082_v41  ;;  %v14181_v11 = vpop.f32.mrb[80].mxu1 }
 0x38b   :  { %v10166_v3 = vcombine.low %v6729_v49, %v6739_v39  ;;  %v7085_v44 = vsel %vm12111_vm14, %v7083_v50, %v7084_v38  ;;  %v10761_v13 = vadd.f32 %v14108_v55, %v14104_v45  ;;  %v10649_v43 = vadd.f32 %v14092_v24, %v14088_v21  ;;  %v14189_v27 = vpop.f32.mrb[81].mxu1 }
 0x38c   :  { %v7698_v41 = vsel %vm11550_vm11, %v7693_v40, %v7697_v19  ;;  %v7708_v20 = vsel %vm11550_vm11, %v7703_v56, %v7707_v4  ;;  %v10199_v29 = vcombine.low %v7082_v0, %v7085_v44  ;;  %v14195_v46 = vadd.f32 %v10758_v23, %v10646_v61  ;;  %v14197_v54 = vpop.f32.mrb[82].mxu1  ;;  %v6936_v19 = vld [vmem:[#allocation3 + $0xd4] sm:$0x1] }
 0x38d   :  { %9296 = vmatmul.mubr.bf16.gmra.mrb[176].mxu1 %v10166_v3  ;;  %v10231_v45 = vcombine.low %v7698_v41, %v7708_v20  ;;  %v14199_v55 = vadd.f32 %v10761_v13, %v10649_v43  ;;  %v6741_v21 = vshrl.u32 %v6419_v57, 16  ;;  %v6744_v24 = vshll.u32 %v6419_v57, 16  ;;  %v14203_v52 = vpop.f32.mrb[83].mxu1 }
 0x38e   :  { %v14201_v8 = vpop.f32.mrb[112].mxu0  ;;  %9303 = vmatprep.mubr.bf16.mxu1 %v10199_v29  ;;  %v6750_v48 = vshll.u32 %v6420_v10, 16  ;;  %v6754_v17 = vshrl.u32 %v6420_v10, 16  ;;  %v6760_v6 = vshll.u32 %v6421_v22, 16  ;;  %v7710_v16 = vshrl.u32 %v7367_v9, 16 }
 0x38f   :  { %v14205_v60 = vpop.f32.mrb[113].mxu0  ;;  %9464 = vmatprep.mubr.bf16.mxu0 %v10231_v45  ;;  %v6743_v12 = vrot.slane %v6741_v21, 4  ;;  %v6746_v4 = vrot.slane %v6744_v24, 5  ;;  %v7713_v63 = vshll.u32 %v7367_v9, 16  ;;  %v7719_v42 = vshll.u32 %v7368_v62, 16 }
 0x390   :  { %v14207_v1 = vpop.f32.mrb[114].mxu0  ;;  %9465 = vmatmul.mubr.bf16.gmra.mrb[212].mxu0 %v11378_v14  ;;  %v6752_v36 = vrot.slane %v6750_v48, 5  ;;  %v6756_v51 = vrot.slane %v6754_v17, 4  ;;  %v6762_v38 = vrot.slane %v6760_v6, 5  ;;  %v7712_v49 = vrot.slane %v7710_v16, 4 }
 0x391   :  { %v14209_v0 = vpop.f32.mrb[115].mxu0  ;;  %v6747_v50 = vor.u32 %v6746_v4, %v6743_v12  ;;  %v7715_v23 = vrot.slane %v7713_v63, 5  ;;  %v7721_v57 = vrot.slane %v7719_v42, 5  ;;  %v7723_v39 = vshrl.u32 %v7368_v62, 16  ;;  %v6422_v24 = vld [vmem:[#allocation3 + $0xcc] sm:$0xf] }
 0x392   :  { %v6757_v40 = vor.u32 %v6756_v51, %v6752_v36  ;;  %v7729_v56 = vshll.u32 %v7369_v5, 16  ;;  %v10184_v61 = vrot.slane %v6934_v15, 9  ;;  %v7088_v10 = vrot.slane %v6935_v37, 5  ;;  %v6423_v17 = vld [vmem:[#allocation3 + $0xd0] sm:$0xf] }
 0x393   :  { %v6748_v3 = vrot.slane %v6747_v50, 4  ;;  %v7716_v44 = vor.u32 %v7715_v23, %v7712_v49  ;;  %v7725_v13 = vrot.slane %v7723_v39, 4  ;;  %v7091_v43 = vrot.slane %v6936_v19, 5  ;;  %v6424_v6 = vld [vmem:[#allocation3 + $0xd4] sm:$0x1] }
 0x394   :  { %v6758_v22 = vrot.slane %v6757_v40, 4  ;;  %v7731_v9 = vrot.slane %v7729_v56, 5  ;;  %v7089_v41 = vsel %vm12111_vm14, %v10184_v61, %v7088_v10  ;;  %v7090_v20 = vrot.slane %v7088_v10, 4  ;;  %v6937_v4 = vld [vmem:[#allocation3 + $0xd8] sm:$0xe] }
 0x395   :  { %v6753_v29 = vsel %vm11550_vm11, %v6748_v3, %v6752_v36  ;;  %v7717_v45 = vrot.slane %v7716_v44, 4  ;;  %v7726_v21 = vor.u32 %v7725_v13, %v7721_v57  ;;  %v10764_v62 = vadd.f32 %v14141_v26, %v14137_v25  ;;  %v6425_v61 = vld [vmem:[#allocation3 + $0xd8] sm:$0xf] }
 0x396   :  { %v14217_v5 = vpop.f32.mrb[116].mxu0  ;;  %v6763_v15 = vsel %vm11550_vm11, %v6758_v22, %v6762_v38  ;;  %v7092_v37 = vsel %vm12111_vm14, %v7090_v20, %v7091_v43  ;;  %v10652_v14 = vadd.f32 %v14133_v32, %v14131_v58  ;;  %v10767_v48 = vadd.f32 %v14155_v7, %v14149_v31  ;;  %v6938_v7 = vld [vmem:[#allocation3 + $0xdc] sm:$0xf] }
 0x397   :  { %v14227_v16 = vpop.f32.mrb[117].mxu0  ;;  %v10167_v25 = vcombine.low %v6753_v29, %v6763_v15  ;;  %v7722_v26 = vsel %vm11550_vm11, %v7717_v45, %v7721_v57  ;;  %v7727_v19 = vrot.slane %v7726_v21, 4  ;;  %v10200_v12 = vcombine.low %v7089_v41, %v7092_v37  ;;  %v6939_v57 = vld [vmem:[#allocation3 + $0xe0] sm:$0x1]  ;;  %v11379_v3 = vld [vmem:[#allocation3 + $0xd8] sm:$0xff]  }
 0x398   :  { %v14231_v63 = vpop.f32.mrb[118].mxu0  ;;  %v14233_v42 = vadd.f32 %v10764_v62, %v10652_v14  ;;  %v10655_v58 = vadd.f32 %v14139_v47, %v14135_v33  ;;  %v6765_v32 = vshrl.u32 %v6422_v24, 16  ;;  %v6768_v31 = vshll.u32 %v6422_v24, 16  ;;  %v6426_v37 = vld [vmem:[#allocation3 + $0xdc] sm:$0xf] }
 0x399   :  { %v14237_v36 = vpop.f32.mrb[84].mxu1  ;;  %v14239_v51 = vpop.f32.mrb[119].mxu0  ;;  %9304 = vmatmul.mubr.bf16.gmra.mrb[180].mxu1 %v10167_v25  ;;  %v7732_v38 = vsel %vm11550_vm11, %v7727_v19, %v7731_v9  ;;  %v6774_v49 = vshll.u32 %v6423_v17, 16  ;;  %v6778_v50 = vshrl.u32 %v6423_v17, 16  ;;  %v6784_v23 = vshll.u32 %v6424_v6, 16 }
 0x39a   :  { %v14243_v39 = vpop.f32.mrb[85].mxu1  ;;  %v10232_v40 = vcombine.low %v7722_v26, %v7732_v38  ;;  %9311 = vmatprep.mubr.bf16.mxu1 %v10200_v12  ;;  %v14245_v33 = vadd.f32 %v10767_v48, %v10655_v58  ;;  %v6767_v47 = vrot.slane %v6765_v32, 4  ;;  %v6770_v56 = vrot.slane %v6768_v31, 5  ;;  %v6427_v14 = vld [vmem:[#allocation3 + $0xe0] sm:$0x1] }
 0x39b   :  { %v14247_v10 = vpop.f32.mrb[86].mxu1  ;;  %v6776_v44 = vrot.slane %v6774_v49, 5  ;;  %v6780_v13 = vrot.slane %v6778_v50, 4  ;;  %v6786_v43 = vrot.slane %v6784_v23, 5  ;;  %v10185_v22 = vrot.slane %v6937_v4, 9 }
 0x39c   :  { %v14249_v9 = vpop.f32.mrb[87].mxu1  ;;  %9472 = vmatprep.mubr.bf16.mxu0 %v10232_v40  ;;  %v6771_v41 = vor.u32 %v6770_v56, %v6767_v47  ;;  %v7095_v20 = vrot.slane %v6938_v7, 5  ;;  %v7098_v29 = vrot.slane %v6939_v57, 5  ;;  %v10770_v45 = vadd.f32 %v14205_v60, %v14201_v8  ;;  %v243_v25 = vld [vmem:[#allocation3 + $0xe4] sm:$0x1] }
 0x39d   :  { %9473 = vmatmul.mubr.bf16.gmra.mrb[216].mxu0 %v11379_v3  ;;  %v6781_v21 = vor.u32 %v6780_v13, %v6776_v44  ;;  %v10658_v62 = vadd.f32 %v14189_v27, %v14181_v11  ;;  %v10773_v24 = vadd.f32 %v14209_v0, %v14207_v1  ;;  %v10661_v15 = vadd.f32 %v14203_v52, %v14197_v54  ;;  %v304_v54 = vld [vmem:[#allocation3 + $0xec] sm:$0x1]  ;;  %v7371_v32 = vld [vmem:[#allocation3 + $0xe8] sm:$0xf]  ;;  %v7838_v57 = vld [vmem:[#allocation3 + $0x1c] sm:$0xf] }
 0x39e   :  { %v14259_v48 = vpop.f32.mrb[120].mxu0  ;;  %v6772_v17 = vrot.slane %v6771_v41, 4  ;;  %v7096_v6 = vsel %vm12111_vm14, %v10185_v22, %v7095_v20  ;;  %v7097_v8 = vrot.slane %v7095_v20, 4  ;;  %v6789_v60 = vshrl.u32 %v6425_v61, 16  ;;  %v7839_v20 = vld [vmem:[#allocation3 + $0x20] sm:$0x1] }
 0x39f   :  { %v14263_v26 = vpop.f32.mrb[121].mxu0  ;;  %v6782_v11 = vrot.slane %v6781_v21, 4  ;;  %v14265_v27 = vadd.f32 %v10770_v45, %v10658_v62  ;;  %v14267_v1 = vadd.f32 %v10773_v24, %v10661_v15  ;;  %v6792_v0 = vshll.u32 %v6425_v61, 16  ;;  %v7837_v15 = vld [vmem:[#allocation3 + $0x18] sm:$0xe] }
 0x3a0   :  { %v14269_v52 = vpop.f32.mrb[122].mxu0  ;;  %v6777_v19 = vsel %vm11550_vm11, %v6772_v17, %v6776_v44  ;;  %v7099_v12 = vsel %vm12111_vm14, %v7097_v8, %v7098_v29  ;;  %v6791_v4 = vrot.slane %v6789_v60, 4  ;;  %v6798_v58 = vshll.u32 %v6426_v37, 16  ;;  %v14297_v8 = vld [vmem:[#allocation3 + $0x28] sm:$0xf] }
 0x3a1   :  { %v14275_v31 = vpop.f32.mrb[88].mxu1  ;;  %v14277_v7 = vpop.f32.mrb[123].mxu0  ;;  %v6787_v38 = vsel %vm11550_vm11, %v6782_v11, %v6786_v43  ;;  %v10201_v49 = vcombine.low %v7096_v6, %v7099_v12  ;;  %v6794_v50 = vrot.slane %v6792_v0, 5  ;;  %v6802_v23 = vshrl.u32 %v6426_v37, 16 }
 0x3a2   :  { %v14281_v40 = vpop.f32.mrb[89].mxu1  ;;  %v10168_v47 = vcombine.low %v6777_v19, %v6787_v38  ;;  %v6800_v56 = vrot.slane %v6798_v58, 5  ;;  %v6808_v61 = vshll.u32 %v6427_v14, 16  ;;  %v244_v3 = vsel %vm12890_vm3, 0, %v243_v25  ;;  %v7842_v38 = vld [vmem:[#allocation3 + $0x2c] sm:$0x1] }
 0x3a3   :  { %v14285_v44 = vpop.f32.mrb[90].mxu1  ;;  %v6795_v13 = vor.u32 %v6794_v50, %v6791_v4  ;;  %v6804_v22 = vrot.slane %v6802_v23, 4  ;;  %245 = vst [vmem:[#allocation3 + $0xe4] sm:$0x1] %v244_v3  ;;  %v305_v43 = vsel %vm12898_vm5, 0, %v304_v54  ;;  %v7743_v41 = vshll.u32 %v7371_v32, 16 }
 0x3a4   :  { %v14289_v29 = vpop.f32.mrb[91].mxu1  ;;  %9312 = vmatmul.mubr.bf16.gmra.mrb[184].mxu1 %v10168_v47  ;;  %306 = vst [vmem:[#allocation3 + $0xec] sm:$0x1] %v305_v43  ;;  %v7747_v45 = vshrl.u32 %v7371_v32, 16  ;;  %v7935_v21 = vrot.slane %v7838_v57, 5  ;;  %v7938_v18 = vrot.slane %v7839_v20, 5  ;;  %v10776_v6 = vadd.f32 %v14227_v16, %v14217_v5 }
 0x3a5   :  { %9319 = vmatprep.mubr.bf16.mxu1 %v10201_v49  ;;  %v6796_v62 = vrot.slane %v6795_v13, 4  ;;  %v6805_v28 = vor.u32 %v6804_v22, %v6800_v56  ;;  %v14291_v24 = vrot.slane %v7743_v41, 5  ;;  %v6810_v11 = vrot.slane %v6808_v61, 5  ;;  %v7844_v50 = vld [vmem:[#allocation3 + $0x34] sm:$0xf] }
 0x3a6   :  { %v14293_v37 = vpop.f32.mrb[124].mxu0  ;;  %v7749_v14 = vrot.slane %v7747_v45, 4  ;;  %v7937_v17 = vrot.slane %v7935_v21, 4  ;;  %v10664_v0 = vadd.f32 %v14243_v39, %v14237_v36  ;;  %v10779_v54 = vadd.f32 %v14239_v51, %v14231_v63  ;;  %v7840_v39 = vld [vmem:[#allocation3 + $0x24] sm:$0xe] }
 0x3a7   :  { %v14299_v60 = vpop.f32.mrb[125].mxu0  ;;  %v6806_v25 = vrot.slane %v6805_v28, 4  ;;  %v10234_v4 = vrot.slane %v7837_v15, 9  ;;  %v10667_v16 = vadd.f32 %v14249_v9, %v14247_v10  ;;  %v6801_v36 = vsel %vm11550_vm11, %v6796_v62, %v6800_v56  ;;  %v7845_v56 = vld [vmem:[#allocation3 + $0x38] sm:$0x1] }
 0x3a8   :  { %v14305_v19 = vpop.f32.mrb[126].mxu0  ;;  %v7750_v12 = vor.u32 %v7749_v14, %v14291_v24  ;;  %v7939_v5 = vsel %vm12111_vm14, %v7937_v17, %v7938_v18  ;;  %v14320_v51 = vadd.f32 %v10776_v6, %v10664_v0  ;;  %v7942_v49 = vrot.slane %v14297_v8, 5  ;;  %v7843_v28 = vld [vmem:[#allocation3 + $0x30] sm:$0xe] }
 0x3a9   :  { %v14312_v58 = vpop.f32.mrb[92].mxu1  ;;  %v14314_v32 = vpop.f32.mrb[127].mxu0  ;;  %v6811_v63 = vsel %vm11550_vm11, %v6806_v25, %v6810_v11  ;;  %v7936_v57 = vsel %vm12111_vm14, %v10234_v4, %v7935_v21  ;;  %v14327_v47 = vadd.f32 %v10779_v54, %v10667_v16  ;;  %v10782_v61 = vadd.f32 %v14263_v26, %v14259_v48  ;;  %v7847_v48 = vld [vmem:[#allocation3 + $0x40] sm:$0xf] }
 0x3aa   :  { %v14323_v23 = vpop.f32.mrb[93].mxu1  ;;  %v10169_v10 = vcombine.low %v6801_v36, %v6811_v63  ;;  %v7370_v9 = vld [vmem:[#allocation3 + $0xe4] sm:$0xf]  ;;  %v10250_v43 = vcombine.low %v7936_v57, %v7939_v5  ;;  %v7944_v41 = vrot.slane %v7942_v49, 4  ;;  %v7751_v45 = vrot.slane %v7750_v12, 4 }
 0x3ab   :  { %v7372_v3 = vld [vmem:[#allocation3 + $0xec] sm:$0x1]  ;;  %v7734_v13 = vshrl.u32 %v7370_v9, 16  ;;  %v7737_v22 = vshll.u32 %v7370_v9, 16  ;;  %v10677_v20 = vpop.f32.mrb[94].mxu1  ;;  %v7949_v15 = vrot.slane %v7844_v50, 5  ;;  %v10670_v6 = vadd.f32 %v14281_v40, %v14275_v31 }
 0x3ac   :  { %9320 = vmatmul.mubr.bf16.gmra.mrb[188].mxu1 %v10169_v10  ;;  %v7753_v62 = vshll.u32 %v7372_v3, 16  ;;  %v10678_v14 = vpop.f32.mrb[95].mxu1  ;;  %v7945_v18 = vrot.slane %v7842_v38, 5  ;;  %v10235_v25 = vrot.slane %v7840_v39, 9  ;;  %v7952_v0 = vrot.slane %v7845_v56, 5 }
 0x3ad   :  { %v7736_v17 = vrot.slane %v7734_v13, 4  ;;  %v7739_v21 = vrot.slane %v7737_v22, 5  ;;  %11144 = vmatprep.mubr.bf16.mxu1 %v10250_v43  ;;  %v7951_v11 = vrot.slane %v7949_v15, 4  ;;  %v14337_v5 = vadd.f32 %v10782_v61, %v10670_v6  ;;  %v7850_v36 = vld [vmem:[#allocation3 + $0x4c] sm:$0xf]  ;;  %v11381_v43 = vld [vmem:[#allocation3 + $0xe4] sm:$0xff]  }
 0x3ae   :  { %v14333_v26 = vpop.f32.mrb[128].mxu0  ;;  %v7755_v8 = vrot.slane %v7753_v62, 5  ;;  %v7946_v4 = vsel %vm12111_vm14, %v7944_v41, %v7945_v18  ;;  %v10785_v16 = vadd.f32 %v14277_v7, %v14269_v52  ;;  %v10236_v31 = vrot.slane %v7843_v28, 9  ;;  %v7846_v3 = vld [vmem:[#allocation3 + $0x3c] sm:$0xe] }
 0x3af   :  { %v10793_v54 = vpop.f32.mrb[129].mxu0  ;;  %v7740_v12 = vor.u32 %v7739_v21, %v7736_v17  ;;  %v7953_v40 = vsel %vm12111_vm14, %v7951_v11, %v7952_v0  ;;  %v10673_v39 = vadd.f32 %v14289_v29, %v14285_v44  ;;  %v7943_v9 = vsel %vm12111_vm14, %v10235_v25, %v7942_v49  ;;  %v7848_v13 = vld [vmem:[#allocation3 + $0x44] sm:$0x1]  ;;  %v7851_v49 = vld [vmem:[#allocation3 + $0x50] sm:$0x1] }
 0x3b0   :  { %v10795_v63 = vpop.f32.mrb[130].mxu0  ;;  %v7756_v10 = vsel %vm11550_vm11, %v7751_v45, %v7755_v8  ;;  %v7956_v57 = vrot.slane %v7847_v48, 5  ;;  %v10251_v52 = vcombine.low %v7943_v9, %v7946_v4  ;;  %v7950_v7 = vsel %vm12111_vm14, %v10236_v31, %v7949_v15  ;;  %v14360_v18 = vld [vmem:[#allocation3 + $0x58] sm:$0xf]  ;;  %v14364_v25 = vld [vmem:[#allocation3 + $0x64] sm:$0xf] }
 0x3b1   :  { %v10796_v38 = vpop.f32.mrb[131].mxu0  ;;  %v7741_v50 = vrot.slane %v7740_v12, 4  ;;  %v10680_v56 = vpop.f32.mrb[96].mxu1  ;;  %v14351_v61 = vadd.f32 %v10785_v16, %v10673_v39  ;;  %v7963_v22 = vrot.slane %v7850_v36, 5  ;;  %v10252_v41 = vcombine.low %v7950_v7, %v7953_v40  ;;  %v7854_v7 = vld [vmem:[#allocation3 + $0x5c] sm:$0x1] }
 0x3b2   :  { %v10681_v44 = vpop.f32.mrb[97].mxu1  ;;  %v7958_v45 = vrot.slane %v7956_v57, 4  ;;  %v10788_v62 = vadd.f32 %v14299_v60, %v14293_v37  ;;  %v10676_v21 = vadd.f32 %v14323_v23, %v14312_v58  ;;  %v7959_v34 = vrot.slane %v7848_v13, 5 }
 0x3b3   :  { %v7746_v29 = vsel %vm11550_vm11, %v7741_v50, %v14291_v24  ;;  %v10683_v28 = vpop.f32.mrb[98].mxu1  ;;  %v7965_v15 = vrot.slane %v7963_v22, 4  ;;  %v7849_v24 = vld [vmem:[#allocation3 + $0x48] sm:$0xe]  ;;  %v10791_v48 = vadd.f32 %v14314_v32, %v14305_v19  ;;  %v10679_v8 = vadd.f32 %v10678_v14, %v10677_v20 }
 0x3b4   :  { %v10233_v17 = vcombine.low %v7746_v29, %v7756_v10  ;;  %11145 = vmatmul.mubr.bf16.vlgmr.msra.gmra.mrb[192].mxu1 %v10251_v52  ;;  %v10684_v6 = vpop.f32.mrb[99].mxu1  ;;  %v10237_v60 = vrot.slane %v7846_v3, 9  ;;  %v7966_v11 = vrot.slane %v7851_v49, 5  ;;  %v14366_v0 = vadd.f32 %v10788_v62, %v10676_v21  ;;  %v7859_v3 = vld [vmem:[#allocation3 + $0x70] sm:$0xf] }
 0x3b5   :  { %11148 = vmatprep.mubr.bf16.mxu1 %v10252_v41  ;;  %v7960_v58 = vsel %vm12111_vm14, %v7958_v45, %v7959_v34  ;;  %v14370_v23 = vadd.f32 %v10791_v48, %v10679_v8  ;;  %v7970_v4 = vrot.slane %v14360_v18, 5  ;;  %v10238_v32 = vrot.slane %v7849_v24, 9  ;;  %v7852_v29 = vld [vmem:[#allocation3 + $0x54] sm:$0xe]  ;;  %v7857_v41 = vld [vmem:[#allocation3 + $0x68] sm:$0x1] }
 0x3b6   :  { %v10798_v37 = vpop.f32.mrb[132].mxu0  ;;  %9480 = vmatprep.mubr.bf16.mxu0 %v10233_v17  ;;  %v7957_v19 = vsel %vm12111_vm14, %v10237_v60, %v7956_v57  ;;  %v7967_v20 = vsel %vm12111_vm14, %v7965_v15, %v7966_v11  ;;  %v7977_v14 = vrot.slane %v14364_v25, 5  ;;  %v10682_v31 = vadd.f32 %v10681_v44, %v10680_v56  ;;  %v7862_v62 = vld [vmem:[#allocation3 + $0x94] sm:$0xf] }
 0x3b7   :  { %v10799_v12 = vpop.f32.mrb[133].mxu0  ;;  %9481 = vmatmul.mubr.bf16.gmra.mrb[220].mxu0 %v11381_v43  ;;  %v10794_v40 = vadd.f32 %v10793_v54, %v14333_v26  ;;  %v10685_v39 = vadd.f32 %v10684_v6, %v10683_v28  ;;  %v10797_v50 = vadd.f32 %v10796_v38, %v10795_v63  ;;  %v10253_v9 = vcombine.low %v7957_v19, %v7960_v58  ;;  %v7855_v26 = vld [vmem:[#allocation3 + $0x60] sm:$0xe]  ;;  %v7858_v63 = vld [vmem:[#allocation3 + $0x6c] sm:$0xe] }
 0x3b8   :  { %v10801_v16 = vpop.f32.mrb[134].mxu0  ;;  %v7964_v52 = vsel %vm12111_vm14, %v10238_v32, %v7963_v22  ;;  %v7972_v43 = vrot.slane %v7970_v4, 4  ;;  %v7979_v54 = vrot.slane %v7977_v14, 4  ;;  %v7973_v44 = vrot.slane %v7854_v7, 5  ;;  %v7860_v21 = vld [vmem:[#allocation3 + $0x74] sm:$0x1] }
 0x3b9   :  { %v10802_v36 = vpop.f32.mrb[135].mxu0  ;;  %v10686_v10 = vpop.f32.mrb[100].mxu1  ;;  %v10254_v13 = vcombine.low %v7964_v52, %v7967_v20  ;;  %v14381_v45 = vadd.f32 %v10794_v40, %v10682_v31  ;;  %v14383_v49 = vadd.f32 %v10797_v50, %v10685_v39  ;;  %v7984_v22 = vrot.slane %v7859_v3, 5 }
 0x3ba   :  { %v10687_v57 = vpop.f32.mrb[101].mxu1  ;;  %v10239_v17 = vrot.slane %v7852_v29, 9  ;;  %v7980_v15 = vrot.slane %v7857_v41, 5  ;;  %v10800_v18 = vadd.f32 %v10799_v12, %v10798_v37  ;;  %v7974_v24 = vsel %vm12111_vm14, %v7972_v43, %v7973_v44  ;;  %v7865_v29 = vld [vmem:[#allocation3 + $0xa0] sm:$0xf] }
 0x3bb   :  { %v10689_v56 = vpop.f32.mrb[102].mxu1  ;;  %v10688_v6 = vadd.f32 %v10687_v57, %v10686_v10  ;;  %v10240_v48 = vrot.slane %v7855_v26, 9  ;;  %v10803_v8 = vadd.f32 %v10802_v36, %v10801_v16  ;;  %v7991_v19 = vrot.slane %v7862_v62, 5  ;;  %v7861_v57 = vld [vmem:[#allocation3 + $0x90] sm:$0xe] }
 0x3bc   :  { %11149 = vmatmul.mubr.bf16.gmra.mrb[196].mxu1 %v10253_v9  ;;  %v10690_v38 = vpop.f32.mrb[103].mxu1  ;;  %v7971_v11 = vsel %vm12111_vm14, %v10239_v17, %v7970_v4  ;;  %v7981_v58 = vsel %vm12111_vm14, %v7979_v54, %v7980_v15  ;;  %v10241_v37 = vrot.slane %v7858_v63, 9  ;;  %v7986_v12 = vrot.slane %v7984_v22, 4  ;;  %v7863_v4 = vld [vmem:[#allocation3 + $0x98] sm:$0x1] }
 0x3bd   :  { %11152 = vmatprep.mubr.bf16.mxu1 %v10254_v13  ;;  %v10691_v25 = vadd.f32 %v10690_v38, %v10689_v56  ;;  %v14391_v32 = vadd.f32 %v10800_v18, %v10688_v6  ;;  %v7987_v31 = vrot.slane %v7860_v21, 5  ;;  %v10255_v50 = vcombine.low %v7971_v11, %v7974_v24 }
 0x3be   :  { %v10804_v28 = vpop.f32.mrb[136].mxu0  ;;  %v7978_v16 = vsel %vm12111_vm14, %v10240_v48, %v7977_v14  ;;  %v7993_v13 = vrot.slane %v7991_v19, 4  ;;  %v7985_v41 = vsel %vm12111_vm14, %v10241_v37, %v7984_v22  ;;  %v7868_v14 = vld [vmem:[#allocation3 + $0xac] sm:$0xf]  ;;  %v7994_v38 = vrot.slane %v7863_v4, 5 }
 0x3bf   :  { %v10805_v34 = vpop.f32.mrb[137].mxu0  ;;  %v14393_v40 = vadd.f32 %v10803_v8, %v10691_v25  ;;  %v10256_v10 = vcombine.low %v7978_v16, %v7981_v58  ;;  %v7988_v56 = vsel %vm12111_vm14, %v7986_v12, %v7987_v31  ;;  %v10242_v62 = vrot.slane %v7861_v57, 9  ;;  %v7866_v25 = vld [vmem:[#allocation3 + $0xa4] sm:$0x1]  ;;  %v7864_v58 = vld [vmem:[#allocation3 + $0x9c] sm:$0xe] }
 0x3c0   :  { %v10807_v60 = vpop.f32.mrb[138].mxu0  ;;  %v10806_v9 = vadd.f32 %v10805_v34, %v10804_v28  ;;  %v7998_v28 = vrot.slane %v7865_v29, 5  ;;  %v10257_v21 = vcombine.low %v7985_v41, %v7988_v56  ;;  %v7995_v18 = vsel %vm12111_vm14, %v7993_v13, %v7994_v38  ;;  %v7869_v37 = vld [vmem:[#allocation3 + $0xb0] sm:$0x1]  ;;  %v7874_v4 = vld [vmem:[#allocation3 + $0xc4] sm:$0xf] }
 0x3c1   :  { %v10808_v20 = vpop.f32.mrb[139].mxu0  ;;  %v10692_v39 = vpop.f32.mrb[104].mxu1  ;;  %v8005_v22 = vrot.slane %v7868_v14, 5  ;;  %v7992_v8 = vsel %vm12111_vm14, %v10242_v62, %v7991_v19 }
 0x3c2   :  { %v10693_v36 = vpop.f32.mrb[105].mxu1  ;;  %v10809_v3 = vadd.f32 %v10808_v20, %v10807_v60  ;;  %v10258_v11 = vcombine.low %v7992_v8, %v7995_v18  ;;  %v8000_v20 = vrot.slane %v7998_v28, 4 }
 0x3c3   :  { %v10694_v52 = vadd.f32 %v10693_v36, %v10692_v39  ;;  %v10695_v7 = vpop.f32.mrb[106].mxu1  ;;  %v8007_v39 = vrot.slane %v8005_v22, 4  ;;  %v8001_v36 = vrot.slane %v7866_v25, 5  ;;  %v7875_v25 = vld [vmem:[#allocation3 + $0xc8] sm:$0x1] }
 0x3c4   :  { %11153 = vmatmul.mubr.bf16.gmra.mrb[200].mxu1 %v10255_v50  ;;  %v10696_v43 = vpop.f32.mrb[107].mxu1  ;;  %v7871_v50 = vld [vmem:[#allocation3 + $0xb8] sm:$0xf] }
 0x3c5   :  { %11156 = vmatprep.mubr.bf16.mxu1 %v10256_v10  ;;  %v14401_v26 = vadd.f32 %v10806_v9, %v10694_v52  ;;  %v10697_v54 = vadd.f32 %v10696_v43, %v10695_v7  ;;  %v7867_v10 = vld [vmem:[#allocation3 + $0xa8] sm:$0xe]  ;;  %v10243_v7 = vrot.slane %v7864_v58, 9  ;;  %v8002_v13 = vsel %vm12111_vm14, %v8000_v20, %v8001_v36  ;;  %v7877_v20 = vld [vmem:[#allocation3 + $0xd0] sm:$0xf] }
 0x3c6   :  { %v10810_v63 = vpop.f32.mrb[140].mxu0  ;;  %v8012_v29 = vrot.slane %v7871_v50, 5  ;;  %v10244_v14 = vrot.slane %v7867_v10, 9  ;;  %v8022_v36 = vrot.slane %v7875_v25, 5 }
 0x3c7   :  { %v10811_v44 = vpop.f32.mrb[141].mxu0  ;;  %v14403_v17 = vadd.f32 %v10809_v3, %v10697_v54  ;;  %v8008_v3 = vrot.slane %v7869_v37, 5 }
 0x3c8   :  { %v10813_v15 = vpop.f32.mrb[142].mxu0  ;;  %v10812_v6 = vadd.f32 %v10811_v44, %v10810_v63  ;;  %v8019_v63 = vrot.slane %v7874_v4, 5  ;;  %v7999_v44 = vsel %vm12111_vm14, %v10243_v7, %v7998_v28  ;;  %v8006_v18 = vsel %vm12111_vm14, %v10244_v14, %v8005_v22 }
 0x3c9   :  { %v10814_v34 = vpop.f32.mrb[143].mxu0  ;;  %v10698_v24 = vpop.f32.mrb[108].mxu1  ;;  %v8009_v54 = vsel %vm12111_vm14, %v8007_v39, %v8008_v3  ;;  %v8014_v8 = vrot.slane %v8012_v29, 4 }
 0x3ca   :  { %v10815_v48 = vadd.f32 %v10814_v34, %v10813_v15  ;;  %v10699_v60 = vpop.f32.mrb[109].mxu1  ;;  %v8021_v58 = vrot.slane %v8019_v63, 4 }
 0x3cb   :  { %v10700_v12 = vadd.f32 %v10699_v60, %v10698_v24  ;;  %v10701_v31 = vpop.f32.mrb[110].mxu1  ;;  %v10260_v24 = vcombine.low %v8006_v18, %v8009_v54 }
 0x3cc   :  { %11157 = vmatmul.mubr.bf16.gmra.mrb[204].mxu1 %v10257_v21  ;;  %v10702_v16 = vpop.f32.mrb[111].mxu1  ;;  %v10259_v21 = vcombine.low %v7999_v44, %v8002_v13  ;;  %v8023_v13 = vsel %vm12111_vm14, %v8021_v58, %v8022_v36 }
 0x3cd   :  { %11160 = vmatprep.mubr.bf16.mxu1 %v10258_v11  ;;  %v14409_v9 = vadd.f32 %v10812_v6, %v10700_v12  ;;  %v10703_v52 = vadd.f32 %v10702_v16, %v10701_v31  ;;  %v7872_v6 = vld [vmem:[#allocation3 + $0xbc] sm:$0x1]  ;;  %v7873_v12 = vld [vmem:[#allocation3 + $0xc0] sm:$0xe] }
 0x3ce   :  { %v10816_v19 = vpop.f32.mrb[144].mxu0  ;;  %v8015_v28 = vrot.slane %v7872_v6, 5  ;;  %v7880_v31 = vld [vmem:[#allocation3 + $0xdc] sm:$0xf] }
 0x3cf   :  { %v10817_v57 = vpop.f32.mrb[145].mxu0  ;;  %v14413_v43 = vadd.f32 %v10815_v48, %v10703_v52  ;;  %v7870_v48 = vld [vmem:[#allocation3 + $0xb4] sm:$0xe]  ;;  %v8026_v52 = vrot.slane %v7877_v20, 5  ;;  %v7882_v20 = vld [vmem:[#allocation3 + $0xe4] sm:$0xe] }
 0x3d0   :  { %v10818_v41 = vadd.f32 %v10817_v57, %v10816_v19  ;;  %v10819_v56 = vpop.f32.mrb[146].mxu0  ;;  %v10245_v16 = vrot.slane %v7870_v48, 9  ;;  %v8016_v4 = vsel %vm12111_vm14, %v8014_v8, %v8015_v28  ;;  %v10246_v57 = vrot.slane %v7873_v12, 9  ;;  %v7881_v48 = vld [vmem:[#allocation3 + $0xe0] sm:$0x1] }
 0x3d1   :  { %v10820_v38 = vpop.f32.mrb[147].mxu0  ;;  %v10704_v62 = vpop.f32.mrb[112].mxu1 }
 0x3d2   :  { %v10821_v15 = vadd.f32 %v10820_v38, %v10819_v56  ;;  %v10705_v34 = vpop.f32.mrb[113].mxu1  ;;  %v8033_v56 = vrot.slane %v7880_v31, 5  ;;  %v8013_v14 = vsel %vm12111_vm14, %v10245_v16, %v8012_v29 }
 0x3d3   :  { %v10706_v60 = vadd.f32 %v10705_v34, %v10704_v62  ;;  %v10707_v11 = vpop.f32.mrb[114].mxu1  ;;  %v10261_v44 = vcombine.low %v8013_v14, %v8016_v4  ;;  %v8020_v62 = vsel %vm12111_vm14, %v10246_v57, %v8019_v63  ;;  %v7876_v34 = vld [vmem:[#allocation3 + $0xcc] sm:$0xe]  ;;  %v10249_v14 = vrot.slane %v7882_v20, 9 }
 0x3d4   :  { %11161 = vmatmul.mubr.bf16.gmra.mrb[208].mxu1 %v10259_v21  ;;  %v10708_v37 = vpop.f32.mrb[115].mxu1  ;;  %v7878_v21 = vld [vmem:[#allocation3 + $0xd4] sm:$0x1]  ;;  %v10262_v6 = vcombine.low %v8020_v62, %v8023_v13  ;;  %v10247_v31 = vrot.slane %v7876_v34, 9 }
 0x3d5   :  { %11164 = vmatprep.mubr.bf16.mxu1 %v10260_v24  ;;  %v14421_v39 = vadd.f32 %v10818_v41, %v10706_v60  ;;  %v10709_v50 = vadd.f32 %v10708_v37, %v10707_v11  ;;  %v8028_v24 = vrot.slane %v8026_v52, 4  ;;  %v7879_v60 = vld [vmem:[#allocation3 + $0xd8] sm:$0xe]  ;;  %v8035_v11 = vrot.slane %v8033_v56, 4 }
 0x3d6   :  { %v10822_v22 = vpop.f32.mrb[148].mxu0  ;;  %v8029_v29 = vrot.slane %v7878_v21, 5  ;;  %v8027_v57 = vsel %vm12111_vm14, %v10247_v31, %v8026_v52  ;;  %v10248_v13 = vrot.slane %v7879_v60, 9 }
 0x3d7   :  { %v10823_v10 = vpop.f32.mrb[149].mxu0  ;;  %v14425_v19 = vadd.f32 %v10821_v15, %v10709_v50  ;;  %v7883_v15 = vld [vmem:[#allocation3 + $0xe8] sm:$0xf]  ;;  %v8036_v50 = vrot.slane %v7881_v48, 5 }
 0x3d8   :  { %v10824_v7 = vadd.f32 %v10823_v10, %v10822_v22  ;;  %v10825_v3 = vpop.f32.mrb[150].mxu0  ;;  %v8040_v37 = vrot.slane %v7883_v15, 5  ;;  %v7884_v22 = vld [vmem:[#allocation3 + $0xec] sm:$0x1]  ;;  %v8030_v36 = vsel %vm12111_vm14, %v8028_v24, %v8029_v29 }
 0x3d9   :  { %v10826_v41 = vpop.f32.mrb[151].mxu0  ;;  %v10710_v54 = vpop.f32.mrb[116].mxu1  ;;  %v10263_v15 = vcombine.low %v8027_v57, %v8030_v36 }
 0x3da   :  { %v10827_v38 = vadd.f32 %v10826_v41, %v10825_v3  ;;  %v10711_v18 = vpop.f32.mrb[117].mxu1  ;;  %v8041_v48 = vsel %vm12111_vm14, %v10249_v14, %v8040_v37 }
 0x3db   :  { %v10712_v8 = vadd.f32 %v10711_v18, %v10710_v54  ;;  %v10713_v25 = vpop.f32.mrb[118].mxu1  ;;  %v8042_v54 = vrot.slane %v8040_v37, 4 }
 0x3dc   :  { %11165 = vmatmul.mubr.bf16.gmra.mrb[212].mxu1 %v10261_v44  ;;  %v10714_v58 = vpop.f32.mrb[119].mxu1  ;;  %v8043_v44 = vrot.slane %v7884_v22, 5 }
 0x3dd   :  { %11168 = vmatprep.mubr.bf16.mxu1 %v10262_v6  ;;  %v14433_v28 = vadd.f32 %v10824_v7, %v10712_v8  ;;  %v10715_v63 = vadd.f32 %v10714_v58, %v10713_v25  ;;  %v8037_v7 = vsel %vm12111_vm14, %v8035_v11, %v8036_v50 }
 0x3de   :  { %v10828_v12 = vpop.f32.mrb[152].mxu0  ;;  %v8044_v8 = vsel %vm12111_vm14, %v8042_v54, %v8043_v44 }
 0x3df   :  { %v10829_v16 = vpop.f32.mrb[153].mxu0  ;;  %v14437_v10 = vadd.f32 %v10827_v38, %v10715_v63  ;;  %v8034_v38 = vsel %vm12111_vm14, %v10248_v13, %v8033_v56  ;;  %v10265_v63 = vcombine.low %v8041_v48, %v8044_v8 }
 0x3e0   :  { %v10830_v4 = vadd.f32 %v10829_v16, %v10828_v12  ;;  %v10831_v3 = vpop.f32.mrb[154].mxu0  ;;  %v10264_v6 = vcombine.low %v8034_v38, %v8037_v7 }
 0x3e1   :  { %v10832_v41 = vpop.f32.mrb[155].mxu0  ;;  %v10716_v62 = vpop.f32.mrb[120].mxu1 }
 0x3e2   :  { %v10833_v21 = vadd.f32 %v10832_v41, %v10831_v3  ;;  %v10717_v18 = vpop.f32.mrb[121].mxu1 }
 0x3e3   :  { %v10718_v34 = vadd.f32 %v10717_v18, %v10716_v62  ;;  %v10719_v24 = vpop.f32.mrb[122].mxu1 }
 0x3e4   :  { %11169 = vmatmul.mubr.bf16.gmra.mrb[216].mxu1 %v10263_v15  ;;  %v10720_v52 = vpop.f32.mrb[123].mxu1 }
 0x3e5   :  { %11172 = vmatprep.mubr.bf16.mxu1 %v10264_v6  ;;  %v14449_v25 = vadd.f32 %v10830_v4, %v10718_v34  ;;  %v10721_v60 = vadd.f32 %v10720_v52, %v10719_v24 }
 0x3e6   :  { %v10834_v11 = vpop.f32.mrb[156].mxu0 }
 0x3e7   :  { %v10835_v58 = vpop.f32.mrb[157].mxu0  ;;  %v14451_v29 = vadd.f32 %v10833_v21, %v10721_v60 }
 0x3e8   :  { %v10836_v56 = vadd.f32 %v10835_v58, %v10834_v11  ;;  %v10837_v20 = vpop.f32.mrb[158].mxu0 }
 0x3e9   :  { %v10838_v12 = vpop.f32.mrb[159].mxu0  ;;  %v10722_v31 = vpop.f32.mrb[124].mxu1 }
 0x3ea   :  { %v10839_v50 = vadd.f32 %v10838_v12, %v10837_v20  ;;  %v10723_v22 = vpop.f32.mrb[125].mxu1 }
 0x3eb   :  { %v10724_v16 = vadd.f32 %v10723_v22, %v10722_v31  ;;  %v10725_v36 = vpop.f32.mrb[126].mxu1 }
 0x3ec   :  { %11173 = vmatmul.mubr.bf16.gmra.mrb[220].mxu1 %v10265_v63  ;;  %v10726_v37 = vpop.f32.mrb[127].mxu1 }
 0x3ed   :  { %v14453_v35 = vadd.f32 %v10836_v56, %v10724_v16  ;;  %v10727_v4 = vadd.f32 %v10726_v37, %v10725_v36 }
 0x3ee   :  { %v10968_v3 = vpop.f32.mrb[160].mxu0 }
 0x3ef   :  { %v10969_v57 = vpop.f32.mrb[161].mxu0  ;;  %v14455_v13 = vadd.f32 %v10839_v50, %v10727_v4 }
 0x3f0   :  { %v10970_v7 = vadd.f32 %v10969_v57, %v10968_v3  ;;  %v10971_v41 = vpop.f32.mrb[162].mxu0 }
 0x3f1   :  { %v10972_v14 = vpop.f32.mrb[163].mxu0  ;;  %v10856_v54 = vpop.f32.mrb[128].mxu1 }
 0x3f2   :  { %v10973_v44 = vadd.f32 %v10972_v14, %v10971_v41  ;;  %v10857_v62 = vpop.f32.mrb[129].mxu1 }
 0x3f3   :  { %v10858_v21 = vadd.f32 %v10857_v62, %v10856_v54  ;;  %v10859_v15 = vpop.f32.mrb[130].mxu1 }
 0x3f4   :  { %v10860_v38 = vpop.f32.mrb[131].mxu1 }
 0x3f5   :  { %v9202_v18 = vadd.f32 %v10858_v21, %v14114_v2  ;;  %v10861_v6 = vadd.f32 %v10860_v38, %v10859_v15 }
 0x3f6   :  { %v10974_v34 = vpop.f32.mrb[164].mxu0 }
 0x3f7   :  { %v10975_v24 = vpop.f32.mrb[165].mxu0  ;;  %v9205_v52 = vadd.f32 %v10861_v6, %v14123_v30 }
 0x3f8   :  { %v10976_v48 = vadd.f32 %v10975_v24, %v10974_v34  ;;  %v10977_v8 = vpop.f32.mrb[166].mxu0 }
 0x3f9   :  { %v10978_v60 = vpop.f32.mrb[167].mxu0  ;;  %v10862_v11 = vpop.f32.mrb[132].mxu1 }
 0x3fa   :  { %v10979_v58 = vadd.f32 %v10978_v60, %v10977_v8  ;;  %v10863_v56 = vpop.f32.mrb[133].mxu1 }
 0x3fb   :  { %v10864_v20 = vadd.f32 %v10863_v56, %v10862_v11  ;;  %v10865_v63 = vpop.f32.mrb[134].mxu1 }
 0x3fc   :  { %v10866_v12 = vpop.f32.mrb[135].mxu1 }
 0x3fd   :  { %v9210_v31 = vadd.f32 %v10864_v20, %v14157_v59  ;;  %v10867_v50 = vadd.f32 %v10866_v12, %v10865_v63 }
 0x3fe   :  { %v10980_v22 = vpop.f32.mrb[168].mxu0 }
 0x3ff   :  { %v10981_v16 = vpop.f32.mrb[169].mxu0  ;;  %v9213_v2 = vadd.f32 %v10867_v50, %v14169_v53 }
 0x400   :  { %v10982_v36 = vadd.f32 %v10981_v16, %v10980_v22  ;;  %v10983_v37 = vpop.f32.mrb[170].mxu0 }
 0x401   :  { %v10984_v4 = vpop.f32.mrb[171].mxu0  ;;  %v10868_v30 = vpop.f32.mrb[136].mxu1 }
 0x402   :  { %v10985_v3 = vadd.f32 %v10984_v4, %v10983_v37  ;;  %v10869_v57 = vpop.f32.mrb[137].mxu1 }
 0x403   :  { %v10870_v41 = vadd.f32 %v10869_v57, %v10868_v30  ;;  %v10871_v14 = vpop.f32.mrb[138].mxu1  ;;  %v14467_v30 = vadd.f32 %v10970_v7, %v9202_v18 }
 0x404   :  { %v10872_v54 = vpop.f32.mrb[139].mxu1 }
 0x405   :  { %v9218_v62 = vadd.f32 %v10870_v41, %v14195_v46  ;;  %v10873_v21 = vadd.f32 %v10872_v54, %v10871_v14  ;;  %v14464_v46 = vadd.f32 %v10976_v48, %v9210_v31  ;;  %v14469_v14 = vadd.f32 %v10979_v58, %v9213_v2 }
 0x406   :  { %v10986_v15 = vpop.f32.mrb[172].mxu0 }
 0x407   :  { %v10987_v38 = vpop.f32.mrb[173].mxu0  ;;  %v9221_v59 = vadd.f32 %v10873_v21, %v14199_v55  ;;  %v14471_v21 = vadd.f32 %v10973_v44, %v9205_v52  ;;  %v14477_v58 = vadd.f32 %v10982_v36, %v9218_v62 }
 0x408   :  { %v10988_v6 = vadd.f32 %v10987_v38, %v10986_v15  ;;  %v10989_v34 = vpop.f32.mrb[174].mxu0 }
 0x409   :  { %v10990_v24 = vpop.f32.mrb[175].mxu0  ;;  %v10874_v53 = vpop.f32.mrb[140].mxu1 }
 0x40a   :  { %v10991_v8 = vadd.f32 %v10990_v24, %v10989_v34  ;;  %v10875_v60 = vpop.f32.mrb[141].mxu1 }
 0x40b   :  { %v10876_v11 = vadd.f32 %v10875_v60, %v10874_v53  ;;  %v10877_v56 = vpop.f32.mrb[142].mxu1 }
 0x40c   :  { %v10878_v20 = vpop.f32.mrb[143].mxu1 }
 0x40d   :  { %v9226_v63 = vadd.f32 %v10876_v11, %v14233_v42  ;;  %v10879_v12 = vadd.f32 %v10878_v20, %v10877_v56 }
 0x40e   :  { %v10992_v50 = vpop.f32.mrb[176].mxu0 }
 0x40f   :  { %v10993_v22 = vpop.f32.mrb[177].mxu0  ;;  %v9229_v16 = vadd.f32 %v10879_v12, %v14245_v33  ;;  %v14473_v38 = vadd.f32 %v10988_v6, %v9226_v63  ;;  %v14481_v6 = vadd.f32 %v10985_v3, %v9221_v59 }
 0x410   :  { %v10994_v37 = vadd.f32 %v10993_v22, %v10992_v50  ;;  %v10995_v55 = vpop.f32.mrb[178].mxu0 }
 0x411   :  { %v10996_v4 = vpop.f32.mrb[179].mxu0  ;;  %v10880_v57 = vpop.f32.mrb[144].mxu1  ;;  %v14479_v52 = vadd.f32 %v10991_v8, %v9229_v16 }
 0x412   :  { %v10997_v41 = vadd.f32 %v10996_v4, %v10995_v55  ;;  %v10881_v54 = vpop.f32.mrb[145].mxu1 }
 0x413   :  { %v10882_v42 = vadd.f32 %v10881_v54, %v10880_v57  ;;  %v10883_v15 = vpop.f32.mrb[146].mxu1 }
 0x414   :  { %v10884_v48 = vpop.f32.mrb[147].mxu1 }
 0x415   :  { %v9234_v31 = vadd.f32 %v10882_v42, %v14265_v27  ;;  %v10885_v33 = vadd.f32 %v10884_v48, %v10883_v15 }
 0x416   :  { %v10998_v34 = vpop.f32.mrb[180].mxu0 }
 0x417   :  { %v10999_v24 = vpop.f32.mrb[181].mxu0  ;;  %v9237_v7 = vadd.f32 %v10885_v33, %v14267_v1  ;;  %v14487_v8 = vadd.f32 %v10994_v37, %v9234_v31 }
 0x418   :  { %v11000_v18 = vadd.f32 %v10999_v24, %v10998_v34  ;;  %v11001_v53 = vpop.f32.mrb[182].mxu0 }
 0x419   :  { %v11002_v60 = vpop.f32.mrb[183].mxu0  ;;  %v10886_v2 = vpop.f32.mrb[148].mxu1  ;;  %v14491_v54 = vadd.f32 %v10997_v41, %v9237_v7 }
 0x41a   :  { %v11003_v44 = vadd.f32 %v11002_v60, %v11001_v53  ;;  %v10887_v11 = vpop.f32.mrb[149].mxu1 }
 0x41b   :  { %v10888_v56 = vadd.f32 %v10887_v11, %v10886_v2  ;;  %v10889_v20 = vpop.f32.mrb[150].mxu1 }
 0x41c   :  { %v10890_v27 = vpop.f32.mrb[151].mxu1 }
 0x41d   :  { %v9242_v63 = vadd.f32 %v10888_v56, %v14320_v51  ;;  %v10891_v12 = vadd.f32 %v10890_v27, %v10889_v20 }
 0x41e   :  { %v11004_v50 = vpop.f32.mrb[184].mxu0 }
 0x41f   :  { %v11005_v1 = vpop.f32.mrb[185].mxu0  ;;  %v9245_v22 = vadd.f32 %v10891_v12, %v14327_v47  ;;  %v14485_v62 = vadd.f32 %v11000_v18, %v9242_v63 }
 0x420   :  { %v11006_v55 = vadd.f32 %v11005_v1, %v11004_v50  ;;  %v11007_v36 = vpop.f32.mrb[186].mxu0 }
 0x421   :  { %v11008_v4 = vpop.f32.mrb[187].mxu0  ;;  %v10892_v16 = vpop.f32.mrb[152].mxu1  ;;  %v14489_v59 = vadd.f32 %v11003_v44, %v9245_v22 }
 0x422   :  { %v11009_v3 = vadd.f32 %v11008_v4, %v11007_v36  ;;  %v10893_v57 = vpop.f32.mrb[153].mxu1 }
 0x423   :  { %v10894_v51 = vadd.f32 %v10893_v57, %v10892_v16  ;;  %v10895_v42 = vpop.f32.mrb[154].mxu1 }
 0x424   :  { %v10896_v15 = vpop.f32.mrb[155].mxu1 }
 0x425   :  { %v9250_v48 = vadd.f32 %v10894_v51, %v14337_v5  ;;  %v10897_v47 = vadd.f32 %v10896_v15, %v10895_v42 }
 0x427   :  { %v9253_v33 = vadd.f32 %v10897_v47, %v14351_v61  ;;  %v14495_v34 = vadd.f32 %v11006_v55, %v9250_v48 }
 0x429   :  { %v10898_v24 = vpop.f32.mrb[156].mxu1  ;;  %v14497_v31 = vadd.f32 %v11009_v3, %v9253_v33 }
 0x42a   :  { %v10899_v37 = vpop.f32.mrb[157].mxu1 }
 0x42b   :  { %v10900_v18 = vadd.f32 %v10899_v37, %v10898_v24  ;;  %v10901_v53 = vpop.f32.mrb[158].mxu1 }
 0x42c   :  { %v11010_v60 = vpop.f32.mrb[188].mxu0  ;;  %v10902_v2 = vpop.f32.mrb[159].mxu1 }
 0x42d   :  { %v9258_v41 = vadd.f32 %v10900_v18, %v14366_v0  ;;  %v10903_v7 = vadd.f32 %v10902_v2, %v10901_v53  ;;  %v11011_v44 = vpop.f32.mrb[189].mxu0 }
 0x42e   :  { %v11012_v11 = vadd.f32 %v11011_v44, %v11010_v60  ;;  %v11013_v56 = vpop.f32.mrb[190].mxu0 }
 0x42f   :  { %v9261_v5 = vadd.f32 %v10903_v7, %v14370_v23  ;;  %v11014_v20 = vpop.f32.mrb[191].mxu0 }
 0x430   :  { %v11015_v61 = vadd.f32 %v11014_v20, %v11013_v56  ;;  %v14501_v27 = vadd.f32 %v11012_v11, %v9258_v41 }
 0x432   :  { %v14503_v63 = vadd.f32 %v11015_v61, %v9261_v5 }
 0x434   :  { %v11016_v12 = vpop.f32.mrb[192].mxu0  ;;  %v10904_v50 = vpop.f32.mrb[160].mxu1 }
 0x435   :  { %v11017_v1 = vpop.f32.mrb[193].mxu0  ;;  %v10905_v22 = vpop.f32.mrb[161].mxu1 }
 0x436   :  { %v11018_v55 = vadd.f32 %v11017_v1, %v11016_v12  ;;  %v10906_v36 = vadd.f32 %v10905_v22, %v10904_v50  ;;  %v11019_v4 = vpop.f32.mrb[194].mxu0  ;;  %v10907_v0 = vpop.f32.mrb[162].mxu1 }
 0x437   :  { %v11020_v16 = vpop.f32.mrb[195].mxu0  ;;  %v10908_v3 = vpop.f32.mrb[163].mxu1 }
 0x438   :  { %v9266_v57 = vadd.f32 %v10906_v36, %v14381_v45  ;;  %v11021_v51 = vadd.f32 %v11020_v16, %v11019_v4  ;;  %v10909_v23 = vadd.f32 %v10908_v3, %v10907_v0 }
 0x43a   :  { %v9269_v42 = vadd.f32 %v10909_v23, %v14383_v49  ;;  %v14507_v15 = vadd.f32 %v11018_v55, %v9266_v57 }
 0x43c   :  { %v11022_v48 = vpop.f32.mrb[196].mxu0  ;;  %v14509_v47 = vadd.f32 %v11021_v51, %v9269_v42 }
 0x43d   :  { %v11023_v33 = vpop.f32.mrb[197].mxu0 }
 0x43e   :  { %v10910_v24 = vpop.f32.mrb[164].mxu1  ;;  %v11024_v37 = vadd.f32 %v11023_v33, %v11022_v48  ;;  %v11025_v18 = vpop.f32.mrb[198].mxu0 }
 0x43f   :  { %v10911_v53 = vpop.f32.mrb[165].mxu1  ;;  %v11026_v60 = vpop.f32.mrb[199].mxu0 }
 0x440   :  { %v10912_v2 = vadd.f32 %v10911_v53, %v10910_v24  ;;  %v10913_v41 = vpop.f32.mrb[166].mxu1  ;;  %v11027_v7 = vadd.f32 %v11026_v60, %v11025_v18 }
 0x441   :  { %v10914_v44 = vpop.f32.mrb[167].mxu1 }
 0x442   :  { %v9274_v45 = vadd.f32 %v10912_v2, %v14391_v32  ;;  %v10915_v11 = vadd.f32 %v10914_v44, %v10913_v41 }
 0x444   :  { %v9277_v49 = vadd.f32 %v10915_v11, %v14393_v40  ;;  %v11028_v56 = vpop.f32.mrb[200].mxu0  ;;  %v14513_v5 = vadd.f32 %v11024_v37, %v9274_v45 }
 0x445   :  { %v11029_v20 = vpop.f32.mrb[201].mxu0 }
 0x446   :  { %v11030_v61 = vadd.f32 %v11029_v20, %v11028_v56  ;;  %v11031_v12 = vpop.f32.mrb[202].mxu0  ;;  %v14515_v50 = vadd.f32 %v11027_v7, %v9277_v49 }
 0x447   :  { %v11032_v1 = vpop.f32.mrb[203].mxu0 }
 0x448   :  { %v11033_v22 = vadd.f32 %v11032_v1, %v11031_v12 }
 0x449   :  { %v10916_v55 = vpop.f32.mrb[168].mxu1 }
 0x44a   :  { %v10917_v36 = vpop.f32.mrb[169].mxu1 }
 0x44b   :  { %v10918_v4 = vadd.f32 %v10917_v36, %v10916_v55  ;;  %v10919_v0 = vpop.f32.mrb[170].mxu1 }
 0x44c   :  { %v10920_v16 = vpop.f32.mrb[171].mxu1 }
 0x44d   :  { %v9282_v32 = vadd.f32 %v10918_v4, %v14401_v26  ;;  %v10921_v3 = vadd.f32 %v10920_v16, %v10919_v0  ;;  %v11034_v57 = vpop.f32.mrb[204].mxu0 }
 0x44e   :  { %v11035_v40 = vpop.f32.mrb[205].mxu0 }
 0x44f   :  { %v9285_v51 = vadd.f32 %v10921_v3, %v14403_v17  ;;  %v11036_v23 = vadd.f32 %v11035_v40, %v11034_v57  ;;  %v11037_v42 = vpop.f32.mrb[206].mxu0  ;;  %v14519_v48 = vadd.f32 %v11030_v61, %v9282_v32 }
 0x450   :  { %v11038_v33 = vpop.f32.mrb[207].mxu0 }
 0x451   :  { %v11039_v24 = vadd.f32 %v11038_v33, %v11037_v42  ;;  %v14521_v37 = vadd.f32 %v11033_v22, %v9285_v51 }
 0x454   :  { %v10922_v18 = vpop.f32.mrb[172].mxu1 }
 0x455   :  { %v10923_v53 = vpop.f32.mrb[173].mxu1 }
 0x456   :  { %v10924_v60 = vadd.f32 %v10923_v53, %v10922_v18  ;;  %v10925_v2 = vpop.f32.mrb[174].mxu1 }
 0x457   :  { %v10926_v41 = vpop.f32.mrb[175].mxu1 }
 0x458   :  { %v9290_v26 = vadd.f32 %v10924_v60, %v14409_v9  ;;  %v10927_v7 = vadd.f32 %v10926_v41, %v10925_v2  ;;  %v11040_v44 = vpop.f32.mrb[208].mxu0 }
 0x459   :  { %v11041_v45 = vpop.f32.mrb[209].mxu0 }
 0x45a   :  { %v9293_v17 = vadd.f32 %v10927_v7, %v14413_v43  ;;  %v11042_v11 = vadd.f32 %v11041_v45, %v11040_v44  ;;  %v11043_v49 = vpop.f32.mrb[210].mxu0  ;;  %v14525_v56 = vadd.f32 %v11036_v23, %v9290_v26 }
 0x45b   :  { %v11044_v20 = vpop.f32.mrb[211].mxu0 }
 0x45c   :  { %v11045_v61 = vadd.f32 %v11044_v20, %v11043_v49  ;;  %v14527_v12 = vadd.f32 %v11039_v24, %v9293_v17 }
 0x460   :  { %v10928_v1 = vpop.f32.mrb[176].mxu1 }
 0x461   :  { %v10929_v22 = vpop.f32.mrb[177].mxu1 }
 0x462   :  { %v10930_v55 = vadd.f32 %v10929_v22, %v10928_v1  ;;  %v10931_v36 = vpop.f32.mrb[178].mxu1 }
 0x463   :  { %v10932_v4 = vpop.f32.mrb[179].mxu1  ;;  %v11046_v0 = vpop.f32.mrb[212].mxu0 }
 0x464   :  { %v9298_v9 = vadd.f32 %v10930_v55, %v14421_v39  ;;  %v10933_v16 = vadd.f32 %v10932_v4, %v10931_v36  ;;  %v11047_v32 = vpop.f32.mrb[213].mxu0 }
 0x465   :  { %v11048_v3 = vadd.f32 %v11047_v32, %v11046_v0  ;;  %v11049_v43 = vpop.f32.mrb[214].mxu0 }
 0x466   :  { %v9301_v57 = vadd.f32 %v10933_v16, %v14425_v19  ;;  %v11050_v40 = vpop.f32.mrb[215].mxu0  ;;  %v14531_v51 = vadd.f32 %v11042_v11, %v9298_v9 }
 0x467   :  { %v11051_v23 = vadd.f32 %v11050_v40, %v11049_v43 }
 0x468   :  { %v14533_v42 = vadd.f32 %v11045_v61, %v9301_v57 }
 0x46c   :  { %v10934_v33 = vpop.f32.mrb[180].mxu1 }
 0x46d   :  { %v10935_v24 = vpop.f32.mrb[181].mxu1 }
 0x46e   :  { %v10936_v18 = vadd.f32 %v10935_v24, %v10934_v33  ;;  %v10937_v53 = vpop.f32.mrb[182].mxu1 }
 0x46f   :  { %v10938_v60 = vpop.f32.mrb[183].mxu1 }
 0x470   :  { %v9306_v2 = vadd.f32 %v10936_v18, %v14433_v28  ;;  %v10939_v39 = vadd.f32 %v10938_v60, %v10937_v53  ;;  %v11052_v41 = vpop.f32.mrb[216].mxu0  ;;  %v14558_v18 = vld [vmem:[%s14761_s6] ss:$0 sm:$0xff] }
 0x471   :  { %v11053_v26 = vpop.f32.mrb[217].mxu0 }
 0x472   :  { %v9309_v7 = vadd.f32 %v10939_v39, %v14437_v10  ;;  %v11054_v44 = vadd.f32 %v11053_v26, %v11052_v41  ;;  %v11055_v19 = vpop.f32.mrb[218].mxu0  ;;  %v14537_v45 = vadd.f32 %v11048_v3, %v9306_v2 }
 0x473   :  { %v11056_v17 = vpop.f32.mrb[219].mxu0 }
 0x474   :  { %v11057_v11 = vadd.f32 %v11056_v17, %v11055_v19  ;;  %v14539_v49 = vadd.f32 %v11051_v23, %v9309_v7 }
 0x477   :  { %v10940_v20 = vpop.f32.mrb[184].mxu1 }
 0x478   :  { %v10941_v61 = vpop.f32.mrb[185].mxu1 }
 0x479   :  { %v10942_v1 = vadd.f32 %v10941_v61, %v10940_v20  ;;  %v10943_v22 = vpop.f32.mrb[186].mxu1 }
 0x47a   :  { %v10944_v55 = vpop.f32.mrb[187].mxu1 }
 0x47b   :  { %v9314_v28 = vadd.f32 %v10942_v1, %v14449_v25  ;;  %v10945_v36 = vadd.f32 %v10944_v55, %v10943_v22  ;;  %v14552_v25 = vld [vmem:[%s14760_s5] ss:$0 sm:$0xff] }
 0x47d   :  { %v9317_v4 = vadd.f32 %v10945_v36, %v14451_v29  ;;  %v14543_v0 = vadd.f32 %v11054_v44, %v9314_v28 }
 0x47f   :  { %v10946_v10 = vpop.f32.mrb[188].mxu1  ;;  %v14545_v9 = vadd.f32 %v11057_v11, %v9317_v4 }
 0x480   :  { %v10947_v16 = vpop.f32.mrb[189].mxu1 }
 0x481   :  { %v10948_v32 = vadd.f32 %v10947_v16, %v10946_v10  ;;  %v10949_v3 = vpop.f32.mrb[190].mxu1 }
 0x482   :  { %v10950_v43 = vpop.f32.mrb[191].mxu1 }
 0x483   :  { %v9322_v57 = vadd.f32 %v10948_v32, %v14453_v35  ;;  %v10951_v40 = vadd.f32 %v10950_v43, %v10949_v3 }
 0x485   :  { %v9325_v23 = vadd.f32 %v10951_v40, %v14455_v13 }
 0x487   :  { %v11146_v33 = vpop.f32.mrb[192].mxu1 }
 0x488   :  { %v9532_v29 = vadd.f32 %v11146_v33, %v14464_v46  ;;  %v9523_v24 = vpop.f32.mrb[193].mxu1 }
 0x489   :  { %v9524_v53 = vadd.f32 %v9523_v24, %v14467_v30  ;;  %v11147_v35 = vpop.f32.mrb[194].mxu1 }
 0x48a   :  { %v11058_v60 = vpop.f32.mrb[220].mxu0  ;;  %v9659_v13 = vmul.f32 %v14552_v25, %v9532_v29  ;;  %v9535_v2 = vadd.f32 %v11147_v35, %v14469_v14  ;;  %v9526_v39 = vpop.f32.mrb[195].mxu1 }
 0x48b   :  { %v11059_v41 = vpop.f32.mrb[221].mxu0  ;;  %v9657_v26 = vmul.f32 %v14552_v25, %v9524_v53  ;;  %v9527_v46 = vadd.f32 %v9526_v39, %v14471_v21 }
 0x48c   :  { %v11060_v7 = vadd.f32 %v11059_v41, %v11058_v60  ;;  %v11061_v44 = vpop.f32.mrb[222].mxu0  ;;  %v9698_v19 = vadd.f32 %v14558_v18, %v9659_v13  ;;  %v9660_v17 = vmul.f32 %v14552_v25, %v9535_v2 }
 0x48d   :  { %v11062_v11 = vpop.f32.mrb[223].mxu0  ;;  %v9696_v30 = vadd.f32 %v14558_v18, %v9657_v26  ;;  %v9658_v20 = vmul.f32 %v14552_v25, %v9527_v46 }
 0x48e   :  { %v11063_v61 = vadd.f32 %v11062_v11, %v11061_v44  ;;  %v9730_v1 = vmax.f32 %v9698_v19, 0.0  ;;  %v9699_v14 = vadd.f32 %v14558_v18, %v9660_v17  ;;  %v14570_v22 = vadd.f32 %v11060_v7, %v9322_v57 }
 0x48f   :  { %v9728_v55 = vmax.f32 %v9696_v30, 0.0  ;;  %v9697_v21 = vadd.f32 %v14558_v18, %v9658_v20  ;;  %v11150_v28 = vpop.f32.mrb[196].mxu1 }
 0x490   :  { %9762 = vst [vmem:[%s14762_s7 + $0x10] sm:$0xff] %v9730_v1  ;;  %v9731_v36 = vmax.f32 %v9699_v14, 0.0  ;;  %v9548_v4 = vadd.f32 %v11150_v28, %v14473_v38  ;;  %v9539_v10 = vpop.f32.mrb[197].mxu1  ;;  %v14577_v16 = vadd.f32 %v11063_v61, %v9325_v23 }
 0x491   :  { %9760 = vst [vmem:[%s14762_s7] sm:$0xff] %v9728_v55  ;;  %v9729_v32 = vmax.f32 %v9697_v21, 0.0  ;;  %v9540_v3 = vadd.f32 %v9539_v10, %v14477_v58  ;;  %v11151_v43 = vpop.f32.mrb[198].mxu1 }
 0x492   :  { %9763 = vst [vmem:[%s14762_s7 + $0x18] sm:$0xff] %v9731_v36  ;;  %v9663_v57 = vmul.f32 %v14552_v25, %v9548_v4  ;;  %v9551_v40 = vadd.f32 %v11151_v43, %v14479_v52  ;;  %v9542_v38 = vpop.f32.mrb[199].mxu1 }
 0x493   :  { %9761 = vst [vmem:[%s14762_s7 + $0x8] sm:$0xff] %v9729_v32  ;;  %v9661_v23 = vmul.f32 %v14552_v25, %v9540_v3  ;;  %v9543_v33 = vadd.f32 %v9542_v38, %v14481_v6 }
 0x494   :  { %v9702_v58 = vadd.f32 %v14558_v18, %v9663_v57  ;;  %v9664_v29 = vmul.f32 %v14552_v25, %v9551_v40 }
 0x495   :  { %v9700_v24 = vadd.f32 %v14558_v18, %v9661_v23  ;;  %v9662_v53 = vmul.f32 %v14552_v25, %v9543_v33 }
 0x496   :  { %v9734_v35 = vmax.f32 %v9702_v58, 0.0  ;;  %v9703_v52 = vadd.f32 %v14558_v18, %v9664_v29 }
 0x497   :  { %v9732_v60 = vmax.f32 %v9700_v24, 0.0  ;;  %v9701_v13 = vadd.f32 %v14558_v18, %v9662_v53  ;;  %v11154_v2 = vpop.f32.mrb[200].mxu1 }
 0x498   :  { %9766 = vst [vmem:[%s14762_s7 + $0x30] sm:$0xff] %v9734_v35  ;;  %v9735_v6 = vmax.f32 %v9703_v52, 0.0  ;;  %v9564_v39 = vadd.f32 %v11154_v2, %v14485_v62  ;;  %v9555_v41 = vpop.f32.mrb[201].mxu1 }
 0x499   :  { %9764 = vst [vmem:[%s14762_s7 + $0x20] sm:$0xff] %v9732_v60  ;;  %v9733_v26 = vmax.f32 %v9701_v13, 0.0  ;;  %v9556_v46 = vadd.f32 %v9555_v41, %v14487_v8  ;;  %v11155_v7 = vpop.f32.mrb[202].mxu1 }
 0x49a   :  { %9767 = vst [vmem:[%s14762_s7 + $0x38] sm:$0xff] %v9735_v6  ;;  %v9667_v44 = vmul.f32 %v14552_v25, %v9564_v39  ;;  %v9567_v19 = vadd.f32 %v11155_v7, %v14489_v59  ;;  %v9558_v17 = vpop.f32.mrb[203].mxu1 }
 0x49b   :  { %9765 = vst [vmem:[%s14762_s7 + $0x28] sm:$0xff] %v9733_v26  ;;  %v9665_v62 = vmul.f32 %v14552_v25, %v9556_v46  ;;  %v9559_v11 = vadd.f32 %v9558_v17, %v14491_v54 }
 0x49c   :  { %v9706_v8 = vadd.f32 %v14558_v18, %v9667_v44  ;;  %v9668_v30 = vmul.f32 %v14552_v25, %v9567_v19 }
 0x49d   :  { %v9704_v20 = vadd.f32 %v14558_v18, %v9665_v62  ;;  %v9666_v61 = vmul.f32 %v14552_v25, %v9559_v11 }
 0x49e   :  { %v9738_v1 = vmax.f32 %v9706_v8, 0.0  ;;  %v9707_v59 = vadd.f32 %v14558_v18, %v9668_v30 }
 0x49f   :  { %v9736_v14 = vmax.f32 %v9704_v20, 0.0  ;;  %v9705_v55 = vadd.f32 %v14558_v18, %v9666_v61  ;;  %v11158_v21 = vpop.f32.mrb[204].mxu1 }
 0x4a0   :  { %9770 = vst [vmem:[%s14762_s7 + $0x50] sm:$0xff] %v9738_v1  ;;  %v9739_v54 = vmax.f32 %v9707_v59, 0.0  ;;  %v9580_v28 = vadd.f32 %v11158_v21, %v14501_v27  ;;  %v9571_v36 = vpop.f32.mrb[205].mxu1 }
 0x4a1   :  { %9768 = vst [vmem:[%s14762_s7 + $0x40] sm:$0xff] %v9736_v14  ;;  %v9737_v4 = vmax.f32 %v9705_v55, 0.0  ;;  %v9572_v10 = vadd.f32 %v9571_v36, %v14495_v34  ;;  %v11159_v32 = vpop.f32.mrb[206].mxu1 }
 0x4a2   :  { %9771 = vst [vmem:[%s14762_s7 + $0x58] sm:$0xff] %v9739_v54  ;;  %v9671_v3 = vmul.f32 %v14552_v25, %v9580_v28  ;;  %v9583_v43 = vadd.f32 %v11159_v32, %v14503_v63  ;;  %v9574_v57 = vpop.f32.mrb[207].mxu1 }
 0x4a3   :  { %9769 = vst [vmem:[%s14762_s7 + $0x48] sm:$0xff] %v9737_v4  ;;  %v9669_v27 = vmul.f32 %v14552_v25, %v9572_v10  ;;  %v9575_v40 = vadd.f32 %v9574_v57, %v14497_v31 }
 0x4a4   :  { %v9710_v34 = vadd.f32 %v14558_v18, %v9671_v3  ;;  %v9672_v38 = vmul.f32 %v14552_v25, %v9583_v43 }
 0x4a5   :  { %v9708_v23 = vadd.f32 %v14558_v18, %v9669_v27  ;;  %v9670_v33 = vmul.f32 %v14552_v25, %v9575_v40 }
 0x4a6   :  { %v9742_v58 = vmax.f32 %v9710_v34, 0.0  ;;  %v9711_v63 = vadd.f32 %v14558_v18, %v9672_v38 }
 0x4a7   :  { %v9740_v29 = vmax.f32 %v9708_v23, 0.0  ;;  %v9709_v24 = vadd.f32 %v14558_v18, %v9670_v33  ;;  %v11162_v53 = vpop.f32.mrb[208].mxu1 }
 0x4a8   :  { %9774 = vst [vmem:[%s14762_s7 + $0x70] sm:$0xff] %v9742_v58  ;;  %v9743_v31 = vmax.f32 %v9711_v63, 0.0  ;;  %v9596_v35 = vadd.f32 %v11162_v53, %v14513_v5  ;;  %v9587_v52 = vpop.f32.mrb[209].mxu1 }
 0x4a9   :  { %9772 = vst [vmem:[%s14762_s7 + $0x60] sm:$0xff] %v9740_v29  ;;  %v9741_v60 = vmax.f32 %v9709_v24, 0.0  ;;  %v9588_v13 = vadd.f32 %v9587_v52, %v14507_v15  ;;  %v11163_v2 = vpop.f32.mrb[210].mxu1 }
 0x4aa   :  { %9775 = vst [vmem:[%s14762_s7 + $0x78] sm:$0xff] %v9743_v31  ;;  %v9675_v6 = vmul.f32 %v14552_v25, %v9596_v35  ;;  %v9599_v39 = vadd.f32 %v11163_v2, %v14515_v50  ;;  %v9590_v41 = vpop.f32.mrb[211].mxu1 }
 0x4ab   :  { %9773 = vst [vmem:[%s14762_s7 + $0x68] sm:$0xff] %v9741_v60  ;;  %v9673_v5 = vmul.f32 %v14552_v25, %v9588_v13  ;;  %v9591_v26 = vadd.f32 %v9590_v41, %v14509_v47 }
 0x4ac   :  { %v9714_v15 = vadd.f32 %v14558_v18, %v9675_v6  ;;  %v9676_v46 = vmul.f32 %v14552_v25, %v9599_v39 }
 0x4ad   :  { %v9712_v7 = vadd.f32 %v14558_v18, %v9673_v5  ;;  %v9674_v44 = vmul.f32 %v14552_v25, %v9591_v26 }
 0x4ae   :  { %v9746_v19 = vmax.f32 %v9714_v15, 0.0  ;;  %v9715_v50 = vadd.f32 %v14558_v18, %v9676_v46 }
 0x4af   :  { %v9744_v17 = vmax.f32 %v9712_v7, 0.0  ;;  %v9713_v62 = vadd.f32 %v14558_v18, %v9674_v44  ;;  %v11166_v11 = vpop.f32.mrb[212].mxu1 }
 0x4b0   :  { %9778 = vst [vmem:[%s14762_s7 + $0x90] sm:$0xff] %v9746_v19  ;;  %v9747_v47 = vmax.f32 %v9715_v50, 0.0  ;;  %v9612_v8 = vadd.f32 %v11166_v11, %v14525_v56  ;;  %v9603_v30 = vpop.f32.mrb[213].mxu1 }
 0x4b1   :  { %9776 = vst [vmem:[%s14762_s7 + $0x80] sm:$0xff] %v9744_v17  ;;  %v9745_v20 = vmax.f32 %v9713_v62, 0.0  ;;  %v9604_v61 = vadd.f32 %v9603_v30, %v14519_v48  ;;  %v11167_v1 = vpop.f32.mrb[214].mxu1 }
 0x4b2   :  { %9779 = vst [vmem:[%s14762_s7 + $0x98] sm:$0xff] %v9747_v47  ;;  %v9679_v59 = vmul.f32 %v14552_v25, %v9612_v8  ;;  %v9615_v14 = vadd.f32 %v11167_v1, %v14527_v12  ;;  %v9606_v55 = vpop.f32.mrb[215].mxu1 }
 0x4b3   :  { %9777 = vst [vmem:[%s14762_s7 + $0x88] sm:$0xff] %v9745_v20  ;;  %v9677_v56 = vmul.f32 %v14552_v25, %v9604_v61  ;;  %v9607_v21 = vadd.f32 %v9606_v55, %v14521_v37 }
 0x4b4   :  { %v9718_v48 = vadd.f32 %v14558_v18, %v9679_v59  ;;  %v9680_v54 = vmul.f32 %v14552_v25, %v9615_v14 }
 0x4b5   :  { %v9716_v28 = vadd.f32 %v14558_v18, %v9677_v56  ;;  %v9678_v36 = vmul.f32 %v14552_v25, %v9607_v21 }
 0x4b6   :  { %v9750_v4 = vmax.f32 %v9718_v48, 0.0  ;;  %v9719_v12 = vadd.f32 %v14558_v18, %v9680_v54 }
 0x4b7   :  { %v9748_v10 = vmax.f32 %v9716_v28, 0.0  ;;  %v9717_v32 = vadd.f32 %v14558_v18, %v9678_v36  ;;  %v11170_v3 = vpop.f32.mrb[216].mxu1 }
 0x4b8   :  { %9782 = vst [vmem:[%s14762_s7 + $0xb0] sm:$0xff] %v9750_v4  ;;  %v9751_v37 = vmax.f32 %v9719_v12, 0.0  ;;  %v9628_v43 = vadd.f32 %v11170_v3, %v14537_v45  ;;  %v9619_v57 = vpop.f32.mrb[217].mxu1 }
 0x4b9   :  { %9780 = vst [vmem:[%s14762_s7 + $0xa0] sm:$0xff] %v9748_v10  ;;  %v9749_v27 = vmax.f32 %v9717_v32, 0.0  ;;  %v9620_v40 = vadd.f32 %v9619_v57, %v14531_v51  ;;  %v11171_v34 = vpop.f32.mrb[218].mxu1 }
 0x4ba   :  { %9783 = vst [vmem:[%s14762_s7 + $0xb8] sm:$0xff] %v9751_v37  ;;  %v9683_v38 = vmul.f32 %v14552_v25, %v9628_v43  ;;  %v9631_v23 = vadd.f32 %v11171_v34, %v14539_v49  ;;  %v9622_v33 = vpop.f32.mrb[219].mxu1 }
 0x4bb   :  { %9781 = vst [vmem:[%s14762_s7 + $0xa8] sm:$0xff] %v9749_v27  ;;  %v9681_v45 = vmul.f32 %v14552_v25, %v9620_v40  ;;  %v9623_v58 = vadd.f32 %v9622_v33, %v14533_v42 }
 0x4bc   :  { %v9722_v51 = vadd.f32 %v14558_v18, %v9683_v38  ;;  %v9684_v63 = vmul.f32 %v14552_v25, %v9631_v23 }
 0x4bd   :  { %v9720_v29 = vadd.f32 %v14558_v18, %v9681_v45  ;;  %v9682_v24 = vmul.f32 %v14552_v25, %v9623_v58 }
 0x4be   :  { %v9754_v53 = vmax.f32 %v9722_v51, 0.0  ;;  %v9723_v49 = vadd.f32 %v14558_v18, %v9684_v63 }
 0x4bf   :  { %v9752_v31 = vmax.f32 %v9720_v29, 0.0  ;;  %v9721_v35 = vadd.f32 %v14558_v18, %v9682_v24  ;;  %v11174_v52 = vpop.f32.mrb[220].mxu1 }
 0x4c0   :  { %9786 = vst [vmem:[%s14762_s7 + $0xd0] sm:$0xff] %v9754_v53  ;;  %v9755_v42 = vmax.f32 %v9723_v49, 0.0  ;;  %v9644_v60 = vadd.f32 %v11174_v52, %v14570_v22  ;;  %v9635_v13 = vpop.f32.mrb[221].mxu1 }
 0x4c1   :  { %9784 = vst [vmem:[%s14762_s7 + $0xc0] sm:$0xff] %v9752_v31  ;;  %v9753_v2 = vmax.f32 %v9721_v35, 0.0  ;;  %v9636_v6 = vadd.f32 %v9635_v13, %v14543_v0  ;;  %v11175_v39 = vpop.f32.mrb[222].mxu1 }
 0x4c2   :  { %9787 = vst [vmem:[%s14762_s7 + $0xd8] sm:$0xff] %v9755_v42  ;;  %v9687_v41 = vmul.f32 %v14552_v25, %v9644_v60  ;;  %v9647_v5 = vadd.f32 %v11175_v39, %v14577_v16  ;;  %v9638_v26 = vpop.f32.mrb[223].mxu1 }
 0x4c3   :  { %9785 = vst [vmem:[%s14762_s7 + $0xc8] sm:$0xff] %v9753_v2  ;;  %v9685_v22 = vmul.f32 %v14552_v25, %v9636_v6  ;;  %v9639_v15 = vadd.f32 %v9638_v26, %v14545_v9 }
 0x4c4   :  { %v9726_v0 = vadd.f32 %v14558_v18, %v9687_v41  ;;  %v9688_v46 = vmul.f32 %v14552_v25, %v9647_v5 }
 0x4c5   :  { %v9724_v7 = vadd.f32 %v14558_v18, %v9685_v22  ;;  %v9686_v44 = vmul.f32 %v14552_v25, %v9639_v15 }
 0x4c6   :  { %v9758_v19 = vmax.f32 %v9726_v0, 0.0  ;;  %v9727_v16 = vadd.f32 %v14558_v18, %v9688_v46 }
 0x4c7   :  { %v9756_v50 = vmax.f32 %v9724_v7, 0.0  ;;  %v9725_v17 = vadd.f32 %v14558_v18, %v9686_v44 }
 0x4c8   :  { %9790 = vst [vmem:[%s14762_s7 + $0xf0] sm:$0xff] %v9758_v19  ;;  %v9759_v62 = vmax.f32 %v9727_v16, 0.0 }
 0x4c9   :  { %9788 = vst [vmem:[%s14762_s7 + $0xe0] sm:$0xff] %v9756_v50  ;;  %v9757_v9 = vmax.f32 %v9725_v17, 0.0 }
 0x4ca   :  { %9791 = vst [vmem:[%s14762_s7 + $0xf8] sm:$0xff] %v9759_v62 }
 0x4cb   :  { %9789 = vst [vmem:[%s14762_s7 + $0xe8] sm:$0xff] %v9757_v9 }

</bundles_post_ra>
